<compile_context>
chip_gen: v5e
topology: v5e:2x2
jax: 0.10.0
libtpu: 0.0.40
codegen_flags: <defaults>
</compile_context>

<pallas_src>
import functools

import jax
import jax.numpy as jnp
from jax.experimental import pallas as pl
from jax.experimental.pallas import tpu as pltpu

EPS = 1e-5
LANE = 128


def _round_up(x, m):
    return (x + m - 1) // m * m


def _pick_tile_m(m, hw):
    # Largest power-of-two row tile that divides M and leaves >= 2 grid steps
    # (so the pipeline is exercised even at toy sizes).  Fall back to one
    # sample's worth of rows (hw always divides M by construction).
    for t in (4096, 2048, 1024, 512, 256, 128, 64, 32, 16, 8):
        if m % t == 0 and m // t >= 2:
            return t
    return hw


@functools.lru_cache(maxsize=None)
def _vmem_limit_bytes():
    # Per-generation VMEM budget: ~75% of physical, capped at 100 MiB
    # (v5e/v6e 128 MiB parts), floor 32 MiB; defaults to v7x-safe if the
    # hardware query is unavailable.
    cap = 64 * 1024 * 1024
    try:
        info_fn = getattr(pltpu, "get_tpu_info", None)
        if info_fn is not None:
            cap = int(getattr(info_fn(), "vmem_capacity_bytes", cap))
    except Exception:
        pass
    return max(32 * 1024 * 1024, min(cap * 3 // 4, 100 * 1024 * 1024))


def _compiler_params(semantics):
    return pltpu.CompilerParams(dimension_semantics=semantics,
                                vmem_limit_bytes=_vmem_limit_bytes())


# ---------------------------------------------------------------- kernels ---

def _conv1x1_kernel(x_ref, w_ref, b_ref, o_ref):
    # x: (tile_m, cin_p) f32, w: (cin_p, co_p) compute dtype, b: (1, co_p) f32
    a = x_ref[...].astype(w_ref.dtype)
    y = jnp.dot(a, w_ref[...], preferred_element_type=jnp.float32) + b_ref[...]
    o_ref[...] = y.astype(o_ref.dtype)


def _conv3x3_stats_kernel(x_ref, w_ref, aff_ref, conv_ref, stat_ref,
                          xpad_ref, col_ref, *, h, w, pre_act):
    """One grid step = one sample:
       (optional fused BN+ReLU pre-affine) -> zero-halo pad in VMEM ->
       im2col slab in VMEM -> single big-K MXU matmul -> per-sample BN partial
       statistics.  All state is rewritten every step, so the grid axis is
       safe to mark "parallel" (v7x megacore)."""
    co_p = w_ref.shape[-1]
    hw = h * w

    x = x_ref[0].astype(jnp.float32)                       # (h, w, co_p)
    if pre_act:                                            # fused BN1 + ReLU
        scale = aff_ref[0:1, :].reshape(1, 1, co_p)
        shift = aff_ref[1:2, :].reshape(1, 1, co_p)
        x = jnp.maximum(x * scale + shift, 0.0)

    # 1-pixel zero halo, built on-chip (no HBM pad pass).
    xpad_ref[...] = jnp.zeros_like(xpad_ref)
    xpad_ref[1:h + 1, 1:w + 1, :] = x.astype(xpad_ref.dtype)

    # Fused im2col: nine shifted views -> one (hw, 9*co_p) slab in VMEM.
    for k in range(9):
        dy, dx = k // 3, k % 3
        patch = xpad_ref[dy:dy + h, dx:dx + w, :]
        col_ref[:, k * co_p:(k + 1) * co_p] = patch.reshape(hw, co_p)

    # Single big-K matmul (K = 9*co_p); accumulation stays inside the MXU.
    conv = jnp.dot(col_ref[...], w_ref[...],
                   preferred_element_type=jnp.float32)      # (hw, co_p) f32
    conv_ref[...] = conv.astype(conv_ref.dtype)

    # Per-sample partial BN statistics (folded with gamma/beta outside).
    st = jnp.concatenate([jnp.sum(conv, axis=0, keepdims=True),
                          jnp.sum(conv * conv, axis=0, keepdims=True)],
                         axis=0)                             # (2, co_p)
    stat_ref[...] = st.reshape(1, 2, co_p)


def _bn_add_relu_kernel(v_ref, aff_ref, r_ref, o_ref):
    # BN2 normalize + residual add + ReLU; all math in f32 (no bf16 VPU on v5e).
    aff = aff_ref[...]
    v = v_ref[...].astype(jnp.float32)
    r = r_ref[...].astype(jnp.float32)
    o_ref[...] = jnp.maximum(v * aff[0:1, :] + aff[1:2, :] + r, 0.0)


# ---------------------------------------------------------- pallas wrappers ---

def _conv1x1(x2d, w, b, tile_m, out_dtype):
    m, cin_p = x2d.shape
    co_p = w.shape[1]
    return pl.pallas_call(
        _conv1x1_kernel,
        out_shape=jax.ShapeDtypeStruct((m, co_p), out_dtype),
        grid=(m // tile_m,),
        in_specs=[pl.BlockSpec((tile_m, cin_p), lambda i: (i, 0)),
                  pl.BlockSpec((cin_p, co_p), lambda i: (0, 0)),
                  pl.BlockSpec((1, co_p), lambda i: (0, 0))],
        out_specs=pl.BlockSpec((tile_m, co_p), lambda i: (i, 0)),
        compiler_params=_compiler_params(("parallel",)),
    )(x2d, w, b)


def _conv3x3_stats(y2d, w_big, aff, n, h, w, compute_dtype, out_dtype,
                   pre_act):
    m, co_p = y2d.shape
    hw = h * w
    hp, wp = h + 2, _round_up(w + 2, 8)        # sublane-aligned padded width
    y4d = y2d.reshape(n, h, w, co_p)           # row-major: metadata-only
    kernel = functools.partial(_conv3x3_stats_kernel, h=h, w=w,
                               pre_act=pre_act)
    return pl.pallas_call(
        kernel,
        out_shape=(jax.ShapeDtypeStruct((m, co_p), out_dtype),
                   jax.ShapeDtypeStruct((n, 2, co_p), jnp.float32)),
        grid=(n,),
        in_specs=[pl.BlockSpec((1, h, w, co_p), lambda i: (i, 0, 0, 0)),
                  pl.BlockSpec((9 * co_p, co_p), lambda i: (0, 0)),
                  pl.BlockSpec((2, co_p), lambda i: (0, 0))],
        out_specs=(pl.BlockSpec((hw, co_p), lambda i: (i, 0)),
                   pl.BlockSpec((1, 2, co_p), lambda i: (i, 0, 0))),
        scratch_shapes=[pltpu.VMEM((hp, wp, co_p), compute_dtype),
                        pltpu.VMEM((hw, 9 * co_p), compute_dtype)],
        compiler_params=_compiler_params(("parallel",)),
    )(y4d, w_big, aff)


def _bn_add_relu(v2d, aff, resid, tile_m):
    m, co_p = v2d.shape
    tile = pl.BlockSpec((tile_m, co_p), lambda i: (i, 0))
    return pl.pallas_call(
        _bn_add_relu_kernel,
        out_shape=jax.ShapeDtypeStruct((m, co_p), jnp.float32),
        grid=(m // tile_m,),
        in_specs=[tile, pl.BlockSpec((2, co_p), lambda i: (0, 0)), tile],
        out_specs=tile,
        compiler_params=_compiler_params(("parallel",)),
    )(v2d, aff, resid)


def _fold_stats(stats, gamma_p, beta_p, m_total):
    # Tiny (n, 2, co_p) reduction + affine fold in plain XLA, f32 throughout.
    total = jnp.sum(stats, axis=0)                       # (2, co_p)
    mean = total[0] / m_total
    var = jnp.maximum(total[1] / m_total - mean * mean, 0.0)
    inv_std = jax.lax.rsqrt(var + EPS)
    scale = gamma_p * inv_std
    shift = beta_p - mean * scale
    return jnp.stack([scale, shift], axis=0)             # (2, co_p) f32


# ------------------------------------------------------------------ forward ---

def residual_block_forward(x_nchw, params, compute_dtype=jnp.bfloat16):
    n, cin, h, w = x_nchw.shape
    co = params["w1x1"].shape[1]
    cin_p = _round_up(cin, 8)          # sublane pad only (skinny K, no 128 pad)
    co_p = _round_up(co, LANE)         # lane-dense output channels
    m = n * h * w
    hw = h * w
    tile_m = _pick_tile_m(m, hw)
    # bf16 intermediates in HBM when the MXU runs in bf16; BN math stays f32.
    store_dtype = jnp.bfloat16 if compute_dtype == jnp.bfloat16 else jnp.float32

    # ---- lane-dense (channel-padded) parameters -----------------------------
    w1 = jnp.zeros((cin_p, co_p), jnp.float32)
    w1 = w1.at[:cin, :co].set(params["w1x1"]).astype(compute_dtype)
    b1 = jnp.zeros((1, co_p), jnp.float32).at[:, :co].set(params["b1x1"])

    def pad_taps(hwio):                # (3,3,co,co) -> (9*co_p, co_p), big-K
        wt = jnp.zeros((9, co_p, co_p), jnp.float32)
        wt = wt.at[:, :co, :co].set(hwio.reshape(9, co, co))
        return wt.reshape(9 * co_p, co_p).astype(compute_dtype)

    def pad_vec(v):                    # (1, co) -> (co_p,)
        return jnp.zeros((co_p,), jnp.float32).at[:co].set(v.reshape(-1))

    w3a, w3b = pad_taps(params["hwio1"]), pad_taps(params["hwio2"])
    g1, be1 = pad_vec(params["gamma1"]), pad_vec(params["beta1"])
    g2, be2 = pad_vec(params["gamma2"]), pad_vec(params["beta2"])

    # ---- input: NCHW -> channels-last (M, cin_p) -----------------------------
    x2d = jnp.transpose(x_nchw, (0, 2, 3, 1)).reshape(m, cin)
    if cin_p != cin:
        x2d = jnp.pad(x2d, ((0, 0), (0, cin_p - cin)))

    # conv1x1 (tiled over M); its output is also the residual.
    y2d = _conv1x1(x2d, w1, b1, tile_m, store_dtype)

    # conv1 (3x3: halo + im2col + big-K matmul in VMEM) + per-sample BN1 stats.
    dummy_aff = jnp.zeros((2, co_p), jnp.float32)
    v1, st1 = _conv3x3_stats(y2d, w3a, dummy_aff, n, h, w,
                             compute_dtype, store_dtype, pre_act=False)
    aff1 = _fold_stats(st1, g1, be1, m)

    # conv2 with BN1 normalize + ReLU fused in as a pre-affine; BN2 stats.
    v2, st2 = _conv3x3_stats(v1, w3b, aff1, n, h, w,
                             compute_dtype, store_dtype, pre_act=True)
    aff2 = _fold_stats(st2, g2, be2, m)

    # BN2 normalize + residual add + ReLU (tiled over M).
    o2d = _bn_add_relu(v2, aff2, y2d, tile_m)

    out = o2d[:, :co].reshape(n, h, w, co)
    return jnp.transpose(out, (0, 3, 1, 2))


# ---------------------------------------------------------------- reference ---

def _reference(x, params):
    """Pure-JAX NCHW reference mirroring the PyTorch module (train-mode BN)."""
    cin, co = params["w1x1"].shape

    def bn(v, gamma, beta):
        mean = jnp.mean(v, axis=(0, 2, 3), keepdims=True)
        var = jnp.mean((v - mean) ** 2, axis=(0, 2, 3), keepdims=True)
        return ((v - mean) / jnp.sqrt(var + EPS)) * gamma.reshape(1, -1, 1, 1) \
               + beta.reshape(1, -1, 1, 1)

    dn = ("NCHW", "OIHW", "NCHW")
    w1 = params["w1x1"].T.reshape(co, cin, 1, 1)
    y = jax.lax.conv_general_dilated(x, w1, (1, 1), "VALID",
                                     dimension_numbers=dn)
    y = y + params["b1x1"].reshape(1, co, 1, 1)
    residual = y

    wc1 = jnp.transpose(params["hwio1"], (3, 2, 0, 1))   # HWIO -> OIHW
    z = jax.lax.conv_general_dilated(y, wc1, (1, 1), ((1, 1), (1, 1)),
                                     dimension_numbers=dn)
    z = jnp.maximum(bn(z, params["gamma1"], params["beta1"]), 0.0)

    wc2 = jnp.transpose(params["hwio2"], (3, 2, 0, 1))
    o = jax.lax.conv_general_dilated(z, wc2, (1, 1), ((1, 1), (1, 1)),
                                     dimension_numbers=dn)
    o = bn(o, params["gamma2"], params["beta2"]) + residual
    return jnp.maximum(o, 0.0)


# -------------------------------------------------------------------- main ---

if __name__ == "__main__":
    N, CIN, CO, H, W = 2, 4, 8, 16, 16

    key = jax.random.PRNGKey(0)
    ks = jax.random.split(key, 9)
    x = jax.random.normal(ks[0], (N, CIN, H, W), jnp.float32)

    params = {
        "w1x1": 0.1 * jax.random.normal(ks[1], (CIN, CO), jnp.float32),
        "b1x1": 0.1 * jax.random.normal(ks[2], (1, CO), jnp.float32),
        "hwio1": 0.1 * jax.random.normal(ks[3], (3, 3, CO, CO), jnp.float32),
        "hwio2": 0.1 * jax.random.normal(ks[4], (3, 3, CO, CO), jnp.float32),
        "gamma1": 1.0 + 0.1 * jax.random.normal(ks[5], (1, CO), jnp.float32),
        "beta1": 0.1 * jax.random.normal(ks[6], (1, CO), jnp.float32),
        "gamma2": 1.0 + 0.1 * jax.random.normal(ks[7], (1, CO), jnp.float32),
        "beta2": 0.1 * jax.random.normal(ks[8], (1, CO), jnp.float32),
    }

    fwd = jax.jit(residual_block_forward, static_argnames=("compute_dtype",))
    ref = _reference(x, params)

    # f32 path (tight tolerance against the f32 reference).
    out_f32 = jax.block_until_ready(fwd(x, params, compute_dtype=jnp.float32))
    assert out_f32.shape == (N, CO, H, W), out_f32.shape
    assert jnp.allclose(out_f32, ref, atol=2e-3, rtol=2e-3), \
        float(jnp.max(jnp.abs(out_f32 - ref)))

    # bf16 MXU operands + bf16 HBM intermediates (fast path on every
    # generation -- v5e's MXU is bf16-native too); BN math stays f32.
    out_bf16 = jax.block_until_ready(fwd(x, params, compute_dtype=jnp.bfloat16))
    assert jnp.allclose(out_bf16, ref, atol=5e-2, rtol=5e-2), \
        float(jnp.max(jnp.abs(out_bf16 - ref)))

    print("KERNEL_OK")
</pallas_src>

<mosaic_0001>
module attributes {stable_mosaic.version = 11 : i64} {
  func.func @_conv1x1_kernel(%arg0: i32, %arg1: memref<256x8xf32, #tpu.memory_space<vmem>>, %arg2: memref<8x128xf32, #tpu.memory_space<vmem>>, %arg3: memref<1x128xf32, #tpu.memory_space<vmem>>, %arg4: memref<256x128xf32, #tpu.memory_space<vmem>>) attributes {dimension_semantics = [#tpu.dimension_semantics<parallel>], iteration_bounds = array<i64: 2>, scalar_prefetch = 0 : i64, scratch_operands = 0 : i64, tpu.core_type = #tpu.core_type<tc>, window_params = [{transform_indices = @transform_0, window_bounds = array<i64: 256, 8>}, {pipeline_mode = #tpu.pipeline_mode<synchronous>, transform_indices = @transform_1, window_bounds = array<i64: 8, 128>}, {pipeline_mode = #tpu.pipeline_mode<synchronous>, transform_indices = @transform_2, window_bounds = array<i64: 1, 128>}, {transform_indices = @transform_3, window_bounds = array<i64: 256, 128>}]} {
    %c0 = arith.constant 0 : index
    %c0_0 = arith.constant 0 : index
    %0 = vector.load %arg1[%c0, %c0_0] : memref<256x8xf32, #tpu.memory_space<vmem>>, vector<256x8xf32>
    %c0_1 = arith.constant 0 : index
    %c0_2 = arith.constant 0 : index
    %1 = vector.load %arg2[%c0_1, %c0_2] : memref<8x128xf32, #tpu.memory_space<vmem>>, vector<8x128xf32>
    %cst = arith.constant dense<0.000000e+00> : vector<256x128xf32>
    %2 = tpu.matmul %0, %1, %cst {dimension_numbers = #tpu.dot_dimension_numbers<[1], [0], [0], [1], [0, 0, 1, 1], [], []>} : vector<256x8xf32>, vector<8x128xf32>, vector<256x128xf32> -> vector<256x128xf32>
    %c0_3 = arith.constant 0 : index
    %c0_4 = arith.constant 0 : index
    %3 = vector.load %arg3[%c0_3, %c0_4] : memref<1x128xf32, #tpu.memory_space<vmem>>, vector<1x128xf32>
    %4 = vector.broadcast %3 : vector<1x128xf32> to vector<256x128xf32>
    %5 = arith.addf %2, %4 : vector<256x128xf32>
    %c0_5 = arith.constant 0 : index
    %c0_6 = arith.constant 0 : index
    %6 = vector.load %arg4[%c0_5, %c0_6] : memref<256x128xf32, #tpu.memory_space<vmem>>, vector<256x128xf32>
    tpu.vector_store %arg4[%c0_5, %c0_6], %5 {strides = array<i32>} : memref<256x128xf32, #tpu.memory_space<vmem>>, vector<256x128xf32>,
    return
  }
  func.func @transform_0(%arg0: i32) -> (i32, i32) {
    %c0_i32 = arith.constant 0 : i32
    %c0_i32_0 = arith.constant 0 : i32
    return %arg0, %c0_i32 : i32, i32
  }
  func.func @transform_1(%arg0: i32) -> (i32, i32) {
    %c0_i32 = arith.constant 0 : i32
    %c0_i32_0 = arith.constant 0 : i32
    %c0_i32_1 = arith.constant 0 : i32
    return %c0_i32, %c0_i32_0 : i32, i32
  }
  func.func @transform_2(%arg0: i32) -> (i32, i32) {
    %c0_i32 = arith.constant 0 : i32
    %c0_i32_0 = arith.constant 0 : i32
    %c0_i32_1 = arith.constant 0 : i32
    return %c0_i32, %c0_i32_0 : i32, i32
  }
  func.func @transform_3(%arg0: i32) -> (i32, i32) {
    %c0_i32 = arith.constant 0 : i32
    %c0_i32_0 = arith.constant 0 : i32
    return %arg0, %c0_i32 : i32, i32
  }
}

module attributes {stable_mosaic.version = 11 : i64} {
  func.func @_conv3x3_stats_kernel(%arg0: i32, %arg1: memref<1x16x16x128xf32, #tpu.memory_space<vmem>>, %arg2: memref<1152x128xf32, #tpu.memory_space<vmem>>, %arg3: memref<2x128xf32, #tpu.memory_space<vmem>>, %arg4: memref<256x128xf32, #tpu.memory_space<vmem>>, %arg5: memref<1x2x128xf32, #tpu.memory_space<vmem>>, %arg6: memref<18x24x128xf32, #tpu.memory_space<vmem>>, %arg7: memref<256x1152xf32, #tpu.memory_space<vmem>>) attributes {dimension_semantics = [#tpu.dimension_semantics<parallel>], iteration_bounds = array<i64: 2>, scalar_prefetch = 0 : i64, scratch_operands = 2 : i64, tpu.core_type = #tpu.core_type<tc>, window_params = [{transform_indices = @transform_0, window_bounds = array<i64: 1, 16, 16, 128>}, {pipeline_mode = #tpu.pipeline_mode<synchronous>, transform_indices = @transform_1, window_bounds = array<i64: 1152, 128>}, {pipeline_mode = #tpu.pipeline_mode<synchronous>, transform_indices = @transform_2, window_bounds = array<i64: 2, 128>}, {transform_indices = @transform_3, window_bounds = array<i64: 256, 128>}, {transform_indices = @transform_4, window_bounds = array<i64: 1, 2, 128>}]} {
    %c0 = arith.constant 0 : index
    %c0_0 = arith.constant 0 : index
    %c0_1 = arith.constant 0 : index
    %c0_2 = arith.constant 0 : index
    %0 = vector.load %arg1[%c0, %c0_0, %c0_1, %c0_2] : memref<1x16x16x128xf32, #tpu.memory_space<vmem>>, vector<1x16x16x128xf32>
    %1 = vector.shape_cast %0 : vector<1x16x16x128xf32> to vector<16x16x128xf32>
    %cst = arith.constant 0.000000e+00 : f32
    %2 = vector.broadcast %cst : f32 to vector<18x24x128xf32>
    %c0_3 = arith.constant 0 : index
    %c0_4 = arith.constant 0 : index
    %c0_5 = arith.constant 0 : index
    %3 = vector.load %arg6[%c0_3, %c0_4, %c0_5] : memref<18x24x128xf32, #tpu.memory_space<vmem>>, vector<18x24x128xf32>
    tpu.vector_store %arg6[%c0_3, %c0_4, %c0_5], %2 {strides = array<i32>} : memref<18x24x128xf32, #tpu.memory_space<vmem>>, vector<18x24x128xf32>,
    %c1 = arith.constant 1 : index
    %c1_6 = arith.constant 1 : index
    %c0_7 = arith.constant 0 : index
    %4 = vector.load %arg6[%c1, %c1_6, %c0_7] : memref<18x24x128xf32, #tpu.memory_space<vmem>>, vector<16x16x128xf32>
    tpu.vector_store %arg6[%c1, %c1_6, %c0_7], %1 {strides = array<i32>} : memref<18x24x128xf32, #tpu.memory_space<vmem>>, vector<16x16x128xf32>,
    %c0_8 = arith.constant 0 : index
    %c0_9 = arith.constant 0 : index
    %c0_10 = arith.constant 0 : index
    %5 = vector.load %arg6[%c0_8, %c0_9, %c0_10] : memref<18x24x128xf32, #tpu.memory_space<vmem>>, vector<16x16x128xf32>
    %6 = vector.shape_cast %5 : vector<16x16x128xf32> to vector<256x128xf32>
    %c0_11 = arith.constant 0 : index
    %c0_12 = arith.constant 0 : index
    %7 = vector.load %arg7[%c0_11, %c0_12] : memref<256x1152xf32, #tpu.memory_space<vmem>>, vector<256x128xf32>
    tpu.vector_store %arg7[%c0_11, %c0_12], %6 {strides = array<i32>} : memref<256x1152xf32, #tpu.memory_space<vmem>>, vector<256x128xf32>,
    %c0_13 = arith.constant 0 : index
    %c1_14 = arith.constant 1 : index
    %c0_15 = arith.constant 0 : index
    %8 = vector.load %arg6[%c0_13, %c1_14, %c0_15] : memref<18x24x128xf32, #tpu.memory_space<vmem>>, vector<16x16x128xf32>
    %9 = vector.shape_cast %8 : vector<16x16x128xf32> to vector<256x128xf32>
    %c0_16 = arith.constant 0 : index
    %c128 = arith.constant 128 : index
    %10 = vector.load %arg7[%c0_16, %c128] : memref<256x1152xf32, #tpu.memory_space<vmem>>, vector<256x128xf32>
    tpu.vector_store %arg7[%c0_16, %c128], %9 {strides = array<i32>} : memref<256x1152xf32, #tpu.memory_space<vmem>>, vector<256x128xf32>,
    %c0_17 = arith.constant 0 : index
    %c2 = arith.constant 2 : index
    %c0_18 = arith.constant 0 : index
    %11 = vector.load %arg6[%c0_17, %c2, %c0_18] : memref<18x24x128xf32, #tpu.memory_space<vmem>>, vector<16x16x128xf32>
    %12 = vector.shape_cast %11 : vector<16x16x128xf32> to vector<256x128xf32>
    %c0_19 = arith.constant 0 : index
    %c256 = arith.constant 256 : index
    %13 = vector.load %arg7[%c0_19, %c256] : memref<256x1152xf32, #tpu.memory_space<vmem>>, vector<256x128xf32>
    tpu.vector_store %arg7[%c0_19, %c256], %12 {strides = array<i32>} : memref<256x1152xf32, #tpu.memory_space<vmem>>, vector<256x128xf32>,
    %c1_20 = arith.constant 1 : index
    %c0_21 = arith.constant 0 : index
    %c0_22 = arith.constant 0 : index
    %14 = vector.load %arg6[%c1_20, %c0_21, %c0_22] : memref<18x24x128xf32, #tpu.memory_space<vmem>>, vector<16x16x128xf32>
    %15 = vector.shape_cast %14 : vector<16x16x128xf32> to vector<256x128xf32>
    %c0_23 = arith.constant 0 : index
    %c384 = arith.constant 384 : index
    %16 = vector.load %arg7[%c0_23, %c384] : memref<256x1152xf32, #tpu.memory_space<vmem>>, vector<256x128xf32>
    tpu.vector_store %arg7[%c0_23, %c384], %15 {strides = array<i32>} : memref<256x1152xf32, #tpu.memory_space<vmem>>, vector<256x128xf32>,
    %c1_24 = arith.constant 1 : index
    %c1_25 = arith.constant 1 : index
    %c0_26 = arith.constant 0 : index
    %17 = vector.load %arg6[%c1_24, %c1_25, %c0_26] : memref<18x24x128xf32, #tpu.memory_space<vmem>>, vector<16x16x128xf32>
    %18 = vector.shape_cast %17 : vector<16x16x128xf32> to vector<256x128xf32>
    %c0_27 = arith.constant 0 : index
    %c512 = arith.constant 512 : index
    %19 = vector.load %arg7[%c0_27, %c512] : memref<256x1152xf32, #tpu.memory_space<vmem>>, vector<256x128xf32>
    tpu.vector_store %arg7[%c0_27, %c512], %18 {strides = array<i32>} : memref<256x1152xf32, #tpu.memory_space<vmem>>, vector<256x128xf32>,
    %c1_28 = arith.constant 1 : index
    %c2_29 = arith.constant 2 : index
    %c0_30 = arith.constant 0 : index
    %20 = vector.load %arg6[%c1_28, %c2_29, %c0_30] : memref<18x24x128xf32, #tpu.memory_space<vmem>>, vector<16x16x128xf32>
    %21 = vector.shape_cast %20 : vector<16x16x128xf32> to vector<256x128xf32>
    %c0_31 = arith.constant 0 : index
    %c640 = arith.constant 640 : index
    %22 = vector.load %arg7[%c0_31, %c640] : memref<256x1152xf32, #tpu.memory_space<vmem>>, vector<256x128xf32>
    tpu.vector_store %arg7[%c0_31, %c640], %21 {strides = array<i32>} : memref<256x1152xf32, #tpu.memory_space<vmem>>, vector<256x128xf32>,
    %c2_32 = arith.constant 2 : index
    %c0_33 = arith.constant 0 : index
    %c0_34 = arith.constant 0 : index
    %23 = vector.load %arg6[%c2_32, %c0_33, %c0_34] : memref<18x24x128xf32, #tpu.memory_space<vmem>>, vector<16x16x128xf32>
    %24 = vector.shape_cast %23 : vector<16x16x128xf32> to vector<256x128xf32>
    %c0_35 = arith.constant 0 : index
    %c768 = arith.constant 768 : index
    %25 = vector.load %arg7[%c0_35, %c768] : memref<256x1152xf32, #tpu.memory_space<vmem>>, vector<256x128xf32>
    tpu.vector_store %arg7[%c0_35, %c768], %24 {strides = array<i32>} : memref<256x1152xf32, #tpu.memory_space<vmem>>, vector<256x128xf32>,
    %c2_36 = arith.constant 2 : index
    %c1_37 = arith.constant 1 : index
    %c0_38 = arith.constant 0 : index
    %26 = vector.load %arg6[%c2_36, %c1_37, %c0_38] : memref<18x24x128xf32, #tpu.memory_space<vmem>>, vector<16x16x128xf32>
    %27 = vector.shape_cast %26 : vector<16x16x128xf32> to vector<256x128xf32>
    %c0_39 = arith.constant 0 : index
    %c896 = arith.constant 896 : index
    %28 = vector.load %arg7[%c0_39, %c896] : memref<256x1152xf32, #tpu.memory_space<vmem>>, vector<256x128xf32>
    tpu.vector_store %arg7[%c0_39, %c896], %27 {strides = array<i32>} : memref<256x1152xf32, #tpu.memory_space<vmem>>, vector<256x128xf32>,
    %c2_40 = arith.constant 2 : index
    %c2_41 = arith.constant 2 : index
    %c0_42 = arith.constant 0 : index
    %29 = vector.load %arg6[%c2_40, %c2_41, %c0_42] : memref<18x24x128xf32, #tpu.memory_space<vmem>>, vector<16x16x128xf32>
    %30 = vector.shape_cast %29 : vector<16x16x128xf32> to vector<256x128xf32>
    %c0_43 = arith.constant 0 : index
    %c1024 = arith.constant 1024 : index
    %31 = vector.load %arg7[%c0_43, %c1024] : memref<256x1152xf32, #tpu.memory_space<vmem>>, vector<256x128xf32>
    tpu.vector_store %arg7[%c0_43, %c1024], %30 {strides = array<i32>} : memref<256x1152xf32, #tpu.memory_space<vmem>>, vector<256x128xf32>,
    %c0_44 = arith.constant 0 : index
    %c0_45 = arith.constant 0 : index
    %32 = vector.load %arg7[%c0_44, %c0_45] : memref<256x1152xf32, #tpu.memory_space<vmem>>, vector<256x1152xf32>
    %c0_46 = arith.constant 0 : index
    %c0_47 = arith.constant 0 : index
    %33 = vector.load %arg2[%c0_46, %c0_47] : memref<1152x128xf32, #tpu.memory_space<vmem>>, vector<1152x128xf32>
    %cst_48 = arith.constant dense<0.000000e+00> : vector<256x128xf32>
    %34 = tpu.matmul %32, %33, %cst_48 {dimension_numbers = #tpu.dot_dimension_numbers<[1], [0], [0], [1], [0, 0, 1, 1], [], []>} : vector<256x1152xf32>, vector<1152x128xf32>, vector<256x128xf32> -> vector<256x128xf32>
    %c0_49 = arith.constant 0 : index
    %c0_50 = arith.constant 0 : index
    %35 = vector.load %arg4[%c0_49, %c0_50] : memref<256x128xf32, #tpu.memory_space<vmem>>, vector<256x128xf32>
    tpu.vector_store %arg4[%c0_49, %c0_50], %34 {strides = array<i32>} : memref<256x128xf32, #tpu.memory_space<vmem>>, vector<256x128xf32>,
    %cst_51 = arith.constant dense<0.000000e+00> : vector<128xf32>
    %36 = vector.multi_reduction <add>, %34, %cst_51 [0] : vector<256x128xf32> to vector<128xf32>
    %37 = vector.shape_cast %36 : vector<128xf32> to vector<1x128xf32>
    %38 = arith.mulf %34, %34 : vector<256x128xf32>
    %cst_52 = arith.constant dense<0.000000e+00> : vector<128xf32>
    %39 = vector.multi_reduction <add>, %38, %cst_52 [0] : vector<256x128xf32> to vector<128xf32>
    %40 = vector.shape_cast %39 : vector<128xf32> to vector<1x128xf32>
    %41 = tpu.concatenate %37, %40 in 0 : vector<1x128xf32>, vector<1x128xf32> -> vector<2x128xf32>
    %42 = vector.shape_cast %41 : vector<2x128xf32> to vector<1x2x128xf32>
    %c0_53 = arith.constant 0 : index
    %c0_54 = arith.constant 0 : index
    %c0_55 = arith.constant 0 : index
    %43 = vector.load %arg5[%c0_53, %c0_54, %c0_55] : memref<1x2x128xf32, #tpu.memory_space<vmem>>, vector<1x2x128xf32>
    tpu.vector_store %arg5[%c0_53, %c0_54, %c0_55], %42 {strides = array<i32>} : memref<1x2x128xf32, #tpu.memory_space<vmem>>, vector<1x2x128xf32>,
    return
  }
  func.func @transform_0(%arg0: i32) -> (i32, i32, i32, i32) {
    %c0_i32 = arith.constant 0 : i32
    %c0_i32_0 = arith.constant 0 : i32
    %c0_i32_1 = arith.constant 0 : i32
    %c0_i32_2 = arith.constant 0 : i32
    return %arg0, %c0_i32, %c0_i32_0, %c0_i32_1 : i32, i32, i32, i32
  }
  func.func @transform_1(%arg0: i32) -> (i32, i32) {
    %c0_i32 = arith.constant 0 : i32
    %c0_i32_0 = arith.constant 0 : i32
    %c0_i32_1 = arith.constant 0 : i32
    return %c0_i32, %c0_i32_0 : i32, i32
  }
  func.func @transform_2(%arg0: i32) -> (i32, i32) {
    %c0_i32 = arith.constant 0 : i32
    %c0_i32_0 = arith.constant 0 : i32
    %c0_i32_1 = arith.constant 0 : i32
    return %c0_i32, %c0_i32_0 : i32, i32
  }
  func.func @transform_3(%arg0: i32) -> (i32, i32) {
    %c0_i32 = arith.constant 0 : i32
    %c0_i32_0 = arith.constant 0 : i32
    return %arg0, %c0_i32 : i32, i32
  }
  func.func @transform_4(%arg0: i32) -> (i32, i32, i32) {
    %c0_i32 = arith.constant 0 : i32
    %c0_i32_0 = arith.constant 0 : i32
    %c0_i32_1 = arith.constant 0 : i32
    return %arg0, %c0_i32, %c0_i32_0 : i32, i32, i32
  }
}

module attributes {stable_mosaic.version = 11 : i64} {
  func.func @_bn_add_relu_kernel(%arg0: i32, %arg1: memref<256x128xf32, #tpu.memory_space<vmem>>, %arg2: memref<2x128xf32, #tpu.memory_space<vmem>>, %arg3: memref<256x128xf32, #tpu.memory_space<vmem>>, %arg4: memref<256x128xf32, #tpu.memory_space<vmem>>) attributes {dimension_semantics = [#tpu.dimension_semantics<parallel>], iteration_bounds = array<i64: 2>, scalar_prefetch = 0 : i64, scratch_operands = 0 : i64, tpu.core_type = #tpu.core_type<tc>, window_params = [{transform_indices = @transform_0, window_bounds = array<i64: 256, 128>}, {pipeline_mode = #tpu.pipeline_mode<synchronous>, transform_indices = @transform_1, window_bounds = array<i64: 2, 128>}, {transform_indices = @transform_2, window_bounds = array<i64: 256, 128>}, {transform_indices = @transform_3, window_bounds = array<i64: 256, 128>}]} {
    %c0 = arith.constant 0 : index
    %c0_0 = arith.constant 0 : index
    %0 = vector.load %arg2[%c0, %c0_0] : memref<2x128xf32, #tpu.memory_space<vmem>>, vector<2x128xf32>
    %c0_1 = arith.constant 0 : index
    %c0_2 = arith.constant 0 : index
    %1 = vector.load %arg1[%c0_1, %c0_2] : memref<256x128xf32, #tpu.memory_space<vmem>>, vector<256x128xf32>
    %c0_3 = arith.constant 0 : index
    %c0_4 = arith.constant 0 : index
    %2 = vector.load %arg3[%c0_3, %c0_4] : memref<256x128xf32, #tpu.memory_space<vmem>>, vector<256x128xf32>
    %3 = vector.extract_strided_slice %0 {offsets = [0, 0], sizes = [1, 128], strides = [1, 1]} : vector<2x128xf32> to vector<1x128xf32>
    %4 = vector.broadcast %3 : vector<1x128xf32> to vector<256x128xf32>
    %5 = arith.mulf %1, %4 : vector<256x128xf32>
    %6 = vector.extract_strided_slice %0 {offsets = [1, 0], sizes = [1, 128], strides = [1, 1]} : vector<2x128xf32> to vector<1x128xf32>
    %7 = vector.broadcast %6 : vector<1x128xf32> to vector<256x128xf32>
    %8 = arith.addf %5, %7 : vector<256x128xf32>
    %9 = arith.addf %8, %2 : vector<256x128xf32>
    %cst = arith.constant 0.000000e+00 : f32
    %10 = vector.broadcast %cst : f32 to vector<256x128xf32>
    %11 = arith.maximumf %9, %10 : vector<256x128xf32>
    %c0_5 = arith.constant 0 : index
    %c0_6 = arith.constant 0 : index
    %12 = vector.load %arg4[%c0_5, %c0_6] : memref<256x128xf32, #tpu.memory_space<vmem>>, vector<256x128xf32>
    tpu.vector_store %arg4[%c0_5, %c0_6], %11 {strides = array<i32>} : memref<256x128xf32, #tpu.memory_space<vmem>>, vector<256x128xf32>,
    return
  }
  func.func @transform_0(%arg0: i32) -> (i32, i32) {
    %c0_i32 = arith.constant 0 : i32
    %c0_i32_0 = arith.constant 0 : i32
    return %arg0, %c0_i32 : i32, i32
  }
  func.func @transform_1(%arg0: i32) -> (i32, i32) {
    %c0_i32 = arith.constant 0 : i32
    %c0_i32_0 = arith.constant 0 : i32
    %c0_i32_1 = arith.constant 0 : i32
    return %c0_i32, %c0_i32_0 : i32, i32
  }
  func.func @transform_2(%arg0: i32) -> (i32, i32) {
    %c0_i32 = arith.constant 0 : i32
    %c0_i32_0 = arith.constant 0 : i32
    return %arg0, %c0_i32 : i32, i32
  }
  func.func @transform_3(%arg0: i32) -> (i32, i32) {
    %c0_i32 = arith.constant 0 : i32
    %c0_i32_0 = arith.constant 0 : i32
    return %arg0, %c0_i32 : i32, i32
  }
}

module attributes {stable_mosaic.version = 11 : i64} {
  func.func @_conv3x3_stats_kernel(%arg0: i32, %arg1: memref<1x16x16x128xf32, #tpu.memory_space<vmem>>, %arg2: memref<1152x128xf32, #tpu.memory_space<vmem>>, %arg3: memref<2x128xf32, #tpu.memory_space<vmem>>, %arg4: memref<256x128xf32, #tpu.memory_space<vmem>>, %arg5: memref<1x2x128xf32, #tpu.memory_space<vmem>>, %arg6: memref<18x24x128xf32, #tpu.memory_space<vmem>>, %arg7: memref<256x1152xf32, #tpu.memory_space<vmem>>) attributes {dimension_semantics = [#tpu.dimension_semantics<parallel>], iteration_bounds = array<i64: 2>, scalar_prefetch = 0 : i64, scratch_operands = 2 : i64, tpu.core_type = #tpu.core_type<tc>, window_params = [{transform_indices = @transform_0, window_bounds = array<i64: 1, 16, 16, 128>}, {pipeline_mode = #tpu.pipeline_mode<synchronous>, transform_indices = @transform_1, window_bounds = array<i64: 1152, 128>}, {pipeline_mode = #tpu.pipeline_mode<synchronous>, transform_indices = @transform_2, window_bounds = array<i64: 2, 128>}, {transform_indices = @transform_3, window_bounds = array<i64: 256, 128>}, {transform_indices = @transform_4, window_bounds = array<i64: 1, 2, 128>}]} {
    %c0 = arith.constant 0 : index
    %c0_0 = arith.constant 0 : index
    %c0_1 = arith.constant 0 : index
    %c0_2 = arith.constant 0 : index
    %0 = vector.load %arg1[%c0, %c0_0, %c0_1, %c0_2] : memref<1x16x16x128xf32, #tpu.memory_space<vmem>>, vector<1x16x16x128xf32>
    %1 = vector.shape_cast %0 : vector<1x16x16x128xf32> to vector<16x16x128xf32>
    %c0_3 = arith.constant 0 : index
    %c0_4 = arith.constant 0 : index
    %2 = vector.load %arg3[%c0_3, %c0_4] : memref<2x128xf32, #tpu.memory_space<vmem>>, vector<1x128xf32>
    %3 = vector.shape_cast %2 : vector<1x128xf32> to vector<1x1x128xf32>
    %c1 = arith.constant 1 : index
    %c0_5 = arith.constant 0 : index
    %4 = vector.load %arg3[%c1, %c0_5] : memref<2x128xf32, #tpu.memory_space<vmem>>, vector<1x128xf32>
    %5 = vector.shape_cast %4 : vector<1x128xf32> to vector<1x1x128xf32>
    %6 = vector.broadcast %3 : vector<1x1x128xf32> to vector<16x16x128xf32>
    %7 = arith.mulf %1, %6 : vector<16x16x128xf32>
    %8 = vector.broadcast %5 : vector<1x1x128xf32> to vector<16x16x128xf32>
    %9 = arith.addf %7, %8 : vector<16x16x128xf32>
    %cst = arith.constant 0.000000e+00 : f32
    %10 = vector.broadcast %cst : f32 to vector<16x16x128xf32>
    %11 = arith.maximumf %9, %10 : vector<16x16x128xf32>
    %cst_6 = arith.constant 0.000000e+00 : f32
    %12 = vector.broadcast %cst_6 : f32 to vector<18x24x128xf32>
    %c0_7 = arith.constant 0 : index
    %c0_8 = arith.constant 0 : index
    %c0_9 = arith.constant 0 : index
    %13 = vector.load %arg6[%c0_7, %c0_8, %c0_9] : memref<18x24x128xf32, #tpu.memory_space<vmem>>, vector<18x24x128xf32>
    tpu.vector_store %arg6[%c0_7, %c0_8, %c0_9], %12 {strides = array<i32>} : memref<18x24x128xf32, #tpu.memory_space<vmem>>, vector<18x24x128xf32>,
    %c1_10 = arith.constant 1 : index
    %c1_11 = arith.constant 1 : index
    %c0_12 = arith.constant 0 : index
    %14 = vector.load %arg6[%c1_10, %c1_11, %c0_12] : memref<18x24x128xf32, #tpu.memory_space<vmem>>, vector<16x16x128xf32>
    tpu.vector_store %arg6[%c1_10, %c1_11, %c0_12], %11 {strides = array<i32>} : memref<18x24x128xf32, #tpu.memory_space<vmem>>, vector<16x16x128xf32>,
    %c0_13 = arith.constant 0 : index
    %c0_14 = arith.constant 0 : index
    %c0_15 = arith.constant 0 : index
    %15 = vector.load %arg6[%c0_13, %c0_14, %c0_15] : memref<18x24x128xf32, #tpu.memory_space<vmem>>, vector<16x16x128xf32>
    %16 = vector.shape_cast %15 : vector<16x16x128xf32> to vector<256x128xf32>
    %c0_16 = arith.constant 0 : index
    %c0_17 = arith.constant 0 : index
    %17 = vector.load %arg7[%c0_16, %c0_17] : memref<256x1152xf32, #tpu.memory_space<vmem>>, vector<256x128xf32>
    tpu.vector_store %arg7[%c0_16, %c0_17], %16 {strides = array<i32>} : memref<256x1152xf32, #tpu.memory_space<vmem>>, vector<256x128xf32>,
    %c0_18 = arith.constant 0 : index
    %c1_19 = arith.constant 1 : index
    %c0_20 = arith.constant 0 : index
    %18 = vector.load %arg6[%c0_18, %c1_19, %c0_20] : memref<18x24x128xf32, #tpu.memory_space<vmem>>, vector<16x16x128xf32>
    %19 = vector.shape_cast %18 : vector<16x16x128xf32> to vector<256x128xf32>
    %c0_21 = arith.constant 0 : index
    %c128 = arith.constant 128 : index
    %20 = vector.load %arg7[%c0_21, %c128] : memref<256x1152xf32, #tpu.memory_space<vmem>>, vector<256x128xf32>
    tpu.vector_store %arg7[%c0_21, %c128], %19 {strides = array<i32>} : memref<256x1152xf32, #tpu.memory_space<vmem>>, vector<256x128xf32>,
    %c0_22 = arith.constant 0 : index
    %c2 = arith.constant 2 : index
    %c0_23 = arith.constant 0 : index
    %21 = vector.load %arg6[%c0_22, %c2, %c0_23] : memref<18x24x128xf32, #tpu.memory_space<vmem>>, vector<16x16x128xf32>
    %22 = vector.shape_cast %21 : vector<16x16x128xf32> to vector<256x128xf32>
    %c0_24 = arith.constant 0 : index
    %c256 = arith.constant 256 : index
    %23 = vector.load %arg7[%c0_24, %c256] : memref<256x1152xf32, #tpu.memory_space<vmem>>, vector<256x128xf32>
    tpu.vector_store %arg7[%c0_24, %c256], %22 {strides = array<i32>} : memref<256x1152xf32, #tpu.memory_space<vmem>>, vector<256x128xf32>,
    %c1_25 = arith.constant 1 : index
    %c0_26 = arith.constant 0 : index
    %c0_27 = arith.constant 0 : index
    %24 = vector.load %arg6[%c1_25, %c0_26, %c0_27] : memref<18x24x128xf32, #tpu.memory_space<vmem>>, vector<16x16x128xf32>
    %25 = vector.shape_cast %24 : vector<16x16x128xf32> to vector<256x128xf32>
    %c0_28 = arith.constant 0 : index
    %c384 = arith.constant 384 : index
    %26 = vector.load %arg7[%c0_28, %c384] : memref<256x1152xf32, #tpu.memory_space<vmem>>, vector<256x128xf32>
    tpu.vector_store %arg7[%c0_28, %c384], %25 {strides = array<i32>} : memref<256x1152xf32, #tpu.memory_space<vmem>>, vector<256x128xf32>,
    %c1_29 = arith.constant 1 : index
    %c1_30 = arith.constant 1 : index
    %c0_31 = arith.constant 0 : index
    %27 = vector.load %arg6[%c1_29, %c1_30, %c0_31] : memref<18x24x128xf32, #tpu.memory_space<vmem>>, vector<16x16x128xf32>
    %28 = vector.shape_cast %27 : vector<16x16x128xf32> to vector<256x128xf32>
    %c0_32 = arith.constant 0 : index
    %c512 = arith.constant 512 : index
    %29 = vector.load %arg7[%c0_32, %c512] : memref<256x1152xf32, #tpu.memory_space<vmem>>, vector<256x128xf32>
    tpu.vector_store %arg7[%c0_32, %c512], %28 {strides = array<i32>} : memref<256x1152xf32, #tpu.memory_space<vmem>>, vector<256x128xf32>,
    %c1_33 = arith.constant 1 : index
    %c2_34 = arith.constant 2 : index
    %c0_35 = arith.constant 0 : index
    %30 = vector.load %arg6[%c1_33, %c2_34, %c0_35] : memref<18x24x128xf32, #tpu.memory_space<vmem>>, vector<16x16x128xf32>
    %31 = vector.shape_cast %30 : vector<16x16x128xf32> to vector<256x128xf32>
    %c0_36 = arith.constant 0 : index
    %c640 = arith.constant 640 : index
    %32 = vector.load %arg7[%c0_36, %c640] : memref<256x1152xf32, #tpu.memory_space<vmem>>, vector<256x128xf32>
    tpu.vector_store %arg7[%c0_36, %c640], %31 {strides = array<i32>} : memref<256x1152xf32, #tpu.memory_space<vmem>>, vector<256x128xf32>,
    %c2_37 = arith.constant 2 : index
    %c0_38 = arith.constant 0 : index
    %c0_39 = arith.constant 0 : index
    %33 = vector.load %arg6[%c2_37, %c0_38, %c0_39] : memref<18x24x128xf32, #tpu.memory_space<vmem>>, vector<16x16x128xf32>
    %34 = vector.shape_cast %33 : vector<16x16x128xf32> to vector<256x128xf32>
    %c0_40 = arith.constant 0 : index
    %c768 = arith.constant 768 : index
    %35 = vector.load %arg7[%c0_40, %c768] : memref<256x1152xf32, #tpu.memory_space<vmem>>, vector<256x128xf32>
    tpu.vector_store %arg7[%c0_40, %c768], %34 {strides = array<i32>} : memref<256x1152xf32, #tpu.memory_space<vmem>>, vector<256x128xf32>,
    %c2_41 = arith.constant 2 : index
    %c1_42 = arith.constant 1 : index
    %c0_43 = arith.constant 0 : index
    %36 = vector.load %arg6[%c2_41, %c1_42, %c0_43] : memref<18x24x128xf32, #tpu.memory_space<vmem>>, vector<16x16x128xf32>
    %37 = vector.shape_cast %36 : vector<16x16x128xf32> to vector<256x128xf32>
    %c0_44 = arith.constant 0 : index
    %c896 = arith.constant 896 : index
    %38 = vector.load %arg7[%c0_44, %c896] : memref<256x1152xf32, #tpu.memory_space<vmem>>, vector<256x128xf32>
    tpu.vector_store %arg7[%c0_44, %c896], %37 {strides = array<i32>} : memref<256x1152xf32, #tpu.memory_space<vmem>>, vector<256x128xf32>,
    %c2_45 = arith.constant 2 : index
    %c2_46 = arith.constant 2 : index
    %c0_47 = arith.constant 0 : index
    %39 = vector.load %arg6[%c2_45, %c2_46, %c0_47] : memref<18x24x128xf32, #tpu.memory_space<vmem>>, vector<16x16x128xf32>
    %40 = vector.shape_cast %39 : vector<16x16x128xf32> to vector<256x128xf32>
    %c0_48 = arith.constant 0 : index
    %c1024 = arith.constant 1024 : index
    %41 = vector.load %arg7[%c0_48, %c1024] : memref<256x1152xf32, #tpu.memory_space<vmem>>, vector<256x128xf32>
    tpu.vector_store %arg7[%c0_48, %c1024], %40 {strides = array<i32>} : memref<256x1152xf32, #tpu.memory_space<vmem>>, vector<256x128xf32>,
    %c0_49 = arith.constant 0 : index
    %c0_50 = arith.constant 0 : index
    %42 = vector.load %arg7[%c0_49, %c0_50] : memref<256x1152xf32, #tpu.memory_space<vmem>>, vector<256x1152xf32>
    %c0_51 = arith.constant 0 : index
    %c0_52 = arith.constant 0 : index
    %43 = vector.load %arg2[%c0_51, %c0_52] : memref<1152x128xf32, #tpu.memory_space<vmem>>, vector<1152x128xf32>
    %cst_53 = arith.constant dense<0.000000e+00> : vector<256x128xf32>
    %44 = tpu.matmul %42, %43, %cst_53 {dimension_numbers = #tpu.dot_dimension_numbers<[1], [0], [0], [1], [0, 0, 1, 1], [], []>} : vector<256x1152xf32>, vector<1152x128xf32>, vector<256x128xf32> -> vector<256x128xf32>
    %c0_54 = arith.constant 0 : index
    %c0_55 = arith.constant 0 : index
    %45 = vector.load %arg4[%c0_54, %c0_55] : memref<256x128xf32, #tpu.memory_space<vmem>>, vector<256x128xf32>
    tpu.vector_store %arg4[%c0_54, %c0_55], %44 {strides = array<i32>} : memref<256x128xf32, #tpu.memory_space<vmem>>, vector<256x128xf32>,
    %cst_56 = arith.constant dense<0.000000e+00> : vector<128xf32>
    %46 = vector.multi_reduction <add>, %44, %cst_56 [0] : vector<256x128xf32> to vector<128xf32>
    %47 = vector.shape_cast %46 : vector<128xf32> to vector<1x128xf32>
    %48 = arith.mulf %44, %44 : vector<256x128xf32>
    %cst_57 = arith.constant dense<0.000000e+00> : vector<128xf32>
    %49 = vector.multi_reduction <add>, %48, %cst_57 [0] : vector<256x128xf32> to vector<128xf32>
    %50 = vector.shape_cast %49 : vector<128xf32> to vector<1x128xf32>
    %51 = tpu.concatenate %47, %50 in 0 : vector<1x128xf32>, vector<1x128xf32> -> vector<2x128xf32>
    %52 = vector.shape_cast %51 : vector<2x128xf32> to vector<1x2x128xf32>
    %c0_58 = arith.constant 0 : index
    %c0_59 = arith.constant 0 : index
    %c0_60 = arith.constant 0 : index
    %53 = vector.load %arg5[%c0_58, %c0_59, %c0_60] : memref<1x2x128xf32, #tpu.memory_space<vmem>>, vector<1x2x128xf32>
    tpu.vector_store %arg5[%c0_58, %c0_59, %c0_60], %52 {strides = array<i32>} : memref<1x2x128xf32, #tpu.memory_space<vmem>>, vector<1x2x128xf32>,
    return
  }
  func.func @transform_0(%arg0: i32) -> (i32, i32, i32, i32) {
    %c0_i32 = arith.constant 0 : i32
    %c0_i32_0 = arith.constant 0 : i32
    %c0_i32_1 = arith.constant 0 : i32
    %c0_i32_2 = arith.constant 0 : i32
    return %arg0, %c0_i32, %c0_i32_0, %c0_i32_1 : i32, i32, i32, i32
  }
  func.func @transform_1(%arg0: i32) -> (i32, i32) {
    %c0_i32 = arith.constant 0 : i32
    %c0_i32_0 = arith.constant 0 : i32
    %c0_i32_1 = arith.constant 0 : i32
    return %c0_i32, %c0_i32_0 : i32, i32
  }
  func.func @transform_2(%arg0: i32) -> (i32, i32) {
    %c0_i32 = arith.constant 0 : i32
    %c0_i32_0 = arith.constant 0 : i32
    %c0_i32_1 = arith.constant 0 : i32
    return %c0_i32, %c0_i32_0 : i32, i32
  }
  func.func @transform_3(%arg0: i32) -> (i32, i32) {
    %c0_i32 = arith.constant 0 : i32
    %c0_i32_0 = arith.constant 0 : i32
    return %arg0, %c0_i32 : i32, i32
  }
  func.func @transform_4(%arg0: i32) -> (i32, i32, i32) {
    %c0_i32 = arith.constant 0 : i32
    %c0_i32_0 = arith.constant 0 : i32
    %c0_i32_1 = arith.constant 0 : i32
    return %arg0, %c0_i32, %c0_i32_0 : i32, i32, i32
  }
}

</mosaic_0001>

<bundles_post_ra>
// kernel: residual_block_forward.7
= control target key start
LH: loop header
LB: loop body
LE: loop exit
PB: predicated region body
PF: predicated region fallthrough
CT: control target
= control target key end

     0   :  { %s540_s12 = smov 0   ;;  %s738_s0 = inlined_call_operand.vmem [shape: f32[512,128], index: 0, kind: input, shape index: {}]   ;;  %s739_s1 = inlined_call_operand.vmem [shape: f32[2,128], index: 1, kind: input, shape index: {}]   ;;  %s740_s2 = inlined_call_operand.vmem [shape: f32[512,128], index: 2, kind: input, shape index: {}]   ;;  %s741_s3 = inlined_call_operand.vmem [shape: f32[512,128], index: 3, kind: output, shape index: {}]  }
   0x1 LB: > { %s491_s13 = sadd.s32 4294967295, %s518_s12   ;;  %p495_p0 = scmp.ge.s32.totalorder %s518_s12, 1  ;;  %s518_s12 = sphi %s540_s12, %s13_s12  }
   0x2   : > { %p149_p1 = scmp.lt.s32.totalorder %s518_s12, 3 }
   0x4   : > { %p150_p2 = pnand %p495_p0, %p149_p1 }
   0x5   : > { %s496_s14 = sshll.u32 (!%p150_p2), %s491_s13, 5 }
   0x6   : > { %153 = sbr.rel (%p150_p2) target bundleno = 55 (0x37), region = 32  ;;  %p179_p3 = scmp.lt.s32.totalorder (!%p150_p2), %s496_s14, 63 }
   0xb   : > { %v196_v0 = vld [vmem:[%s739_s1] sm:$0x3]  ;;  %s743_s14 = smov (!%p179_p3, %s496_s14), 63 }
   0xc   : > { %v551_v1 = vperm.slane %v196_v0, 0  ;;  %s553_s17 = sshll.u32 %s743_s14, 3  ;;  %v567_v2 = vperm.slane %v196_v0, 1 }
   0xd   : > { %s559_s20 = scalar_lea.vmem %s738_s0, %s553_s17  ;;  %s565_s23 = scalar_lea.vmem %s740_s2, %s553_s17 }
   0xe   : > { %v197_v3 = vld [vmem:[%s559_s20] sm:$0xff]  ;;  %v198_v4 = vld [vmem:[%s559_s20 + $0x8] sm:$0xff]  ;;  %v199_v8 = vld [vmem:[%s559_s20 + $0x10] sm:$0xff]  ;;  %s598_s26 = scalar_lea.vmem %s741_s3, %s553_s17 }
   0xf   : > { %v229_v5 = vld [vmem:[%s565_s23] sm:$0xff]  ;;  %v262_v6 = vmul.f32 %v551_v1, %v197_v3  ;;  %v263_v7 = vmul.f32 %v551_v1, %v198_v4  ;;  %v230_v9 = vld [vmem:[%s565_s23 + $0x8] sm:$0xff]  ;;  %v264_v10 = vmul.f32 %v551_v1, %v199_v8  ;;  %v200_v11 = vld [vmem:[%s559_s20 + $0x18] sm:$0xff] }
  0x10   : > { %v201_v12 = vld [vmem:[%s559_s20 + $0x20] sm:$0xff]  ;;  %v231_v15 = vld [vmem:[%s565_s23 + $0x10] sm:$0xff]  ;;  %v232_v16 = vld [vmem:[%s565_s23 + $0x18] sm:$0xff]  ;;  %v265_v17 = vmul.f32 %v551_v1, %v200_v11 }
  0x11   : > { %v295_v13 = vadd.f32 %v567_v2, %v262_v6  ;;  %v296_v14 = vadd.f32 %v567_v2, %v263_v7  ;;  %v266_v18 = vmul.f32 %v551_v1, %v201_v12  ;;  %v202_v19 = vld [vmem:[%s559_s20 + $0x28] sm:$0xff]  ;;  %v297_v20 = vadd.f32 %v567_v2, %v264_v10  ;;  %v233_v21 = vld [vmem:[%s565_s23 + $0x20] sm:$0xff]  ;;  %v203_v23 = vld [vmem:[%s559_s20 + $0x30] sm:$0xff] }
  0x12   : > { %v267_v22 = vmul.f32 %v551_v1, %v202_v19  ;;  %v204_v24 = vld [vmem:[%s559_s20 + $0x38] sm:$0xff]  ;;  %v298_v27 = vadd.f32 %v567_v2, %v265_v17  ;;  %v234_v29 = vld [vmem:[%s565_s23 + $0x28] sm:$0xff]  ;;  %v268_v32 = vmul.f32 %v551_v1, %v203_v23  ;;  %v205_v34 = vld [vmem:[%s559_s20 + $0x40] sm:$0xff] }
  0x13   : > { %v327_v25 = vadd.f32 %v295_v13, %v229_v5  ;;  %v328_v26 = vadd.f32 %v296_v14, %v230_v9  ;;  %v299_v28 = vadd.f32 %v567_v2, %v266_v18  ;;  %v329_v30 = vadd.f32 %v297_v20, %v231_v15  ;;  %v206_v35 = vld [vmem:[%s559_s20 + $0x48] sm:$0xff]  ;;  %v235_v40 = vld [vmem:[%s565_s23 + $0x30] sm:$0xff]  ;;  %v236_v41 = vld [vmem:[%s565_s23 + $0x38] sm:$0xff] }
  0x14   : > { %v300_v31 = vadd.f32 %v567_v2, %v267_v22  ;;  %v269_v33 = vmul.f32 %v551_v1, %v204_v24  ;;  %v330_v38 = vadd.f32 %v298_v27, %v232_v16  ;;  %v207_v42 = vld [vmem:[%s559_s20 + $0x50] sm:$0xff]  ;;  %v301_v45 = vadd.f32 %v567_v2, %v268_v32  ;;  %v208_v47 = vld [vmem:[%s559_s20 + $0x58] sm:$0xff]  ;;  %v209_v48 = vld [vmem:[%s559_s20 + $0x60] sm:$0xff] }
  0x15   : > { %v359_v36 = vmax.f32 %v327_v25, 0.0  ;;  %v360_v37 = vmax.f32 %v328_v26, 0.0  ;;  %v331_v39 = vadd.f32 %v299_v28, %v233_v21  ;;  %v361_v43 = vmax.f32 %v329_v30, 0.0  ;;  %v210_v53 = vld [vmem:[%s559_s20 + $0x68] sm:$0xff]  ;;  %v237_v57 = vld [vmem:[%s565_s23 + $0x40] sm:$0xff]  ;;  %v239_v62 = vld [vmem:[%s565_s23 + $0x50] sm:$0xff] }
  0x16   : > { %v332_v44 = vadd.f32 %v300_v31, %v234_v29  ;;  %v302_v46 = vadd.f32 %v567_v2, %v269_v33  ;;  %v362_v49 = vmax.f32 %v330_v38, 0.0  ;;  %v270_v51 = vmul.f32 %v551_v1, %v205_v34  ;;  %v238_v58 = vld [vmem:[%s565_s23 + $0x48] sm:$0xff]  ;;  %v211_v3 = vld [vmem:[%s559_s20 + $0x70] sm:$0xff]  ;;  %v212_v4 = vld [vmem:[%s559_s20 + $0x78] sm:$0xff] }
  0x17   : > { %391 = vst [vmem:[%s598_s26] sm:$0xff] %v359_v36  ;;  %v363_v50 = vmax.f32 %v331_v39, 0.0  ;;  %v271_v52 = vmul.f32 %v551_v1, %v206_v35  ;;  %v333_v55 = vadd.f32 %v301_v45, %v235_v40  ;;  %v272_v59 = vmul.f32 %v551_v1, %v207_v42  ;;  %v240_v8 = vld [vmem:[%s565_s23 + $0x58] sm:$0xff]  ;;  %v241_v9 = vld [vmem:[%s565_s23 + $0x60] sm:$0xff]  ;;  %v242_v15 = vld [vmem:[%s565_s23 + $0x68] sm:$0xff] }
  0x18   : > { %392 = vst [vmem:[%s598_s26 + $0x8] sm:$0xff] %v360_v37  ;;  %v364_v54 = vmax.f32 %v332_v44, 0.0  ;;  %v334_v56 = vadd.f32 %v302_v46, %v236_v41  ;;  %v303_v60 = vadd.f32 %v567_v2, %v270_v51  ;;  %v273_v63 = vmul.f32 %v551_v1, %v208_v47  ;;  %v213_v20 = vld [vmem:[%s559_s20 + $0x80] sm:$0xff]  ;;  %v214_v21 = vld [vmem:[%s559_s20 + $0x88] sm:$0xff]  ;;  %v243_v26 = vld [vmem:[%s565_s23 + $0x70] sm:$0xff] }
  0x19   : > { %393 = vst [vmem:[%s598_s26 + $0x10] sm:$0xff] %v361_v43  ;;  %v304_v61 = vadd.f32 %v567_v2, %v271_v52  ;;  %v274_v0 = vmul.f32 %v551_v1, %v209_v48  ;;  %v365_v5 = vmax.f32 %v333_v55, 0.0  ;;  %v305_v7 = vadd.f32 %v567_v2, %v272_v59  ;;  %v244_v27 = vld [vmem:[%s565_s23 + $0x78] sm:$0xff]  ;;  %v215_v28 = vld [vmem:[%s559_s20 + $0x90] sm:$0xff]  ;;  %v217_v34 = vld [vmem:[%s559_s20 + $0xa0] sm:$0xff] }
  0x1a   : > { %394 = vst [vmem:[%s598_s26 + $0x18] sm:$0xff] %v362_v49  ;;  %v366_v6 = vmax.f32 %v334_v56, 0.0  ;;  %v275_v10 = vmul.f32 %v551_v1, %v210_v53  ;;  %v335_v11 = vadd.f32 %v303_v60, %v237_v57  ;;  %v306_v13 = vadd.f32 %v567_v2, %v273_v63  ;;  %v216_v33 = vld [vmem:[%s559_s20 + $0x98] sm:$0xff]  ;;  %v218_v39 = vld [vmem:[%s559_s20 + $0xa8] sm:$0xff]  ;;  %v245_v43 = vld [vmem:[%s565_s23 + $0x80] sm:$0xff] }
  0x1b   : > { %395 = vst [vmem:[%s598_s26 + $0x20] sm:$0xff] %v363_v50  ;;  %v336_v12 = vadd.f32 %v304_v61, %v238_v58  ;;  %v307_v14 = vadd.f32 %v567_v2, %v274_v0  ;;  %v337_v16 = vadd.f32 %v305_v7, %v239_v62  ;;  %v276_v18 = vmul.f32 %v551_v1, %v211_v3  ;;  %v246_v44 = vld [vmem:[%s565_s23 + $0x88] sm:$0xff]  ;;  %v247_v48 = vld [vmem:[%s565_s23 + $0x90] sm:$0xff]  ;;  %v220_v52 = vld [vmem:[%s559_s20 + $0xb8] sm:$0xff] }
  0x1c   : > { %396 = vst [vmem:[%s598_s26 + $0x28] sm:$0xff] %v364_v54  ;;  %v308_v17 = vadd.f32 %v567_v2, %v275_v10  ;;  %v277_v19 = vmul.f32 %v551_v1, %v212_v4  ;;  %v367_v22 = vmax.f32 %v335_v11, 0.0  ;;  %v338_v24 = vadd.f32 %v306_v13, %v240_v8  ;;  %v219_v51 = vld [vmem:[%s559_s20 + $0xb0] sm:$0xff]  ;;  %v248_v56 = vld [vmem:[%s565_s23 + $0x98] sm:$0xff]  ;;  %v249_v57 = vld [vmem:[%s565_s23 + $0xa0] sm:$0xff] }
  0x1d   : > { %397 = vst [vmem:[%s598_s26 + $0x30] sm:$0xff] %v365_v5  ;;  %v368_v23 = vmax.f32 %v336_v12, 0.0  ;;  %v339_v25 = vadd.f32 %v307_v14, %v241_v9  ;;  %v369_v29 = vmax.f32 %v337_v16, 0.0  ;;  %v309_v31 = vadd.f32 %v567_v2, %v276_v18  ;;  %v250_v63 = vld [vmem:[%s565_s23 + $0xa8] sm:$0xff]  ;;  %v251_v12 = vld [vmem:[%s565_s23 + $0xb0] sm:$0xff]  ;;  %v252_v13 = vld [vmem:[%s565_s23 + $0xb8] sm:$0xff] }
  0x1e   : > { %398 = vst [vmem:[%s598_s26 + $0x38] sm:$0xff] %v366_v6  ;;  %v340_v30 = vadd.f32 %v308_v17, %v242_v15  ;;  %v310_v32 = vadd.f32 %v567_v2, %v277_v19  ;;  %v370_v35 = vmax.f32 %v338_v24, 0.0  ;;  %v278_v37 = vmul.f32 %v551_v1, %v213_v20  ;;  %v221_v6 = vld [vmem:[%s559_s20 + $0xc0] sm:$0xff]  ;;  %v222_v7 = vld [vmem:[%s559_s20 + $0xc8] sm:$0xff]  ;;  %v223_v14 = vld [vmem:[%s559_s20 + $0xd0] sm:$0xff] }
  0x1f   : > { %399 = vst [vmem:[%s598_s26 + $0x40] sm:$0xff] %v367_v22  ;;  %v371_v36 = vmax.f32 %v339_v25, 0.0  ;;  %v279_v38 = vmul.f32 %v551_v1, %v214_v21  ;;  %v341_v41 = vadd.f32 %v309_v31, %v243_v26  ;;  %v280_v45 = vmul.f32 %v551_v1, %v215_v28  ;;  %v224_v19 = vld [vmem:[%s559_s20 + $0xd8] sm:$0xff]  ;;  %v225_v20 = vld [vmem:[%s559_s20 + $0xe0] sm:$0xff]  ;;  %v226_v25 = vld [vmem:[%s559_s20 + $0xe8] sm:$0xff] }
  0x20   : > { %400 = vst [vmem:[%s598_s26 + $0x48] sm:$0xff] %v368_v23  ;;  %v372_v40 = vmax.f32 %v340_v30, 0.0  ;;  %v342_v42 = vadd.f32 %v310_v32, %v244_v27  ;;  %v311_v46 = vadd.f32 %v567_v2, %v278_v37  ;;  %v281_v49 = vmul.f32 %v551_v1, %v216_v33  ;;  %v254_v30 = vld [vmem:[%s565_s23 + $0xc8] sm:$0xff]  ;;  %v227_v37 = vld [vmem:[%s559_s20 + $0xf0] sm:$0xff] }
  0x21   : > { %401 = vst [vmem:[%s598_s26 + $0x50] sm:$0xff] %v369_v29  ;;  %v312_v47 = vadd.f32 %v567_v2, %v279_v38  ;;  %v282_v50 = vmul.f32 %v551_v1, %v217_v34  ;;  %v373_v53 = vmax.f32 %v341_v41, 0.0  ;;  %v313_v55 = vadd.f32 %v567_v2, %v280_v45  ;;  %v253_v29 = vld [vmem:[%s565_s23 + $0xc0] sm:$0xff]  ;;  %v255_v34 = vld [vmem:[%s565_s23 + $0xd0] sm:$0xff]  ;;  %v228_v38 = vld [vmem:[%s559_s20 + $0xf8] sm:$0xff] }
  0x22   : > { %402 = vst [vmem:[%s598_s26 + $0x58] sm:$0xff] %v370_v35  ;;  %v374_v54 = vmax.f32 %v342_v42, 0.0  ;;  %v283_v58 = vmul.f32 %v551_v1, %v218_v39  ;;  %v343_v59 = vadd.f32 %v311_v46, %v245_v43  ;;  %v314_v61 = vadd.f32 %v567_v2, %v281_v49  ;;  %v256_v42 = vld [vmem:[%s565_s23 + $0xd8] sm:$0xff]  ;;  %v257_v43 = vld [vmem:[%s565_s23 + $0xe0] sm:$0xff]  ;;  %v258_v49 = vld [vmem:[%s565_s23 + $0xe8] sm:$0xff] }
  0x23   : > { %403 = vst [vmem:[%s598_s26 + $0x60] sm:$0xff] %v371_v36  ;;  %v344_v60 = vadd.f32 %v312_v47, %v246_v44  ;;  %v315_v62 = vadd.f32 %v567_v2, %v282_v50  ;;  %v345_v0 = vadd.f32 %v313_v55, %v247_v48  ;;  %v284_v4 = vmul.f32 %v551_v1, %v219_v51 }
  0x24   : > { %404 = vst [vmem:[%s598_s26 + $0x68] sm:$0xff] %v372_v40  ;;  %v316_v3 = vadd.f32 %v567_v2, %v283_v58  ;;  %v285_v5 = vmul.f32 %v551_v1, %v220_v52  ;;  %v375_v8 = vmax.f32 %v343_v59, 0.0  ;;  %v346_v10 = vadd.f32 %v314_v61, %v248_v56  ;;  %v259_v58 = vld [vmem:[%s565_s23 + $0xf0] sm:$0xff]  ;;  %v260_v59 = vld [vmem:[%s565_s23 + $0xf8] sm:$0xff] }
  0x25   : > { %405 = vst [vmem:[%s598_s26 + $0x70] sm:$0xff] %v373_v53  ;;  %v376_v9 = vmax.f32 %v344_v60, 0.0  ;;  %v347_v11 = vadd.f32 %v315_v62, %v249_v57  ;;  %v377_v15 = vmax.f32 %v345_v0, 0.0  ;;  %v317_v17 = vadd.f32 %v567_v2, %v284_v4 }
  0x26   : > { %406 = vst [vmem:[%s598_s26 + $0x78] sm:$0xff] %v374_v54  ;;  %v348_v16 = vadd.f32 %v316_v3, %v250_v63  ;;  %v318_v18 = vadd.f32 %v567_v2, %v285_v5  ;;  %v378_v21 = vmax.f32 %v346_v10, 0.0  ;;  %v286_v23 = vmul.f32 %v551_v1, %v221_v6 }
  0x27   : > { %407 = vst [vmem:[%s598_s26 + $0x80] sm:$0xff] %v375_v8  ;;  %v379_v22 = vmax.f32 %v347_v11, 0.0  ;;  %v287_v24 = vmul.f32 %v551_v1, %v222_v7  ;;  %v349_v27 = vadd.f32 %v317_v17, %v251_v12  ;;  %v288_v31 = vmul.f32 %v551_v1, %v223_v14 }
  0x28   : > { %408 = vst [vmem:[%s598_s26 + $0x88] sm:$0xff] %v376_v9  ;;  %v380_v26 = vmax.f32 %v348_v16, 0.0  ;;  %v350_v28 = vadd.f32 %v318_v18, %v252_v13  ;;  %v319_v32 = vadd.f32 %v567_v2, %v286_v23  ;;  %v289_v35 = vmul.f32 %v551_v1, %v224_v19 }
  0x29   : > { %409 = vst [vmem:[%s598_s26 + $0x90] sm:$0xff] %v377_v15  ;;  %v320_v33 = vadd.f32 %v567_v2, %v287_v24  ;;  %v290_v36 = vmul.f32 %v551_v1, %v225_v20  ;;  %v381_v39 = vmax.f32 %v349_v27, 0.0  ;;  %v321_v41 = vadd.f32 %v567_v2, %v288_v31 }
  0x2a   : > { %410 = vst [vmem:[%s598_s26 + $0x98] sm:$0xff] %v378_v21  ;;  %v382_v40 = vmax.f32 %v350_v28, 0.0  ;;  %v291_v44 = vmul.f32 %v551_v1, %v226_v25  ;;  %v351_v45 = vadd.f32 %v319_v32, %v253_v29  ;;  %v322_v47 = vadd.f32 %v567_v2, %v289_v35 }
  0x2b   : > { %411 = vst [vmem:[%s598_s26 + $0xa0] sm:$0xff] %v379_v22  ;;  %v352_v46 = vadd.f32 %v320_v33, %v254_v30  ;;  %v323_v48 = vadd.f32 %v567_v2, %v290_v36  ;;  %v353_v50 = vadd.f32 %v321_v41, %v255_v34  ;;  %v292_v52 = vmul.f32 %v551_v1, %v227_v37 }
  0x2c   : > { %412 = vst [vmem:[%s598_s26 + $0xa8] sm:$0xff] %v380_v26  ;;  %v324_v51 = vadd.f32 %v567_v2, %v291_v44  ;;  %v293_v53 = vmul.f32 %v551_v1, %v228_v38  ;;  %v383_v54 = vmax.f32 %v351_v45, 0.0  ;;  %v354_v56 = vadd.f32 %v322_v47, %v256_v42 }
  0x2d   : > { %413 = vst [vmem:[%s598_s26 + $0xb0] sm:$0xff] %v381_v39  ;;  %v384_v55 = vmax.f32 %v352_v46, 0.0  ;;  %v355_v57 = vadd.f32 %v323_v48, %v257_v43  ;;  %v385_v60 = vmax.f32 %v353_v50, 0.0  ;;  %v325_v62 = vadd.f32 %v567_v2, %v292_v52 }
  0x2e   : > { %414 = vst [vmem:[%s598_s26 + $0xb8] sm:$0xff] %v382_v40  ;;  %v356_v61 = vadd.f32 %v324_v51, %v258_v49  ;;  %v326_v1 = vadd.f32 %v567_v2, %v293_v53  ;;  %v386_v63 = vmax.f32 %v354_v56, 0.0 }
  0x2f   : > { %415 = vst [vmem:[%s598_s26 + $0xc0] sm:$0xff] %v383_v54  ;;  %v387_v0 = vmax.f32 %v355_v57, 0.0  ;;  %v357_v4 = vadd.f32 %v325_v62, %v259_v58 }
  0x30   : > { %416 = vst [vmem:[%s598_s26 + $0xc8] sm:$0xff] %v384_v55  ;;  %v388_v3 = vmax.f32 %v356_v61, 0.0  ;;  %v358_v5 = vadd.f32 %v326_v1, %v260_v59 }
  0x31   : > { %417 = vst [vmem:[%s598_s26 + $0xd0] sm:$0xff] %v385_v60  ;;  %v389_v6 = vmax.f32 %v357_v4, 0.0 }
  0x32   : > { %418 = vst [vmem:[%s598_s26 + $0xd8] sm:$0xff] %v386_v63  ;;  %v390_v7 = vmax.f32 %v358_v5, 0.0 }
  0x33   : > { %419 = vst [vmem:[%s598_s26 + $0xe0] sm:$0xff] %v387_v0 }
  0x34   : > { %420 = vst [vmem:[%s598_s26 + $0xe8] sm:$0xff] %v388_v3 }
  0x35   : > { %421 = vst [vmem:[%s598_s26 + $0xf0] sm:$0xff] %v389_v6 }
  0x36   : > { %422 = vst [vmem:[%s598_s26 + $0xf8] sm:$0xff] %v390_v7 }
  0x37 PF: > { %s13_s12 = sadd.s32 1, %s518_s12  }
  0x38   : > { %p10_p4 = scmp.ge.s32.totalorder %s13_s12, 4  }
  0x3a   :  { %12 = sbr.rel (!%p10_p4) target bundleno = 1 (0x1), region = 65 }

// kernel: residual_block_forward.4
= control target key start
LH: loop header
LB: loop body
LE: loop exit
PB: predicated region body
PF: predicated region fallthrough
CT: control target
= control target key end

     0   :  { %s592_s12 = smov 0   ;;  %s756_s0 = inlined_call_operand.vmem [shape: f32[512,8], index: 0, kind: input, shape index: {}]   ;;  %s757_s1 = inlined_call_operand.vmem [shape: f32[8,128], index: 1, kind: input, shape index: {}]   ;;  %s758_s2 = inlined_call_operand.vmem [shape: f32[1,128], index: 2, kind: input, shape index: {}]   ;;  %s759_s3 = inlined_call_operand.vmem [shape: f32[512,128], index: 3, kind: output, shape index: {}]  }
   0x1 LB: > { %s509_s13 = sadd.s32 4294967295, %s570_s12   ;;  %p513_p0 = scmp.ge.s32.totalorder %s570_s12, 1  ;;  %s570_s12 = sphi %s592_s12, %s13_s12  }
   0x2   : > { %p138_p1 = scmp.lt.s32.totalorder %s570_s12, 3 }
   0x4   : > { %p139_p2 = pnand %p513_p0, %p138_p1 }
   0x5   : > { %s514_s16 = sshll.u32 (!%p139_p2), %s509_s13, 5 }
   0x6   : > { %142 = sbr.rel (%p139_p2) target bundleno = 207 (0xcf), region = 32  ;;  %p163_p3 = scmp.lt.s32.totalorder (!%p139_p2), %s514_s16, 63 }
   0xb   : > { %v206_v0 = vld [vmem:[%s757_s1] sm:$0xff]  ;;  %s761_s16 = smov (!%p163_p3, %s514_s16), 63  ;;  %vm211_vm0 = vcmask 64512  }
   0xc   : > { %553 = vmatpush.msra.mxu2 %v206_v0  ;;  %554 = vmatpush.msra.mxu3 %v206_v0  ;;  %s515_s17 = sshll.u32 %s761_s16, 3  ;;  %v680_v33 = vld [vmem:[%s758_s2] ss:$0 sm:$0xff] }
   0xd   : > { %323 = vmatpush.msra.mxu0 %v206_v0  ;;  %552 = vmatpush.msra.mxu1 %v206_v0  ;;  %s611_s20 = scalar_lea.vmem %s756_s0, %s515_s17  ;;  %s687_s25 = scalar_lea.vmem %s759_s3, %s515_s17 }
   0xe   : > { %v190_v1 = vld [vmem:[%s611_s20 + $0x80] sm:$0xff]  ;;  %v191_v5 = vld [vmem:[%s611_s20 + $0x88] sm:$0xff]  ;;  %v192_v9 = vld [vmem:[%s611_s20 + $0x90] sm:$0xff] }
   0xf   : > { %v198_v2 = vld [vmem:[%s611_s20 + $0xc0] sm:$0xff]  ;;  %534 = vmatmul.msk.f32.vlgmr.msra.gmra.mxu2 %vm211_vm0, %v190_v1  ;;  %v199_v6 = vld [vmem:[%s611_s20 + $0xc8] sm:$0xff]  ;;  %v200_v10 = vld [vmem:[%s611_s20 + $0xd0] sm:$0xff] }
  0x10   : > { %v174_v3 = vld [vmem:[%s611_s20] sm:$0xff]  ;;  %542 = vmatmul.msk.f32.vlgmr.msra.gmra.mxu3 %vm211_vm0, %v198_v2  ;;  %v175_v7 = vld [vmem:[%s611_s20 + $0x8] sm:$0xff]  ;;  %v176_v11 = vld [vmem:[%s611_s20 + $0x10] sm:$0xff] }
  0x11   : > { %v182_v4 = vld [vmem:[%s611_s20 + $0x40] sm:$0xff]  ;;  %518 = vmatmul.msk.f32.vlgmr.msra.gmra.mxu0 %vm211_vm0, %v174_v3  ;;  %v183_v8 = vld [vmem:[%s611_s20 + $0x48] sm:$0xff]  ;;  %v184_v12 = vld [vmem:[%s611_s20 + $0x50] sm:$0xff] }
  0x12   : > { %526 = vmatmul.msk.f32.vlgmr.msra.gmra.mxu1 %vm211_vm0, %v182_v4  ;;  %v193_v13 = vld [vmem:[%s611_s20 + $0x98] sm:$0xff]  ;;  %v194_v17 = vld [vmem:[%s611_s20 + $0xa0] sm:$0xff]  ;;  %v195_v21 = vld [vmem:[%s611_s20 + $0xa8] sm:$0xff] }
  0x13   : > { %v201_v14 = vld [vmem:[%s611_s20 + $0xd8] sm:$0xff]  ;;  %v202_v18 = vld [vmem:[%s611_s20 + $0xe0] sm:$0xff]  ;;  %v203_v22 = vld [vmem:[%s611_s20 + $0xe8] sm:$0xff] }
  0x14   : > { %v177_v15 = vld [vmem:[%s611_s20 + $0x18] sm:$0xff]  ;;  %v178_v19 = vld [vmem:[%s611_s20 + $0x20] sm:$0xff]  ;;  %v179_v23 = vld [vmem:[%s611_s20 + $0x28] sm:$0xff] }
  0x15   : > { %v185_v16 = vld [vmem:[%s611_s20 + $0x58] sm:$0xff]  ;;  %v186_v20 = vld [vmem:[%s611_s20 + $0x60] sm:$0xff]  ;;  %v187_v24 = vld [vmem:[%s611_s20 + $0x68] sm:$0xff] }
  0x16   : > { %v196_v25 = vld [vmem:[%s611_s20 + $0xb0] sm:$0xff]  ;;  %v197_v29 = vld [vmem:[%s611_s20 + $0xb8] sm:$0xff] }
  0x17   : > { %535 = vmatmul.msk.f32.gmra.mxu2 %vm211_vm0, %v191_v5  ;;  %v204_v26 = vld [vmem:[%s611_s20 + $0xf0] sm:$0xff]  ;;  %v205_v30 = vld [vmem:[%s611_s20 + $0xf8] sm:$0xff] }
  0x18   : > { %543 = vmatmul.msk.f32.gmra.mxu3 %vm211_vm0, %v199_v6  ;;  %v180_v27 = vld [vmem:[%s611_s20 + $0x30] sm:$0xff]  ;;  %v181_v31 = vld [vmem:[%s611_s20 + $0x38] sm:$0xff] }
  0x19   : > { %519 = vmatmul.msk.f32.gmra.mxu0 %vm211_vm0, %v175_v7  ;;  %v188_v28 = vld [vmem:[%s611_s20 + $0x70] sm:$0xff]  ;;  %v189_v32 = vld [vmem:[%s611_s20 + $0x78] sm:$0xff] }
  0x1a   : > { %527 = vmatmul.msk.f32.gmra.mxu1 %vm211_vm0, %v183_v8 }
  0x1f   : > { %536 = vmatmul.msk.f32.gmra.mxu2 %vm211_vm0, %v192_v9 }
  0x20   : > { %544 = vmatmul.msk.f32.gmra.mxu3 %vm211_vm0, %v200_v10 }
  0x21   : > { %520 = vmatmul.msk.f32.gmra.mxu0 %vm211_vm0, %v176_v11 }
  0x22   : > { %528 = vmatmul.msk.f32.gmra.mxu1 %vm211_vm0, %v184_v12 }
  0x27   : > { %537 = vmatmul.msk.f32.gmra.mxu2 %vm211_vm0, %v193_v13 }
  0x28   : > { %545 = vmatmul.msk.f32.gmra.mxu3 %vm211_vm0, %v201_v14 }
  0x29   : > { %521 = vmatmul.msk.f32.gmra.mxu0 %vm211_vm0, %v177_v15 }
  0x2a   : > { %529 = vmatmul.msk.f32.gmra.mxu1 %vm211_vm0, %v185_v16 }
  0x2f   : > { %538 = vmatmul.msk.f32.gmra.mxu2 %vm211_vm0, %v194_v17 }
  0x30   : > { %546 = vmatmul.msk.f32.gmra.mxu3 %vm211_vm0, %v202_v18 }
  0x31   : > { %522 = vmatmul.msk.f32.gmra.mxu0 %vm211_vm0, %v178_v19 }
  0x32   : > { %530 = vmatmul.msk.f32.gmra.mxu1 %vm211_vm0, %v186_v20 }
  0x37   : > { %539 = vmatmul.msk.f32.gmra.mxu2 %vm211_vm0, %v195_v21 }
  0x38   : > { %547 = vmatmul.msk.f32.gmra.mxu3 %vm211_vm0, %v203_v22 }
  0x39   : > { %523 = vmatmul.msk.f32.gmra.mxu0 %vm211_vm0, %v179_v23 }
  0x3a   : > { %531 = vmatmul.msk.f32.gmra.mxu1 %vm211_vm0, %v187_v24 }
  0x3f   : > { %540 = vmatmul.msk.f32.gmra.mxu2 %vm211_vm0, %v196_v25 }
  0x40   : > { %548 = vmatmul.msk.f32.gmra.mxu3 %vm211_vm0, %v204_v26 }
  0x41   : > { %524 = vmatmul.msk.f32.gmra.mxu0 %vm211_vm0, %v180_v27 }
  0x42   : > { %532 = vmatmul.msk.f32.gmra.mxu1 %vm211_vm0, %v188_v28 }
  0x47   : > { %541 = vmatmul.msk.f32.gmra.mxu2 %vm211_vm0, %v197_v29 }
  0x48   : > { %549 = vmatmul.msk.f32.gmra.mxu3 %vm211_vm0, %v205_v30 }
  0x49   : > { %525 = vmatmul.msk.f32.gmra.mxu0 %vm211_vm0, %v181_v31 }
  0x4a   : > { %533 = vmatmul.msk.f32.gmra.mxu1 %vm211_vm0, %v189_v32 }
  0x8e   : > { %v325_v34 = vpop.f32.mrf.mxu0 }
  0x8f   : > { %v349_v35 = vpop.f32.mrf.mxu1  ;;  %v326_v36 = vadd.f32 %v680_v33, %v325_v34 }
  0x90   : > { %v350_v37 = vadd.f32 %v680_v33, %v349_v35 }
  0x91   : > { %421 = vst [vmem:[%s687_s25] sm:$0xff] %v326_v36 }
  0x92   : > { %429 = vst [vmem:[%s687_s25 + $0x40] sm:$0xff] %v350_v37  ;;  %v373_v38 = vpop.f32.mrf.mxu2 }
  0x93   : > { %v397_v39 = vpop.f32.mrf.mxu3  ;;  %v374_v40 = vadd.f32 %v680_v33, %v373_v38 }
  0x94   : > { %v398_v41 = vadd.f32 %v680_v33, %v397_v39 }
  0x95   : > { %437 = vst [vmem:[%s687_s25 + $0x80] sm:$0xff] %v374_v40 }
  0x96   : > { %v328_v42 = vpop.f32.mrf.mxu0  ;;  %445 = vst [vmem:[%s687_s25 + $0xc0] sm:$0xff] %v398_v41 }
  0x97   : > { %v352_v43 = vpop.f32.mrf.mxu1  ;;  %v329_v44 = vadd.f32 %v680_v33, %v328_v42 }
  0x98   : > { %v353_v45 = vadd.f32 %v680_v33, %v352_v43 }
  0x99   : > { %422 = vst [vmem:[%s687_s25 + $0x8] sm:$0xff] %v329_v44 }
  0x9a   : > { %430 = vst [vmem:[%s687_s25 + $0x48] sm:$0xff] %v353_v45  ;;  %v376_v46 = vpop.f32.mrf.mxu2 }
  0x9b   : > { %v400_v47 = vpop.f32.mrf.mxu3  ;;  %v377_v48 = vadd.f32 %v680_v33, %v376_v46 }
  0x9c   : > { %v401_v49 = vadd.f32 %v680_v33, %v400_v47 }
  0x9d   : > { %438 = vst [vmem:[%s687_s25 + $0x88] sm:$0xff] %v377_v48 }
  0x9e   : > { %v331_v50 = vpop.f32.mrf.mxu0  ;;  %446 = vst [vmem:[%s687_s25 + $0xc8] sm:$0xff] %v401_v49 }
  0x9f   : > { %v355_v51 = vpop.f32.mrf.mxu1  ;;  %v332_v52 = vadd.f32 %v680_v33, %v331_v50 }
  0xa0   : > { %v356_v53 = vadd.f32 %v680_v33, %v355_v51 }
  0xa1   : > { %423 = vst [vmem:[%s687_s25 + $0x10] sm:$0xff] %v332_v52 }
  0xa2   : > { %431 = vst [vmem:[%s687_s25 + $0x50] sm:$0xff] %v356_v53  ;;  %v379_v54 = vpop.f32.mrf.mxu2 }
  0xa3   : > { %v403_v55 = vpop.f32.mrf.mxu3  ;;  %v380_v56 = vadd.f32 %v680_v33, %v379_v54 }
  0xa4   : > { %v404_v57 = vadd.f32 %v680_v33, %v403_v55 }
  0xa5   : > { %439 = vst [vmem:[%s687_s25 + $0x90] sm:$0xff] %v380_v56 }
  0xa6   : > { %v334_v58 = vpop.f32.mrf.mxu0  ;;  %447 = vst [vmem:[%s687_s25 + $0xd0] sm:$0xff] %v404_v57 }
  0xa7   : > { %v358_v59 = vpop.f32.mrf.mxu1  ;;  %v335_v60 = vadd.f32 %v680_v33, %v334_v58 }
  0xa8   : > { %v359_v61 = vadd.f32 %v680_v33, %v358_v59 }
  0xa9   : > { %424 = vst [vmem:[%s687_s25 + $0x18] sm:$0xff] %v335_v60 }
  0xaa   : > { %432 = vst [vmem:[%s687_s25 + $0x58] sm:$0xff] %v359_v61  ;;  %v382_v62 = vpop.f32.mrf.mxu2 }
  0xab   : > { %v406_v63 = vpop.f32.mrf.mxu3  ;;  %v383_v0 = vadd.f32 %v680_v33, %v382_v62 }
  0xac   : > { %v407_v1 = vadd.f32 %v680_v33, %v406_v63 }
  0xad   : > { %440 = vst [vmem:[%s687_s25 + $0x98] sm:$0xff] %v383_v0 }
  0xae   : > { %v337_v2 = vpop.f32.mrf.mxu0  ;;  %448 = vst [vmem:[%s687_s25 + $0xd8] sm:$0xff] %v407_v1 }
  0xaf   : > { %v361_v3 = vpop.f32.mrf.mxu1  ;;  %v338_v4 = vadd.f32 %v680_v33, %v337_v2 }
  0xb0   : > { %v362_v5 = vadd.f32 %v680_v33, %v361_v3 }
  0xb1   : > { %425 = vst [vmem:[%s687_s25 + $0x20] sm:$0xff] %v338_v4 }
  0xb2   : > { %433 = vst [vmem:[%s687_s25 + $0x60] sm:$0xff] %v362_v5  ;;  %v385_v6 = vpop.f32.mrf.mxu2 }
  0xb3   : > { %v409_v7 = vpop.f32.mrf.mxu3  ;;  %v386_v8 = vadd.f32 %v680_v33, %v385_v6 }
  0xb4   : > { %v410_v9 = vadd.f32 %v680_v33, %v409_v7 }
  0xb5   : > { %441 = vst [vmem:[%s687_s25 + $0xa0] sm:$0xff] %v386_v8 }
  0xb6   : > { %v340_v10 = vpop.f32.mrf.mxu0  ;;  %449 = vst [vmem:[%s687_s25 + $0xe0] sm:$0xff] %v410_v9 }
  0xb7   : > { %v364_v11 = vpop.f32.mrf.mxu1  ;;  %v341_v12 = vadd.f32 %v680_v33, %v340_v10 }
  0xb8   : > { %v365_v13 = vadd.f32 %v680_v33, %v364_v11 }
  0xb9   : > { %426 = vst [vmem:[%s687_s25 + $0x28] sm:$0xff] %v341_v12 }
  0xba   : > { %434 = vst [vmem:[%s687_s25 + $0x68] sm:$0xff] %v365_v13  ;;  %v388_v14 = vpop.f32.mrf.mxu2 }
  0xbb   : > { %v412_v15 = vpop.f32.mrf.mxu3  ;;  %v389_v16 = vadd.f32 %v680_v33, %v388_v14 }
  0xbc   : > { %v413_v17 = vadd.f32 %v680_v33, %v412_v15 }
  0xbd   : > { %442 = vst [vmem:[%s687_s25 + $0xa8] sm:$0xff] %v389_v16 }
  0xbe   : > { %v343_v18 = vpop.f32.mrf.mxu0  ;;  %450 = vst [vmem:[%s687_s25 + $0xe8] sm:$0xff] %v413_v17 }
  0xbf   : > { %v367_v19 = vpop.f32.mrf.mxu1  ;;  %v344_v20 = vadd.f32 %v680_v33, %v343_v18 }
  0xc0   : > { %v368_v21 = vadd.f32 %v680_v33, %v367_v19 }
  0xc1   : > { %427 = vst [vmem:[%s687_s25 + $0x30] sm:$0xff] %v344_v20 }
  0xc2   : > { %435 = vst [vmem:[%s687_s25 + $0x70] sm:$0xff] %v368_v21  ;;  %v391_v22 = vpop.f32.mrf.mxu2 }
  0xc3   : > { %v415_v23 = vpop.f32.mrf.mxu3  ;;  %v392_v24 = vadd.f32 %v680_v33, %v391_v22 }
  0xc4   : > { %v416_v25 = vadd.f32 %v680_v33, %v415_v23 }
  0xc5   : > { %443 = vst [vmem:[%s687_s25 + $0xb0] sm:$0xff] %v392_v24 }
  0xc6   : > { %v346_v26 = vpop.f32.mrf.mxu0  ;;  %451 = vst [vmem:[%s687_s25 + $0xf0] sm:$0xff] %v416_v25 }
  0xc7   : > { %v370_v27 = vpop.f32.mrf.mxu1  ;;  %v347_v28 = vadd.f32 %v680_v33, %v346_v26 }
  0xc8   : > { %v371_v29 = vadd.f32 %v680_v33, %v370_v27 }
  0xc9   : > { %428 = vst [vmem:[%s687_s25 + $0x38] sm:$0xff] %v347_v28 }
  0xca   : > { %436 = vst [vmem:[%s687_s25 + $0x78] sm:$0xff] %v371_v29  ;;  %v394_v30 = vpop.f32.mrf.mxu2 }
  0xcb   : > { %v418_v31 = vpop.f32.mrf.mxu3  ;;  %v395_v32 = vadd.f32 %v680_v33, %v394_v30 }
  0xcc   : > { %v419_v34 = vadd.f32 %v680_v33, %v418_v31 }
  0xcd   : > { %444 = vst [vmem:[%s687_s25 + $0xb8] sm:$0xff] %v395_v32 }
  0xce   : > { %452 = vst [vmem:[%s687_s25 + $0xf8] sm:$0xff] %v419_v34 }
  0xcf PF: > { %s13_s12 = sadd.s32 1, %s570_s12  }
  0xd0   : > { %p10_p4 = scmp.ge.s32.totalorder %s13_s12, 4  }
  0xd2   :  { %12 = sbr.rel (!%p10_p4) target bundleno = 1 (0x1), region = 62 }

// kernel: residual_block_forward.6
= control target key start
LH: loop header
LB: loop body
LE: loop exit
PB: predicated region body
PF: predicated region fallthrough
CT: control target
= control target key end

     0   :  { %s2792_s15 = smov 0   ;;  %s3834_s0 = inlined_call_operand.vmem [shape: f32[2,16,16,128], index: 0, kind: input, shape index: {}]   ;;  %s3835_s1 = inlined_call_operand.vmem [shape: f32[1152,128], index: 1, kind: input, shape index: {}]   ;;  %s3836_s2 = inlined_call_operand.vmem [shape: f32[2,128], index: 2, kind: input, shape index: {}]   ;;  %s3837_s3 = inlined_call_operand.vmem [shape: f32[512,128], index: 3, kind: output, shape index: {0}]   ;;  %s3838_s4 = inlined_call_operand.vmem [shape: f32[2,2,128], index: 4, kind: output, shape index: {1}]  }
   0x1 LB: > { %s2798_s16 = sadd.s32 4294967295, %s2764_s15   ;;  %p2687_p0 = scmp.ge.s32.totalorder %s2764_s15, 1  ;;  %s2764_s15 = sphi %s2792_s15, %s15_s15  }
   0x2   : > { %p165_p1 = scmp.lt.s32.totalorder %s2764_s15, 3 }
   0x4   : > { %p166_p2 = pnand %p2687_p0, %p165_p1 }
   0x5   : > { %p195_p3 = scmp.lt.s32.totalorder (!%p166_p2), %s2798_s16, 1  ;;  %s2690_s30 = sshll.u32 (!%p166_p2), %s2798_s16, 5 }
   0x6   : > { %169 = sbr.rel (%p166_p2) target bundleno = 799 (0x31f), region = 32  ;;  %p201_p4 = scmp.lt.s32.totalorder (!%p166_p2), %s2690_s30, 63 }
   0xb   : > { %v1309_v0 = vld [vmem:[%s3835_s1 + $0x78] sm:$0xff]  ;;  %v1308_v1 = vld [vmem:[%s3835_s1 + $0x70] sm:$0xff]  ;;  %v2766_v2 = vmov 0.0   ;;  %v1307_v3 = vld [vmem:[%s3835_s1 + $0x68] sm:$0xff]  ;;  %s2814_s23 = scalar_select %p195_p3, %s2798_s16, 1  ;;  %vm2593_vm0 = vcmask 1040384  }
   0xc   : > { %2696 = vmatpush.msra.mxu1 %v1309_v0  ;;  %2697 = vmatpush.msra.mxu2 %v1309_v0  ;;  %354 = vst [vmem:[#allocation2 + $0x60] sm:$0xff] %v2766_v2  ;;  %v1306_v4 = vld [vmem:[%s3835_s1 + $0x60] sm:$0xff]  ;;  %v1305_v5 = vld [vmem:[%s3835_s1 + $0x58] sm:$0xff]  ;;  %v1304_v9 = vld [vmem:[%s3835_s1 + $0x50] sm:$0xff]  ;;  %s3840_s30 = smov (!%p201_p4, %s2690_s30), 63 }
   0xd   : > { %2698 = vmatpush.msra.mxu3 %v1309_v0  ;;  %1438 = vmatpush.msra.mxu0 %v1309_v0  ;;  %355 = vst [vmem:[#allocation2 + $0x68] sm:$0xff] %v2766_v2  ;;  %s2695_s26 = sshll.u32 %s2814_s23, 8  ;;  %v2836_v7 = vld [vmem:[%s3836_s2] ss:$0 sm:$0xff]  ;;  %v2841_v8 = vld [vmem:[%s3836_s2 + $0x1] ss:$0 sm:$0xff] }
   0xe   : > { %2699 = vmatpush.msra.mxu1 %v1308_v1  ;;  %2700 = vmatpush.msra.mxu2 %v1308_v1  ;;  %342 = vst [vmem:[#allocation2] sm:$0xff] %v2766_v2  ;;  %s2829_s5 = scalar_lea.vmem %s3834_s0, %s2695_s26  ;;  %v1303_v11 = vld [vmem:[%s3835_s1 + $0x48] sm:$0xff]  ;;  %v1302_v13 = vld [vmem:[%s3835_s1 + $0x40] sm:$0xff]  ;;  %v1301_v15 = vld [vmem:[%s3835_s1 + $0x38] sm:$0xff]  ;;  %s2691_s16 = sshll.u32 %s3840_s30, 3 }
   0xf   : > { %2701 = vmatpush.msra.mxu3 %v1308_v1  ;;  %1439 = vmatpush.msra.mxu0 %v1308_v1  ;;  %343 = vst [vmem:[#allocation2 + $0x8] sm:$0xff] %v2766_v2  ;;  %v216_v6 = vld [vmem:[%s2829_s5 + $0x30] sm:$0xff]  ;;  %v1299_v17 = vld [vmem:[%s3835_s1 + $0x28] sm:$0xff]  ;;  %v1298_v18 = vld [vmem:[%s3835_s1 + $0x20] sm:$0xff]  ;;  %s3762_s8 = scalar_lea.vmem %s3837_s3, %s2691_s16  ;;  %s2692_s9 = sshll.u32 %s2814_s23, 1 }
  0x10   : > { %2702 = vmatpush.msra.mxu1 %v1307_v3  ;;  %2703 = vmatpush.msra.mxu2 %v1307_v3  ;;  %344 = vst [vmem:[#allocation2 + $0x10] sm:$0xff] %v2766_v2  ;;  %v251_v10 = vmul.f32 %v2836_v7, %v216_v6  ;;  %v1300_v16 = vld [vmem:[%s3835_s1 + $0x30] sm:$0xff]  ;;  %v1297_v19 = vld [vmem:[%s3835_s1 + $0x18] sm:$0xff]  ;;  %v1295_v21 = vld [vmem:[%s3835_s1 + $0x8] sm:$0xff]  ;;  %s209_s12 = scalar_lea.vmem %s3838_s4, %s2692_s9 }
  0x11   : > { %2704 = vmatpush.msra.mxu3 %v1307_v3  ;;  %1440 = vmatpush.msra.mxu0 %v1307_v3  ;;  %345 = vst [vmem:[#allocation2 + $0x18] sm:$0xff] %v2766_v2  ;;  %v1296_v20 = vld [vmem:[%s3835_s1 + $0x10] sm:$0xff]  ;;  %v1294_v22 = vld [vmem:[%s3835_s1] sm:$0xff]  ;;  %v1341_v24 = vld [vmem:[%s3835_s1 + $0x178] sm:$0xff] }
  0x12   : > { %2705 = vmatpush.msra.mxu1 %v1306_v4  ;;  %2706 = vmatpush.msra.mxu2 %v1306_v4  ;;  %346 = vst [vmem:[#allocation2 + $0x20] sm:$0xff] %v2766_v2  ;;  %v284_v12 = vadd.f32 %v2841_v8, %v251_v10  ;;  %v1357_v25 = vld [vmem:[%s3835_s1 + $0x1f8] sm:$0xff]  ;;  %v1340_v27 = vld [vmem:[%s3835_s1 + $0x170] sm:$0xff]  ;;  %v1339_v32 = vld [vmem:[%s3835_s1 + $0x168] sm:$0xff] }
  0x13   : > { %2707 = vmatpush.msra.mxu3 %v1306_v4  ;;  %1441 = vmatpush.msra.mxu0 %v1306_v4  ;;  %347 = vst [vmem:[#allocation2 + $0x28] sm:$0xff] %v2766_v2  ;;  %v1325_v26 = vld [vmem:[%s3835_s1 + $0xf8] sm:$0xff]  ;;  %v1356_v28 = vld [vmem:[%s3835_s1 + $0x1f0] sm:$0xff]  ;;  %v1355_v33 = vld [vmem:[%s3835_s1 + $0x1e8] sm:$0xff] }
  0x14   : > { %2708 = vmatpush.msra.mxu1 %v1305_v5  ;;  %2709 = vmatpush.msra.mxu2 %v1305_v5  ;;  %348 = vst [vmem:[#allocation2 + $0x30] sm:$0xff] %v2766_v2  ;;  %v2860_v14 = vmax.f32 %v284_v12, 0.0  ;;  %v224_v29 = vld [vmem:[%s2829_s5 + $0x70] sm:$0xff]  ;;  %v1373_v34 = vld [vmem:[%s3835_s1 + $0x278] sm:$0xff]  ;;  %v1323_v35 = vld [vmem:[%s3835_s1 + $0xe8] sm:$0xff] }
  0x15   : > { %2710 = vmatpush.msra.mxu3 %v1305_v5  ;;  %1442 = vmatpush.msra.mxu0 %v1305_v5  ;;  %349 = vst [vmem:[#allocation2 + $0x38] sm:$0xff] %v2766_v2  ;;  %v232_v30 = vld [vmem:[%s2829_s5 + $0xb0] sm:$0xff]  ;;  %v1338_v36 = vld [vmem:[%s3835_s1 + $0x160] sm:$0xff]  ;;  %v217_v39 = vld [vmem:[%s2829_s5 + $0x38] sm:$0xff]  ;;  %v259_v40 = vmul.f32 %v2836_v7, %v224_v29 }
  0x16   : > { %2711 = vmatpush.msra.mxu1 %v1304_v9  ;;  %2712 = vmatpush.msra.mxu2 %v1304_v9  ;;  %350 = vst [vmem:[#allocation2 + $0x40] sm:$0xff] %v2766_v2  ;;  %v1324_v31 = vld [vmem:[%s3835_s1 + $0xf0] sm:$0xff]  ;;  %v1354_v37 = vld [vmem:[%s3835_s1 + $0x1e0] sm:$0xff]  ;;  %v225_v41 = vld [vmem:[%s2829_s5 + $0x78] sm:$0xff]  ;;  %v267_v42 = vmul.f32 %v2836_v7, %v232_v30  ;;  %v252_v44 = vmul.f32 %v2836_v7, %v217_v39 }
  0x17   : > { %2713 = vmatpush.msra.mxu3 %v1304_v9  ;;  %1443 = vmatpush.msra.mxu0 %v1304_v9  ;;  %351 = vst [vmem:[#allocation2 + $0x48] sm:$0xff] %v2766_v2  ;;  %v1372_v38 = vld [vmem:[%s3835_s1 + $0x270] sm:$0xff]  ;;  %v233_v43 = vld [vmem:[%s2829_s5 + $0xb8] sm:$0xff]  ;;  %v218_v45 = vld [vmem:[%s2829_s5 + $0x40] sm:$0xff]  ;;  %v260_v46 = vmul.f32 %v2836_v7, %v225_v41  ;;  %v292_v50 = vadd.f32 %v2841_v8, %v259_v40 }
  0x18   : > { %2714 = vmatpush.msra.mxu1 %v1303_v11  ;;  %2715 = vmatpush.msra.mxu2 %v1303_v11  ;;  %352 = vst [vmem:[#allocation2 + $0x50] sm:$0xff] %v2766_v2  ;;  %v226_v47 = vld [vmem:[%s2829_s5 + $0x80] sm:$0xff]  ;;  %v219_v49 = vld [vmem:[%s2829_s5 + $0x48] sm:$0xff]  ;;  %v268_v51 = vmul.f32 %v2836_v7, %v233_v43  ;;  %v1337_v53 = vld [vmem:[%s3835_s1 + $0x158] sm:$0xff]  ;;  %v300_v55 = vadd.f32 %v2841_v8, %v267_v42 }
  0x19   : > { %2716 = vmatpush.msra.mxu3 %v1303_v11  ;;  %1444 = vmatpush.msra.mxu0 %v1303_v11  ;;  %403 = vst [vmem:[#allocation2 + $0x61] sm:$0xff] %v2860_v14  ;;  %v234_v48 = vld [vmem:[%s2829_s5 + $0xc0] sm:$0xff]  ;;  %v227_v54 = vld [vmem:[%s2829_s5 + $0x88] sm:$0xff]  ;;  %v253_v56 = vmul.f32 %v2836_v7, %v218_v45  ;;  %v1353_v57 = vld [vmem:[%s3835_s1 + $0x1d8] sm:$0xff]  ;;  %v285_v60 = vadd.f32 %v2841_v8, %v252_v44  ;;  %v324_v5 = vmax.f32 %v292_v50, 0.0 }
  0x1a   : > { %2717 = vmatpush.msra.mxu1 %v1302_v13  ;;  %2718 = vmatpush.msra.mxu2 %v1302_v13  ;;  %353 = vst [vmem:[#allocation2 + $0x58] sm:$0xff] %v2766_v2  ;;  %v1322_v52 = vld [vmem:[%s3835_s1 + $0xe0] sm:$0xff]  ;;  %v1371_v58 = vld [vmem:[%s3835_s1 + $0x268] sm:$0xff]  ;;  %v1321_v59 = vld [vmem:[%s3835_s1 + $0xd8] sm:$0xff]  ;;  %v261_v61 = vmul.f32 %v2836_v7, %v226_v47  ;;  %v293_v1 = vadd.f32 %v2841_v8, %v260_v46  ;;  %v332_v11 = vmax.f32 %v300_v55, 0.0 }
  0x1b   : > { %2719 = vmatpush.msra.mxu3 %v1302_v13  ;;  %1445 = vmatpush.msra.mxu0 %v1302_v13  ;;  %356 = vst [vmem:[#allocation2 + $0x70] sm:$0xff] %v2766_v2  ;;  %v1336_v62 = vld [vmem:[%s3835_s1 + $0x150] sm:$0xff]  ;;  %v1370_v0 = vld [vmem:[%s3835_s1 + $0x260] sm:$0xff]  ;;  %v269_v3 = vmul.f32 %v2836_v7, %v234_v48  ;;  %v301_v6 = vadd.f32 %v2841_v8, %v268_v51  ;;  %v235_v10 = vld [vmem:[%s2829_s5 + $0xc8] sm:$0xff] }
  0x1c   : > { %2720 = vmatpush.msra.mxu1 %v1301_v15  ;;  %2721 = vmatpush.msra.mxu2 %v1301_v15  ;;  %357 = vst [vmem:[#allocation2 + $0x78] sm:$0xff] %v2766_v2  ;;  %v1352_v63 = vld [vmem:[%s3835_s1 + $0x1d0] sm:$0xff]  ;;  %v210_v4 = vld [vmem:[%s2829_s5] sm:$0xff]  ;;  %v254_v9 = vmul.f32 %v2836_v7, %v219_v49  ;;  %v286_v12 = vadd.f32 %v2841_v8, %v253_v56  ;;  %v221_v45 = vld [vmem:[%s2829_s5 + $0x58] sm:$0xff] }
  0x1d   : > { %2722 = vmatpush.msra.mxu3 %v1301_v15  ;;  %1446 = vmatpush.msra.mxu0 %v1301_v15  ;;  %358 = vst [vmem:[#allocation2 + $0x80] sm:$0xff] %v2766_v2  ;;  %v262_v13 = vmul.f32 %v2836_v7, %v227_v54  ;;  %v220_v15 = vld [vmem:[%s2829_s5 + $0x50] sm:$0xff]  ;;  %v1350_v39 = vld [vmem:[%s3835_s1 + $0x1c0] sm:$0xff]  ;;  %v229_v46 = vld [vmem:[%s2829_s5 + $0x98] sm:$0xff]  ;;  %v256_v50 = vmul.f32 %v2836_v7, %v221_v45 }
  0x1e   : > { %2723 = vmatpush.msra.mxu1 %v1300_v16  ;;  %2724 = vmatpush.msra.mxu2 %v1300_v16  ;;  %359 = vst [vmem:[#allocation2 + $0x88] sm:$0xff] %v2766_v2  ;;  %v236_v29 = vld [vmem:[%s2829_s5 + $0xd0] sm:$0xff]  ;;  %v3044_v30 = vmax.f32 %v286_v12, 0.0  ;;  %v237_v51 = vld [vmem:[%s2829_s5 + $0xd8] sm:$0xff]  ;;  %v264_v54 = vmul.f32 %v2836_v7, %v229_v46 }
  0x1f   : > { %2725 = vmatpush.msra.mxu3 %v1300_v16  ;;  %1447 = vmatpush.msra.mxu0 %v1300_v16  ;;  %360 = vst [vmem:[#allocation2 + $0x90] sm:$0xff] %v2766_v2  ;;  %v3026_v16 = vmax.f32 %v285_v60, 0.0  ;;  %v1368_v40 = vld [vmem:[%s3835_s1 + $0x250] sm:$0xff]  ;;  %v271_v44 = vmul.f32 %v2836_v7, %v236_v29  ;;  %v1317_v12 = vld [vmem:[%s3835_s1 + $0xb8] sm:$0xff]  ;;  %v238_v29 = vld [vmem:[%s2829_s5 + $0xe0] sm:$0xff] }
  0x20   : > { %2726 = vmatpush.msra.mxu1 %v1299_v17  ;;  %2727 = vmatpush.msra.mxu2 %v1299_v17  ;;  %361 = vst [vmem:[#allocation2 + $0x98] sm:$0xff] %v2766_v2  ;;  %v2903_v23 = vld [vmem:[#allocation2 + $0x60] sm:$0xff]  ;;  %v212_v47 = vld [vmem:[%s2829_s5 + $0x10] sm:$0xff]  ;;  %v1365_v45 = vld [vmem:[%s3835_s1 + $0x238] sm:$0xff] }
  0x21   : > { %2728 = vmatpush.msra.mxu3 %v1299_v17  ;;  %1448 = vmatpush.msra.mxu0 %v1299_v17  ;;  %362 = vst [vmem:[#allocation2 + $0xa0] sm:$0xff] %v2766_v2  ;;  %v294_v17 = vadd.f32 %v2841_v8, %v261_v61  ;;  %v304_v60 = vadd.f32 %v2841_v8, %v271_v44  ;;  %v1347_v44 = vld [vmem:[%s3835_s1 + $0x1a8] sm:$0xff] }
  0x22   : > { %2729 = vmatpush.msra.mxu1 %v1298_v18  ;;  %2730 = vmatpush.msra.mxu2 %v1298_v18  ;;  %363 = vst [vmem:[#allocation2 + $0xa8] sm:$0xff] %v2766_v2  ;;  %v272_v61 = vmul.f32 %v2836_v7, %v237_v51 }
  0x23   : > { %2731 = vmatpush.msra.mxu3 %v1298_v18  ;;  %364 = vst [vmem:[#allocation2 + $0xb0] sm:$0xff] %v2766_v2  ;;  %1449 = vmatpush.msra.mxu0 %v1298_v18  ;;  %v245_v18 = vmul.f32 %v2836_v7, %v210_v4 }
  0x24   : > { %2732 = vmatpush.msra.mxu1 %v1297_v19  ;;  %2733 = vmatpush.msra.mxu2 %v1297_v19  ;;  %365 = vst [vmem:[#allocation2 + $0xb8] sm:$0xff] %v2766_v2 }
  0x25   : > { %2734 = vmatpush.msra.mxu3 %v1297_v19  ;;  %366 = vst [vmem:[#allocation2 + $0xc0] sm:$0xff] %v2766_v2  ;;  %1450 = vmatpush.msra.mxu0 %v1297_v19  ;;  %v228_v19 = vld [vmem:[%s2829_s5 + $0x90] sm:$0xff] }
  0x26   : > { %2735 = vmatpush.msra.mxu1 %v1296_v20  ;;  %2736 = vmatpush.msra.mxu2 %v1296_v20  ;;  %367 = vst [vmem:[#allocation2 + $0xc8] sm:$0xff] %v2766_v2 }
  0x27   : > { %2737 = vmatpush.msra.mxu3 %v1296_v20  ;;  %368 = vst [vmem:[#allocation2 + $0xd0] sm:$0xff] %v2766_v2  ;;  %1451 = vmatpush.msra.mxu0 %v1296_v20  ;;  %v325_v20 = vmax.f32 %v293_v1, 0.0  ;;  %v1333_v1 = vld [vmem:[%s3835_s1 + $0x138] sm:$0xff] }
  0x28   : > { %2738 = vmatpush.msra.mxu1 %v1295_v21  ;;  %2739 = vmatpush.msra.mxu2 %v1295_v21  ;;  %369 = vst [vmem:[#allocation2 + $0xd8] sm:$0xff] %v2766_v2 }
  0x29   : > { %2740 = vmatpush.msra.mxu3 %v1295_v21  ;;  %370 = vst [vmem:[#allocation2 + $0xe0] sm:$0xff] %v2766_v2  ;;  %1452 = vmatpush.msra.mxu0 %v1295_v21  ;;  %v302_v21 = vadd.f32 %v2841_v8, %v269_v3  ;;  %v289_v3 = vadd.f32 %v2841_v8, %v256_v50  ;;  %v1330_v50 = vld [vmem:[%s3835_s1 + $0x120] sm:$0xff] }
  0x2a   : > { %2741 = vmatpush.msra.mxu1 %v1294_v22  ;;  %2742 = vmatpush.msra.mxu2 %v1294_v22  ;;  %371 = vst [vmem:[#allocation2 + $0xe8] sm:$0xff] %v2766_v2 }
  0x2b   : > { %1478 = vmatmul.f32.vlgmr.msra.gmra.mxu1 %v2903_v23  ;;  %372 = vst [vmem:[#allocation2 + $0xf0] sm:$0xff] %v2766_v2  ;;  %2743 = vmatpush.msra.mxu3 %v1294_v22  ;;  %v334_v42 = vmax.f32 %v302_v21, 0.0  ;;  %v3131_v21 = vmax.f32 %v289_v3, 0.0 }
  0x2c   : > { %373 = vst [vmem:[#allocation2 + $0xf8] sm:$0xff] %v2766_v2  ;;  %1664 = vmatpush.msrb.mxu2 %v1341_v24  ;;  %1453 = vmatpush.msra.mxu0 %v1294_v22  ;;  %v270_v22 = vmul.f32 %v2836_v7, %v235_v10  ;;  %v211_v24 = vld [vmem:[%s2829_s5 + $0x8] sm:$0xff]  ;;  %v297_v10 = vadd.f32 %v2841_v8, %v264_v54  ;;  %v1364_v54 = vld [vmem:[%s3835_s1 + $0x230] sm:$0xff] }
  0x2d   : > { %374 = vst [vmem:[#allocation2 + $0x100] sm:$0xff] %v2766_v2  ;;  %1777 = vmatpush.msrb.mxu3 %v1357_v25  ;;  %1551 = vmatpush.msrb.mxu1 %v1325_v26  ;;  %v333_v25 = vmax.f32 %v301_v6, 0.0  ;;  %v287_v26 = vadd.f32 %v2841_v8, %v254_v9  ;;  %v246_v41 = vmul.f32 %v2836_v7, %v211_v24  ;;  %v1349_v6 = vld [vmem:[%s3835_s1 + $0x1b8] sm:$0xff]  ;;  %v1367_v9 = vld [vmem:[%s3835_s1 + $0x248] sm:$0xff]  ;;  %v230_v24 = vld [vmem:[%s2829_s5 + $0xa0] sm:$0xff] }
  0x2e   : > { %375 = vst [vmem:[#allocation2 + $0x108] sm:$0xff] %v2766_v2  ;;  %1665 = vmatpush.msrb.mxu2 %v1340_v27  ;;  %1454 = vmatmul.f32.vlgmr.msra.gmra.mxu0 %v2766_v2  ;;  %v1320_v27 = vld [vmem:[%s3835_s1 + $0xd0] sm:$0xff]  ;;  %v303_v43 = vadd.f32 %v2841_v8, %v270_v22  ;;  %v222_v22 = vld [vmem:[%s2829_s5 + $0x60] sm:$0xff] }
  0x2f   : > { %376 = vst [vmem:[#allocation2 + $0x110] sm:$0xff] %v2766_v2  ;;  %1778 = vmatpush.msrb.mxu3 %v1356_v28  ;;  %1552 = vmatpush.msrb.mxu1 %v1324_v31  ;;  %v1335_v28 = vld [vmem:[%s3835_s1 + $0x148] sm:$0xff]  ;;  %v295_v31 = vadd.f32 %v2841_v8, %v262_v13  ;;  %v3074_v48 = vmax.f32 %v287_v26, 0.0  ;;  %v279_v56 = vadd.f32 %v2841_v8, %v246_v41  ;;  %v1332_v13 = vld [vmem:[%s3835_s1 + $0x130] sm:$0xff]  ;;  %v3136_v26 = vmax.f32 %v297_v10, 0.0 }
  0x30   : > { %377 = vst [vmem:[#allocation2 + $0x118] sm:$0xff] %v2766_v2  ;;  %1666 = vmatpush.msrb.mxu2 %v1339_v32  ;;  %1890 = vmatpush.msrb.mxu0 %v1373_v34  ;;  %v1351_v32 = vld [vmem:[%s3835_s1 + $0x1c8] sm:$0xff] }
  0x31   : > { %378 = vst [vmem:[#allocation2 + $0x120] sm:$0xff] %v2766_v2  ;;  %1779 = vmatpush.msrb.mxu3 %v1355_v33  ;;  %1553 = vmatpush.msrb.mxu1 %v1323_v35  ;;  %v1369_v33 = vld [vmem:[%s3835_s1 + $0x258] sm:$0xff]  ;;  %v1319_v34 = vld [vmem:[%s3835_s1 + $0xc8] sm:$0xff]  ;;  %v263_v35 = vmul.f32 %v2836_v7, %v228_v19  ;;  %v1366_v19 = vld [vmem:[%s3835_s1 + $0x240] sm:$0xff] }
  0x32   : > { %379 = vst [vmem:[#allocation2 + $0x128] sm:$0xff] %v2766_v2  ;;  %1667 = vmatpush.msrb.mxu2 %v1338_v36  ;;  %1891 = vmatpush.msrb.mxu0 %v1372_v38  ;;  %v326_v36 = vmax.f32 %v294_v17, 0.0  ;;  %v1334_v38 = vld [vmem:[%s3835_s1 + $0x140] sm:$0xff]  ;;  %v336_v17 = vmax.f32 %v304_v60, 0.0 }
  0x33   : > { %380 = vst [vmem:[#allocation2 + $0x130] sm:$0xff] %v2766_v2  ;;  %1780 = vmatpush.msrb.mxu3 %v1354_v37  ;;  %1554 = vmatpush.msrb.mxu1 %v1322_v52  ;;  %v278_v37 = vadd.f32 %v2841_v8, %v245_v18  ;;  %v3080_v52 = vmax.f32 %v295_v31, 0.0  ;;  %v1348_v18 = vld [vmem:[%s3835_s1 + $0x1b0] sm:$0xff] }
  0x34   : > { %381 = vst [vmem:[#allocation2 + $0x138] sm:$0xff] %v2766_v2  ;;  %1668 = vmatpush.msrb.mxu2 %v1337_v53  ;;  %1892 = vmatpush.msrb.mxu0 %v1371_v58  ;;  %v296_v53 = vadd.f32 %v2841_v8, %v263_v35 }
  0x35   : > { %382 = vst [vmem:[#allocation2 + $0x140] sm:$0xff] %v2766_v2  ;;  %1781 = vmatpush.msrb.mxu3 %v1353_v57  ;;  %1555 = vmatpush.msrb.mxu1 %v1321_v59  ;;  %v3084_v55 = vmax.f32 %v278_v37, 0.0  ;;  %v247_v57 = vmul.f32 %v2836_v7, %v212_v47  ;;  %v335_v59 = vmax.f32 %v303_v43, 0.0 }
  0x36   : > { %383 = vst [vmem:[#allocation2 + $0x148] sm:$0xff] %v2766_v2  ;;  %1457 = vmatmul.f32.gmra.mxu0 %v2766_v2  ;;  %1669 = vmatpush.msrb.mxu2 %v1336_v62 }
  0x37   : > { %384 = vst [vmem:[#allocation2 + $0x150] sm:$0xff] %v2766_v2  ;;  %1782 = vmatpush.msrb.mxu3 %v1352_v63  ;;  %1893 = vmatpush.msrb.mxu0 %v1370_v0  ;;  %v1318_v0 = vld [vmem:[%s3835_s1 + $0xc0] sm:$0xff] }
  0x38   : > { %385 = vst [vmem:[#allocation2 + $0x158] sm:$0xff] %v2766_v2  ;;  %1556 = vmatpush.msrb.mxu1 %v1320_v27  ;;  %1670 = vmatpush.msrb.mxu2 %v1335_v28  ;;  %v257_v27 = vmul.f32 %v2836_v7, %v222_v22  ;;  %v265_v28 = vmul.f32 %v2836_v7, %v230_v24  ;;  %v1363_v22 = vld [vmem:[%s3835_s1 + $0x228] sm:$0xff] }
  0x39   : > { %386 = vst [vmem:[#allocation2 + $0x160] sm:$0xff] %v2766_v2  ;;  %1783 = vmatpush.msrb.mxu3 %v1351_v32  ;;  %1894 = vmatpush.msrb.mxu0 %v1369_v33 }
  0x3a   : > { %387 = vst [vmem:[#allocation2 + $0x168] sm:$0xff] %v2766_v2  ;;  %1557 = vmatpush.msrb.mxu1 %v1319_v34  ;;  %1671 = vmatpush.msrb.mxu2 %v1334_v38  ;;  %v273_v34 = vmul.f32 %v2836_v7, %v238_v29  ;;  %v290_v37 = vadd.f32 %v2841_v8, %v257_v27  ;;  %v1313_v27 = vld [vmem:[%s3835_s1 + $0x98] sm:$0xff] }
  0x3b   : > { %388 = vst [vmem:[#allocation2 + $0x170] sm:$0xff] %v2766_v2  ;;  %1784 = vmatpush.msrb.mxu3 %v1350_v39  ;;  %1895 = vmatpush.msrb.mxu0 %v1368_v40  ;;  %v298_v38 = vadd.f32 %v2841_v8, %v265_v28  ;;  %v1316_v39 = vld [vmem:[%s3835_s1 + $0xb0] sm:$0xff]  ;;  %v1331_v40 = vld [vmem:[%s3835_s1 + $0x128] sm:$0xff] }
  0x3c   : > { %389 = vst [vmem:[#allocation2 + $0x178] sm:$0xff] %v2766_v2  ;;  %1558 = vmatpush.msrb.mxu1 %v1318_v0  ;;  %1672 = vmatpush.msrb.mxu2 %v1333_v1  ;;  %v3169_v46 = vmax.f32 %v290_v37, 0.0  ;;  %v239_v0 = vld [vmem:[%s2829_s5 + $0xe8] sm:$0xff]  ;;  %v1328_v28 = vld [vmem:[%s3835_s1 + $0x110] sm:$0xff] }
  0x3d   : > { %390 = vst [vmem:[#allocation2 + $0x180] sm:$0xff] %v2766_v2  ;;  %1785 = vmatpush.msrb.mxu3 %v1349_v6  ;;  %1896 = vmatpush.msrb.mxu0 %v1367_v9  ;;  %v3171_v47 = vmax.f32 %v298_v38, 0.0  ;;  %v274_v6 = vmul.f32 %v2836_v7, %v239_v0  ;;  %v1359_v0 = vld [vmem:[%s3835_s1 + $0x208] sm:$0xff] }
  0x3e   : > { %391 = vst [vmem:[#allocation2 + $0x188] sm:$0xff] %v2766_v2  ;;  %1559 = vmatpush.msrb.mxu1 %v1317_v12  ;;  %1673 = vmatpush.msrb.mxu2 %v1332_v13 }
  0x3f   : > { %392 = vst [vmem:[#allocation2 + $0x190] sm:$0xff] %v2766_v2  ;;  %1786 = vmatpush.msrb.mxu3 %v1348_v18  ;;  %1897 = vmatpush.msrb.mxu0 %v1366_v19  ;;  %v307_v19 = vadd.f32 %v2841_v8, %v274_v6  ;;  %v1358_v6 = vld [vmem:[%s3835_s1 + $0x200] sm:$0xff] }
  0x40   : > { %393 = vst [vmem:[#allocation2 + $0x198] sm:$0xff] %v2766_v2  ;;  %1560 = vmatpush.msrb.mxu1 %v1316_v39  ;;  %1674 = vmatpush.msrb.mxu2 %v1331_v40 }
  0x41   : > { %394 = vst [vmem:[#allocation2 + $0x1a0] sm:$0xff] %v2766_v2  ;;  %1787 = vmatpush.msrb.mxu3 %v1347_v44  ;;  %1898 = vmatpush.msrb.mxu0 %v1365_v45  ;;  %v339_v29 = vmax.f32 %v307_v19, 0.0  ;;  %v1327_v44 = vld [vmem:[%s3835_s1 + $0x108] sm:$0xff] }
  0x42   : > { %395 = vst [vmem:[#allocation2 + $0x1a8] sm:$0xff] %v2766_v2  ;;  %v255_v2 = vmul.f32 %v2836_v7, %v220_v15  ;;  %v280_v15 = vadd.f32 %v2841_v8, %v247_v57  ;;  %v223_v57 = vld [vmem:[%s2829_s5 + $0x68] sm:$0xff]  ;;  %1675 = vmatpush.msrb.mxu2 %v1330_v50  ;;  %v1326_v50 = vld [vmem:[%s3835_s1 + $0x100] sm:$0xff] }
  0x43   : > { %411 = vst [vmem:[#allocation2 + $0xc1] sm:$0xff] %v324_v5  ;;  %v3103_v5 = vmax.f32 %v296_v53, 0.0  ;;  %v1346_v53 = vld [vmem:[%s3835_s1 + $0x1a0] sm:$0xff]  ;;  %v258_v60 = vmul.f32 %v2836_v7, %v223_v57  ;;  %1899 = vmatpush.msrb.mxu0 %v1364_v54  ;;  %v1311_v45 = vld [vmem:[%s3835_s1 + $0x88] sm:$0xff]  ;;  %v1360_v54 = vld [vmem:[%s3835_s1 + $0x210] sm:$0xff] }
  0x44   : > { %419 = vst [vmem:[#allocation2 + $0x121] sm:$0xff] %v332_v11  ;;  %v288_v49 = vadd.f32 %v2841_v8, %v255_v2  ;;  %v3114_v11 = vmax.f32 %v279_v56, 0.0  ;;  %v213_v2 = vld [vmem:[%s2829_s5 + $0x18] sm:$0xff]  ;;  %v3143_v32 = vmax.f32 %v280_v15, 0.0  ;;  %1788 = vmatpush.msrb.mxu3 %v1346_v53  ;;  %v1314_v15 = vld [vmem:[%s3835_s1 + $0xa0] sm:$0xff] }
  0x45   : > { %404 = vst [vmem:[#allocation2 + $0x69] sm:$0xff] %v3026_v16  ;;  %v248_v33 = vmul.f32 %v2836_v7, %v213_v2  ;;  %v291_v12 = vadd.f32 %v2841_v8, %v258_v60  ;;  %1900 = vmatpush.msrb.mxu0 %v1363_v22  ;;  %v1342_v53 = vld [vmem:[%s3835_s1 + $0x180] sm:$0xff] }
  0x46   : > { %412 = vst [vmem:[#allocation2 + $0xc9] sm:$0xff] %v325_v20  ;;  %v3091_v63 = vmax.f32 %v288_v49, 0.0  ;;  %v305_v20 = vadd.f32 %v2841_v8, %v272_v61  ;;  %v1315_v49 = vld [vmem:[%s3835_s1 + $0xa8] sm:$0xff] }
  0x47   : > { %420 = vst [vmem:[#allocation2 + $0x129] sm:$0xff] %v333_v25  ;;  %v281_v41 = vadd.f32 %v2841_v8, %v248_v33  ;;  %1561 = vmatpush.msrb.mxu1 %v1315_v49  ;;  %v3224_v24 = vmax.f32 %v291_v12, 0.0  ;;  %v1362_v33 = vld [vmem:[%s3835_s1 + $0x220] sm:$0xff] }
  0x48   : > { %405 = vst [vmem:[#allocation2 + $0x79] sm:$0xff] %v3044_v30  ;;  %1901 = vmatpush.msrb.mxu0 %v1362_v33 }
  0x49   : > { %413 = vst [vmem:[#allocation2 + $0xd9] sm:$0xff] %v326_v36  ;;  %v337_v36 = vmax.f32 %v305_v20, 0.0  ;;  %v3182_v51 = vmax.f32 %v281_v41, 0.0  ;;  %1562 = vmatpush.msrb.mxu1 %v1314_v15  ;;  %v1345_v20 = vld [vmem:[%s3835_s1 + $0x198] sm:$0xff] }
  0x4a   : > { %v445_v58 = vld [vmem:[#allocation2 + $0xc0] sm:$0xff]  ;;  %421 = vst [vmem:[#allocation2 + $0x139] sm:$0xff] %v334_v42  ;;  %v306_v42 = vadd.f32 %v2841_v8, %v273_v34  ;;  %1789 = vmatpush.msrb.mxu3 %v1345_v20  ;;  %v215_v34 = vld [vmem:[%s2829_s5 + $0x28] sm:$0xff] }
  0x4b   : > { %1502 = vmatmul.f32.vlgmr.msra.gmra.mxu2 %v445_v58  ;;  %v453_v62 = vld [vmem:[#allocation2 + $0x120] sm:$0xff]  ;;  %406 = vst [vmem:[#allocation2 + $0x81] sm:$0xff] %v3074_v48  ;;  %v231_v58 = vld [vmem:[%s2829_s5 + $0xa8] sm:$0xff]  ;;  %1563 = vmatpush.msrb.mxu1 %v1313_v27  ;;  %v250_v37 = vmul.f32 %v2836_v7, %v215_v34 }
  0x4c   : > { %1526 = vmatmul.f32.vlgmr.msra.gmra.mxu3 %v453_v62  ;;  %v3100_v4 = vld [vmem:[#allocation2 + $0x68] sm:$0xff]  ;;  %414 = vst [vmem:[#allocation2 + $0xe1] sm:$0xff] %v3080_v52  ;;  %v338_v56 = vmax.f32 %v306_v42, 0.0  ;;  %v266_v61 = vmul.f32 %v2836_v7, %v231_v58  ;;  %v214_v62 = vld [vmem:[%s2829_s5 + $0x20] sm:$0xff]  ;;  %v1312_v42 = vld [vmem:[%s3835_s1 + $0x90] sm:$0xff] }
  0x4d   : > { %1481 = vmatmul.f32.gmra.mxu1 %v3100_v4  ;;  %397 = vst [vmem:[#allocation2 + $0x19] sm:$0xff] %v3084_v55  ;;  %v446_v25 = vld [vmem:[#allocation2 + $0xc8] sm:$0xff]  ;;  %v249_v3 = vmul.f32 %v2836_v7, %v214_v62  ;;  %v283_v41 = vadd.f32 %v2841_v8, %v250_v37  ;;  %v1405_v62 = vld [vmem:[%s3835_s1 + $0x378] sm:$0xff] }
  0x4e   : > { %422 = vst [vmem:[#allocation2 + $0x141] sm:$0xff] %v335_v59  ;;  %v454_v31 = vld [vmem:[#allocation2 + $0x128] sm:$0xff]  ;;  %v299_v13 = vadd.f32 %v2841_v8, %v266_v61  ;;  %1564 = vmatpush.msrb.mxu1 %v1312_v42 }
  0x4f   : > { %407 = vst [vmem:[#allocation2 + $0x91] sm:$0xff] %v3091_v63  ;;  %v3147_v35 = vld [vmem:[#allocation2 + $0x78] sm:$0xff]  ;;  %v282_v18 = vadd.f32 %v2841_v8, %v249_v3  ;;  %v1343_v7 = vld [vmem:[%s3835_s1 + $0x188] sm:$0xff]  ;;  %v3272_v49 = vmax.f32 %v283_v41, 0.0 }
  0x50   : > { %415 = vst [vmem:[#allocation2 + $0xf1] sm:$0xff] %v3103_v5  ;;  %v3193_v59 = vld [vmem:[#allocation2 + $0xd8] sm:$0xff]  ;;  %1565 = vmatpush.msrb.mxu1 %v1311_v45  ;;  %v493_v37 = vld [vmem:[#allocation2 + $0x1] sm:$0xff]  ;;  %v494_v42 = vld [vmem:[#allocation2 + $0x9] sm:$0xff] }
  0x51   : > { %398 = vst [vmem:[#allocation2 + $0x21] sm:$0xff] %v3114_v11  ;;  %v455_v1 = vld [vmem:[#allocation2 + $0x138] sm:$0xff]  ;;  %v3236_v2 = vmax.f32 %v282_v18, 0.0  ;;  %v557_v41 = vld [vmem:[#allocation2 + $0x2] sm:$0xff]  ;;  %v558_v45 = vld [vmem:[#allocation2 + $0xa] sm:$0xff] }
  0x52   : > { %423 = vst [vmem:[#allocation2 + $0x151] sm:$0xff] %v336_v17  ;;  %v3203_v9 = vld [vmem:[#allocation2 + $0x80] sm:$0xff]  ;;  %v1329_v17 = vld [vmem:[%s3835_s1 + $0x118] sm:$0xff] }
  0x53   : > { %1505 = vmatmul.f32.gmra.mxu2 %v446_v25  ;;  %408 = vst [vmem:[#allocation2 + $0x99] sm:$0xff] %v3131_v21  ;;  %v3226_v25 = vmax.f32 %v299_v13, 0.0  ;;  %v1361_v8 = vld [vmem:[%s3835_s1 + $0x218] sm:$0xff] }
  0x54   : > { %1529 = vmatmul.f32.gmra.mxu3 %v454_v31  ;;  %v3160_v43 = vld [vmem:[#allocation2 + $0x18] sm:$0xff]  ;;  %416 = vst [vmem:[#allocation2 + $0xf9] sm:$0xff] %v3136_v26  ;;  %1676 = vmatpush.msrb.mxu2 %v1329_v17  ;;  %v1344_v31 = vld [vmem:[%s3835_s1 + $0x190] sm:$0xff] }
  0x55   : > { %1484 = vmatmul.f32.gmra.mxu1 %v3147_v35  ;;  %1460 = vmatmul.f32.gmra.mxu0 %v3160_v43  ;;  %399 = vst [vmem:[#allocation2 + $0x31] sm:$0xff] %v3143_v32  ;;  %v456_v38 = vld [vmem:[#allocation2 + $0x140] sm:$0xff]  ;;  %v1389_v3 = vld [vmem:[%s3835_s1 + $0x2f8] sm:$0xff] }
  0x56   : > { %424 = vst [vmem:[#allocation2 + $0x159] sm:$0xff] %v337_v36  ;;  %v3247_v36 = vld [vmem:[#allocation2 + $0xe0] sm:$0xff]  ;;  %1677 = vmatpush.msrb.mxu2 %v1328_v28  ;;  %1790 = vmatpush.msrb.mxu3 %v1344_v31  ;;  %v3251_v39 = vld [vmem:[#allocation2 + $0x90] sm:$0xff]  ;;  %v1437_v18 = vld [vmem:[%s3835_s1 + $0x478] sm:$0xff] }
  0x57   : > { %409 = vst [vmem:[#allocation2 + $0xa9] sm:$0xff] %v3169_v46  ;;  %1902 = vmatpush.msrb.mxu0 %v1361_v8  ;;  %v3289_v57 = vld [vmem:[#allocation2 + $0xf0] sm:$0xff]  ;;  %v1387_v8 = vld [vmem:[%s3835_s1 + $0x2e8] sm:$0xff] }
  0x58   : > { %417 = vst [vmem:[#allocation2 + $0x109] sm:$0xff] %v3171_v47  ;;  %v3205_v10 = vld [vmem:[#allocation2 + $0x20] sm:$0xff]  ;;  %1678 = vmatpush.msrb.mxu2 %v1327_v44  ;;  %1791 = vmatpush.msrb.mxu3 %v1343_v7  ;;  %v1404_v28 = vld [vmem:[%s3835_s1 + $0x370] sm:$0xff]  ;;  %v1403_v44 = vld [vmem:[%s3835_s1 + $0x368] sm:$0xff] }
  0x59   : > { %400 = vst [vmem:[#allocation2 + $0x39] sm:$0xff] %v3182_v51  ;;  %v457_v58 = vld [vmem:[#allocation2 + $0x150] sm:$0xff]  ;;  %1903 = vmatpush.msrb.mxu0 %v1360_v54  ;;  %v1419_v7 = vld [vmem:[%s3835_s1 + $0x3e8] sm:$0xff] }
  0x5a   : > { %425 = vst [vmem:[#allocation2 + $0x169] sm:$0xff] %v338_v56  ;;  %v1310_v56 = vld [vmem:[%s3835_s1 + $0x80] sm:$0xff]  ;;  %1679 = vmatpush.msrb.mxu2 %v1326_v50  ;;  %1792 = vmatpush.msrb.mxu3 %v1342_v53  ;;  %v3291_v60 = vld [vmem:[#allocation2 + $0x98] sm:$0xff]  ;;  %v1388_v31 = vld [vmem:[%s3835_s1 + $0x2f0] sm:$0xff] }
  0x5b   : > { %1508 = vmatmul.f32.gmra.mxu2 %v3193_v59  ;;  %410 = vst [vmem:[#allocation2 + $0xb1] sm:$0xff] %v3224_v24  ;;  %1566 = vmatpush.msrb.mxu1 %v1310_v56  ;;  %v3313_v12 = vld [vmem:[#allocation2 + $0xf8] sm:$0xff]  ;;  %v1402_v53 = vld [vmem:[%s3835_s1 + $0x360] sm:$0xff] }
  0x5c   : > { %1532 = vmatmul.f32.gmra.mxu3 %v455_v1  ;;  %418 = vst [vmem:[#allocation2 + $0x111] sm:$0xff] %v3226_v25  ;;  %v3253_v40 = vld [vmem:[#allocation2 + $0x30] sm:$0xff]  ;;  %2116 = vmatpush.msra.mxu2 %v1405_v62  ;;  %v1421_v1 = vld [vmem:[%s3835_s1 + $0x3f8] sm:$0xff]  ;;  %v560_v54 = vld [vmem:[#allocation2 + $0x22] sm:$0xff] }
  0x5d   : > { %1487 = vmatmul.f32.gmra.mxu1 %v3203_v9  ;;  %1463 = vmatmul.f32.gmra.mxu0 %v3205_v10  ;;  %401 = vst [vmem:[#allocation2 + $0x49] sm:$0xff] %v3236_v2  ;;  %v458_v13 = vld [vmem:[#allocation2 + $0x158] sm:$0xff] }
  0x5e   : > { %426 = vst [vmem:[#allocation2 + $0x171] sm:$0xff] %v339_v29  ;;  %1904 = vmatpush.msrb.mxu0 %v1359_v0  ;;  %2229 = vmatpush.msra.mxu3 %v1421_v1  ;;  %v3315_v15 = vld [vmem:[#allocation2 + $0xa8] sm:$0xff]  ;;  %v1420_v29 = vld [vmem:[%s3835_s1 + $0x3f0] sm:$0xff]  ;;  %v559_v50 = vld [vmem:[#allocation2 + $0x1a] sm:$0xff] }
  0x5f   : > { %402 = vst [vmem:[#allocation2 + $0x51] sm:$0xff] %v3272_v49  ;;  %2003 = vmatpush.msra.mxu1 %v1389_v3  ;;  %v3325_v19 = vld [vmem:[#allocation2 + $0x108] sm:$0xff]  ;;  %2117 = vmatpush.msra.mxu2 %v1404_v28  ;;  %v1433_v62 = vld [vmem:[%s3835_s1 + $0x458] sm:$0xff]  ;;  %v1400_v0 = vld [vmem:[%s3835_s1 + $0x350] sm:$0xff] }
  0x60   : > { %v3293_v61 = vld [vmem:[#allocation2 + $0x38] sm:$0xff]  ;;  %1905 = vmatpush.msrb.mxu0 %v1358_v6  ;;  %2230 = vmatpush.msra.mxu3 %v1420_v29  ;;  %v1416_v1 = vld [vmem:[%s3835_s1 + $0x3d0] sm:$0xff] }
  0x61   : > { %v459_v20 = vld [vmem:[#allocation2 + $0x168] sm:$0xff]  ;;  %2004 = vmatpush.msra.mxu1 %v1388_v31  ;;  %2118 = vmatpush.msra.mxu2 %v1403_v44  ;;  %v561_v56 = vld [vmem:[#allocation2 + $0x32] sm:$0xff] }
  0x62   : > { %2342 = vmatpush.msra.mxu0 %v1437_v18  ;;  %v3327_v22 = vld [vmem:[#allocation2 + $0xb0] sm:$0xff]  ;;  %2231 = vmatpush.msra.mxu3 %v1419_v7  ;;  %v1382_v7 = vld [vmem:[%s3835_s1 + $0x2c0] sm:$0xff] }
  0x63   : > { %1511 = vmatmul.f32.gmra.mxu2 %v3247_v36  ;;  %v3343_v33 = vld [vmem:[#allocation2 + $0x110] sm:$0xff]  ;;  %2005 = vmatpush.msra.mxu1 %v1387_v8 }
  0x64   : > { %1535 = vmatmul.f32.gmra.mxu3 %v456_v38  ;;  %v3317_v17 = vld [vmem:[#allocation2 + $0x48] sm:$0xff]  ;;  %v1436_v38 = vld [vmem:[%s3835_s1 + $0x470] sm:$0xff]  ;;  %2119 = vmatpush.msra.mxu2 %v1402_v53 }
  0x65   : > { %1490 = vmatmul.f32.gmra.mxu1 %v3251_v39  ;;  %1466 = vmatmul.f32.gmra.mxu0 %v3253_v40  ;;  %v460_v34 = vld [vmem:[#allocation2 + $0x170] sm:$0xff] }
  0x66   : > { %v3329_v27 = vld [vmem:[#allocation2 + $0x50] sm:$0xff]  ;;  %2343 = vmatpush.msra.mxu0 %v1436_v38  ;;  %v567_v38 = vld [vmem:[#allocation2 + $0x7a] sm:$0xff] }
  0x67   : > { %v1384_v3 = vld [vmem:[%s3835_s1 + $0x2d0] sm:$0xff] }
  0x68   : > { %v564_v6 = vld [vmem:[#allocation2 + $0x52] sm:$0xff] }
  0x6b   : > { %1514 = vmatmul.f32.gmra.mxu2 %v3289_v57 }
  0x6c   : > { %1538 = vmatmul.f32.gmra.mxu3 %v457_v58  ;;  %v1417_v58 = vld [vmem:[%s3835_s1 + $0x3d8] sm:$0xff] }
  0x6d   : > { %1493 = vmatmul.f32.gmra.mxu1 %v3291_v60  ;;  %1469 = vmatmul.f32.gmra.mxu0 %v3293_v61 }
  0x73   : > { %1517 = vmatmul.f32.gmra.mxu2 %v3313_v12 }
  0x74   : > { %1541 = vmatmul.f32.gmra.mxu3 %v458_v13 }
  0x75   : > { %1496 = vmatmul.f32.gmra.mxu1 %v3315_v15  ;;  %1472 = vmatmul.f32.gmra.mxu0 %v3317_v17 }
  0x7b   : > { %1520 = vmatmul.f32.gmra.mxu2 %v3325_v19 }
  0x7c   : > { %1544 = vmatmul.f32.gmra.mxu3 %v459_v20  ;;  %v1399_v20 = vld [vmem:[%s3835_s1 + $0x348] sm:$0xff] }
  0x7d   : > { %1499 = vmatmul.f32.gmra.mxu1 %v3327_v22  ;;  %1475 = vmatmul.f32.gmra.mxu0 %v3329_v27 }
  0x83   : > { %1523 = vmatmul.f32.gmra.mxu2 %v3343_v33 }
  0x84   : > { %1547 = vmatmul.f32.gmra.mxu3 %v460_v34 }
  0x85   : > { %1567 = vmatmul.f32.vlgmr.msrb.gmra.mxu1 %v493_v37  ;;  %1906 = vmatmul.f32.vlgmr.msrb.gmra.mxu0 %v3084_v55 }
  0x8b   : > { %1680 = vmatmul.f32.vlgmr.msrb.gmra.mxu2 %v557_v41 }
  0x8c   : > { %1793 = vmatmul.f32.vlgmr.msrb.gmra.mxu3 %v3160_v43  ;;  %v1435_v43 = vld [vmem:[%s3835_s1 + $0x468] sm:$0xff] }
  0x8d   : > { %1570 = vmatmul.f32.gmra.mxu1 %v494_v42  ;;  %1909 = vmatmul.f32.gmra.mxu0 %v3114_v11 }
  0x8e   : > { %2344 = vmatpush.msra.mxu0 %v1435_v43 }
  0x93   : > { %1683 = vmatmul.f32.gmra.mxu2 %v558_v45 }
  0x94   : > { %1796 = vmatmul.f32.gmra.mxu3 %v3205_v10  ;;  %v1418_v10 = vld [vmem:[%s3835_s1 + $0x3e0] sm:$0xff] }
  0x95   : > { %1573 = vmatmul.f32.gmra.mxu1 %v3084_v55  ;;  %1912 = vmatmul.f32.gmra.mxu0 %v3143_v32  ;;  %v1386_v55 = vld [vmem:[%s3835_s1 + $0x2e0] sm:$0xff] }
  0x96   : > { %2232 = vmatpush.msra.mxu3 %v1418_v10  ;;  %2006 = vmatpush.msra.mxu1 %v1386_v55  ;;  %v569_v10 = vld [vmem:[#allocation2 + $0x92] sm:$0xff] }
  0x98   : > { %2233 = vmatpush.msra.mxu3 %v1417_v58  ;;  %v570_v58 = vld [vmem:[#allocation2 + $0x9a] sm:$0xff] }
  0x9a   : > { %2234 = vmatpush.msra.mxu3 %v1416_v1  ;;  %v635_v1 = vld [vmem:[#allocation2 + $0xc0] sm:$0xff] }
  0x9b   : > { %1686 = vmatmul.f32.gmra.mxu2 %v559_v50 }
  0x9c   : > { %1799 = vmatmul.f32.gmra.mxu3 %v3253_v40  ;;  %v1434_v40 = vld [vmem:[%s3835_s1 + $0x460] sm:$0xff] }
  0x9d   : > { %1576 = vmatmul.f32.gmra.mxu1 %v3114_v11  ;;  %1915 = vmatmul.f32.gmra.mxu0 %v3182_v51  ;;  %v1401_v11 = vld [vmem:[%s3835_s1 + $0x358] sm:$0xff] }
  0x9e   : > { %2345 = vmatpush.msra.mxu0 %v1434_v40  ;;  %2120 = vmatpush.msra.mxu2 %v1401_v11  ;;  %v1381_v11 = vld [vmem:[%s3835_s1 + $0x2b8] sm:$0xff] }
  0xa0   : > { %2346 = vmatpush.msra.mxu0 %v1433_v62  ;;  %2121 = vmatpush.msra.mxu2 %v1400_v0  ;;  %v571_v0 = vld [vmem:[#allocation2 + $0xaa] sm:$0xff] }
  0xa2   : > { %2122 = vmatpush.msra.mxu2 %v1399_v20 }
  0xa3   : > { %1689 = vmatmul.f32.gmra.mxu2 %v560_v54 }
  0xa4   : > { %1802 = vmatmul.f32.gmra.mxu3 %v3293_v61  ;;  %v562_v61 = vld [vmem:[#allocation2 + $0x3a] sm:$0xff] }
  0xa5   : > { %1579 = vmatmul.f32.gmra.mxu1 %v3143_v32  ;;  %1918 = vmatmul.f32.gmra.mxu0 %v3236_v2  ;;  %v1385_v32 = vld [vmem:[%s3835_s1 + $0x2d8] sm:$0xff] }
  0xa6   : > { %2007 = vmatpush.msra.mxu1 %v1385_v32 }
  0xa8   : > { %2008 = vmatpush.msra.mxu1 %v1384_v3  ;;  %v3417_v13 = vpop.f32.mrf.mxu1 }
  0xab   : > { %1692 = vmatmul.f32.gmra.mxu2 %v561_v56 }
  0xac   : > { %1805 = vmatmul.f32.gmra.mxu3 %v3317_v17 }
  0xad   : > { %1582 = vmatmul.f32.gmra.mxu1 %v3182_v51  ;;  %1921 = vmatmul.f32.gmra.mxu0 %v3272_v49  ;;  %v563_v51 = vld [vmem:[#allocation2 + $0x4a] sm:$0xff] }
  0xb3   : > { %1695 = vmatmul.f32.gmra.mxu2 %v562_v61  ;;  %v699_v61 = vld [vmem:[#allocation2 + $0xc1] sm:$0xff] }
  0xb4   : > { %1808 = vmatmul.f32.gmra.mxu3 %v3329_v27  ;;  %v1383_v27 = vld [vmem:[%s3835_s1 + $0x2c8] sm:$0xff] }
  0xb5   : > { %1585 = vmatmul.f32.gmra.mxu1 %v3236_v2  ;;  %1924 = vmatmul.f32.gmra.mxu0 %v2860_v14  ;;  %v3412_v2 = vpop.f32.mrf.mxu0 }
  0xb6   : > { %2009 = vmatpush.msra.mxu1 %v1383_v27  ;;  %v572_v27 = vld [vmem:[#allocation2 + $0xb2] sm:$0xff] }
  0xb8   : > { %2010 = vmatpush.msra.mxu1 %v1382_v7 }
  0xba   : > { %2011 = vmatpush.msra.mxu1 %v1381_v11 }
  0xbb   : > { %1698 = vmatmul.f32.gmra.mxu2 %v563_v51 }
  0xbc   : > { %1811 = vmatmul.f32.gmra.mxu3 %v2903_v23  ;;  %v1432_v23 = vld [vmem:[%s3835_s1 + $0x450] sm:$0xff] }
  0xbd   : > { %1588 = vmatmul.f32.gmra.mxu1 %v3272_v49  ;;  %1927 = vmatmul.f32.gmra.mxu0 %v3026_v16  ;;  %v565_v49 = vld [vmem:[#allocation2 + $0x62] sm:$0xff]  ;;  %v3425_v17 = vpop.f32.mrf.mxu0 }
  0xbe   : > { %2347 = vmatpush.msra.mxu0 %v1432_v23  ;;  %v700_v23 = vld [vmem:[#allocation2 + $0xc9] sm:$0xff] }
  0xc3   : > { %1701 = vmatmul.f32.gmra.mxu2 %v564_v6 }
  0xc4   : > { %1814 = vmatmul.f32.gmra.mxu3 %v3100_v4 }
  0xc5   : > { %1591 = vmatmul.f32.gmra.mxu1 %v2860_v14  ;;  %1930 = vmatmul.f32.gmra.mxu0 %v3044_v30  ;;  %v1415_v14 = vld [vmem:[%s3835_s1 + $0x3c8] sm:$0xff] }
  0xc6   : > { %2235 = vmatpush.msra.mxu3 %v1415_v14  ;;  %v1380_v14 = vld [vmem:[%s3835_s1 + $0x2b0] sm:$0xff] }
  0xc7   : > { %2012 = vmatpush.msra.mxu1 %v1380_v14 }
  0xca   : > { %v3427_v18 = vpop.f32.mrf.mxu1 }
  0xcb   : > { %1704 = vmatmul.f32.gmra.mxu2 %v565_v49 }
  0xcc   : > { %1817 = vmatmul.f32.gmra.mxu3 %v3147_v35  ;;  %v566_v35 = vld [vmem:[#allocation2 + $0x6a] sm:$0xff] }
  0xcd   : > { %1594 = vmatmul.f32.gmra.mxu1 %v3026_v16  ;;  %1933 = vmatmul.f32.gmra.mxu0 %v3074_v48  ;;  %v1431_v16 = vld [vmem:[%s3835_s1 + $0x448] sm:$0xff] }
  0xce   : > { %v3438_v4 = vpop.f32.mrf.mxu2  ;;  %2348 = vmatpush.msra.mxu0 %v1431_v16 }
  0xcf   : > { %v3443_v28 = vpop.f32.mrf.mxu3 }
  0xd2   : > { %v3445_v29 = vpop.f32.mrf.mxu1  ;;  %v3447_v31 = vpop.f32.mrf.mxu0 }
  0xd3   : > { %1707 = vmatmul.f32.gmra.mxu2 %v566_v35  ;;  %v636_v35 = vld [vmem:[#allocation2 + $0xc8] sm:$0xff] }
  0xd4   : > { %1820 = vmatmul.f32.gmra.mxu3 %v3203_v9  ;;  %v1398_v9 = vld [vmem:[%s3835_s1 + $0x340] sm:$0xff] }
  0xd5   : > { %1597 = vmatmul.f32.gmra.mxu1 %v3044_v30  ;;  %1936 = vmatmul.f32.gmra.mxu0 %v3091_v63  ;;  %v1414_v30 = vld [vmem:[%s3835_s1 + $0x3c0] sm:$0xff] }
  0xd6   : > { %v3455_v34 = vpop.f32.mrf.mxu2  ;;  %2123 = vmatpush.msra.mxu2 %v1398_v9  ;;  %2236 = vmatpush.msra.mxu3 %v1414_v30  ;;  %v701_v9 = vld [vmem:[#allocation2 + $0xd9] sm:$0xff] }
  0xd7   : > { %v3457_v37 = vpop.f32.mrf.mxu3 }
  0xda   : > { %v3459_v41 = vpop.f32.mrf.mxu1  ;;  %v3461_v42 = vpop.f32.mrf.mxu0 }
  0xdb   : > { %1710 = vmatmul.f32.gmra.mxu2 %v567_v38 }
  0xdc   : > { %1823 = vmatmul.f32.gmra.mxu3 %v3251_v39  ;;  %v568_v39 = vld [vmem:[#allocation2 + $0x82] sm:$0xff] }
  0xdd   : > { %1600 = vmatmul.f32.gmra.mxu1 %v3074_v48  ;;  %1939 = vmatmul.f32.gmra.mxu0 %v3131_v21  ;;  %v1430_v48 = vld [vmem:[%s3835_s1 + $0x440] sm:$0xff] }
  0xde   : > { %v3472_v44 = vpop.f32.mrf.mxu2  ;;  %2349 = vmatpush.msra.mxu0 %v1430_v48 }
  0xdf   : > { %v3477_v8 = vpop.f32.mrf.mxu3 }
  0xe2   : > { %v3479_v45 = vpop.f32.mrf.mxu1  ;;  %v3481_v43 = vpop.f32.mrf.mxu0 }
  0xe3   : > { %1713 = vmatmul.f32.gmra.mxu2 %v568_v39  ;;  %v573_v39 = vld [vmem:[#allocation2 + $0xc2] sm:$0xff] }
  0xe4   : > { %1826 = vmatmul.f32.gmra.mxu3 %v3291_v60  ;;  %v1397_v60 = vld [vmem:[%s3835_s1 + $0x338] sm:$0xff] }
  0xe5   : > { %1603 = vmatmul.f32.gmra.mxu1 %v3091_v63  ;;  %1942 = vmatmul.f32.gmra.mxu0 %v3169_v46  ;;  %v1413_v63 = vld [vmem:[%s3835_s1 + $0x3b8] sm:$0xff] }
  0xe6   : > { %v3489_v50 = vpop.f32.mrf.mxu2  ;;  %2124 = vmatpush.msra.mxu2 %v1397_v60  ;;  %2237 = vmatpush.msra.mxu3 %v1413_v63  ;;  %v1395_v60 = vld [vmem:[%s3835_s1 + $0x328] sm:$0xff] }
  0xe7   : > { %v3491_v53 = vpop.f32.mrf.mxu3  ;;  %v1411_v63 = vld [vmem:[%s3835_s1 + $0x3a8] sm:$0xff] }
  0xea   : > { %v3493_v55 = vpop.f32.mrf.mxu1  ;;  %v3495_v54 = vpop.f32.mrf.mxu0 }
  0xeb   : > { %1716 = vmatmul.f32.gmra.mxu2 %v569_v10 }
  0xec   : > { %1829 = vmatmul.f32.gmra.mxu3 %v3315_v15 }
  0xed   : > { %1606 = vmatmul.f32.gmra.mxu1 %v3131_v21  ;;  %1945 = vmatmul.f32.gmra.mxu0 %v3224_v24  ;;  %v1429_v21 = vld [vmem:[%s3835_s1 + $0x438] sm:$0xff] }
  0xee   : > { %v3506_v40 = vpop.f32.mrf.mxu2  ;;  %2350 = vmatpush.msra.mxu0 %v1429_v21 }
  0xef   : > { %v3508_v56 = vpop.f32.mrf.mxu3 }
  0xf2   : > { %v3513_v15 = vpop.f32.mrf.mxu1  ;;  %v3515_v32 = vpop.f32.mrf.mxu0 }
  0xf3   : > { %1719 = vmatmul.f32.gmra.mxu2 %v570_v58 }
  0xf4   : > { %1832 = vmatmul.f32.gmra.mxu3 %v3327_v22  ;;  %v1396_v22 = vld [vmem:[%s3835_s1 + $0x330] sm:$0xff] }
  0xf5   : > { %1609 = vmatmul.f32.gmra.mxu1 %v3169_v46  ;;  %1948 = vmatmul.f32.gmra.mxu0 %v699_v61  ;;  %v1412_v46 = vld [vmem:[%s3835_s1 + $0x3b0] sm:$0xff] }
  0xf6   : > { %v3522_v62 = vpop.f32.mrf.mxu2  ;;  %2125 = vmatpush.msra.mxu2 %v1396_v22  ;;  %2238 = vmatpush.msra.mxu3 %v1412_v46 }
  0xf7   : > { %v3524_v51 = vpop.f32.mrf.mxu3 }
  0xf8   : > { %2126 = vmatpush.msra.mxu2 %v1395_v60  ;;  %2239 = vmatpush.msra.mxu3 %v1411_v63 }
  0xfa   : > { %v3526_v3 = vpop.f32.mrf.mxu1  ;;  %v3528_v6 = vpop.f32.mrf.mxu0 }
  0xfb   : > { %1722 = vmatmul.f32.gmra.mxu2 %v571_v0  ;;  %v1379_v0 = vld [vmem:[%s3835_s1 + $0x2a8] sm:$0xff] }
  0xfc   : > { %1835 = vmatmul.f32.gmra.mxu3 %v635_v1  ;;  %v574_v1 = vld [vmem:[#allocation2 + $0xca] sm:$0xff]  ;;  %2013 = vmatpush.msra.mxu1 %v1379_v0 }
  0xfd   : > { %1612 = vmatmul.f32.gmra.mxu1 %v3224_v24  ;;  %1951 = vmatmul.f32.gmra.mxu0 %v700_v23  ;;  %v1428_v24 = vld [vmem:[%s3835_s1 + $0x430] sm:$0xff] }
  0xfe   : > { %v3537_v49 = vpop.f32.mrf.mxu2  ;;  %2351 = vmatpush.msra.mxu0 %v1428_v24  ;;  %v575_v24 = vld [vmem:[#allocation2 + $0xda] sm:$0xff] }
  0xff   : > { %v3539_v20 = vpop.f32.mrf.mxu3 }
 0x102   : > { %v1568_v16 = vpop.f32.mrf.mxu1  ;;  %v1907_v38 = vpop.f32.mrf.mxu0 }
 0x103   : > { %1725 = vmatmul.f32.gmra.mxu2 %v572_v27  ;;  %v1569_v11 = vadd.f32 %v1568_v16, %v3412_v2  ;;  %v1427_v2 = vld [vmem:[%s3835_s1 + $0x428] sm:$0xff] }
 0x104   : > { %1838 = vmatmul.f32.gmra.mxu3 %v636_v35  ;;  %2352 = vmatpush.msra.mxu0 %v1427_v2 }
 0x105   : > { %1615 = vmatmul.f32.gmra.mxu1 %v699_v61  ;;  %1954 = vmatmul.f32.gmra.mxu0 %v701_v9 }
 0x106   : > { %v3547_v30 = vpop.f32.mrf.mxu2 }
 0x107   : > { %v3549_v7 = vpop.f32.mrf.mxu3 }
 0x10a   : > { %v1571_v48 = vpop.f32.mrf.mxu1  ;;  %v1910_v10 = vpop.f32.mrf.mxu0 }
 0x10b   : > { %1728 = vmatmul.f32.gmra.mxu2 %v573_v39 }
 0x10c   : > { %1841 = vmatmul.f32.gmra.mxu3 %v3193_v59 }
 0x10d   : > { %1618 = vmatmul.f32.gmra.mxu1 %v700_v23  ;;  %1957 = vmatmul.f32.gmra.mxu0 %v3080_v52  ;;  %v1572_v23 = vadd.f32 %v1571_v48, %v3425_v17  ;;  %v1410_v17 = vld [vmem:[%s3835_s1 + $0x3a0] sm:$0xff] }
 0x10e   : > { %v1681_v58 = vpop.f32.mrf.mxu2  ;;  %2240 = vmatpush.msra.mxu3 %v1410_v17 }
 0x10f   : > { %v1682_v61 = vadd.f32 %v1681_v58, %v1569_v11  ;;  %v1794_v21 = vpop.f32.mrf.mxu3  ;;  %v1378_v58 = vld [vmem:[%s3835_s1 + $0x2a0] sm:$0xff] }
 0x110   : > { %2014 = vmatpush.msra.mxu1 %v1378_v58 }
 0x111   : > { %v1795_v59 = vadd.f32 %v1794_v21, %v1682_v61 }
 0x112   : > { %v1574_v22 = vpop.f32.mrf.mxu1  ;;  %v1913_v46 = vpop.f32.mrf.mxu0 }
 0x113   : > { %v3563_v14 = vadd.f32 %v1907_v38, %v1795_v59  ;;  %1731 = vmatmul.f32.gmra.mxu2 %v574_v1 }
 0x114   : > { %1844 = vmatmul.f32.gmra.mxu3 %v3247_v36  ;;  %v1394_v36 = vld [vmem:[%s3835_s1 + $0x320] sm:$0xff] }
 0x115   : > { %1621 = vmatmul.f32.gmra.mxu1 %v701_v9  ;;  %1960 = vmatmul.f32.gmra.mxu0 %v3103_v5  ;;  %v1575_v9 = vadd.f32 %v1574_v22, %v3447_v31 }
 0x116   : > { %v1684_v27 = vpop.f32.mrf.mxu2  ;;  %2127 = vmatpush.msra.mxu2 %v1394_v36 }
 0x117   : > { %v1685_v35 = vadd.f32 %v1684_v27, %v1572_v23  ;;  %v1797_v16 = vpop.f32.mrf.mxu3  ;;  %v577_v23 = vld [vmem:[#allocation2 + $0xf2] sm:$0xff] }
 0x119   : > { %v1798_v39 = vadd.f32 %v1797_v16, %v1685_v35 }
 0x11a   : > { %v1577_v38 = vpop.f32.mrf.mxu1  ;;  %v1916_v60 = vpop.f32.mrf.mxu0 }
 0x11b   : > { %v3571_v63 = vadd.f32 %v1910_v10, %v1798_v39  ;;  %1734 = vmatmul.f32.gmra.mxu2 %v575_v24  ;;  %v1578_v31 = vadd.f32 %v1577_v38, %v3461_v42 }
 0x11c   : > { %1847 = vmatmul.f32.gmra.mxu3 %v3289_v57  ;;  %v576_v57 = vld [vmem:[#allocation2 + $0xe2] sm:$0xff] }
 0x11d   : > { %1624 = vmatmul.f32.gmra.mxu1 %v3080_v52  ;;  %1963 = vmatmul.f32.gmra.mxu0 %v3136_v26  ;;  %v1426_v52 = vld [vmem:[%s3835_s1 + $0x420] sm:$0xff] }
 0x11e   : > { %v1687_v48 = vpop.f32.mrf.mxu2  ;;  %2353 = vmatpush.msra.mxu0 %v1426_v52 }
 0x11f   : > { %v1688_v10 = vadd.f32 %v1687_v48, %v1575_v9  ;;  %v1800_v11 = vpop.f32.mrf.mxu3  ;;  %v707_v48 = vld [vmem:[#allocation2 + $0x121] sm:$0xff] }
 0x121   : > { %v1801_v61 = vadd.f32 %v1800_v11, %v1688_v10 }
 0x122   : > { %v1580_v21 = vpop.f32.mrf.mxu1  ;;  %v1919_v0 = vpop.f32.mrf.mxu0 }
 0x123   : > { %v3586_v1 = vadd.f32 %v1913_v46, %v1801_v61  ;;  %1737 = vmatmul.f32.gmra.mxu2 %v576_v57  ;;  %v1581_v42 = vadd.f32 %v1580_v21, %v3481_v43  ;;  %v579_v61 = vld [vmem:[#allocation2 + $0x10a] sm:$0xff] }
 0x124   : > { %1850 = vmatmul.f32.gmra.mxu3 %v3313_v12  ;;  %v1393_v12 = vld [vmem:[%s3835_s1 + $0x318] sm:$0xff] }
 0x125   : > { %1627 = vmatmul.f32.gmra.mxu1 %v3103_v5  ;;  %1966 = vmatmul.f32.gmra.mxu0 %v3171_v47  ;;  %v1409_v5 = vld [vmem:[%s3835_s1 + $0x398] sm:$0xff] }
 0x126   : > { %v1690_v59 = vpop.f32.mrf.mxu2  ;;  %2128 = vmatpush.msra.mxu2 %v1393_v12  ;;  %2241 = vmatpush.msra.mxu3 %v1409_v5  ;;  %v644_v5 = vld [vmem:[#allocation2 + $0x128] sm:$0xff] }
 0x127   : > { %v1691_v22 = vadd.f32 %v1690_v59, %v1578_v31  ;;  %v1803_v2 = vpop.f32.mrf.mxu3  ;;  %v708_v59 = vld [vmem:[#allocation2 + $0x129] sm:$0xff] }
 0x129   : > { %v1804_v46 = vadd.f32 %v1803_v2, %v1691_v22 }
 0x12a   : > { %v1583_v27 = vpop.f32.mrf.mxu1  ;;  %v1922_v35 = vpop.f32.mrf.mxu0 }
 0x12b   : > { %v3595_v16 = vadd.f32 %v1916_v60, %v1804_v46  ;;  %1740 = vmatmul.f32.gmra.mxu2 %v577_v23  ;;  %v1377_v60 = vld [vmem:[%s3835_s1 + $0x298] sm:$0xff]  ;;  %v1584_v43 = vadd.f32 %v1583_v27, %v3495_v54  ;;  %v1392_v54 = vld [vmem:[%s3835_s1 + $0x310] sm:$0xff] }
 0x12c   : > { %1853 = vmatmul.f32.gmra.mxu3 %v3325_v19  ;;  %v578_v19 = vld [vmem:[#allocation2 + $0xfa] sm:$0xff]  ;;  %2015 = vmatpush.msra.mxu1 %v1377_v60  ;;  %v1376_v27 = vld [vmem:[%s3835_s1 + $0x290] sm:$0xff] }
 0x12d   : > { %1630 = vmatmul.f32.gmra.mxu1 %v3136_v26  ;;  %1969 = vmatmul.f32.gmra.mxu0 %v3226_v25  ;;  %v1425_v26 = vld [vmem:[%s3835_s1 + $0x418] sm:$0xff] }
 0x12e   : > { %v1693_v24 = vpop.f32.mrf.mxu2  ;;  %2354 = vmatpush.msra.mxu0 %v1425_v26  ;;  %2129 = vmatpush.msra.mxu2 %v1392_v54  ;;  %v1375_v54 = vld [vmem:[%s3835_s1 + $0x288] sm:$0xff] }
 0x12f   : > { %v1694_v39 = vadd.f32 %v1693_v24, %v1581_v42  ;;  %v1806_v38 = vpop.f32.mrf.mxu3  ;;  %2016 = vmatpush.msra.mxu1 %v1376_v27 }
 0x131   : > { %v1807_v36 = vadd.f32 %v1806_v38, %v1694_v39  ;;  %v709_v39 = vld [vmem:[#allocation2 + $0x139] sm:$0xff]  ;;  %2017 = vmatpush.msra.mxu1 %v1375_v54 }
 0x132   : > { %v1586_v17 = vpop.f32.mrf.mxu1  ;;  %v1925_v9 = vpop.f32.mrf.mxu0 }
 0x133   : > { %v3610_v10 = vadd.f32 %v1919_v0, %v1807_v36  ;;  %1743 = vmatmul.f32.gmra.mxu2 %v578_v19  ;;  %v643_v0 = vld [vmem:[#allocation2 + $0x120] sm:$0xff]  ;;  %v1587_v22 = vadd.f32 %v1586_v17, %v3515_v32 }
 0x134   : > { %1856 = vmatmul.f32.gmra.mxu3 %v3343_v33  ;;  %v581_v17 = vld [vmem:[#allocation2 + $0x122] sm:$0xff] }
 0x135   : > { %1633 = vmatmul.f32.gmra.mxu1 %v3171_v47  ;;  %1972 = vmatmul.f32.gmra.mxu0 %v707_v48  ;;  %v1408_v47 = vld [vmem:[%s3835_s1 + $0x390] sm:$0xff] }
 0x136   : > { %v1696_v11 = vpop.f32.mrf.mxu2  ;;  %2242 = vmatpush.msra.mxu3 %v1408_v47  ;;  %v2755_v47 = vld [vmem:[%s3836_s2] ss:$0 sm:$0xff] }
 0x137   : > { %v1697_v58 = vadd.f32 %v1696_v11, %v1584_v43  ;;  %v1809_v57 = vpop.f32.mrf.mxu3  ;;  %v645_v43 = vld [vmem:[#allocation2 + $0x138] sm:$0xff] }
 0x139   : > { %v1810_v21 = vadd.f32 %v1809_v57, %v1697_v58  ;;  %v710_v58 = vld [vmem:[#allocation2 + $0x141] sm:$0xff] }
 0x13a   : > { %v1589_v52 = vpop.f32.mrf.mxu1  ;;  %v1928_v31 = vpop.f32.mrf.mxu0 }
 0x13b   : > { %v3618_v33 = vadd.f32 %v1922_v35, %v1810_v21  ;;  %1746 = vmatmul.f32.gmra.mxu2 %v579_v61  ;;  %v580_v35 = vld [vmem:[#allocation2 + $0x112] sm:$0xff]  ;;  %v1590_v32 = vadd.f32 %v1589_v52, %v3528_v6  ;;  %v1391_v6 = vld [vmem:[%s3835_s1 + $0x308] sm:$0xff] }
 0x13c   : > { %1859 = vmatmul.f32.gmra.mxu3 %v643_v0  ;;  %2130 = vmatpush.msra.mxu2 %v1391_v6  ;;  %v240_v0 = vld [vmem:[%s2829_s5 + $0xf0] sm:$0xff] }
 0x13d   : > { %1636 = vmatmul.f32.gmra.mxu1 %v3226_v25  ;;  %1975 = vmatmul.f32.gmra.mxu0 %v708_v59  ;;  %v1424_v25 = vld [vmem:[%s3835_s1 + $0x410] sm:$0xff] }
 0x13e   : > { %v1699_v2 = vpop.f32.mrf.mxu2  ;;  %2355 = vmatpush.msra.mxu0 %v1424_v25  ;;  %v1423_v25 = vld [vmem:[%s3835_s1 + $0x408] sm:$0xff]  ;;  %v647_v6 = vld [vmem:[#allocation2 + $0x150] sm:$0xff] }
 0x13f   : > { %v1700_v23 = vadd.f32 %v1699_v2, %v1587_v22  ;;  %v1812_v46 = vpop.f32.mrf.mxu3  ;;  %v275_v22 = vmul.f32 %v2755_v47, %v240_v0  ;;  %v582_v2 = vld [vmem:[#allocation2 + $0x12a] sm:$0xff]  ;;  %v712_v0 = vld [vmem:[#allocation2 + $0x159] sm:$0xff] }
 0x140   : > { %2356 = vmatpush.msra.mxu0 %v1423_v25 }
 0x141   : > { %v1813_v12 = vadd.f32 %v1812_v46, %v1700_v23 }
 0x142   : > { %v1592_v42 = vpop.f32.mrf.mxu1  ;;  %v1931_v24 = vpop.f32.mrf.mxu0 }
 0x143   : > { %v3631_v38 = vadd.f32 %v1925_v9, %v1813_v12  ;;  %1749 = vmatmul.f32.gmra.mxu2 %v580_v35  ;;  %v1593_v61 = vadd.f32 %v1592_v42, %v3417_v13  ;;  %v646_v13 = vld [vmem:[#allocation2 + $0x140] sm:$0xff]  ;;  %v711_v12 = vld [vmem:[#allocation2 + $0x151] sm:$0xff] }
 0x144   : > { %1862 = vmatmul.f32.gmra.mxu3 %v644_v5 }
 0x145   : > { %1639 = vmatmul.f32.gmra.mxu1 %v707_v48  ;;  %1978 = vmatmul.f32.gmra.mxu0 %v709_v39  ;;  %v1407_v48 = vld [vmem:[%s3835_s1 + $0x388] sm:$0xff] }
 0x146   : > { %v1702_v60 = vpop.f32.mrf.mxu2  ;;  %2243 = vmatpush.msra.mxu3 %v1407_v48 }
 0x147   : > { %v1703_v19 = vadd.f32 %v1702_v60, %v1590_v32  ;;  %v1815_v36 = vpop.f32.mrf.mxu3 }
 0x149   : > { %v1816_v26 = vadd.f32 %v1815_v36, %v1703_v19  ;;  %v241_v19 = vld [vmem:[%s2829_s5 + $0xf8] sm:$0xff] }
 0x14a   : > { %v1595_v9 = vpop.f32.mrf.mxu1  ;;  %v1934_v11 = vpop.f32.mrf.mxu0 }
 0x14b   : > { %v3637_v57 = vadd.f32 %v1928_v31, %v1816_v26  ;;  %1752 = vmatmul.f32.gmra.mxu2 %v581_v17  ;;  %v1596_v32 = vadd.f32 %v1595_v9, %v3427_v18  ;;  %v276_v17 = vmul.f32 %v2755_v47, %v241_v19  ;;  %v583_v26 = vld [vmem:[#allocation2 + $0x13a] sm:$0xff] }
 0x14c   : > { %1865 = vmatmul.f32.gmra.mxu3 %v645_v43 }
 0x14d   : > { %1642 = vmatmul.f32.gmra.mxu1 %v708_v59  ;;  %1981 = vmatmul.f32.gmra.mxu0 %v710_v58  ;;  %v2756_v59 = vld [vmem:[%s3836_s2 + $0x1] ss:$0 sm:$0xff] }
 0x14e   : > { %v1705_v21 = vpop.f32.mrf.mxu2  ;;  %v3656_v46 = vadd.f32 %v2756_v59, %v275_v22  ;;  %v3668_v48 = vadd.f32 %v2756_v59, %v276_v17  ;;  %v1374_v22 = vld [vmem:[%s3835_s1 + $0x280] sm:$0xff] }
 0x14f   : > { %v1706_v52 = vadd.f32 %v1705_v21, %v1593_v61  ;;  %v1818_v31 = vpop.f32.mrf.mxu3  ;;  %2018 = vmatpush.msra.mxu1 %v1374_v22 }
 0x150   : > { %v340_v42 = vmax.f32 %v3656_v46, 0.0  ;;  %v341_v9 = vmax.f32 %v3668_v48, 0.0 }
 0x151   : > { %v1819_v23 = vadd.f32 %v1818_v31, %v1706_v52  ;;  %v1406_v52 = vld [vmem:[%s3835_s1 + $0x380] sm:$0xff] }
 0x152   : > { %v1598_v27 = vpop.f32.mrf.mxu1  ;;  %v1937_v35 = vpop.f32.mrf.mxu0  ;;  %427 = vst [vmem:[#allocation2 + $0x181] sm:$0xff] %v340_v42  ;;  %2244 = vmatpush.msra.mxu3 %v1406_v52 }
 0x153   : > { %v3658_v5 = vadd.f32 %v1931_v24, %v1819_v23  ;;  %1755 = vmatmul.f32.gmra.mxu2 %v582_v2  ;;  %v1599_v31 = vadd.f32 %v1598_v27, %v3445_v29  ;;  %428 = vst [vmem:[#allocation2 + $0x189] sm:$0xff] %v341_v9  ;;  %v584_v2 = vld [vmem:[#allocation2 + $0x142] sm:$0xff] }
 0x154   : > { %1868 = vmatmul.f32.gmra.mxu3 %v646_v13  ;;  %v648_v13 = vld [vmem:[#allocation2 + $0x158] sm:$0xff]  ;;  %v713_v29 = vld [vmem:[#allocation2 + $0x169] sm:$0xff]  ;;  %v1422_v27 = vld [vmem:[%s3835_s1 + $0x400] sm:$0xff] }
 0x155   : > { %1645 = vmatmul.f32.gmra.mxu1 %v709_v39  ;;  %1984 = vmatmul.f32.gmra.mxu0 %v711_v12  ;;  %v1390_v39 = vld [vmem:[%s3835_s1 + $0x300] sm:$0xff] }
 0x156   : > { %v1708_v60 = vpop.f32.mrf.mxu2  ;;  %2131 = vmatpush.msra.mxu2 %v1390_v39  ;;  %2357 = vmatpush.msra.mxu0 %v1422_v27 }
 0x157   : > { %v1709_v24 = vadd.f32 %v1708_v60, %v1596_v32  ;;  %v1821_v36 = vpop.f32.mrf.mxu3 }
 0x159   : > { %v1822_v43 = vadd.f32 %v1821_v36, %v1709_v24  ;;  %v585_v36 = vld [vmem:[#allocation2 + $0x152] sm:$0xff]  ;;  %v651_v27 = vld [vmem:[#allocation2 + $0x180] sm:$0xff] }
 0x15a   : > { %v1601_v61 = vpop.f32.mrf.mxu1  ;;  %v1940_v21 = vpop.f32.mrf.mxu0 }
 0x15b   : > { %v3670_v18 = vadd.f32 %v1934_v11, %v1822_v43  ;;  %1758 = vmatmul.f32.gmra.mxu2 %v583_v26  ;;  %v1602_v32 = vadd.f32 %v1601_v61, %v3459_v41  ;;  %v649_v26 = vld [vmem:[#allocation2 + $0x168] sm:$0xff] }
 0x15c   : > { %1871 = vmatmul.f32.gmra.mxu3 %v647_v6  ;;  %v714_v6 = vld [vmem:[#allocation2 + $0x171] sm:$0xff] }
 0x15d   : > { %1648 = vmatmul.f32.gmra.mxu1 %v710_v58  ;;  %1987 = vmatmul.f32.gmra.mxu0 %v712_v0 }
 0x15e   : > { %v1711_v11 = vpop.f32.mrf.mxu2 }
 0x15f   : > { %v1712_v54 = vadd.f32 %v1711_v11, %v1599_v31  ;;  %v1824_v47 = vpop.f32.mrf.mxu3  ;;  %v586_v31 = vld [vmem:[#allocation2 + $0x15a] sm:$0xff] }
 0x161   : > { %v1825_v23 = vadd.f32 %v1824_v47, %v1712_v54  ;;  %v650_v54 = vld [vmem:[#allocation2 + $0x170] sm:$0xff] }
 0x162   : > { %v1604_v59 = vpop.f32.mrf.mxu1  ;;  %v1943_v25 = vpop.f32.mrf.mxu0 }
 0x163   : > { %v3685_v58 = vadd.f32 %v1937_v35, %v1825_v23  ;;  %1761 = vmatmul.f32.gmra.mxu2 %v584_v2  ;;  %v1605_v52 = vadd.f32 %v1604_v59, %v3479_v45 }
 0x164   : > { %1874 = vmatmul.f32.gmra.mxu3 %v648_v13  ;;  %v587_v13 = vld [vmem:[#allocation2 + $0x16a] sm:$0xff] }
 0x165   : > { %1651 = vmatmul.f32.gmra.mxu1 %v711_v12  ;;  %1990 = vmatmul.f32.gmra.mxu0 %v713_v29 }
 0x166   : > { %v1714_v60 = vpop.f32.mrf.mxu2 }
 0x167   : > { %v1715_v19 = vadd.f32 %v1714_v60, %v1602_v32  ;;  %v1827_v24 = vpop.f32.mrf.mxu3 }
 0x169   : > { %v1828_v17 = vadd.f32 %v1827_v24, %v1715_v19 }
 0x16a   : > { %v1607_v43 = vpop.f32.mrf.mxu1  ;;  %v1946_v35 = vpop.f32.mrf.mxu0 }
 0x16b   : > { %v3691_v39 = vadd.f32 %v1940_v21, %v1828_v17  ;;  %1764 = vmatmul.f32.gmra.mxu2 %v585_v36  ;;  %v1608_v21 = vadd.f32 %v1607_v43, %v3493_v55  ;;  %v652_v36 = vld [vmem:[#allocation2 + $0x188] sm:$0xff] }
 0x16c   : > { %1877 = vmatmul.f32.gmra.mxu3 %v649_v26  ;;  %v749_v26 = vld [vmem:[#allocation2 + $0x1a] sm:$0xff] }
 0x16d   : > { %1654 = vmatmul.f32.gmra.mxu1 %v712_v0  ;;  %1993 = vmatmul.f32.gmra.mxu0 %v714_v6 }
 0x16e   : > { %v1717_v41 = vpop.f32.mrf.mxu2 }
 0x16f   : > { %v1718_v12 = vadd.f32 %v1717_v41, %v1605_v52  ;;  %v1830_v61 = vpop.f32.mrf.mxu3  ;;  %v942_v52 = vld [vmem:[#allocation2 + $0x32] sm:$0xff] }
 0x170   : > { %v814_v41 = vld [vmem:[#allocation2 + $0x30] sm:$0xff] }
 0x171   : > { %v1831_v11 = vadd.f32 %v1830_v61, %v1718_v12  ;;  %v878_v61 = vld [vmem:[#allocation2 + $0x31] sm:$0xff] }
 0x172   : > { %v1610_v47 = vpop.f32.mrf.mxu1  ;;  %v1949_v22 = vpop.f32.mrf.mxu0 }
 0x173   : > { %v3694_v2 = vadd.f32 %v1943_v25, %v1831_v11  ;;  %1767 = vmatmul.f32.gmra.mxu2 %v586_v31  ;;  %v1611_v25 = vadd.f32 %v1610_v47, %v3513_v15  ;;  %v750_v11 = vld [vmem:[#allocation2 + $0x22] sm:$0xff]  ;;  %v943_v47 = vld [vmem:[#allocation2 + $0x3a] sm:$0xff] }
 0x174   : > { %1880 = vmatmul.f32.gmra.mxu3 %v650_v54 }
 0x175   : > { %1657 = vmatmul.f32.gmra.mxu1 %v713_v29  ;;  %1996 = vmatmul.f32.gmra.mxu0 %v340_v42  ;;  %v588_v29 = vld [vmem:[#allocation2 + $0x172] sm:$0xff] }
 0x176   : > { %v1720_v45 = vpop.f32.mrf.mxu2 }
 0x177   : > { %v1721_v0 = vadd.f32 %v1720_v45, %v1608_v21  ;;  %v1833_v23 = vpop.f32.mrf.mxu3 }
 0x179   : > { %v1834_v59 = vadd.f32 %v1833_v23, %v1721_v0  ;;  %v815_v23 = vld [vmem:[#allocation2 + $0x38] sm:$0xff] }
 0x17a   : > { %v1613_v32 = vpop.f32.mrf.mxu1  ;;  %v1952_v60 = vpop.f32.mrf.mxu0 }
 0x17b   : > { %v3699_v19 = vadd.f32 %v1946_v35, %v1834_v59  ;;  %1770 = vmatmul.f32.gmra.mxu2 %v587_v13  ;;  %v1614_v15 = vadd.f32 %v1613_v32, %v3526_v3  ;;  %v879_v59 = vld [vmem:[#allocation2 + $0x39] sm:$0xff] }
 0x17c   : > { %1883 = vmatmul.f32.gmra.mxu3 %v651_v27 }
 0x17d   : > { %1660 = vmatmul.f32.gmra.mxu1 %v714_v6  ;;  %1999 = vmatmul.f32.gmra.mxu0 %v341_v9 }
 0x17e   : > { %v1723_v55 = vpop.f32.mrf.mxu2 }
 0x17f   : > { %v1724_v46 = vadd.f32 %v1723_v55, %v1611_v25  ;;  %v1836_v42 = vpop.f32.mrf.mxu3  ;;  %v944_v25 = vld [vmem:[#allocation2 + $0x4a] sm:$0xff] }
 0x181   : > { %v1837_v24 = vadd.f32 %v1836_v42, %v1724_v46 }
 0x182   : > { %v1616_v17 = vpop.f32.mrf.mxu1  ;;  %v1955_v43 = vpop.f32.mrf.mxu0 }
 0x183   : > { %v3704_v35 = vadd.f32 %v1949_v22, %v1837_v24  ;;  %1773 = vmatmul.f32.gmra.mxu2 %v588_v29  ;;  %v1617_v22 = vadd.f32 %v1616_v17, %v3438_v4  ;;  %v816_v29 = vld [vmem:[#allocation2 + $0x48] sm:$0xff] }
 0x184   : > { %1886 = vmatmul.f32.gmra.mxu3 %v652_v36  ;;  %v880_v36 = vld [vmem:[#allocation2 + $0x49] sm:$0xff] }
 0x185   : > { %2019 = vmatmul.f32.vlgmr.msra.gmra.mxu1 %v749_v26  ;;  %2358 = vmatmul.f32.vlgmr.msra.gmra.mxu0 %v942_v52 }
 0x186   : > { %v1726_v48 = vpop.f32.mrf.mxu2 }
 0x187   : > { %v1727_v9 = vadd.f32 %v1726_v48, %v1614_v15  ;;  %v1839_v6 = vpop.f32.mrf.mxu3  ;;  %v945_v15 = vld [vmem:[#allocation2 + $0x52] sm:$0xff] }
 0x189   : > { %v1840_v12 = vadd.f32 %v1839_v6, %v1727_v9  ;;  %v817_v6 = vld [vmem:[#allocation2 + $0x50] sm:$0xff] }
 0x18a   : > { %v1619_v31 = vpop.f32.mrf.mxu1  ;;  %v1958_v54 = vpop.f32.mrf.mxu0 }
 0x18b   : > { %v3707_v21 = vadd.f32 %v1952_v60, %v1840_v12  ;;  %2132 = vmatmul.f32.vlgmr.msra.gmra.mxu2 %v814_v41  ;;  %v1620_v60 = vadd.f32 %v1619_v31, %v3455_v34  ;;  %v881_v12 = vld [vmem:[#allocation2 + $0x51] sm:$0xff] }
 0x18c   : > { %2245 = vmatmul.f32.vlgmr.msra.gmra.mxu3 %v878_v61 }
 0x18d   : > { %2022 = vmatmul.f32.gmra.mxu1 %v750_v11  ;;  %2361 = vmatmul.f32.gmra.mxu0 %v943_v47  ;;  %v946_v11 = vld [vmem:[#allocation2 + $0x62] sm:$0xff] }
 0x18e   : > { %v1729_v3 = vpop.f32.mrf.mxu2 }
 0x18f   : > { %v1730_v45 = vadd.f32 %v1729_v3, %v1617_v22  ;;  %v1842_v0 = vpop.f32.mrf.mxu3 }
 0x191   : > { %v1843_v13 = vadd.f32 %v1842_v0, %v1730_v45  ;;  %v818_v45 = vld [vmem:[#allocation2 + $0x60] sm:$0xff] }
 0x192   : > { %v1622_v27 = vpop.f32.mrf.mxu1  ;;  %v1961_v32 = vpop.f32.mrf.mxu0 }
 0x193   : > { %v3710_v55 = vadd.f32 %v1955_v43, %v1843_v13  ;;  %2135 = vmatmul.f32.gmra.mxu2 %v815_v23  ;;  %v1623_v43 = vadd.f32 %v1622_v27, %v3472_v44  ;;  %v882_v23 = vld [vmem:[#allocation2 + $0x61] sm:$0xff]  ;;  %v947_v27 = vld [vmem:[#allocation2 + $0x6a] sm:$0xff] }
 0x194   : > { %2248 = vmatmul.f32.gmra.mxu3 %v879_v59 }
 0x195   : > { %2025 = vmatmul.f32.gmra.mxu1 %v942_v52  ;;  %2364 = vmatmul.f32.gmra.mxu0 %v944_v25 }
 0x196   : > { %v1732_v4 = vpop.f32.mrf.mxu2 }
 0x197   : > { %v1733_v46 = vadd.f32 %v1732_v4, %v1620_v60  ;;  %v1845_v42 = vpop.f32.mrf.mxu3 }
 0x199   : > { %v1846_v24 = vadd.f32 %v1845_v42, %v1733_v46  ;;  %v819_v46 = vld [vmem:[#allocation2 + $0x68] sm:$0xff] }
 0x19a   : > { %v1625_v17 = vpop.f32.mrf.mxu1  ;;  %v1964_v26 = vpop.f32.mrf.mxu0 }
 0x19b   : > { %v3713_v48 = vadd.f32 %v1958_v54, %v1846_v24  ;;  %2138 = vmatmul.f32.gmra.mxu2 %v816_v29  ;;  %v1626_v54 = vadd.f32 %v1625_v17, %v3489_v50  ;;  %v883_v29 = vld [vmem:[#allocation2 + $0x69] sm:$0xff]  ;;  %v948_v17 = vld [vmem:[#allocation2 + $0x7a] sm:$0xff] }
 0x19c   : > { %2251 = vmatmul.f32.gmra.mxu3 %v880_v36 }
 0x19d   : > { %2028 = vmatmul.f32.gmra.mxu1 %v943_v47  ;;  %2367 = vmatmul.f32.gmra.mxu0 %v945_v15 }
 0x19e   : > { %v1735_v34 = vpop.f32.mrf.mxu2 }
 0x19f   : > { %v1736_v52 = vadd.f32 %v1735_v34, %v1623_v43  ;;  %v1848_v9 = vpop.f32.mrf.mxu3 }
 0x1a1   : > { %v1849_v41 = vadd.f32 %v1848_v9, %v1736_v52  ;;  %v820_v52 = vld [vmem:[#allocation2 + $0x78] sm:$0xff] }
 0x1a2   : > { %v1628_v61 = vpop.f32.mrf.mxu1  ;;  %v1967_v31 = vpop.f32.mrf.mxu0 }
 0x1a3   : > { %v3716_v22 = vadd.f32 %v1961_v32, %v1849_v41  ;;  %2141 = vmatmul.f32.gmra.mxu2 %v817_v6  ;;  %v1629_v32 = vadd.f32 %v1628_v61, %v3506_v40  ;;  %v884_v6 = vld [vmem:[#allocation2 + $0x79] sm:$0xff]  ;;  %v949_v61 = vld [vmem:[#allocation2 + $0x82] sm:$0xff] }
 0x1a4   : > { %2254 = vmatmul.f32.gmra.mxu3 %v881_v12 }
 0x1a5   : > { %2031 = vmatmul.f32.gmra.mxu1 %v944_v25  ;;  %2370 = vmatmul.f32.gmra.mxu0 %v946_v11 }
 0x1a6   : > { %v1738_v44 = vpop.f32.mrf.mxu2 }
 0x1a7   : > { %v1739_v47 = vadd.f32 %v1738_v44, %v1626_v54  ;;  %v1851_v3 = vpop.f32.mrf.mxu3 }
 0x1a9   : > { %v1852_v0 = vadd.f32 %v1851_v3, %v1739_v47  ;;  %v821_v47 = vld [vmem:[#allocation2 + $0x80] sm:$0xff] }
 0x1aa   : > { %v1631_v13 = vpop.f32.mrf.mxu1  ;;  %v1970_v59 = vpop.f32.mrf.mxu0 }
 0x1ab   : > { %v3719_v60 = vadd.f32 %v1964_v26, %v1852_v0  ;;  %2144 = vmatmul.f32.gmra.mxu2 %v818_v45  ;;  %v1632_v26 = vadd.f32 %v1631_v13, %v3522_v62  ;;  %v885_v45 = vld [vmem:[#allocation2 + $0x81] sm:$0xff]  ;;  %v950_v13 = vld [vmem:[#allocation2 + $0x92] sm:$0xff] }
 0x1ac   : > { %2257 = vmatmul.f32.gmra.mxu3 %v882_v23 }
 0x1ad   : > { %2034 = vmatmul.f32.gmra.mxu1 %v945_v15  ;;  %2373 = vmatmul.f32.gmra.mxu0 %v947_v27 }
 0x1ae   : > { %v1741_v50 = vpop.f32.mrf.mxu2 }
 0x1af   : > { %v1742_v25 = vadd.f32 %v1741_v50, %v1629_v32  ;;  %v1854_v4 = vpop.f32.mrf.mxu3 }
 0x1b1   : > { %v1855_v42 = vadd.f32 %v1854_v4, %v1742_v25  ;;  %v822_v25 = vld [vmem:[#allocation2 + $0x90] sm:$0xff] }
 0x1b2   : > { %v1634_v24 = vpop.f32.mrf.mxu1  ;;  %v1973_v36 = vpop.f32.mrf.mxu0 }
 0x1b3   : > { %v3722_v43 = vadd.f32 %v1967_v31, %v1855_v42  ;;  %2147 = vmatmul.f32.gmra.mxu2 %v819_v46  ;;  %v1635_v31 = vadd.f32 %v1634_v24, %v3537_v49  ;;  %v886_v46 = vld [vmem:[#allocation2 + $0x91] sm:$0xff]  ;;  %v951_v24 = vld [vmem:[#allocation2 + $0x9a] sm:$0xff] }
 0x1b4   : > { %2260 = vmatmul.f32.gmra.mxu3 %v883_v29 }
 0x1b5   : > { %2037 = vmatmul.f32.gmra.mxu1 %v946_v11  ;;  %2376 = vmatmul.f32.gmra.mxu0 %v948_v17 }
 0x1b6   : > { %v1744_v40 = vpop.f32.mrf.mxu2 }
 0x1b7   : > { %v1745_v15 = vadd.f32 %v1744_v40, %v1632_v26  ;;  %v1857_v34 = vpop.f32.mrf.mxu3 }
 0x1b9   : > { %v1858_v9 = vadd.f32 %v1857_v34, %v1745_v15  ;;  %v823_v15 = vld [vmem:[#allocation2 + $0x98] sm:$0xff] }
 0x1ba   : > { %v1637_v41 = vpop.f32.mrf.mxu1  ;;  %v1976_v12 = vpop.f32.mrf.mxu0 }
 0x1bb   : > { %v3725_v54 = vadd.f32 %v1970_v59, %v1858_v9  ;;  %2150 = vmatmul.f32.gmra.mxu2 %v820_v52  ;;  %v1638_v59 = vadd.f32 %v1637_v41, %v3547_v30  ;;  %v887_v52 = vld [vmem:[#allocation2 + $0x99] sm:$0xff]  ;;  %v952_v41 = vld [vmem:[#allocation2 + $0xaa] sm:$0xff] }
 0x1bc   : > { %2263 = vmatmul.f32.gmra.mxu3 %v884_v6 }
 0x1bd   : > { %2040 = vmatmul.f32.gmra.mxu1 %v947_v27  ;;  %2379 = vmatmul.f32.gmra.mxu0 %v949_v61 }
 0x1be   : > { %v1747_v62 = vpop.f32.mrf.mxu2 }
 0x1bf   : > { %v1748_v11 = vadd.f32 %v1747_v62, %v1635_v31  ;;  %v1860_v44 = vpop.f32.mrf.mxu3 }
 0x1c1   : > { %v1861_v3 = vadd.f32 %v1860_v44, %v1748_v11  ;;  %v824_v11 = vld [vmem:[#allocation2 + $0xa8] sm:$0xff] }
 0x1c2   : > { %v1640_v0 = vpop.f32.mrf.mxu1  ;;  %v1979_v23 = vpop.f32.mrf.mxu0 }
 0x1c3   : > { %v3728_v32 = vadd.f32 %v1973_v36, %v1861_v3  ;;  %2153 = vmatmul.f32.gmra.mxu2 %v821_v47  ;;  %v1641_v36 = vadd.f32 %v1640_v0, %v3443_v28  ;;  %v888_v47 = vld [vmem:[#allocation2 + $0xa9] sm:$0xff]  ;;  %v953_v0 = vld [vmem:[#allocation2 + $0xb2] sm:$0xff] }
 0x1c4   : > { %2266 = vmatmul.f32.gmra.mxu3 %v885_v45 }
 0x1c5   : > { %2043 = vmatmul.f32.gmra.mxu1 %v948_v17  ;;  %2382 = vmatmul.f32.gmra.mxu0 %v950_v13 }
 0x1c6   : > { %v1750_v49 = vpop.f32.mrf.mxu2 }
 0x1c7   : > { %v1751_v27 = vadd.f32 %v1750_v49, %v1638_v59  ;;  %v1863_v50 = vpop.f32.mrf.mxu3 }
 0x1c9   : > { %v1864_v4 = vadd.f32 %v1863_v50, %v1751_v27  ;;  %v825_v27 = vld [vmem:[#allocation2 + $0xb0] sm:$0xff] }
 0x1ca   : > { %v1643_v42 = vpop.f32.mrf.mxu1  ;;  %v1982_v29 = vpop.f32.mrf.mxu0 }
 0x1cb   : > { %v3731_v26 = vadd.f32 %v1976_v12, %v1864_v4  ;;  %2156 = vmatmul.f32.gmra.mxu2 %v822_v25  ;;  %v1644_v12 = vadd.f32 %v1643_v42, %v3457_v37  ;;  %v889_v25 = vld [vmem:[#allocation2 + $0xb1] sm:$0xff]  ;;  %v954_v42 = vld [vmem:[#allocation2 + $0xc2] sm:$0xff] }
 0x1cc   : > { %2269 = vmatmul.f32.gmra.mxu3 %v886_v46 }
 0x1cd   : > { %2046 = vmatmul.f32.gmra.mxu1 %v949_v61  ;;  %2385 = vmatmul.f32.gmra.mxu0 %v951_v24 }
 0x1ce   : > { %v1753_v30 = vpop.f32.mrf.mxu2 }
 0x1cf   : > { %v1754_v17 = vadd.f32 %v1753_v30, %v1641_v36  ;;  %v1866_v40 = vpop.f32.mrf.mxu3 }
 0x1d1   : > { %v1867_v34 = vadd.f32 %v1866_v40, %v1754_v17  ;;  %v826_v17 = vld [vmem:[#allocation2 + $0xc0] sm:$0xff] }
 0x1d2   : > { %v1646_v9 = vpop.f32.mrf.mxu1  ;;  %v1985_v6 = vpop.f32.mrf.mxu0 }
 0x1d3   : > { %v3734_v31 = vadd.f32 %v1979_v23, %v1867_v34  ;;  %2159 = vmatmul.f32.gmra.mxu2 %v823_v15  ;;  %v1647_v23 = vadd.f32 %v1646_v9, %v3477_v8  ;;  %v890_v15 = vld [vmem:[#allocation2 + $0xc1] sm:$0xff]  ;;  %v955_v9 = vld [vmem:[#allocation2 + $0xca] sm:$0xff] }
 0x1d4   : > { %2272 = vmatmul.f32.gmra.mxu3 %v887_v52 }
 0x1d5   : > { %2049 = vmatmul.f32.gmra.mxu1 %v950_v13  ;;  %2388 = vmatmul.f32.gmra.mxu0 %v952_v41 }
 0x1d6   : > { %v1756_v28 = vpop.f32.mrf.mxu2 }
 0x1d7   : > { %v1757_v61 = vadd.f32 %v1756_v28, %v1644_v12  ;;  %v1869_v62 = vpop.f32.mrf.mxu3 }
 0x1d9   : > { %v1870_v44 = vadd.f32 %v1869_v62, %v1757_v61  ;;  %v827_v61 = vld [vmem:[#allocation2 + $0xc8] sm:$0xff] }
 0x1da   : > { %v1649_v3 = vpop.f32.mrf.mxu1  ;;  %v1988_v45 = vpop.f32.mrf.mxu0 }
 0x1db   : > { %v3737_v59 = vadd.f32 %v1982_v29, %v1870_v44  ;;  %2162 = vmatmul.f32.gmra.mxu2 %v824_v11  ;;  %v1650_v29 = vadd.f32 %v1649_v3, %v3491_v53  ;;  %v891_v11 = vld [vmem:[#allocation2 + $0xc9] sm:$0xff]  ;;  %v956_v3 = vld [vmem:[#allocation2 + $0xda] sm:$0xff] }
 0x1dc   : > { %2275 = vmatmul.f32.gmra.mxu3 %v888_v47 }
 0x1dd   : > { %2052 = vmatmul.f32.gmra.mxu1 %v951_v24  ;;  %2391 = vmatmul.f32.gmra.mxu0 %v953_v0 }
 0x1de   : > { %v1759_v37 = vpop.f32.mrf.mxu2 }
 0x1df   : > { %v1760_v13 = vadd.f32 %v1759_v37, %v1647_v23  ;;  %v1872_v49 = vpop.f32.mrf.mxu3 }
 0x1e1   : > { %v1873_v50 = vadd.f32 %v1872_v49, %v1760_v13  ;;  %v828_v13 = vld [vmem:[#allocation2 + $0xd8] sm:$0xff] }
 0x1e2   : > { %v1652_v4 = vpop.f32.mrf.mxu1  ;;  %v1991_v46 = vpop.f32.mrf.mxu0 }
 0x1e3   : > { %v3740_v36 = vadd.f32 %v1985_v6, %v1873_v50  ;;  %2165 = vmatmul.f32.gmra.mxu2 %v825_v27  ;;  %v1653_v6 = vadd.f32 %v1652_v4, %v3508_v56  ;;  %v892_v27 = vld [vmem:[#allocation2 + $0xd9] sm:$0xff]  ;;  %v957_v4 = vld [vmem:[#allocation2 + $0xe2] sm:$0xff] }
 0x1e4   : > { %2278 = vmatmul.f32.gmra.mxu3 %v889_v25 }
 0x1e5   : > { %2055 = vmatmul.f32.gmra.mxu1 %v952_v41  ;;  %2394 = vmatmul.f32.gmra.mxu0 %v954_v42 }
 0x1e6   : > { %v1762_v8 = vpop.f32.mrf.mxu2 }
 0x1e7   : > { %v1763_v24 = vadd.f32 %v1762_v8, %v1650_v29  ;;  %v1875_v30 = vpop.f32.mrf.mxu3 }
 0x1e9   : > { %v1876_v40 = vadd.f32 %v1875_v30, %v1763_v24  ;;  %v829_v24 = vld [vmem:[#allocation2 + $0xe0] sm:$0xff] }
 0x1ea   : > { %v1655_v34 = vpop.f32.mrf.mxu1  ;;  %v1994_v52 = vpop.f32.mrf.mxu0 }
 0x1eb   : > { %v3743_v12 = vadd.f32 %v1988_v45, %v1876_v40  ;;  %2168 = vmatmul.f32.gmra.mxu2 %v826_v17  ;;  %v1656_v45 = vadd.f32 %v1655_v34, %v3524_v51  ;;  %v893_v17 = vld [vmem:[#allocation2 + $0xe1] sm:$0xff]  ;;  %v958_v34 = vld [vmem:[#allocation2 + $0xf2] sm:$0xff] }
 0x1ec   : > { %2281 = vmatmul.f32.gmra.mxu3 %v890_v15 }
 0x1ed   : > { %2058 = vmatmul.f32.gmra.mxu1 %v953_v0  ;;  %2397 = vmatmul.f32.gmra.mxu0 %v955_v9 }
 0x1ee   : > { %v1765_v53 = vpop.f32.mrf.mxu2 }
 0x1ef   : > { %v1766_v41 = vadd.f32 %v1765_v53, %v1653_v6  ;;  %v1878_v28 = vpop.f32.mrf.mxu3 }
 0x1f1   : > { %v1879_v62 = vadd.f32 %v1878_v28, %v1766_v41  ;;  %v830_v41 = vld [vmem:[#allocation2 + $0xf0] sm:$0xff] }
 0x1f2   : > { %v1658_v44 = vpop.f32.mrf.mxu1  ;;  %v1997_v47 = vpop.f32.mrf.mxu0 }
 0x1f3   : > { %v3746_v23 = vadd.f32 %v1991_v46, %v1879_v62  ;;  %2171 = vmatmul.f32.gmra.mxu2 %v827_v61  ;;  %v1659_v46 = vadd.f32 %v1658_v44, %v3539_v20  ;;  %v894_v61 = vld [vmem:[#allocation2 + $0xf1] sm:$0xff]  ;;  %v959_v44 = vld [vmem:[#allocation2 + $0xfa] sm:$0xff] }
 0x1f4   : > { %2284 = vmatmul.f32.gmra.mxu3 %v891_v11 }
 0x1f5   : > { %2061 = vmatmul.f32.gmra.mxu1 %v954_v42  ;;  %2400 = vmatmul.f32.gmra.mxu0 %v956_v3 }
 0x1f6   : > { %v1768_v56 = vpop.f32.mrf.mxu2 }
 0x1f7   : > { %v1769_v0 = vadd.f32 %v1768_v56, %v1656_v45  ;;  %v1881_v37 = vpop.f32.mrf.mxu3 }
 0x1f9   : > { %v1882_v49 = vadd.f32 %v1881_v37, %v1769_v0  ;;  %v831_v0 = vld [vmem:[#allocation2 + $0xf8] sm:$0xff] }
 0x1fa   : > { %v1661_v50 = vpop.f32.mrf.mxu1  ;;  %v2000_v25 = vpop.f32.mrf.mxu0 }
 0x1fb   : > { %v3749_v29 = vadd.f32 %v1994_v52, %v1882_v49  ;;  %2174 = vmatmul.f32.gmra.mxu2 %v828_v13  ;;  %v1662_v52 = vadd.f32 %v1661_v50, %v3549_v7  ;;  %v895_v13 = vld [vmem:[#allocation2 + $0xf9] sm:$0xff]  ;;  %v960_v50 = vld [vmem:[#allocation2 + $0x10a] sm:$0xff] }
 0x1fc   : > { %2287 = vmatmul.f32.gmra.mxu3 %v892_v27 }
 0x1fd   : > { %2064 = vmatmul.f32.gmra.mxu1 %v955_v9  ;;  %2403 = vmatmul.f32.gmra.mxu0 %v957_v4 }
 0x1fe   : > { %v1771_v51 = vpop.f32.mrf.mxu2 }
 0x1ff   : > { %v1772_v42 = vadd.f32 %v1771_v51, %v1659_v46  ;;  %v1884_v8 = vpop.f32.mrf.mxu3 }
 0x201   : > { %v1885_v30 = vadd.f32 %v1884_v8, %v1772_v42  ;;  %v832_v42 = vld [vmem:[#allocation2 + $0x108] sm:$0xff] }
 0x202   : > { %v2020_v40 = vpop.f32.mrf.mxu1  ;;  %v2359_v15 = vpop.f32.mrf.mxu0 }
 0x203   : > { %v3752_v6 = vadd.f32 %v1997_v47, %v1885_v30  ;;  %2177 = vmatmul.f32.gmra.mxu2 %v829_v24  ;;  %v2021_v47 = vadd.f32 %v2020_v40, %v3563_v14  ;;  %v896_v24 = vld [vmem:[#allocation2 + $0x109] sm:$0xff]  ;;  %v961_v40 = vld [vmem:[#allocation2 + $0x112] sm:$0xff] }
 0x204   : > { %2290 = vmatmul.f32.gmra.mxu3 %v893_v17 }
 0x205   : > { %2067 = vmatmul.f32.gmra.mxu1 %v956_v3  ;;  %2406 = vmatmul.f32.gmra.mxu0 %v958_v34 }
 0x206   : > { %v1774_v20 = vpop.f32.mrf.mxu2 }
 0x207   : > { %v1775_v9 = vadd.f32 %v1774_v20, %v1662_v52  ;;  %v1887_v53 = vpop.f32.mrf.mxu3 }
 0x209   : > { %v1888_v28 = vadd.f32 %v1887_v53, %v1775_v9 }
 0x20a   : > { %v2023_v62 = vpop.f32.mrf.mxu1  ;;  %v2362_v11 = vpop.f32.mrf.mxu0 }
 0x20b   : > { %v3756_v45 = vadd.f32 %v2000_v25, %v1888_v28  ;;  %2180 = vmatmul.f32.gmra.mxu2 %v830_v41  ;;  %v2024_v14 = vadd.f32 %v2023_v62, %v3571_v63 }
 0x20c   : > { %2293 = vmatmul.f32.gmra.mxu3 %v894_v61  ;;  %v833_v61 = vld [vmem:[#allocation2 + $0x110] sm:$0xff] }
 0x20d   : > { %2070 = vmatmul.f32.gmra.mxu1 %v957_v4  ;;  %2409 = vmatmul.f32.gmra.mxu0 %v959_v44 }
 0x20e   : > { %v2133_v7 = vpop.f32.mrf.mxu2 }
 0x20f   : > { %v2134_v3 = vadd.f32 %v2133_v7, %v2021_v47  ;;  %v2246_v56 = vpop.f32.mrf.mxu3  ;;  %v897_v47 = vld [vmem:[#allocation2 + $0x111] sm:$0xff] }
 0x211   : > { %v2247_v37 = vadd.f32 %v2246_v56, %v2134_v3  ;;  %v962_v3 = vld [vmem:[#allocation2 + $0x122] sm:$0xff] }
 0x212   : > { %v2026_v49 = vpop.f32.mrf.mxu1  ;;  %v2365_v27 = vpop.f32.mrf.mxu0 }
 0x213   : > { %v2360_v25 = vadd.f32 %v2359_v15, %v2247_v37  ;;  %2183 = vmatmul.f32.gmra.mxu2 %v831_v0  ;;  %v2027_v15 = vadd.f32 %v2026_v49, %v3586_v1 }
 0x214   : > { %2296 = vmatmul.f32.gmra.mxu3 %v895_v13 }
 0x215   : > { %2455 = vst [vmem:[%s3762_s8] sm:$0xff] %v2360_v25  ;;  %2073 = vmatmul.f32.gmra.mxu1 %v958_v34  ;;  %2412 = vmatmul.f32.gmra.mxu0 %v960_v50  ;;  %v2524_v20 = vmul.f32 %v2360_v25, %v2360_v25 }
 0x216   : > { %v2136_v4 = vpop.f32.mrf.mxu2 }
 0x217   : > { %v2137_v46 = vadd.f32 %v2136_v4, %v2024_v14  ;;  %v2249_v51 = vpop.f32.mrf.mxu3  ;;  %v834_v14 = vld [vmem:[#allocation2 + $0x120] sm:$0xff] }
 0x219   : > { %v2250_v8 = vadd.f32 %v2249_v51, %v2137_v46  ;;  %v898_v46 = vld [vmem:[#allocation2 + $0x121] sm:$0xff] }
 0x21a   : > { %v2029_v30 = vpop.f32.mrf.mxu1  ;;  %v2368_v17 = vpop.f32.mrf.mxu0 }
 0x21b   : > { %v2363_v52 = vadd.f32 %v2362_v11, %v2250_v8  ;;  %2186 = vmatmul.f32.gmra.mxu2 %v832_v42  ;;  %v2030_v1 = vadd.f32 %v2029_v30, %v3595_v16 }
 0x21c   : > { %2299 = vmatmul.f32.gmra.mxu3 %v896_v24 }
 0x21d   : > { %2456 = vst [vmem:[%s3762_s8 + $0x8] sm:$0xff] %v2363_v52  ;;  %v2487_v63 = vadd.f32 %v2363_v52, %v2360_v25  ;;  %v2525_v34 = vmul.f32 %v2363_v52, %v2363_v52  ;;  %2076 = vmatmul.f32.gmra.mxu1 %v959_v44  ;;  %2415 = vmatmul.f32.gmra.mxu0 %v961_v40 }
 0x21e   : > { %v2139_v9 = vpop.f32.mrf.mxu2 }
 0x21f   : > { %v2556_v53 = vadd.f32 %v2525_v34, %v2524_v20  ;;  %v2140_v41 = vadd.f32 %v2139_v9, %v2027_v15  ;;  %v2252_v28 = vpop.f32.mrf.mxu3  ;;  %v899_v9 = vld [vmem:[#allocation2 + $0x129] sm:$0xff] }
 0x221   : > { %v2253_v62 = vadd.f32 %v2252_v28, %v2140_v41 }
 0x222   : > { %v2032_v7 = vpop.f32.mrf.mxu1  ;;  %v2371_v11 = vpop.f32.mrf.mxu0 }
 0x223   : > { %v2366_v56 = vadd.f32 %v2365_v27, %v2253_v62  ;;  %2189 = vmatmul.f32.gmra.mxu2 %v833_v61  ;;  %v963_v27 = vld [vmem:[#allocation2 + $0x12a] sm:$0xff]  ;;  %v2033_v16 = vadd.f32 %v2032_v7, %v3610_v10 }
 0x224   : > { %2302 = vmatmul.f32.gmra.mxu3 %v897_v47 }
 0x225   : > { %2457 = vst [vmem:[%s3762_s8 + $0x10] sm:$0xff] %v2366_v56  ;;  %v2488_v0 = vadd.f32 %v2487_v63, %v2366_v56  ;;  %v2526_v44 = vmul.f32 %v2366_v56, %v2366_v56  ;;  %2079 = vmatmul.f32.gmra.mxu1 %v960_v50  ;;  %2418 = vmatmul.f32.gmra.mxu0 %v962_v3  ;;  %v835_v63 = vld [vmem:[#allocation2 + $0x128] sm:$0xff] }
 0x226   : > { %v2142_v37 = vpop.f32.mrf.mxu2 }
 0x227   : > { %v2557_v13 = vadd.f32 %v2556_v53, %v2526_v44  ;;  %v2143_v49 = vadd.f32 %v2142_v37, %v2030_v1  ;;  %v2255_v25 = vpop.f32.mrf.mxu3  ;;  %v836_v1 = vld [vmem:[#allocation2 + $0x138] sm:$0xff] }
 0x228   : > { %v900_v44 = vld [vmem:[#allocation2 + $0x139] sm:$0xff] }
 0x229   : > { %v2256_v4 = vadd.f32 %v2255_v25, %v2143_v49 }
 0x22a   : > { %v2035_v51 = vpop.f32.mrf.mxu1  ;;  %v2374_v42 = vpop.f32.mrf.mxu0 }
 0x22b   : > { %v2369_v8 = vadd.f32 %v2368_v17, %v2256_v4  ;;  %2192 = vmatmul.f32.gmra.mxu2 %v834_v14  ;;  %v964_v17 = vld [vmem:[#allocation2 + $0x13a] sm:$0xff]  ;;  %v2036_v10 = vadd.f32 %v2035_v51, %v3618_v33 }
 0x22c   : > { %2305 = vmatmul.f32.gmra.mxu3 %v898_v46 }
 0x22d   : > { %2458 = vst [vmem:[%s3762_s8 + $0x18] sm:$0xff] %v2369_v8  ;;  %v2489_v24 = vadd.f32 %v2488_v0, %v2369_v8  ;;  %v2527_v50 = vmul.f32 %v2369_v8, %v2369_v8  ;;  %2082 = vmatmul.f32.gmra.mxu1 %v961_v40  ;;  %2421 = vmatmul.f32.gmra.mxu0 %v963_v27  ;;  %v837_v8 = vld [vmem:[#allocation2 + $0x140] sm:$0xff] }
 0x22e   : > { %v2145_v30 = vpop.f32.mrf.mxu2 }
 0x22f   : > { %v2558_v52 = vadd.f32 %v2557_v13, %v2527_v50  ;;  %v2146_v15 = vadd.f32 %v2145_v30, %v2033_v16  ;;  %v2258_v20 = vpop.f32.mrf.mxu3 }
 0x231   : > { %v2259_v34 = vadd.f32 %v2258_v20, %v2146_v15 }
 0x232   : > { %v2038_v53 = vpop.f32.mrf.mxu1  ;;  %v2377_v41 = vpop.f32.mrf.mxu0 }
 0x233   : > { %v2372_v28 = vadd.f32 %v2371_v11, %v2259_v34  ;;  %2195 = vmatmul.f32.gmra.mxu2 %v835_v63  ;;  %v965_v11 = vld [vmem:[#allocation2 + $0x142] sm:$0xff]  ;;  %v2039_v33 = vadd.f32 %v2038_v53, %v3631_v38  ;;  %v838_v53 = vld [vmem:[#allocation2 + $0x150] sm:$0xff] }
 0x234   : > { %2308 = vmatmul.f32.gmra.mxu3 %v899_v9 }
 0x235   : > { %2459 = vst [vmem:[%s3762_s8 + $0x20] sm:$0xff] %v2372_v28  ;;  %v2490_v61 = vadd.f32 %v2489_v24, %v2372_v28  ;;  %v2528_v40 = vmul.f32 %v2372_v28, %v2372_v28  ;;  %2085 = vmatmul.f32.gmra.mxu1 %v962_v3  ;;  %2424 = vmatmul.f32.gmra.mxu0 %v964_v17  ;;  %v901_v24 = vld [vmem:[#allocation2 + $0x141] sm:$0xff] }
 0x236   : > { %v2148_v62 = vpop.f32.mrf.mxu2 }
 0x237   : > { %v2559_v47 = vadd.f32 %v2558_v52, %v2528_v40  ;;  %v2149_v7 = vadd.f32 %v2148_v62, %v2036_v10  ;;  %v2261_v56 = vpop.f32.mrf.mxu3  ;;  %v902_v10 = vld [vmem:[#allocation2 + $0x151] sm:$0xff] }
 0x239   : > { %v2262_v0 = vadd.f32 %v2261_v56, %v2149_v7 }
 0x23a   : > { %v2041_v37 = vpop.f32.mrf.mxu1  ;;  %v2380_v13 = vpop.f32.mrf.mxu0 }
 0x23b   : > { %v2375_v49 = vadd.f32 %v2374_v42, %v2262_v0  ;;  %2198 = vmatmul.f32.gmra.mxu2 %v836_v1  ;;  %v966_v42 = vld [vmem:[#allocation2 + $0x152] sm:$0xff]  ;;  %v2042_v38 = vadd.f32 %v2041_v37, %v3637_v57 }
 0x23c   : > { %2311 = vmatmul.f32.gmra.mxu3 %v900_v44  ;;  %v839_v44 = vld [vmem:[#allocation2 + $0x158] sm:$0xff] }
 0x23d   : > { %2460 = vst [vmem:[%s3762_s8 + $0x28] sm:$0xff] %v2375_v49  ;;  %v2491_v25 = vadd.f32 %v2490_v61, %v2375_v49  ;;  %v2529_v3 = vmul.f32 %v2375_v49, %v2375_v49  ;;  %2088 = vmatmul.f32.gmra.mxu1 %v963_v27  ;;  %2427 = vmatmul.f32.gmra.mxu0 %v965_v11  ;;  %v903_v49 = vld [vmem:[#allocation2 + $0x159] sm:$0xff] }
 0x23e   : > { %v2151_v14 = vpop.f32.mrf.mxu2 }
 0x23f   : > { %v2560_v4 = vadd.f32 %v2559_v47, %v2529_v3  ;;  %v2152_v46 = vadd.f32 %v2151_v14, %v2039_v33  ;;  %v2264_v51 = vpop.f32.mrf.mxu3 }
 0x241   : > { %v2265_v16 = vadd.f32 %v2264_v51, %v2152_v46 }
 0x242   : > { %v2044_v50 = vpop.f32.mrf.mxu1  ;;  %v2383_v30 = vpop.f32.mrf.mxu0 }
 0x243   : > { %v2378_v52 = vadd.f32 %v2377_v41, %v2265_v16  ;;  %2201 = vmatmul.f32.gmra.mxu2 %v837_v8  ;;  %v967_v41 = vld [vmem:[#allocation2 + $0x15a] sm:$0xff]  ;;  %v2045_v57 = vadd.f32 %v2044_v50, %v3658_v5  ;;  %v840_v16 = vld [vmem:[#allocation2 + $0x168] sm:$0xff] }
 0x244   : > { %2314 = vmatmul.f32.gmra.mxu3 %v901_v24  ;;  %v904_v50 = vld [vmem:[#allocation2 + $0x169] sm:$0xff] }
 0x245   : > { %2461 = vst [vmem:[%s3762_s8 + $0x30] sm:$0xff] %v2378_v52  ;;  %v2492_v15 = vadd.f32 %v2491_v25, %v2378_v52  ;;  %v2530_v27 = vmul.f32 %v2378_v52, %v2378_v52  ;;  %2091 = vmatmul.f32.gmra.mxu1 %v964_v17  ;;  %2430 = vmatmul.f32.gmra.mxu0 %v966_v42 }
 0x246   : > { %v2154_v20 = vpop.f32.mrf.mxu2 }
 0x247   : > { %v2561_v63 = vadd.f32 %v2560_v4, %v2530_v27  ;;  %v2155_v34 = vadd.f32 %v2154_v20, %v2042_v38  ;;  %v2267_v9 = vpop.f32.mrf.mxu3 }
 0x249   : > { %v2268_v28 = vadd.f32 %v2267_v9, %v2155_v34 }
 0x24a   : > { %v2047_v61 = vpop.f32.mrf.mxu1  ;;  %v2386_v40 = vpop.f32.mrf.mxu0 }
 0x24b   : > { %v2381_v62 = vadd.f32 %v2380_v13, %v2268_v28  ;;  %2204 = vmatmul.f32.gmra.mxu2 %v838_v53  ;;  %v968_v13 = vld [vmem:[#allocation2 + $0x16a] sm:$0xff]  ;;  %v2048_v5 = vadd.f32 %v2047_v61, %v3670_v18 }
 0x24c   : > { %2317 = vmatmul.f32.gmra.mxu3 %v902_v10  ;;  %v841_v53 = vld [vmem:[#allocation2 + $0x170] sm:$0xff] }
 0x24d   : > { %2462 = vst [vmem:[%s3762_s8 + $0x38] sm:$0xff] %v2381_v62  ;;  %v2493_v47 = vadd.f32 %v2492_v15, %v2381_v62  ;;  %v2531_v17 = vmul.f32 %v2381_v62, %v2381_v62  ;;  %2094 = vmatmul.f32.gmra.mxu1 %v965_v11  ;;  %2433 = vmatmul.f32.gmra.mxu0 %v967_v41  ;;  %v905_v10 = vld [vmem:[#allocation2 + $0x171] sm:$0xff] }
 0x24e   : > { %v2157_v7 = vpop.f32.mrf.mxu2 }
 0x24f   : > { %v2562_v56 = vadd.f32 %v2561_v63, %v2531_v17  ;;  %v2158_v1 = vadd.f32 %v2157_v7, %v2045_v57  ;;  %v2270_v0 = vpop.f32.mrf.mxu3 }
 0x251   : > { %v2271_v37 = vadd.f32 %v2270_v0, %v2158_v1  ;;  %v842_v0 = vld [vmem:[#allocation2 + $0x180] sm:$0xff] }
 0x252   : > { %v2050_v33 = vpop.f32.mrf.mxu1  ;;  %v2389_v25 = vpop.f32.mrf.mxu0 }
 0x253   : > { %v2384_v3 = vadd.f32 %v2383_v30, %v2271_v37  ;;  %2207 = vmatmul.f32.gmra.mxu2 %v839_v44  ;;  %v969_v30 = vld [vmem:[#allocation2 + $0x172] sm:$0xff]  ;;  %v2051_v18 = vadd.f32 %v2050_v33, %v3685_v58  ;;  %v906_v37 = vld [vmem:[#allocation2 + $0x181] sm:$0xff] }
 0x254   : > { %2320 = vmatmul.f32.gmra.mxu3 %v903_v49 }
 0x255   : > { %2463 = vst [vmem:[%s3762_s8 + $0x40] sm:$0xff] %v2384_v3  ;;  %v2494_v14 = vadd.f32 %v2493_v47, %v2384_v3  ;;  %v2532_v11 = vmul.f32 %v2384_v3, %v2384_v3  ;;  %2097 = vmatmul.f32.gmra.mxu1 %v966_v42  ;;  %2436 = vmatmul.f32.gmra.mxu0 %v968_v13 }
 0x256   : > { %v2160_v4 = vpop.f32.mrf.mxu2 }
 0x257   : > { %v2563_v46 = vadd.f32 %v2562_v56, %v2532_v11  ;;  %v2161_v51 = vadd.f32 %v2160_v4, %v2048_v5  ;;  %v2273_v8 = vpop.f32.mrf.mxu3 }
 0x259   : > { %v2274_v24 = vadd.f32 %v2273_v8, %v2161_v51  ;;  %v843_v51 = vld [vmem:[#allocation2 + $0x188] sm:$0xff] }
 0x25a   : > { %v2053_v52 = vpop.f32.mrf.mxu1  ;;  %v2392_v38 = vpop.f32.mrf.mxu0 }
 0x25b   : > { %v2387_v15 = vadd.f32 %v2386_v40, %v2274_v24  ;;  %2210 = vmatmul.f32.gmra.mxu2 %v840_v16  ;;  %v970_v40 = vld [vmem:[#allocation2 + $0x182] sm:$0xff]  ;;  %v2054_v58 = vadd.f32 %v2053_v52, %v3691_v39  ;;  %v972_v52 = vld [vmem:[#allocation2 + $0x19a] sm:$0xff] }
 0x25c   : > { %2323 = vmatmul.f32.gmra.mxu3 %v904_v50  ;;  %v907_v16 = vld [vmem:[#allocation2 + $0x189] sm:$0xff] }
 0x25d   : > { %2464 = vst [vmem:[%s3762_s8 + $0x48] sm:$0xff] %v2387_v15  ;;  %v2495_v27 = vadd.f32 %v2494_v14, %v2387_v15  ;;  %v2533_v42 = vmul.f32 %v2387_v15, %v2387_v15  ;;  %2100 = vmatmul.f32.gmra.mxu1 %v967_v41  ;;  %2439 = vmatmul.f32.gmra.mxu0 %v969_v30 }
 0x25e   : > { %v2163_v20 = vpop.f32.mrf.mxu2 }
 0x25f   : > { %v2564_v63 = vadd.f32 %v2563_v46, %v2533_v42  ;;  %v2164_v34 = vadd.f32 %v2163_v20, %v2051_v18  ;;  %v2276_v9 = vpop.f32.mrf.mxu3 }
 0x261   : > { %v2277_v28 = vadd.f32 %v2276_v9, %v2164_v34  ;;  %v908_v34 = vld [vmem:[#allocation2 + $0x199] sm:$0xff] }
 0x262   : > { %v2056_v61 = vpop.f32.mrf.mxu1  ;;  %v2395_v62 = vpop.f32.mrf.mxu0 }
 0x263   : > { %v2390_v57 = vadd.f32 %v2389_v25, %v2277_v28  ;;  %2213 = vmatmul.f32.gmra.mxu2 %v841_v53  ;;  %v971_v25 = vld [vmem:[#allocation2 + $0x18a] sm:$0xff]  ;;  %v2057_v39 = vadd.f32 %v2056_v61, %v3694_v2  ;;  %v973_v28 = vld [vmem:[#allocation2 + $0x1a2] sm:$0xff] }
 0x264   : > { %2326 = vmatmul.f32.gmra.mxu3 %v905_v10  ;;  %v2757_v61 = vld [vmem:[#allocation2] sm:$0xff] }
 0x265   : > { %2465 = vst [vmem:[%s3762_s8 + $0x50] sm:$0xff] %v2390_v57  ;;  %v2496_v47 = vadd.f32 %v2495_v27, %v2390_v57  ;;  %v2534_v41 = vmul.f32 %v2390_v57, %v2390_v57  ;;  %2103 = vmatmul.f32.gmra.mxu1 %v968_v13  ;;  %2442 = vmatmul.f32.gmra.mxu0 %v970_v40 }
 0x266   : > { %v2166_v17 = vpop.f32.mrf.mxu2 }
 0x267   : > { %v2565_v7 = vadd.f32 %v2564_v63, %v2534_v41  ;;  %v2167_v56 = vadd.f32 %v2166_v17, %v2054_v58  ;;  %v2279_v1 = vpop.f32.mrf.mxu3 }
 0x269   : > { %v2280_v44 = vadd.f32 %v2279_v1, %v2167_v56 }
 0x26a   : > { %v2059_v49 = vpop.f32.mrf.mxu1  ;;  %v2398_v33 = vpop.f32.mrf.mxu0 }
 0x26b   : > { %v2393_v3 = vadd.f32 %v2392_v38, %v2280_v44  ;;  %2216 = vmatmul.f32.gmra.mxu2 %v842_v0  ;;  %v2060_v2 = vadd.f32 %v2059_v49, %v3699_v19 }
 0x26c   : > { %2329 = vmatmul.f32.gmra.mxu3 %v906_v37 }
 0x26d   : > { %2466 = vst [vmem:[%s3762_s8 + $0x58] sm:$0xff] %v2393_v3  ;;  %v2497_v5 = vadd.f32 %v2496_v47, %v2393_v3  ;;  %v2535_v13 = vmul.f32 %v2393_v3, %v2393_v3  ;;  %2106 = vmatmul.f32.gmra.mxu1 %v969_v30  ;;  %2445 = vmatmul.f32.gmra.mxu0 %v971_v25 }
 0x26e   : > { %v2169_v14 = vpop.f32.mrf.mxu2 }
 0x26f   : > { %v2566_v11 = vadd.f32 %v2565_v7, %v2535_v13  ;;  %v2170_v4 = vadd.f32 %v2169_v14, %v2057_v39  ;;  %v2282_v46 = vpop.f32.mrf.mxu3  ;;  %v909_v7 = vld [vmem:[#allocation2 + $0x1a1] sm:$0xff] }
 0x271   : > { %v2283_v8 = vadd.f32 %v2282_v46, %v2170_v4 }
 0x272   : > { %v2062_v24 = vpop.f32.mrf.mxu1  ;;  %v2401_v50 = vpop.f32.mrf.mxu0 }
 0x273   : > { %v2396_v38 = vadd.f32 %v2395_v62, %v2283_v8  ;;  %2219 = vmatmul.f32.gmra.mxu2 %v843_v51  ;;  %v2063_v19 = vadd.f32 %v2062_v24, %v3704_v35 }
 0x274   : > { %2332 = vmatmul.f32.gmra.mxu3 %v907_v16 }
 0x275   : > { %2467 = vst [vmem:[%s3762_s8 + $0x60] sm:$0xff] %v2396_v38  ;;  %v2498_v15 = vadd.f32 %v2497_v5, %v2396_v38  ;;  %v2536_v30 = vmul.f32 %v2396_v38, %v2396_v38  ;;  %2109 = vmatmul.f32.gmra.mxu1 %v970_v40  ;;  %2448 = vmatmul.f32.gmra.mxu0 %v972_v52 }
 0x276   : > { %v2172_v18 = vpop.f32.mrf.mxu2 }
 0x277   : > { %v2567_v27 = vadd.f32 %v2566_v11, %v2536_v30  ;;  %v2173_v42 = vadd.f32 %v2172_v18, %v2060_v2  ;;  %v2285_v20 = vpop.f32.mrf.mxu3 }
 0x279   : > { %v2286_v63 = vadd.f32 %v2285_v20, %v2173_v42 }
 0x27a   : > { %v2065_v9 = vpop.f32.mrf.mxu1  ;;  %v2404_v53 = vpop.f32.mrf.mxu0 }
 0x27b   : > { %v2399_v10 = vadd.f32 %v2398_v33, %v2286_v63  ;;  %2222 = vmatmul.f32.gmra.mxu2 %v2757_v61  ;;  %v2066_v35 = vadd.f32 %v2065_v9, %v3707_v21 }
 0x27c   : > { %2335 = vmatmul.f32.gmra.mxu3 %v908_v34 }
 0x27d   : > { %2468 = vst [vmem:[%s3762_s8 + $0x68] sm:$0xff] %v2399_v10  ;;  %v2499_v62 = vadd.f32 %v2498_v15, %v2399_v10  ;;  %v2537_v40 = vmul.f32 %v2399_v10, %v2399_v10  ;;  %2112 = vmatmul.f32.gmra.mxu1 %v971_v25  ;;  %2451 = vmatmul.f32.gmra.mxu0 %v973_v28 }
 0x27e   : > { %v2175_v57 = vpop.f32.mrf.mxu2 }
 0x27f   : > { %v2568_v58 = vadd.f32 %v2567_v27, %v2537_v40  ;;  %v2176_v47 = vadd.f32 %v2175_v57, %v2063_v19  ;;  %v2288_v41 = vpop.f32.mrf.mxu3 }
 0x281   : > { %v2289_v17 = vadd.f32 %v2288_v41, %v2176_v47 }
 0x282   : > { %v2068_v56 = vpop.f32.mrf.mxu1  ;;  %v2407_v1 = vpop.f32.mrf.mxu0 }
 0x283   : > { %v2402_v0 = vadd.f32 %v2401_v50, %v2289_v17  ;;  %2225 = vmatmul.f32.gmra.mxu2 %v2757_v61  ;;  %v2069_v11 = vadd.f32 %v2068_v56, %v3710_v55 }
 0x284   : > { %2338 = vmatmul.f32.gmra.mxu3 %v909_v7 }
 0x285   : > { %2469 = vst [vmem:[%s3762_s8 + $0x70] sm:$0xff] %v2402_v0  ;;  %v2500_v44 = vadd.f32 %v2499_v62, %v2402_v0  ;;  %v2538_v37 = vmul.f32 %v2402_v0, %v2402_v0 }
 0x286   : > { %v2178_v49 = vpop.f32.mrf.mxu2 }
 0x287   : > { %v2569_v33 = vadd.f32 %v2568_v58, %v2538_v37  ;;  %v2179_v25 = vadd.f32 %v2178_v49, %v2066_v35  ;;  %v2291_v3 = vpop.f32.mrf.mxu3 }
 0x289   : > { %v2292_v39 = vadd.f32 %v2291_v3, %v2179_v25 }
 0x28a   : > { %v2071_v5 = vpop.f32.mrf.mxu1  ;;  %v2410_v13 = vpop.f32.mrf.mxu0 }
 0x28b   : > { %v2405_v14 = vadd.f32 %v2404_v53, %v2292_v39  ;;  %v2072_v2 = vadd.f32 %v2071_v5, %v3713_v48 }
 0x28d   : > { %2470 = vst [vmem:[%s3762_s8 + $0x78] sm:$0xff] %v2405_v14  ;;  %v2501_v4 = vadd.f32 %v2500_v44, %v2405_v14  ;;  %v2539_v46 = vmul.f32 %v2405_v14, %v2405_v14 }
 0x28e   : > { %v2181_v51 = vpop.f32.mrf.mxu2 }
 0x28f   : > { %v2570_v8 = vadd.f32 %v2569_v33, %v2539_v46  ;;  %v2182_v21 = vadd.f32 %v2181_v51, %v2069_v11  ;;  %v2294_v16 = vpop.f32.mrf.mxu3 }
 0x291   : > { %v2295_v24 = vadd.f32 %v2294_v16, %v2182_v21 }
 0x292   : > { %v2074_v50 = vpop.f32.mrf.mxu1  ;;  %v2413_v52 = vpop.f32.mrf.mxu0 }
 0x293   : > { %v2408_v38 = vadd.f32 %v2407_v1, %v2295_v24  ;;  %v2075_v53 = vadd.f32 %v2074_v50, %v3716_v22 }
 0x295   : > { %2471 = vst [vmem:[%s3762_s8 + $0x80] sm:$0xff] %v2408_v38  ;;  %v2502_v15 = vadd.f32 %v2501_v4, %v2408_v38  ;;  %v2540_v30 = vmul.f32 %v2408_v38, %v2408_v38 }
 0x296   : > { %v2184_v18 = vpop.f32.mrf.mxu2 }
 0x297   : > { %v2571_v27 = vadd.f32 %v2570_v8, %v2540_v30  ;;  %v2185_v55 = vadd.f32 %v2184_v18, %v2072_v2  ;;  %v2297_v42 = vpop.f32.mrf.mxu3 }
 0x299   : > { %v2298_v20 = vadd.f32 %v2297_v42, %v2185_v55 }
 0x29a   : > { %v2077_v63 = vpop.f32.mrf.mxu1  ;;  %v2416_v34 = vpop.f32.mrf.mxu0 }
 0x29b   : > { %v2411_v9 = vadd.f32 %v2410_v13, %v2298_v20  ;;  %v2078_v41 = vadd.f32 %v2077_v63, %v3719_v60 }
 0x29d   : > { %2472 = vst [vmem:[%s3762_s8 + $0x88] sm:$0xff] %v2411_v9  ;;  %v2503_v28 = vadd.f32 %v2502_v15, %v2411_v9  ;;  %v2541_v10 = vmul.f32 %v2411_v9, %v2411_v9 }
 0x29e   : > { %v2187_v61 = vpop.f32.mrf.mxu2 }
 0x29f   : > { %v2572_v19 = vadd.f32 %v2571_v27, %v2541_v10  ;;  %v2188_v48 = vadd.f32 %v2187_v61, %v2075_v53  ;;  %v2300_v62 = vpop.f32.mrf.mxu3 }
 0x2a1   : > { %v2301_v40 = vadd.f32 %v2300_v62, %v2188_v48 }
 0x2a2   : > { %v2080_v57 = vpop.f32.mrf.mxu1  ;;  %v2419_v58 = vpop.f32.mrf.mxu0 }
 0x2a3   : > { %v2414_v47 = vadd.f32 %v2413_v52, %v2301_v40  ;;  %v2081_v33 = vadd.f32 %v2080_v57, %v3722_v43 }
 0x2a5   : > { %2473 = vst [vmem:[%s3762_s8 + $0x90] sm:$0xff] %v2414_v47  ;;  %v2504_v17 = vadd.f32 %v2503_v28, %v2414_v47  ;;  %v2542_v7 = vmul.f32 %v2414_v47, %v2414_v47 }
 0x2a6   : > { %v2190_v56 = vpop.f32.mrf.mxu2 }
 0x2a7   : > { %v2573_v1 = vadd.f32 %v2572_v19, %v2542_v7  ;;  %v2191_v22 = vadd.f32 %v2190_v56, %v2078_v41  ;;  %v2303_v0 = vpop.f32.mrf.mxu3 }
 0x2a9   : > { %v2304_v35 = vadd.f32 %v2303_v0, %v2191_v22 }
 0x2aa   : > { %v2083_v44 = vpop.f32.mrf.mxu1  ;;  %v2422_v37 = vpop.f32.mrf.mxu0 }
 0x2ab   : > { %v2417_v49 = vadd.f32 %v2416_v34, %v2304_v35  ;;  %v2084_v51 = vadd.f32 %v2083_v44, %v3725_v54 }
 0x2ad   : > { %2474 = vst [vmem:[%s3762_s8 + $0x98] sm:$0xff] %v2417_v49  ;;  %v2505_v25 = vadd.f32 %v2504_v17, %v2417_v49  ;;  %v2543_v3 = vmul.f32 %v2417_v49, %v2417_v49 }
 0x2ae   : > { %v2193_v39 = vpop.f32.mrf.mxu2 }
 0x2af   : > { %v2574_v5 = vadd.f32 %v2573_v1, %v2543_v3  ;;  %v2194_v60 = vadd.f32 %v2193_v39, %v2081_v33  ;;  %v2306_v13 = vpop.f32.mrf.mxu3 }
 0x2b1   : > { %v2307_v14 = vadd.f32 %v2306_v13, %v2194_v60 }
 0x2b2   : > { %v2086_v11 = vpop.f32.mrf.mxu1  ;;  %v2425_v4 = vpop.f32.mrf.mxu0 }
 0x2b3   : > { %v2420_v46 = vadd.f32 %v2419_v58, %v2307_v14  ;;  %v2087_v30 = vadd.f32 %v2086_v11, %v3728_v32 }
 0x2b5   : > { %2475 = vst [vmem:[%s3762_s8 + $0xa0] sm:$0xff] %v2420_v46  ;;  %v2506_v8 = vadd.f32 %v2505_v25, %v2420_v46  ;;  %v2544_v21 = vmul.f32 %v2420_v46, %v2420_v46 }
 0x2b6   : > { %v2196_v16 = vpop.f32.mrf.mxu2 }
 0x2b7   : > { %v2575_v24 = vadd.f32 %v2574_v5, %v2544_v21  ;;  %v2197_v43 = vadd.f32 %v2196_v16, %v2084_v51  ;;  %v2309_v50 = vpop.f32.mrf.mxu3 }
 0x2b9   : > { %v2310_v52 = vadd.f32 %v2309_v50, %v2197_v43 }
 0x2ba   : > { %v2089_v38 = vpop.f32.mrf.mxu1  ;;  %v2428_v2 = vpop.f32.mrf.mxu0 }
 0x2bb   : > { %v2423_v15 = vadd.f32 %v2422_v37, %v2310_v52  ;;  %v2090_v28 = vadd.f32 %v2089_v38, %v3731_v26 }
 0x2bd   : > { %2476 = vst [vmem:[%s3762_s8 + $0xa8] sm:$0xff] %v2423_v15  ;;  %v2507_v18 = vadd.f32 %v2506_v8, %v2423_v15  ;;  %v2545_v27 = vmul.f32 %v2423_v15, %v2423_v15 }
 0x2be   : > { %v2199_v55 = vpop.f32.mrf.mxu2 }
 0x2bf   : > { %v2576_v42 = vadd.f32 %v2575_v24, %v2545_v27  ;;  %v2200_v54 = vadd.f32 %v2199_v55, %v2087_v30  ;;  %v2312_v20 = vpop.f32.mrf.mxu3 }
 0x2c1   : > { %v2313_v63 = vadd.f32 %v2312_v20, %v2200_v54 }
 0x2c2   : > { %v2092_v34 = vpop.f32.mrf.mxu1  ;;  %v2431_v9 = vpop.f32.mrf.mxu0 }
 0x2c3   : > { %v2426_v53 = vadd.f32 %v2425_v4, %v2313_v63  ;;  %v2093_v41 = vadd.f32 %v2092_v34, %v3734_v31 }
 0x2c5   : > { %2477 = vst [vmem:[%s3762_s8 + $0xb0] sm:$0xff] %v2426_v53  ;;  %v2508_v10 = vadd.f32 %v2507_v18, %v2426_v53  ;;  %v2546_v61 = vmul.f32 %v2426_v53, %v2426_v53 }
 0x2c6   : > { %v2202_v19 = vpop.f32.mrf.mxu2 }
 0x2c7   : > { %v2577_v48 = vadd.f32 %v2576_v42, %v2546_v61  ;;  %v2203_v32 = vadd.f32 %v2202_v19, %v2090_v28  ;;  %v2315_v62 = vpop.f32.mrf.mxu3 }
 0x2c9   : > { %v2316_v40 = vadd.f32 %v2315_v62, %v2203_v32 }
 0x2ca   : > { %v2095_v57 = vpop.f32.mrf.mxu1  ;;  %v2434_v47 = vpop.f32.mrf.mxu0 }
 0x2cb   : > { %v2429_v58 = vadd.f32 %v2428_v2, %v2316_v40  ;;  %v2096_v37 = vadd.f32 %v2095_v57, %v3737_v59 }
 0x2cd   : > { %2478 = vst [vmem:[%s3762_s8 + $0xb8] sm:$0xff] %v2429_v58  ;;  %v2509_v17 = vadd.f32 %v2508_v10, %v2429_v58  ;;  %v2547_v7 = vmul.f32 %v2429_v58, %v2429_v58 }
 0x2ce   : > { %v2205_v56 = vpop.f32.mrf.mxu2 }
 0x2cf   : > { %v2578_v1 = vadd.f32 %v2577_v48, %v2547_v7  ;;  %v2206_v26 = vadd.f32 %v2205_v56, %v2093_v41  ;;  %v2318_v22 = vpop.f32.mrf.mxu3 }
 0x2d1   : > { %v2319_v0 = vadd.f32 %v2318_v22, %v2206_v26 }
 0x2d2   : > { %v2098_v35 = vpop.f32.mrf.mxu1  ;;  %v2437_v3 = vpop.f32.mrf.mxu0 }
 0x2d3   : > { %v2432_v44 = vadd.f32 %v2431_v9, %v2319_v0  ;;  %v2099_v11 = vadd.f32 %v2098_v35, %v3740_v36 }
 0x2d5   : > { %2479 = vst [vmem:[%s3762_s8 + $0xc0] sm:$0xff] %v2432_v44  ;;  %v2510_v49 = vadd.f32 %v2509_v17, %v2432_v44  ;;  %v2548_v33 = vmul.f32 %v2432_v44, %v2432_v44 }
 0x2d6   : > { %v2208_v25 = vpop.f32.mrf.mxu2 }
 0x2d7   : > { %v2579_v39 = vadd.f32 %v2578_v1, %v2548_v33  ;;  %v2209_v31 = vadd.f32 %v2208_v25, %v2096_v37  ;;  %v2321_v5 = vpop.f32.mrf.mxu3 }
 0x2d9   : > { %v2322_v60 = vadd.f32 %v2321_v5, %v2209_v31 }
 0x2da   : > { %v2101_v13 = vpop.f32.mrf.mxu1  ;;  %v2440_v16 = vpop.f32.mrf.mxu0 }
 0x2db   : > { %v2435_v14 = vadd.f32 %v2434_v47, %v2322_v60  ;;  %v2102_v52 = vadd.f32 %v2101_v13, %v3743_v12 }
 0x2dd   : > { %2480 = vst [vmem:[%s3762_s8 + $0xc8] sm:$0xff] %v2435_v14  ;;  %v2511_v4 = vadd.f32 %v2510_v49, %v2435_v14  ;;  %v2549_v46 = vmul.f32 %v2435_v14, %v2435_v14 }
 0x2de   : > { %v2211_v51 = vpop.f32.mrf.mxu2 }
 0x2df   : > { %v2580_v8 = vadd.f32 %v2579_v39, %v2549_v46  ;;  %v2212_v59 = vadd.f32 %v2211_v51, %v2099_v11  ;;  %v2324_v21 = vpop.f32.mrf.mxu3 }
 0x2e1   : > { %v2325_v24 = vadd.f32 %v2324_v21, %v2212_v59 }
 0x2e2   : > { %v2104_v50 = vpop.f32.mrf.mxu1  ;;  %v2443_v55 = vpop.f32.mrf.mxu0 }
 0x2e3   : > { %v2438_v43 = vadd.f32 %v2437_v3, %v2325_v24  ;;  %v2105_v54 = vadd.f32 %v2104_v50, %v3746_v23 }
 0x2e5   : > { %2481 = vst [vmem:[%s3762_s8 + $0xd0] sm:$0xff] %v2438_v43  ;;  %v2512_v38 = vadd.f32 %v2511_v4, %v2438_v43  ;;  %v2550_v2 = vmul.f32 %v2438_v43, %v2438_v43 }
 0x2e6   : > { %v2214_v15 = vpop.f32.mrf.mxu2 }
 0x2e7   : > { %v2581_v30 = vadd.f32 %v2580_v8, %v2550_v2  ;;  %v2215_v36 = vadd.f32 %v2214_v15, %v2102_v52  ;;  %v2327_v18 = vpop.f32.mrf.mxu3 }
 0x2e9   : > { %v2328_v27 = vadd.f32 %v2327_v18, %v2215_v36 }
 0x2ea   : > { %v2107_v9 = vpop.f32.mrf.mxu1  ;;  %v2446_v19 = vpop.f32.mrf.mxu0 }
 0x2eb   : > { %v2441_v42 = vadd.f32 %v2440_v16, %v2328_v27  ;;  %v2108_v48 = vadd.f32 %v2107_v9, %v3749_v29 }
 0x2ed   : > { %2482 = vst [vmem:[%s3762_s8 + $0xd8] sm:$0xff] %v2441_v42  ;;  %v2513_v20 = vadd.f32 %v2512_v38, %v2441_v42  ;;  %v2551_v63 = vmul.f32 %v2441_v42, %v2441_v42 }
 0x2ee   : > { %v2217_v34 = vpop.f32.mrf.mxu2 }
 0x2ef   : > { %v2582_v53 = vadd.f32 %v2581_v30, %v2551_v63  ;;  %v2218_v12 = vadd.f32 %v2217_v34, %v2105_v54  ;;  %v2330_v28 = vpop.f32.mrf.mxu3 }
 0x2f1   : > { %v2331_v10 = vadd.f32 %v2330_v28, %v2218_v12 }
 0x2f2   : > { %v2110_v47 = vpop.f32.mrf.mxu1  ;;  %v2449_v22 = vpop.f32.mrf.mxu0 }
 0x2f3   : > { %v2444_v61 = vadd.f32 %v2443_v55, %v2331_v10  ;;  %v2111_v7 = vadd.f32 %v2110_v47, %v3752_v6 }
 0x2f5   : > { %2483 = vst [vmem:[%s3762_s8 + $0xe0] sm:$0xff] %v2444_v61  ;;  %v2514_v32 = vadd.f32 %v2513_v20, %v2444_v61  ;;  %v2552_v62 = vmul.f32 %v2444_v61, %v2444_v61 }
 0x2f6   : > { %v2220_v40 = vpop.f32.mrf.mxu2 }
 0x2f7   : > { %v2583_v57 = vadd.f32 %v2582_v53, %v2552_v62  ;;  %v2221_v23 = vadd.f32 %v2220_v40, %v2108_v48  ;;  %v2333_v58 = vpop.f32.mrf.mxu3 }
 0x2f9   : > { %v2334_v41 = vadd.f32 %v2333_v58, %v2221_v23 }
 0x2fa   : > { %v2113_v37 = vpop.f32.mrf.mxu1  ;;  %v2452_v60 = vpop.f32.mrf.mxu0 }
 0x2fb   : > { %v2447_v17 = vadd.f32 %v2446_v19, %v2334_v41  ;;  %v2114_v33 = vadd.f32 %v2113_v37, %v3756_v45 }
 0x2fd   : > { %2484 = vst [vmem:[%s3762_s8 + $0xe8] sm:$0xff] %v2447_v17  ;;  %v2515_v56 = vadd.f32 %v2514_v32, %v2447_v17  ;;  %v2553_v1 = vmul.f32 %v2447_v17, %v2447_v17 }
 0x2fe   : > { %v2223_v26 = vpop.f32.mrf.mxu2 }
 0x2ff   : > { %v2584_v0 = vadd.f32 %v2583_v57, %v2553_v1  ;;  %v2224_v29 = vadd.f32 %v2223_v26, %v2111_v7  ;;  %v2336_v35 = vpop.f32.mrf.mxu3 }
 0x301   : > { %v2337_v44 = vadd.f32 %v2336_v35, %v2224_v29 }
 0x303   : > { %v2450_v49 = vadd.f32 %v2449_v22, %v2337_v44 }
 0x305   : > { %2485 = vst [vmem:[%s3762_s8 + $0xf0] sm:$0xff] %v2450_v49  ;;  %v2516_v25 = vadd.f32 %v2515_v56, %v2450_v49  ;;  %v2554_v3 = vmul.f32 %v2450_v49, %v2450_v49 }
 0x306   : > { %v2226_v39 = vpop.f32.mrf.mxu2 }
 0x307   : > { %v2585_v31 = vadd.f32 %v2584_v0, %v2554_v3  ;;  %v2227_v6 = vadd.f32 %v2226_v39, %v2114_v33  ;;  %v2339_v5 = vpop.f32.mrf.mxu3 }
 0x309   : > { %v2340_v13 = vadd.f32 %v2339_v5, %v2227_v6 }
 0x30b   : > { %v2453_v14 = vadd.f32 %v2452_v60, %v2340_v13 }
 0x30d   : > { %2486 = vst [vmem:[%s3762_s8 + $0xf8] sm:$0xff] %v2453_v14  ;;  %v2517_v11 = vadd.f32 %v2516_v25, %v2453_v14  ;;  %v2555_v4 = vmul.f32 %v2453_v14, %v2453_v14 }
 0x30f   : > { %v2518_v46 = vrot.slane %v2517_v11, 4  ;;  %v2586_v51 = vadd.f32 %v2585_v31, %v2555_v4 }
 0x311   : > { %v2519_v8 = vadd.f32 %v2518_v46, %v2517_v11  ;;  %v2587_v59 = vrot.slane %v2586_v51, 4 }
 0x313   : > { %v2520_v21 = vrot.slane %v2519_v8, 2  ;;  %v2588_v45 = vadd.f32 %v2587_v59, %v2586_v51 }
 0x315   : > { %v2521_v16 = vadd.f32 %v2520_v21, %v2519_v8  ;;  %v2589_v24 = vrot.slane %v2588_v45, 2 }
 0x317   : > { %v2522_v43 = vrot.slane %v2521_v16, 1  ;;  %v2590_v50 = vadd.f32 %v2589_v24, %v2588_v45 }
 0x319   : > { %v2591_v52 = vrot.slane %v2590_v50, 1  ;;  %v2523_v38 = vadd.f32 %v2522_v43, %v2521_v16 }
 0x31b   : > { %v2592_v2 = vadd.f32 %v2591_v52, %v2590_v50 }
 0x31d   : > { %v2594_v15 = vsel %vm2593_vm0, %v2523_v38, %v2592_v2 }
 0x31e   : > { %2595 = vst [vmem:[%s209_s12] sm:$0x3] %v2594_v15 }
 0x31f PF: > { %s15_s15 = sadd.s32 1, %s2764_s15  }
 0x320   : > { %p12_p5 = scmp.ge.s32.totalorder %s15_s15, 4  }
 0x322   :  { %14 = sbr.rel (!%p12_p5) target bundleno = 1 (0x1), region = 76 }

// kernel: residual_block_forward.5
= control target key start
LH: loop header
LB: loop body
LE: loop exit
PB: predicated region body
PF: predicated region fallthrough
CT: control target
= control target key end

     0   :  { %s2688_s15 = smov 0   ;;  %s3671_s0 = inlined_call_operand.vmem [shape: f32[2,16,16,128], index: 0, kind: input, shape index: {}]   ;;  %s3672_s1 = inlined_call_operand.vmem [shape: f32[1152,128], index: 1, kind: input, shape index: {}]   ;;  %s3673_s2 = inlined_call_operand.vmem [shape: f32[2,128], index: 2, kind: input, shape index: {}]   ;;  %s3674_s3 = inlined_call_operand.vmem [shape: f32[512,128], index: 3, kind: output, shape index: {0}]   ;;  %s3675_s4 = inlined_call_operand.vmem [shape: f32[2,2,128], index: 4, kind: output, shape index: {1}]  }
   0x1 LB: > { %s2694_s16 = sadd.s32 4294967295, %s2660_s15   ;;  %p2587_p0 = scmp.ge.s32.totalorder %s2660_s15, 1  ;;  %s2660_s15 = sphi %s2688_s15, %s15_s15  }
   0x2   : > { %p165_p1 = scmp.lt.s32.totalorder %s2660_s15, 3 }
   0x4   : > { %p166_p2 = pnand %p2587_p0, %p165_p1 }
   0x5   : > { %p195_p3 = scmp.lt.s32.totalorder (!%p166_p2), %s2694_s16, 1  ;;  %s2590_s6 = sshll.u32 (!%p166_p2), %s2694_s16, 5 }
   0x6   : > { %169 = sbr.rel (%p166_p2) target bundleno = 799 (0x31f), region = 32  ;;  %p201_p4 = scmp.lt.s32.totalorder (!%p166_p2), %s2590_s6, 63 }
   0xb   : > { %v1209_v0 = vld [vmem:[%s3672_s1 + $0x78] sm:$0xff]  ;;  %v1208_v1 = vld [vmem:[%s3672_s1 + $0x70] sm:$0xff]  ;;  %v2662_v2 = vmov 0.0   ;;  %v1207_v3 = vld [vmem:[%s3672_s1 + $0x68] sm:$0xff]  ;;  %s2710_s22 = scalar_select %p195_p3, %s2694_s16, 1  ;;  %vm2493_vm0 = vcmask 1040384  }
   0xc   : > { %2596 = vmatpush.msra.mxu1 %v1209_v0  ;;  %2597 = vmatpush.msra.mxu2 %v1209_v0  ;;  %254 = vst [vmem:[#allocation2 + $0x60] sm:$0xff] %v2662_v2  ;;  %v1206_v4 = vld [vmem:[%s3672_s1 + $0x60] sm:$0xff]  ;;  %v1205_v5 = vld [vmem:[%s3672_s1 + $0x58] sm:$0xff]  ;;  %v1204_v7 = vld [vmem:[%s3672_s1 + $0x50] sm:$0xff]  ;;  %s3677_s6 = smov (!%p201_p4, %s2590_s6), 63 }
   0xd   : > { %2598 = vmatpush.msra.mxu3 %v1209_v0  ;;  %1338 = vmatpush.msra.mxu0 %v1209_v0  ;;  %255 = vst [vmem:[#allocation2 + $0x68] sm:$0xff] %v2662_v2  ;;  %s2595_s25 = sshll.u32 %s2710_s22, 8  ;;  %v1203_v8 = vld [vmem:[%s3672_s1 + $0x48] sm:$0xff]  ;;  %v1202_v9 = vld [vmem:[%s3672_s1 + $0x40] sm:$0xff]  ;;  %v1201_v10 = vld [vmem:[%s3672_s1 + $0x38] sm:$0xff]  ;;  %s2591_s16 = sshll.u32 %s3677_s6, 3 }
   0xe   : > { %2599 = vmatpush.msra.mxu1 %v1208_v1  ;;  %2600 = vmatpush.msra.mxu2 %v1208_v1  ;;  %242 = vst [vmem:[#allocation2] sm:$0xff] %v2662_v2  ;;  %s2722_s28 = scalar_lea.vmem %s3671_s0, %s2595_s25  ;;  %v1200_v11 = vld [vmem:[%s3672_s1 + $0x30] sm:$0xff]  ;;  %v1199_v12 = vld [vmem:[%s3672_s1 + $0x28] sm:$0xff]  ;;  %v1198_v13 = vld [vmem:[%s3672_s1 + $0x20] sm:$0xff]  ;;  %s3599_s9 = scalar_lea.vmem %s3674_s3, %s2591_s16 }
   0xf   : > { %2601 = vmatpush.msra.mxu3 %v1208_v1  ;;  %1339 = vmatpush.msra.mxu0 %v1208_v1  ;;  %243 = vst [vmem:[#allocation2 + $0x8] sm:$0xff] %v2662_v2  ;;  %v2729_v6 = vld [vmem:[%s2722_s28 + $0x30] sm:$0xff]  ;;  %v1197_v14 = vld [vmem:[%s3672_s1 + $0x18] sm:$0xff]  ;;  %v1195_v16 = vld [vmem:[%s3672_s1 + $0x8] sm:$0xff]  ;;  %s2592_s10 = sshll.u32 %s2710_s22, 1 }
  0x10   : > { %2602 = vmatpush.msra.mxu1 %v1207_v3  ;;  %2603 = vmatpush.msra.mxu2 %v1207_v3  ;;  %244 = vst [vmem:[#allocation2 + $0x10] sm:$0xff] %v2662_v2  ;;  %v1196_v15 = vld [vmem:[%s3672_s1 + $0x10] sm:$0xff]  ;;  %v1194_v17 = vld [vmem:[%s3672_s1] sm:$0xff]  ;;  %v1241_v19 = vld [vmem:[%s3672_s1 + $0x178] sm:$0xff]  ;;  %s209_s13 = scalar_lea.vmem %s3675_s4, %s2592_s10 }
  0x11   : > { %2604 = vmatpush.msra.mxu3 %v1207_v3  ;;  %1340 = vmatpush.msra.mxu0 %v1207_v3  ;;  %245 = vst [vmem:[#allocation2 + $0x18] sm:$0xff] %v2662_v2  ;;  %v1257_v20 = vld [vmem:[%s3672_s1 + $0x1f8] sm:$0xff]  ;;  %v1240_v22 = vld [vmem:[%s3672_s1 + $0x170] sm:$0xff]  ;;  %v1239_v25 = vld [vmem:[%s3672_s1 + $0x168] sm:$0xff] }
  0x12   : > { %2605 = vmatpush.msra.mxu1 %v1206_v4  ;;  %2606 = vmatpush.msra.mxu2 %v1206_v4  ;;  %303 = vst [vmem:[#allocation2 + $0x61] sm:$0xff] %v2729_v6  ;;  %v1225_v21 = vld [vmem:[%s3672_s1 + $0xf8] sm:$0xff]  ;;  %v1256_v23 = vld [vmem:[%s3672_s1 + $0x1f0] sm:$0xff]  ;;  %v1255_v26 = vld [vmem:[%s3672_s1 + $0x1e8] sm:$0xff] }
  0x13   : > { %2607 = vmatpush.msra.mxu3 %v1206_v4  ;;  %1341 = vmatpush.msra.mxu0 %v1206_v4  ;;  %246 = vst [vmem:[#allocation2 + $0x20] sm:$0xff] %v2662_v2  ;;  %v1224_v24 = vld [vmem:[%s3672_s1 + $0xf0] sm:$0xff]  ;;  %v1273_v27 = vld [vmem:[%s3672_s1 + $0x278] sm:$0xff]  ;;  %v1223_v28 = vld [vmem:[%s3672_s1 + $0xe8] sm:$0xff] }
  0x14   : > { %2608 = vmatpush.msra.mxu1 %v1205_v5  ;;  %2609 = vmatpush.msra.mxu2 %v1205_v5  ;;  %247 = vst [vmem:[#allocation2 + $0x28] sm:$0xff] %v2662_v2  ;;  %v1238_v29 = vld [vmem:[%s3672_s1 + $0x160] sm:$0xff]  ;;  %v1272_v31 = vld [vmem:[%s3672_s1 + $0x270] sm:$0xff]  ;;  %v1237_v33 = vld [vmem:[%s3672_s1 + $0x158] sm:$0xff] }
  0x15   : > { %2610 = vmatpush.msra.mxu3 %v1205_v5  ;;  %1342 = vmatpush.msra.mxu0 %v1205_v5  ;;  %248 = vst [vmem:[#allocation2 + $0x30] sm:$0xff] %v2662_v2  ;;  %v1254_v30 = vld [vmem:[%s3672_s1 + $0x1e0] sm:$0xff]  ;;  %v1253_v34 = vld [vmem:[%s3672_s1 + $0x1d8] sm:$0xff]  ;;  %v1271_v35 = vld [vmem:[%s3672_s1 + $0x268] sm:$0xff] }
  0x16   : > { %2611 = vmatpush.msra.mxu1 %v1204_v7  ;;  %2612 = vmatpush.msra.mxu2 %v1204_v7  ;;  %249 = vst [vmem:[#allocation2 + $0x38] sm:$0xff] %v2662_v2  ;;  %v1222_v32 = vld [vmem:[%s3672_s1 + $0xe0] sm:$0xff]  ;;  %v1221_v36 = vld [vmem:[%s3672_s1 + $0xd8] sm:$0xff]  ;;  %v1236_v37 = vld [vmem:[%s3672_s1 + $0x150] sm:$0xff] }
  0x17   : > { %2613 = vmatpush.msra.mxu3 %v1204_v7  ;;  %1343 = vmatpush.msra.mxu0 %v1204_v7  ;;  %250 = vst [vmem:[#allocation2 + $0x40] sm:$0xff] %v2662_v2  ;;  %v1252_v38 = vld [vmem:[%s3672_s1 + $0x1d0] sm:$0xff]  ;;  %v1270_v39 = vld [vmem:[%s3672_s1 + $0x260] sm:$0xff]  ;;  %v2887_v42 = vld [vmem:[%s2722_s28 + $0x38] sm:$0xff] }
  0x18   : > { %2614 = vmatpush.msra.mxu1 %v1203_v8  ;;  %2615 = vmatpush.msra.mxu2 %v1203_v8  ;;  %251 = vst [vmem:[#allocation2 + $0x48] sm:$0xff] %v2662_v2  ;;  %v2881_v40 = vld [vmem:[%s2722_s28 + $0x70] sm:$0xff]  ;;  %v2890_v43 = vld [vmem:[%s2722_s28 + $0x78] sm:$0xff]  ;;  %v2895_v45 = vld [vmem:[%s2722_s28 + $0x40] sm:$0xff] }
  0x19   : > { %2616 = vmatpush.msra.mxu3 %v1203_v8  ;;  %1344 = vmatpush.msra.mxu0 %v1203_v8  ;;  %252 = vst [vmem:[#allocation2 + $0x50] sm:$0xff] %v2662_v2  ;;  %v2787_v18 = vld [vmem:[#allocation2 + $0x60] sm:$0xff]  ;;  %v232_v41 = vld [vmem:[%s2722_s28 + $0xb0] sm:$0xff]  ;;  %v233_v44 = vld [vmem:[%s2722_s28 + $0xb8] sm:$0xff] }
  0x1a   : > { %2617 = vmatpush.msra.mxu1 %v1202_v9  ;;  %2618 = vmatpush.msra.mxu2 %v1202_v9  ;;  %253 = vst [vmem:[#allocation2 + $0x58] sm:$0xff] %v2662_v2  ;;  %v1220_v46 = vld [vmem:[%s3672_s1 + $0xd0] sm:$0xff]  ;;  %v1235_v47 = vld [vmem:[%s3672_s1 + $0x148] sm:$0xff]  ;;  %v1269_v49 = vld [vmem:[%s3672_s1 + $0x258] sm:$0xff] }
  0x1b   : > { %2619 = vmatpush.msra.mxu3 %v1202_v9  ;;  %1345 = vmatpush.msra.mxu0 %v1202_v9  ;;  %256 = vst [vmem:[#allocation2 + $0x70] sm:$0xff] %v2662_v2  ;;  %v1251_v48 = vld [vmem:[%s3672_s1 + $0x1c8] sm:$0xff]  ;;  %v1234_v51 = vld [vmem:[%s3672_s1 + $0x140] sm:$0xff]  ;;  %v1268_v53 = vld [vmem:[%s3672_s1 + $0x250] sm:$0xff] }
  0x1c   : > { %2620 = vmatpush.msra.mxu1 %v1201_v10  ;;  %2621 = vmatpush.msra.mxu2 %v1201_v10  ;;  %257 = vst [vmem:[#allocation2 + $0x78] sm:$0xff] %v2662_v2  ;;  %v1219_v50 = vld [vmem:[%s3672_s1 + $0xc8] sm:$0xff]  ;;  %v1250_v52 = vld [vmem:[%s3672_s1 + $0x1c0] sm:$0xff]  ;;  %v2942_v61 = vld [vmem:[%s2722_s28 + $0x50] sm:$0xff] }
  0x1d   : > { %2622 = vmatpush.msra.mxu3 %v1201_v10  ;;  %1346 = vmatpush.msra.mxu0 %v1201_v10  ;;  %258 = vst [vmem:[#allocation2 + $0x80] sm:$0xff] %v2662_v2  ;;  %v2924_v54 = vld [vmem:[%s2722_s28 + $0x80] sm:$0xff]  ;;  %v2929_v56 = vld [vmem:[%s2722_s28 + $0x48] sm:$0xff]  ;;  %v1233_v0 = vld [vmem:[%s3672_s1 + $0x138] sm:$0xff] }
  0x1e   : > { %2623 = vmatpush.msra.mxu1 %v1200_v11  ;;  %2624 = vmatpush.msra.mxu2 %v1200_v11  ;;  %259 = vst [vmem:[#allocation2 + $0x88] sm:$0xff] %v2662_v2  ;;  %v234_v55 = vld [vmem:[%s2722_s28 + $0xc0] sm:$0xff]  ;;  %v2933_v57 = vld [vmem:[%s2722_s28 + $0x88] sm:$0xff]  ;;  %v2964_v4 = vld [vmem:[%s2722_s28 + $0x90] sm:$0xff] }
  0x1f   : > { %2625 = vmatpush.msra.mxu3 %v1200_v11  ;;  %1347 = vmatpush.msra.mxu0 %v1200_v11  ;;  %260 = vst [vmem:[#allocation2 + $0x90] sm:$0xff] %v2662_v2  ;;  %v2936_v58 = vld [vmem:[%s2722_s28] sm:$0xff]  ;;  %v235_v60 = vld [vmem:[%s2722_s28 + $0xc8] sm:$0xff]  ;;  %v1217_v5 = vld [vmem:[%s3672_s1 + $0xb8] sm:$0xff] }
  0x20   : > { %2626 = vmatpush.msra.mxu1 %v1199_v12  ;;  %2627 = vmatpush.msra.mxu2 %v1199_v12  ;;  %261 = vst [vmem:[#allocation2 + $0x98] sm:$0xff] %v2662_v2  ;;  %v1218_v63 = vld [vmem:[%s3672_s1 + $0xc0] sm:$0xff]  ;;  %v1267_v3 = vld [vmem:[%s3672_s1 + $0x248] sm:$0xff]  ;;  %v1232_v7 = vld [vmem:[%s3672_s1 + $0x130] sm:$0xff] }
  0x21   : > { %2628 = vmatpush.msra.mxu3 %v1199_v12  ;;  %1348 = vmatpush.msra.mxu0 %v1199_v12  ;;  %262 = vst [vmem:[#allocation2 + $0xa0] sm:$0xff] %v2662_v2  ;;  %v2973_v8 = vld [vmem:[%s2722_s28 + $0x8] sm:$0xff]  ;;  %v1248_v9 = vld [vmem:[%s3672_s1 + $0x1b0] sm:$0xff]  ;;  %v1266_v10 = vld [vmem:[%s3672_s1 + $0x240] sm:$0xff] }
  0x22   : > { %2629 = vmatpush.msra.mxu1 %v1198_v13  ;;  %2630 = vmatpush.msra.mxu2 %v1198_v13  ;;  %263 = vst [vmem:[#allocation2 + $0xa8] sm:$0xff] %v2662_v2  ;;  %v236_v11 = vld [vmem:[%s2722_s28 + $0xd0] sm:$0xff] }
  0x23   : > { %2631 = vmatpush.msra.mxu3 %v1198_v13  ;;  %264 = vst [vmem:[#allocation2 + $0xb0] sm:$0xff] %v2662_v2  ;;  %1349 = vmatpush.msra.mxu0 %v1198_v13  ;;  %v2987_v13 = vld [vmem:[%s2722_s28 + $0x58] sm:$0xff] }
  0x24   : > { %2632 = vmatpush.msra.mxu1 %v1197_v14  ;;  %2633 = vmatpush.msra.mxu2 %v1197_v14  ;;  %265 = vst [vmem:[#allocation2 + $0xb8] sm:$0xff] %v2662_v2 }
  0x25   : > { %2634 = vmatpush.msra.mxu3 %v1197_v14  ;;  %266 = vst [vmem:[#allocation2 + $0xc0] sm:$0xff] %v2662_v2  ;;  %1350 = vmatpush.msra.mxu0 %v1197_v14 }
  0x26   : > { %2635 = vmatpush.msra.mxu1 %v1196_v15  ;;  %2636 = vmatpush.msra.mxu2 %v1196_v15  ;;  %267 = vst [vmem:[#allocation2 + $0xc8] sm:$0xff] %v2662_v2 }
  0x27   : > { %2637 = vmatpush.msra.mxu3 %v1196_v15  ;;  %268 = vst [vmem:[#allocation2 + $0xd0] sm:$0xff] %v2662_v2  ;;  %1351 = vmatpush.msra.mxu0 %v1196_v15  ;;  %v2991_v15 = vld [vmem:[%s2722_s28 + $0x98] sm:$0xff] }
  0x28   : > { %2638 = vmatpush.msra.mxu1 %v1195_v16  ;;  %2639 = vmatpush.msra.mxu2 %v1195_v16  ;;  %269 = vst [vmem:[#allocation2 + $0xd8] sm:$0xff] %v2662_v2 }
  0x29   : > { %2640 = vmatpush.msra.mxu3 %v1195_v16  ;;  %270 = vst [vmem:[#allocation2 + $0xe0] sm:$0xff] %v2662_v2  ;;  %1352 = vmatpush.msra.mxu0 %v1195_v16 }
  0x2a   : > { %2641 = vmatpush.msra.mxu1 %v1194_v17  ;;  %2642 = vmatpush.msra.mxu2 %v1194_v17  ;;  %271 = vst [vmem:[#allocation2 + $0xe8] sm:$0xff] %v2662_v2 }
  0x2b   : > { %1378 = vmatmul.f32.vlgmr.msra.gmra.mxu1 %v2787_v18  ;;  %272 = vst [vmem:[#allocation2 + $0xf0] sm:$0xff] %v2662_v2  ;;  %2643 = vmatpush.msra.mxu3 %v1194_v17 }
  0x2c   : > { %273 = vst [vmem:[#allocation2 + $0xf8] sm:$0xff] %v2662_v2  ;;  %1564 = vmatpush.msrb.mxu2 %v1241_v19  ;;  %1353 = vmatpush.msra.mxu0 %v1194_v17  ;;  %v2996_v17 = vld [vmem:[%s2722_s28 + $0x10] sm:$0xff]  ;;  %v237_v19 = vld [vmem:[%s2722_s28 + $0xd8] sm:$0xff] }
  0x2d   : > { %274 = vst [vmem:[#allocation2 + $0x100] sm:$0xff] %v2662_v2  ;;  %1677 = vmatpush.msrb.mxu3 %v1257_v20  ;;  %1451 = vmatpush.msrb.mxu1 %v1225_v21  ;;  %v1216_v20 = vld [vmem:[%s3672_s1 + $0xb0] sm:$0xff]  ;;  %v1231_v21 = vld [vmem:[%s3672_s1 + $0x128] sm:$0xff] }
  0x2e   : > { %275 = vst [vmem:[#allocation2 + $0x108] sm:$0xff] %v2662_v2  ;;  %1565 = vmatpush.msrb.mxu2 %v1240_v22  ;;  %1354 = vmatmul.f32.vlgmr.msra.gmra.mxu0 %v2662_v2  ;;  %v3008_v22 = vld [vmem:[%s2722_s28 + $0x60] sm:$0xff] }
  0x2f   : > { %276 = vst [vmem:[#allocation2 + $0x110] sm:$0xff] %v2662_v2  ;;  %1678 = vmatpush.msrb.mxu3 %v1256_v23  ;;  %1452 = vmatpush.msrb.mxu1 %v1224_v24  ;;  %v1247_v24 = vld [vmem:[%s3672_s1 + $0x1a8] sm:$0xff] }
  0x30   : > { %277 = vst [vmem:[#allocation2 + $0x118] sm:$0xff] %v2662_v2  ;;  %1566 = vmatpush.msrb.mxu2 %v1239_v25  ;;  %1790 = vmatpush.msrb.mxu0 %v1273_v27  ;;  %v1265_v25 = vld [vmem:[%s3672_s1 + $0x238] sm:$0xff]  ;;  %v1230_v27 = vld [vmem:[%s3672_s1 + $0x120] sm:$0xff] }
  0x31   : > { %278 = vst [vmem:[#allocation2 + $0x120] sm:$0xff] %v2662_v2  ;;  %1679 = vmatpush.msrb.mxu3 %v1255_v26  ;;  %1453 = vmatpush.msrb.mxu1 %v1223_v28  ;;  %v1215_v26 = vld [vmem:[%s3672_s1 + $0xa8] sm:$0xff]  ;;  %v3029_v28 = vld [vmem:[%s2722_s28 + $0xa0] sm:$0xff] }
  0x32   : > { %279 = vst [vmem:[#allocation2 + $0x128] sm:$0xff] %v2662_v2  ;;  %1567 = vmatpush.msrb.mxu2 %v1238_v29  ;;  %1791 = vmatpush.msrb.mxu0 %v1272_v31  ;;  %v1246_v29 = vld [vmem:[%s3672_s1 + $0x1a0] sm:$0xff]  ;;  %v3039_v31 = vld [vmem:[%s2722_s28 + $0x18] sm:$0xff] }
  0x33   : > { %280 = vst [vmem:[#allocation2 + $0x130] sm:$0xff] %v2662_v2  ;;  %1680 = vmatpush.msrb.mxu3 %v1254_v30  ;;  %1454 = vmatpush.msrb.mxu1 %v1222_v32  ;;  %v1264_v30 = vld [vmem:[%s3672_s1 + $0x230] sm:$0xff]  ;;  %v238_v32 = vld [vmem:[%s2722_s28 + $0xe0] sm:$0xff] }
  0x34   : > { %281 = vst [vmem:[#allocation2 + $0x138] sm:$0xff] %v2662_v2  ;;  %1568 = vmatpush.msrb.mxu2 %v1237_v33  ;;  %1792 = vmatpush.msrb.mxu0 %v1271_v35 }
  0x35   : > { %282 = vst [vmem:[#allocation2 + $0x140] sm:$0xff] %v2662_v2  ;;  %1681 = vmatpush.msrb.mxu3 %v1253_v34  ;;  %1455 = vmatpush.msrb.mxu1 %v1221_v36 }
  0x36   : > { %283 = vst [vmem:[#allocation2 + $0x148] sm:$0xff] %v2662_v2  ;;  %1357 = vmatmul.f32.gmra.mxu0 %v2662_v2  ;;  %1569 = vmatpush.msrb.mxu2 %v1236_v37  ;;  %v3051_v37 = vld [vmem:[%s2722_s28 + $0x68] sm:$0xff] }
  0x37   : > { %284 = vst [vmem:[#allocation2 + $0x150] sm:$0xff] %v2662_v2  ;;  %1682 = vmatpush.msrb.mxu3 %v1252_v38  ;;  %1793 = vmatpush.msrb.mxu0 %v1270_v39  ;;  %v3054_v38 = vld [vmem:[%s2722_s28 + $0xa8] sm:$0xff]  ;;  %v1214_v39 = vld [vmem:[%s3672_s1 + $0xa0] sm:$0xff] }
  0x38   : > { %285 = vst [vmem:[#allocation2 + $0x158] sm:$0xff] %v2662_v2  ;;  %1456 = vmatpush.msrb.mxu1 %v1220_v46  ;;  %1570 = vmatpush.msrb.mxu2 %v1235_v47  ;;  %v1263_v46 = vld [vmem:[%s3672_s1 + $0x228] sm:$0xff]  ;;  %v1213_v47 = vld [vmem:[%s3672_s1 + $0x98] sm:$0xff] }
  0x39   : > { %286 = vst [vmem:[#allocation2 + $0x160] sm:$0xff] %v2662_v2  ;;  %1683 = vmatpush.msrb.mxu3 %v1251_v48  ;;  %1794 = vmatpush.msrb.mxu0 %v1269_v49  ;;  %v1228_v48 = vld [vmem:[%s3672_s1 + $0x110] sm:$0xff] }
  0x3a   : > { %287 = vst [vmem:[#allocation2 + $0x168] sm:$0xff] %v2662_v2  ;;  %1457 = vmatpush.msrb.mxu1 %v1219_v50  ;;  %1571 = vmatpush.msrb.mxu2 %v1234_v51  ;;  %v1244_v49 = vld [vmem:[%s3672_s1 + $0x190] sm:$0xff]  ;;  %v1262_v50 = vld [vmem:[%s3672_s1 + $0x220] sm:$0xff] }
  0x3b   : > { %288 = vst [vmem:[#allocation2 + $0x170] sm:$0xff] %v2662_v2  ;;  %1684 = vmatpush.msrb.mxu3 %v1250_v52  ;;  %1795 = vmatpush.msrb.mxu0 %v1268_v53  ;;  %v3086_v51 = vld [vmem:[%s2722_s28 + $0x20] sm:$0xff]  ;;  %v239_v52 = vld [vmem:[%s2722_s28 + $0xe8] sm:$0xff] }
  0x3c   : > { %289 = vst [vmem:[#allocation2 + $0x178] sm:$0xff] %v2662_v2  ;;  %1458 = vmatpush.msrb.mxu1 %v1218_v63  ;;  %1572 = vmatpush.msrb.mxu2 %v1233_v0  ;;  %v1212_v63 = vld [vmem:[%s3672_s1 + $0x90] sm:$0xff]  ;;  %v1227_v0 = vld [vmem:[%s3672_s1 + $0x108] sm:$0xff] }
  0x3d   : > { %290 = vst [vmem:[#allocation2 + $0x180] sm:$0xff] %v2662_v2  ;;  %1796 = vmatpush.msrb.mxu0 %v1267_v3  ;;  %v1261_v3 = vld [vmem:[%s3672_s1 + $0x218] sm:$0xff] }
  0x3e   : > { %291 = vst [vmem:[#allocation2 + $0x188] sm:$0xff] %v2662_v2  ;;  %1459 = vmatpush.msrb.mxu1 %v1217_v5  ;;  %1573 = vmatpush.msrb.mxu2 %v1232_v7  ;;  %v1211_v5 = vld [vmem:[%s3672_s1 + $0x88] sm:$0xff]  ;;  %v1226_v7 = vld [vmem:[%s3672_s1 + $0x100] sm:$0xff] }
  0x3f   : > { %292 = vst [vmem:[#allocation2 + $0x190] sm:$0xff] %v2662_v2  ;;  %1797 = vmatpush.msrb.mxu0 %v1266_v10  ;;  %v1260_v10 = vld [vmem:[%s3672_s1 + $0x210] sm:$0xff] }
  0x40   : > { %293 = vst [vmem:[#allocation2 + $0x198] sm:$0xff] %v2662_v2  ;;  %1460 = vmatpush.msrb.mxu1 %v1216_v20  ;;  %1574 = vmatpush.msrb.mxu2 %v1231_v21 }
  0x41   : > { %294 = vst [vmem:[#allocation2 + $0x1a0] sm:$0xff] %v2662_v2  ;;  %1798 = vmatpush.msrb.mxu0 %v1265_v25  ;;  %v1305_v25 = vld [vmem:[%s3672_s1 + $0x378] sm:$0xff] }
  0x42   : > { %295 = vst [vmem:[#allocation2 + $0x1a8] sm:$0xff] %v2662_v2  ;;  %v1249_v2 = vld [vmem:[%s3672_s1 + $0x1b8] sm:$0xff]  ;;  %1461 = vmatpush.msrb.mxu1 %v1215_v26  ;;  %1575 = vmatpush.msrb.mxu2 %v1230_v27  ;;  %v1259_v26 = vld [vmem:[%s3672_s1 + $0x208] sm:$0xff] }
  0x43   : > { %311 = vst [vmem:[#allocation2 + $0xc1] sm:$0xff] %v2881_v40  ;;  %1685 = vmatpush.msrb.mxu3 %v1249_v2  ;;  %1799 = vmatpush.msrb.mxu0 %v1264_v30  ;;  %v1243_v2 = vld [vmem:[%s3672_s1 + $0x188] sm:$0xff]  ;;  %v1321_v27 = vld [vmem:[%s3672_s1 + $0x3f8] sm:$0xff]  ;;  %v1258_v30 = vld [vmem:[%s3672_s1 + $0x200] sm:$0xff] }
  0x44   : > { %319 = vst [vmem:[#allocation2 + $0x121] sm:$0xff] %v232_v41  ;;  %v1229_v41 = vld [vmem:[%s3672_s1 + $0x118] sm:$0xff]  ;;  %1462 = vmatpush.msrb.mxu1 %v1214_v39 }
  0x45   : > { %304 = vst [vmem:[#allocation2 + $0x69] sm:$0xff] %v2887_v42  ;;  %1686 = vmatpush.msrb.mxu3 %v1248_v9  ;;  %1576 = vmatpush.msrb.mxu2 %v1229_v41  ;;  %v1242_v9 = vld [vmem:[%s3672_s1 + $0x180] sm:$0xff] }
  0x46   : > { %312 = vst [vmem:[#allocation2 + $0xc9] sm:$0xff] %v2890_v43  ;;  %1800 = vmatpush.msrb.mxu0 %v1263_v46  ;;  %1463 = vmatpush.msrb.mxu1 %v1213_v47 }
  0x47   : > { %320 = vst [vmem:[#allocation2 + $0x129] sm:$0xff] %v233_v44  ;;  %1687 = vmatpush.msrb.mxu3 %v1247_v24  ;;  %v1245_v44 = vld [vmem:[%s3672_s1 + $0x198] sm:$0xff]  ;;  %1577 = vmatpush.msrb.mxu2 %v1228_v48 }
  0x48   : > { %305 = vst [vmem:[#allocation2 + $0x79] sm:$0xff] %v2895_v45  ;;  %1801 = vmatpush.msrb.mxu0 %v1262_v50  ;;  %1464 = vmatpush.msrb.mxu1 %v1212_v63  ;;  %v1304_v50 = vld [vmem:[%s3672_s1 + $0x370] sm:$0xff] }
  0x49   : > { %313 = vst [vmem:[#allocation2 + $0xd9] sm:$0xff] %v2924_v54  ;;  %1688 = vmatpush.msrb.mxu3 %v1246_v29  ;;  %1578 = vmatpush.msrb.mxu2 %v1227_v0  ;;  %v1289_v29 = vld [vmem:[%s3672_s1 + $0x2f8] sm:$0xff] }
  0x4a   : > { %v2938_v59 = vld [vmem:[#allocation2 + $0xc0] sm:$0xff]  ;;  %321 = vst [vmem:[#allocation2 + $0x139] sm:$0xff] %v234_v55  ;;  %1802 = vmatpush.msrb.mxu0 %v1261_v3  ;;  %1465 = vmatpush.msrb.mxu1 %v1211_v5  ;;  %v1336_v3 = vld [vmem:[%s3672_s1 + $0x470] sm:$0xff] }
  0x4b   : > { %1402 = vmatmul.f32.vlgmr.msra.gmra.mxu2 %v2938_v59  ;;  %v353_v62 = vld [vmem:[#allocation2 + $0x120] sm:$0xff]  ;;  %306 = vst [vmem:[#allocation2 + $0x81] sm:$0xff] %v2929_v56  ;;  %1689 = vmatpush.msrb.mxu3 %v1245_v44  ;;  %v1337_v44 = vld [vmem:[%s3672_s1 + $0x478] sm:$0xff] }
  0x4c   : > { %1426 = vmatmul.f32.vlgmr.msra.gmra.mxu3 %v353_v62  ;;  %v2952_v1 = vld [vmem:[#allocation2 + $0x68] sm:$0xff]  ;;  %314 = vst [vmem:[#allocation2 + $0xe1] sm:$0xff] %v2933_v57  ;;  %1579 = vmatpush.msrb.mxu2 %v1226_v7 }
  0x4d   : > { %1381 = vmatmul.f32.gmra.mxu1 %v2952_v1  ;;  %297 = vst [vmem:[#allocation2 + $0x19] sm:$0xff] %v2936_v58  ;;  %v2983_v12 = vld [vmem:[#allocation2 + $0xc8] sm:$0xff]  ;;  %1690 = vmatpush.msrb.mxu3 %v1244_v49 }
  0x4e   : > { %322 = vst [vmem:[#allocation2 + $0x141] sm:$0xff] %v235_v60  ;;  %v354_v14 = vld [vmem:[#allocation2 + $0x128] sm:$0xff]  ;;  %1803 = vmatpush.msrb.mxu0 %v1260_v10  ;;  %2016 = vmatpush.msra.mxu2 %v1305_v25 }
  0x4f   : > { %307 = vst [vmem:[#allocation2 + $0x91] sm:$0xff] %v2942_v61  ;;  %v2993_v16 = vld [vmem:[#allocation2 + $0x78] sm:$0xff]  ;;  %1691 = vmatpush.msrb.mxu3 %v1243_v2  ;;  %v393_v2 = vld [vmem:[#allocation2 + $0x1] sm:$0xff]  ;;  %v394_v7 = vld [vmem:[#allocation2 + $0x9] sm:$0xff] }
  0x50   : > { %315 = vst [vmem:[#allocation2 + $0xf1] sm:$0xff] %v2964_v4  ;;  %v3042_v33 = vld [vmem:[#allocation2 + $0xd8] sm:$0xff]  ;;  %1804 = vmatpush.msrb.mxu0 %v1259_v26  ;;  %2017 = vmatpush.msra.mxu2 %v1304_v50  ;;  %v457_v5 = vld [vmem:[#allocation2 + $0x2] sm:$0xff] }
  0x51   : > { %298 = vst [vmem:[#allocation2 + $0x21] sm:$0xff] %v2973_v8  ;;  %v355_v34 = vld [vmem:[#allocation2 + $0x138] sm:$0xff]  ;;  %1692 = vmatpush.msrb.mxu3 %v1242_v9  ;;  %v1303_v9 = vld [vmem:[%s3672_s1 + $0x368] sm:$0xff]  ;;  %v1302_v26 = vld [vmem:[%s3672_s1 + $0x360] sm:$0xff] }
  0x52   : > { %323 = vst [vmem:[#allocation2 + $0x151] sm:$0xff] %v236_v11  ;;  %v3045_v35 = vld [vmem:[#allocation2 + $0x80] sm:$0xff]  ;;  %1805 = vmatpush.msrb.mxu0 %v1258_v30  ;;  %2018 = vmatpush.msra.mxu2 %v1303_v9  ;;  %v1319_v10 = vld [vmem:[%s3672_s1 + $0x3e8] sm:$0xff] }
  0x53   : > { %1405 = vmatmul.f32.gmra.mxu2 %v2983_v12  ;;  %308 = vst [vmem:[#allocation2 + $0x99] sm:$0xff] %v2987_v13  ;;  %v3089_v53 = vld [vmem:[#allocation2 + $0xe0] sm:$0xff]  ;;  %2129 = vmatpush.msra.mxu3 %v1321_v27 }
  0x54   : > { %1429 = vmatmul.f32.gmra.mxu3 %v354_v14  ;;  %v3010_v23 = vld [vmem:[#allocation2 + $0x18] sm:$0xff]  ;;  %316 = vst [vmem:[#allocation2 + $0xf9] sm:$0xff] %v2991_v15  ;;  %v1210_v11 = vld [vmem:[%s3672_s1 + $0x80] sm:$0xff]  ;;  %v3127_v14 = vld [vmem:[%s2722_s28 + $0x28] sm:$0xff]  ;;  %2242 = vmatpush.msra.mxu0 %v1337_v44 }
  0x55   : > { %1384 = vmatmul.f32.gmra.mxu1 %v2993_v16  ;;  %1360 = vmatmul.f32.gmra.mxu0 %v3010_v23  ;;  %299 = vst [vmem:[#allocation2 + $0x31] sm:$0xff] %v2996_v17  ;;  %v356_v55 = vld [vmem:[#allocation2 + $0x140] sm:$0xff]  ;;  %v1316_v44 = vld [vmem:[%s3672_s1 + $0x3d0] sm:$0xff] }
  0x56   : > { %324 = vst [vmem:[#allocation2 + $0x159] sm:$0xff] %v237_v19  ;;  %v3092_v60 = vld [vmem:[#allocation2 + $0x90] sm:$0xff]  ;;  %1466 = vmatpush.msrb.mxu1 %v1210_v11  ;;  %2243 = vmatpush.msra.mxu0 %v1336_v3  ;;  %v1287_v11 = vld [vmem:[%s3672_s1 + $0x2e8] sm:$0xff] }
  0x57   : > { %309 = vst [vmem:[#allocation2 + $0xa9] sm:$0xff] %v3008_v22  ;;  %v3129_v19 = vld [vmem:[#allocation2 + $0xf0] sm:$0xff]  ;;  %2019 = vmatpush.msra.mxu2 %v1302_v26  ;;  %v1282_v26 = vld [vmem:[%s3672_s1 + $0x2c0] sm:$0xff] }
  0x58   : > { %317 = vst [vmem:[#allocation2 + $0x109] sm:$0xff] %v3029_v28  ;;  %v3048_v36 = vld [vmem:[#allocation2 + $0x20] sm:$0xff]  ;;  %1903 = vmatpush.msra.mxu1 %v1289_v29 }
  0x59   : > { %300 = vst [vmem:[#allocation2 + $0x39] sm:$0xff] %v3039_v31  ;;  %v357_v20 = vld [vmem:[#allocation2 + $0x150] sm:$0xff]  ;;  %v459_v25 = vld [vmem:[#allocation2 + $0x1a] sm:$0xff]  ;;  %v460_v27 = vld [vmem:[#allocation2 + $0x22] sm:$0xff] }
  0x5a   : > { %325 = vst [vmem:[#allocation2 + $0x169] sm:$0xff] %v238_v32  ;;  %v3132_v21 = vld [vmem:[#allocation2 + $0x98] sm:$0xff] }
  0x5b   : > { %1408 = vmatmul.f32.gmra.mxu2 %v3042_v33  ;;  %310 = vst [vmem:[#allocation2 + $0xb1] sm:$0xff] %v3051_v37  ;;  %v3154_v32 = vld [vmem:[#allocation2 + $0xf8] sm:$0xff] }
  0x5c   : > { %1432 = vmatmul.f32.gmra.mxu3 %v355_v34  ;;  %318 = vst [vmem:[#allocation2 + $0x111] sm:$0xff] %v3054_v38  ;;  %v3094_v62 = vld [vmem:[#allocation2 + $0x30] sm:$0xff] }
  0x5d   : > { %1387 = vmatmul.f32.gmra.mxu1 %v3045_v35  ;;  %1363 = vmatmul.f32.gmra.mxu0 %v3048_v36  ;;  %301 = vst [vmem:[#allocation2 + $0x49] sm:$0xff] %v3086_v51  ;;  %v358_v34 = vld [vmem:[#allocation2 + $0x158] sm:$0xff] }
  0x5e   : > { %326 = vst [vmem:[#allocation2 + $0x171] sm:$0xff] %v239_v52  ;;  %v3156_v39 = vld [vmem:[#allocation2 + $0xa8] sm:$0xff]  ;;  %v1320_v52 = vld [vmem:[%s3672_s1 + $0x3f0] sm:$0xff] }
  0x5f   : > { %302 = vst [vmem:[#allocation2 + $0x51] sm:$0xff] %v3127_v14  ;;  %v3166_v46 = vld [vmem:[#allocation2 + $0x108] sm:$0xff]  ;;  %2130 = vmatpush.msra.mxu3 %v1320_v52 }
  0x60   : > { %v3134_v24 = vld [vmem:[#allocation2 + $0x38] sm:$0xff] }
  0x61   : > { %v359_v47 = vld [vmem:[#allocation2 + $0x168] sm:$0xff]  ;;  %2131 = vmatpush.msra.mxu3 %v1319_v10  ;;  %v461_v29 = vld [vmem:[#allocation2 + $0x32] sm:$0xff]  ;;  %v462_v30 = vld [vmem:[#allocation2 + $0x3a] sm:$0xff] }
  0x62   : > { %v3168_v48 = vld [vmem:[#allocation2 + $0xb0] sm:$0xff] }
  0x63   : > { %1411 = vmatmul.f32.gmra.mxu2 %v3089_v53  ;;  %v3184_v63 = vld [vmem:[#allocation2 + $0x110] sm:$0xff] }
  0x64   : > { %1435 = vmatmul.f32.gmra.mxu3 %v356_v55  ;;  %v3158_v41 = vld [vmem:[#allocation2 + $0x48] sm:$0xff]  ;;  %v1288_v55 = vld [vmem:[%s3672_s1 + $0x2f0] sm:$0xff] }
  0x65   : > { %1390 = vmatmul.f32.gmra.mxu1 %v3092_v60  ;;  %1366 = vmatmul.f32.gmra.mxu0 %v3094_v62  ;;  %v360_v0 = vld [vmem:[#allocation2 + $0x170] sm:$0xff] }
  0x66   : > { %v3170_v49 = vld [vmem:[#allocation2 + $0x50] sm:$0xff]  ;;  %1904 = vmatpush.msra.mxu1 %v1288_v55 }
  0x68   : > { %1905 = vmatpush.msra.mxu1 %v1287_v11  ;;  %v467_v11 = vld [vmem:[#allocation2 + $0x7a] sm:$0xff] }
  0x6b   : > { %1414 = vmatmul.f32.gmra.mxu2 %v3129_v19 }
  0x6c   : > { %1438 = vmatmul.f32.gmra.mxu3 %v357_v20  ;;  %v458_v20 = vld [vmem:[#allocation2 + $0xa] sm:$0xff] }
  0x6d   : > { %1393 = vmatmul.f32.gmra.mxu1 %v3132_v21  ;;  %1369 = vmatmul.f32.gmra.mxu0 %v3134_v24 }
  0x73   : > { %1417 = vmatmul.f32.gmra.mxu2 %v3154_v32 }
  0x74   : > { %1441 = vmatmul.f32.gmra.mxu3 %v358_v34  ;;  %v1333_v34 = vld [vmem:[%s3672_s1 + $0x458] sm:$0xff] }
  0x75   : > { %1396 = vmatmul.f32.gmra.mxu1 %v3156_v39  ;;  %1372 = vmatmul.f32.gmra.mxu0 %v3158_v41 }
  0x7b   : > { %1420 = vmatmul.f32.gmra.mxu2 %v3166_v46 }
  0x7c   : > { %1444 = vmatmul.f32.gmra.mxu3 %v359_v47  ;;  %v1284_v47 = vld [vmem:[%s3672_s1 + $0x2d0] sm:$0xff] }
  0x7d   : > { %1399 = vmatmul.f32.gmra.mxu1 %v3168_v48  ;;  %1375 = vmatmul.f32.gmra.mxu0 %v3170_v49 }
  0x83   : > { %1423 = vmatmul.f32.gmra.mxu2 %v3184_v63 }
  0x84   : > { %1447 = vmatmul.f32.gmra.mxu3 %v360_v0  ;;  %v1299_v0 = vld [vmem:[%s3672_s1 + $0x348] sm:$0xff] }
  0x85   : > { %1467 = vmatmul.f32.vlgmr.msrb.gmra.mxu1 %v393_v2  ;;  %1806 = vmatmul.f32.vlgmr.msrb.gmra.mxu0 %v2936_v58  ;;  %v1283_v2 = vld [vmem:[%s3672_s1 + $0x2c8] sm:$0xff] }
  0x8b   : > { %1580 = vmatmul.f32.vlgmr.msrb.gmra.mxu2 %v457_v5 }
  0x8c   : > { %1693 = vmatmul.f32.vlgmr.msrb.gmra.mxu3 %v3010_v23  ;;  %v1335_v23 = vld [vmem:[%s3672_s1 + $0x468] sm:$0xff] }
  0x8d   : > { %1470 = vmatmul.f32.gmra.mxu1 %v394_v7  ;;  %1809 = vmatmul.f32.gmra.mxu0 %v2973_v8 }
  0x8e   : > { %2244 = vmatpush.msra.mxu0 %v1335_v23 }
  0x93   : > { %1583 = vmatmul.f32.gmra.mxu2 %v458_v20 }
  0x94   : > { %1696 = vmatmul.f32.gmra.mxu3 %v3048_v36  ;;  %v1318_v36 = vld [vmem:[%s3672_s1 + $0x3e0] sm:$0xff] }
  0x95   : > { %1473 = vmatmul.f32.gmra.mxu1 %v2936_v58  ;;  %1812 = vmatmul.f32.gmra.mxu0 %v2996_v17  ;;  %v1286_v58 = vld [vmem:[%s3672_s1 + $0x2e0] sm:$0xff] }
  0x96   : > { %2132 = vmatpush.msra.mxu3 %v1318_v36  ;;  %1906 = vmatpush.msra.mxu1 %v1286_v58 }
  0x9b   : > { %1586 = vmatmul.f32.gmra.mxu2 %v459_v25 }
  0x9c   : > { %1699 = vmatmul.f32.gmra.mxu3 %v3094_v62  ;;  %v1334_v62 = vld [vmem:[%s3672_s1 + $0x460] sm:$0xff] }
  0x9d   : > { %1476 = vmatmul.f32.gmra.mxu1 %v2973_v8  ;;  %1815 = vmatmul.f32.gmra.mxu0 %v3039_v31  ;;  %v1301_v8 = vld [vmem:[%s3672_s1 + $0x358] sm:$0xff] }
  0x9e   : > { %2245 = vmatpush.msra.mxu0 %v1334_v62  ;;  %2020 = vmatpush.msra.mxu2 %v1301_v8  ;;  %v469_v8 = vld [vmem:[#allocation2 + $0x92] sm:$0xff] }
  0xa0   : > { %2246 = vmatpush.msra.mxu0 %v1333_v34 }
  0xa3   : > { %1589 = vmatmul.f32.gmra.mxu2 %v460_v27 }
  0xa4   : > { %1702 = vmatmul.f32.gmra.mxu3 %v3134_v24  ;;  %v1317_v24 = vld [vmem:[%s3672_s1 + $0x3d8] sm:$0xff] }
  0xa5   : > { %1479 = vmatmul.f32.gmra.mxu1 %v2996_v17  ;;  %1818 = vmatmul.f32.gmra.mxu0 %v3086_v51  ;;  %v1285_v17 = vld [vmem:[%s3672_s1 + $0x2d8] sm:$0xff] }
  0xa6   : > { %2133 = vmatpush.msra.mxu3 %v1317_v24  ;;  %1907 = vmatpush.msra.mxu1 %v1285_v17 }
  0xa8   : > { %2134 = vmatpush.msra.mxu3 %v1316_v44  ;;  %1908 = vmatpush.msra.mxu1 %v1284_v47  ;;  %v3258_v50 = vpop.f32.mrf.mxu1 }
  0xaa   : > { %1909 = vmatpush.msra.mxu1 %v1283_v2 }
  0xab   : > { %1592 = vmatmul.f32.gmra.mxu2 %v461_v29 }
  0xac   : > { %1705 = vmatmul.f32.gmra.mxu3 %v3158_v41  ;;  %v1300_v41 = vld [vmem:[%s3672_s1 + $0x350] sm:$0xff]  ;;  %1910 = vmatpush.msra.mxu1 %v1282_v26  ;;  %v473_v26 = vld [vmem:[#allocation2 + $0xc2] sm:$0xff] }
  0xad   : > { %1482 = vmatmul.f32.gmra.mxu1 %v3039_v31  ;;  %1821 = vmatmul.f32.gmra.mxu0 %v3127_v14  ;;  %v463_v31 = vld [vmem:[#allocation2 + $0x4a] sm:$0xff] }
  0xae   : > { %2021 = vmatpush.msra.mxu2 %v1300_v41  ;;  %v470_v41 = vld [vmem:[#allocation2 + $0x9a] sm:$0xff] }
  0xb0   : > { %2022 = vmatpush.msra.mxu2 %v1299_v0 }
  0xb3   : > { %1595 = vmatmul.f32.gmra.mxu2 %v462_v30 }
  0xb4   : > { %1708 = vmatmul.f32.gmra.mxu3 %v3170_v49  ;;  %v464_v49 = vld [vmem:[#allocation2 + $0x52] sm:$0xff] }
  0xb5   : > { %1485 = vmatmul.f32.gmra.mxu1 %v3086_v51  ;;  %1824 = vmatmul.f32.gmra.mxu0 %v2729_v6  ;;  %v3253_v51 = vpop.f32.mrf.mxu0 }
  0xbb   : > { %1598 = vmatmul.f32.gmra.mxu2 %v463_v31  ;;  %v1281_v31 = vld [vmem:[%s3672_s1 + $0x2b8] sm:$0xff] }
  0xbc   : > { %1711 = vmatmul.f32.gmra.mxu3 %v2787_v18  ;;  %v1332_v18 = vld [vmem:[%s3672_s1 + $0x450] sm:$0xff]  ;;  %1911 = vmatpush.msra.mxu1 %v1281_v31 }
  0xbd   : > { %1488 = vmatmul.f32.gmra.mxu1 %v3127_v14  ;;  %1827 = vmatmul.f32.gmra.mxu0 %v2887_v42  ;;  %v465_v14 = vld [vmem:[#allocation2 + $0x62] sm:$0xff]  ;;  %v3266_v52 = vpop.f32.mrf.mxu0 }
  0xbe   : > { %2247 = vmatpush.msra.mxu0 %v1332_v18  ;;  %v471_v18 = vld [vmem:[#allocation2 + $0xaa] sm:$0xff] }
  0xc3   : > { %1601 = vmatmul.f32.gmra.mxu2 %v464_v49 }
  0xc4   : > { %1714 = vmatmul.f32.gmra.mxu3 %v2952_v1 }
  0xc5   : > { %1491 = vmatmul.f32.gmra.mxu1 %v2729_v6  ;;  %1830 = vmatmul.f32.gmra.mxu0 %v2895_v45  ;;  %v1315_v6 = vld [vmem:[%s3672_s1 + $0x3c8] sm:$0xff] }
  0xc6   : > { %2135 = vmatpush.msra.mxu3 %v1315_v6 }
  0xca   : > { %v3268_v55 = vpop.f32.mrf.mxu1 }
  0xcb   : > { %1604 = vmatmul.f32.gmra.mxu2 %v465_v14 }
  0xcc   : > { %1717 = vmatmul.f32.gmra.mxu3 %v2993_v16  ;;  %v466_v16 = vld [vmem:[#allocation2 + $0x6a] sm:$0xff] }
  0xcd   : > { %1494 = vmatmul.f32.gmra.mxu1 %v2887_v42  ;;  %1833 = vmatmul.f32.gmra.mxu0 %v2929_v56  ;;  %v1331_v42 = vld [vmem:[%s3672_s1 + $0x448] sm:$0xff] }
  0xce   : > { %v3279_v1 = vpop.f32.mrf.mxu2  ;;  %2248 = vmatpush.msra.mxu0 %v1331_v42  ;;  %v472_v42 = vld [vmem:[#allocation2 + $0xb2] sm:$0xff] }
  0xcf   : > { %v3284_v3 = vpop.f32.mrf.mxu3 }
  0xd2   : > { %v3286_v5 = vpop.f32.mrf.mxu1  ;;  %v3288_v7 = vpop.f32.mrf.mxu0 }
  0xd3   : > { %1607 = vmatmul.f32.gmra.mxu2 %v466_v16  ;;  %v1280_v16 = vld [vmem:[%s3672_s1 + $0x2b0] sm:$0xff] }
  0xd4   : > { %1720 = vmatmul.f32.gmra.mxu3 %v3045_v35  ;;  %v1298_v35 = vld [vmem:[%s3672_s1 + $0x340] sm:$0xff]  ;;  %1912 = vmatpush.msra.mxu1 %v1280_v16 }
  0xd5   : > { %1497 = vmatmul.f32.gmra.mxu1 %v2895_v45  ;;  %1836 = vmatmul.f32.gmra.mxu0 %v2942_v61  ;;  %v1314_v45 = vld [vmem:[%s3672_s1 + $0x3c0] sm:$0xff] }
  0xd6   : > { %v3296_v9 = vpop.f32.mrf.mxu2  ;;  %2023 = vmatpush.msra.mxu2 %v1298_v35  ;;  %2136 = vmatpush.msra.mxu3 %v1314_v45 }
  0xd7   : > { %v3298_v10 = vpop.f32.mrf.mxu3 }
  0xda   : > { %v3300_v20 = vpop.f32.mrf.mxu1  ;;  %v3302_v23 = vpop.f32.mrf.mxu0 }
  0xdb   : > { %1610 = vmatmul.f32.gmra.mxu2 %v467_v11 }
  0xdc   : > { %1723 = vmatmul.f32.gmra.mxu3 %v3092_v60  ;;  %v468_v60 = vld [vmem:[#allocation2 + $0x82] sm:$0xff] }
  0xdd   : > { %1500 = vmatmul.f32.gmra.mxu1 %v2929_v56  ;;  %1839 = vmatmul.f32.gmra.mxu0 %v2987_v13  ;;  %v1330_v56 = vld [vmem:[%s3672_s1 + $0x440] sm:$0xff] }
  0xde   : > { %v3313_v25 = vpop.f32.mrf.mxu2  ;;  %2249 = vmatpush.msra.mxu0 %v1330_v56 }
  0xdf   : > { %v3318_v36 = vpop.f32.mrf.mxu3 }
  0xe2   : > { %v3320_v58 = vpop.f32.mrf.mxu1  ;;  %v3322_v27 = vpop.f32.mrf.mxu0 }
  0xe3   : > { %1613 = vmatmul.f32.gmra.mxu2 %v468_v60 }
  0xe4   : > { %1726 = vmatmul.f32.gmra.mxu3 %v3132_v21  ;;  %v1297_v21 = vld [vmem:[%s3672_s1 + $0x338] sm:$0xff] }
  0xe5   : > { %1503 = vmatmul.f32.gmra.mxu1 %v2942_v61  ;;  %1842 = vmatmul.f32.gmra.mxu0 %v3008_v22  ;;  %v1313_v61 = vld [vmem:[%s3672_s1 + $0x3b8] sm:$0xff] }
  0xe6   : > { %v3330_v62 = vpop.f32.mrf.mxu2  ;;  %2024 = vmatpush.msra.mxu2 %v1297_v21  ;;  %2137 = vmatpush.msra.mxu3 %v1313_v61 }
  0xe7   : > { %v3332_v29 = vpop.f32.mrf.mxu3 }
  0xea   : > { %v3334_v24 = vpop.f32.mrf.mxu1  ;;  %v3336_v17 = vpop.f32.mrf.mxu0 }
  0xeb   : > { %1616 = vmatmul.f32.gmra.mxu2 %v469_v8 }
  0xec   : > { %1729 = vmatmul.f32.gmra.mxu3 %v3156_v39 }
  0xed   : > { %1506 = vmatmul.f32.gmra.mxu1 %v2987_v13  ;;  %1845 = vmatmul.f32.gmra.mxu0 %v3051_v37  ;;  %v1329_v13 = vld [vmem:[%s3672_s1 + $0x438] sm:$0xff] }
  0xee   : > { %v3347_v30 = vpop.f32.mrf.mxu2  ;;  %2250 = vmatpush.msra.mxu0 %v1329_v13 }
  0xef   : > { %v3349_v34 = vpop.f32.mrf.mxu3 }
  0xf2   : > { %v3354_v39 = vpop.f32.mrf.mxu1  ;;  %v3356_v44 = vpop.f32.mrf.mxu0 }
  0xf3   : > { %1619 = vmatmul.f32.gmra.mxu2 %v470_v41  ;;  %v1279_v41 = vld [vmem:[%s3672_s1 + $0x2a8] sm:$0xff] }
  0xf4   : > { %1732 = vmatmul.f32.gmra.mxu3 %v3168_v48  ;;  %v1296_v48 = vld [vmem:[%s3672_s1 + $0x330] sm:$0xff]  ;;  %1913 = vmatpush.msra.mxu1 %v1279_v41 }
  0xf5   : > { %1509 = vmatmul.f32.gmra.mxu1 %v3008_v22  ;;  %1848 = vmatmul.f32.gmra.mxu0 %v2881_v40  ;;  %v1312_v22 = vld [vmem:[%s3672_s1 + $0x3b0] sm:$0xff] }
  0xf6   : > { %v3364_v47 = vpop.f32.mrf.mxu2  ;;  %2025 = vmatpush.msra.mxu2 %v1296_v48  ;;  %2138 = vmatpush.msra.mxu3 %v1312_v22 }
  0xf7   : > { %v3366_v49 = vpop.f32.mrf.mxu3 }
  0xfa   : > { %v3368_v14 = vpop.f32.mrf.mxu1  ;;  %v3370_v0 = vpop.f32.mrf.mxu0 }
  0xfb   : > { %1622 = vmatmul.f32.gmra.mxu2 %v471_v18 }
  0xfc   : > { %1735 = vmatmul.f32.gmra.mxu3 %v2938_v59 }
  0xfd   : > { %1512 = vmatmul.f32.gmra.mxu1 %v3051_v37  ;;  %1851 = vmatmul.f32.gmra.mxu0 %v2890_v43  ;;  %v1328_v37 = vld [vmem:[%s3672_s1 + $0x430] sm:$0xff] }
  0xfe   : > { %v3381_v6 = vpop.f32.mrf.mxu2  ;;  %2251 = vmatpush.msra.mxu0 %v1328_v37  ;;  %v475_v37 = vld [vmem:[#allocation2 + $0xda] sm:$0xff] }
  0xff   : > { %v3383_v2 = vpop.f32.mrf.mxu3 }
 0x102   : > { %v1468_v59 = vpop.f32.mrf.mxu1  ;;  %v1807_v11 = vpop.f32.mrf.mxu0 }
 0x103   : > { %1625 = vmatmul.f32.gmra.mxu2 %v472_v42  ;;  %v1469_v8 = vadd.f32 %v1468_v59, %v3253_v51 }
 0x104   : > { %1738 = vmatmul.f32.gmra.mxu3 %v2983_v12  ;;  %v1295_v12 = vld [vmem:[%s3672_s1 + $0x328] sm:$0xff] }
 0x105   : > { %1515 = vmatmul.f32.gmra.mxu1 %v2881_v40  ;;  %1854 = vmatmul.f32.gmra.mxu0 %v2924_v54  ;;  %v1311_v40 = vld [vmem:[%s3672_s1 + $0x3a8] sm:$0xff] }
 0x106   : > { %v3394_v35 = vpop.f32.mrf.mxu2  ;;  %2026 = vmatpush.msra.mxu2 %v1295_v12  ;;  %2139 = vmatpush.msra.mxu3 %v1311_v40 }
 0x107   : > { %v3396_v45 = vpop.f32.mrf.mxu3 }
 0x10a   : > { %v1471_v60 = vpop.f32.mrf.mxu1  ;;  %v1810_v56 = vpop.f32.mrf.mxu0 }
 0x10b   : > { %1628 = vmatmul.f32.gmra.mxu2 %v473_v26  ;;  %v1472_v51 = vadd.f32 %v1471_v60, %v3266_v52 }
 0x10c   : > { %1741 = vmatmul.f32.gmra.mxu3 %v3042_v33  ;;  %v474_v33 = vld [vmem:[#allocation2 + $0xca] sm:$0xff] }
 0x10d   : > { %1518 = vmatmul.f32.gmra.mxu1 %v2890_v43  ;;  %1857 = vmatmul.f32.gmra.mxu0 %v2933_v57  ;;  %v1327_v43 = vld [vmem:[%s3672_s1 + $0x428] sm:$0xff] }
 0x10e   : > { %v1581_v21 = vpop.f32.mrf.mxu2  ;;  %2252 = vmatpush.msra.mxu0 %v1327_v43 }
 0x10f   : > { %v1582_v61 = vadd.f32 %v1581_v21, %v1469_v8  ;;  %v1694_v31 = vpop.f32.mrf.mxu3  ;;  %v1278_v21 = vld [vmem:[%s3672_s1 + $0x2a0] sm:$0xff] }
 0x110   : > { %1914 = vmatpush.msra.mxu1 %v1278_v21 }
 0x111   : > { %v1695_v13 = vadd.f32 %v1694_v31, %v1582_v61 }
 0x112   : > { %v1474_v18 = vpop.f32.mrf.mxu1  ;;  %v1813_v48 = vpop.f32.mrf.mxu0 }
 0x113   : > { %v3411_v22 = vadd.f32 %v1807_v11, %v1695_v13  ;;  %1631 = vmatmul.f32.gmra.mxu2 %v474_v33  ;;  %v1475_v52 = vadd.f32 %v1474_v18, %v3288_v7 }
 0x114   : > { %1744 = vmatmul.f32.gmra.mxu3 %v3089_v53  ;;  %v1294_v53 = vld [vmem:[%s3672_s1 + $0x320] sm:$0xff] }
 0x115   : > { %1521 = vmatmul.f32.gmra.mxu1 %v2924_v54  ;;  %1860 = vmatmul.f32.gmra.mxu0 %v2964_v4  ;;  %v1310_v54 = vld [vmem:[%s3672_s1 + $0x3a0] sm:$0xff] }
 0x116   : > { %v1584_v16 = vpop.f32.mrf.mxu2  ;;  %2027 = vmatpush.msra.mxu2 %v1294_v53  ;;  %2140 = vmatpush.msra.mxu3 %v1310_v54 }
 0x117   : > { %v1585_v42 = vadd.f32 %v1584_v16, %v1472_v51  ;;  %v1697_v59 = vpop.f32.mrf.mxu3  ;;  %v477_v51 = vld [vmem:[#allocation2 + $0xf2] sm:$0xff] }
 0x119   : > { %v1698_v11 = vadd.f32 %v1697_v59, %v1585_v42 }
 0x11a   : > { %v1477_v26 = vpop.f32.mrf.mxu1  ;;  %v1816_v12 = vpop.f32.mrf.mxu0 }
 0x11b   : > { %v3420_v40 = vadd.f32 %v1810_v56, %v1698_v11  ;;  %1634 = vmatmul.f32.gmra.mxu2 %v475_v37  ;;  %v1478_v7 = vadd.f32 %v1477_v26, %v3302_v23 }
 0x11c   : > { %1747 = vmatmul.f32.gmra.mxu3 %v3129_v19  ;;  %v476_v19 = vld [vmem:[#allocation2 + $0xe2] sm:$0xff] }
 0x11d   : > { %1524 = vmatmul.f32.gmra.mxu1 %v2933_v57  ;;  %1863 = vmatmul.f32.gmra.mxu0 %v2991_v15  ;;  %v1326_v57 = vld [vmem:[%s3672_s1 + $0x420] sm:$0xff] }
 0x11e   : > { %v1587_v60 = vpop.f32.mrf.mxu2  ;;  %2253 = vmatpush.msra.mxu0 %v1326_v57 }
 0x11f   : > { %v1588_v56 = vadd.f32 %v1587_v60, %v1475_v52  ;;  %v1700_v8 = vpop.f32.mrf.mxu3  ;;  %v607_v60 = vld [vmem:[#allocation2 + $0x121] sm:$0xff] }
 0x121   : > { %v1701_v61 = vadd.f32 %v1700_v8, %v1588_v56 }
 0x122   : > { %v1480_v31 = vpop.f32.mrf.mxu1  ;;  %v1819_v41 = vpop.f32.mrf.mxu0 }
 0x123   : > { %v3435_v33 = vadd.f32 %v1813_v48, %v1701_v61  ;;  %1637 = vmatmul.f32.gmra.mxu2 %v476_v19  ;;  %v1481_v23 = vadd.f32 %v1480_v31, %v3322_v27  ;;  %v479_v61 = vld [vmem:[#allocation2 + $0x10a] sm:$0xff] }
 0x124   : > { %1750 = vmatmul.f32.gmra.mxu3 %v3154_v32  ;;  %v1293_v32 = vld [vmem:[%s3672_s1 + $0x318] sm:$0xff] }
 0x125   : > { %1527 = vmatmul.f32.gmra.mxu1 %v2964_v4  ;;  %1866 = vmatmul.f32.gmra.mxu0 %v3029_v28  ;;  %v1309_v4 = vld [vmem:[%s3672_s1 + $0x398] sm:$0xff] }
 0x126   : > { %v1590_v13 = vpop.f32.mrf.mxu2  ;;  %2028 = vmatpush.msra.mxu2 %v1293_v32  ;;  %2141 = vmatpush.msra.mxu3 %v1309_v4  ;;  %v544_v4 = vld [vmem:[#allocation2 + $0x128] sm:$0xff] }
 0x127   : > { %v1591_v18 = vadd.f32 %v1590_v13, %v1478_v7  ;;  %v1703_v43 = vpop.f32.mrf.mxu3  ;;  %v608_v13 = vld [vmem:[#allocation2 + $0x129] sm:$0xff] }
 0x129   : > { %v1704_v48 = vadd.f32 %v1703_v43, %v1591_v18 }
 0x12a   : > { %v1483_v16 = vpop.f32.mrf.mxu1  ;;  %v1822_v42 = vpop.f32.mrf.mxu0 }
 0x12b   : > { %v3444_v59 = vadd.f32 %v1816_v12, %v1704_v48  ;;  %1640 = vmatmul.f32.gmra.mxu2 %v477_v51  ;;  %v1277_v12 = vld [vmem:[%s3672_s1 + $0x298] sm:$0xff]  ;;  %v1484_v27 = vadd.f32 %v1483_v16, %v3336_v17  ;;  %v1292_v17 = vld [vmem:[%s3672_s1 + $0x310] sm:$0xff] }
 0x12c   : > { %1753 = vmatmul.f32.gmra.mxu3 %v3166_v46  ;;  %v478_v46 = vld [vmem:[#allocation2 + $0xfa] sm:$0xff]  ;;  %1915 = vmatpush.msra.mxu1 %v1277_v12  ;;  %v1276_v16 = vld [vmem:[%s3672_s1 + $0x290] sm:$0xff] }
 0x12d   : > { %1530 = vmatmul.f32.gmra.mxu1 %v2991_v15  ;;  %1869 = vmatmul.f32.gmra.mxu0 %v3054_v38  ;;  %v1325_v15 = vld [vmem:[%s3672_s1 + $0x418] sm:$0xff] }
 0x12e   : > { %v1593_v37 = vpop.f32.mrf.mxu2  ;;  %2254 = vmatpush.msra.mxu0 %v1325_v15  ;;  %2029 = vmatpush.msra.mxu2 %v1292_v17  ;;  %v482_v17 = vld [vmem:[#allocation2 + $0x12a] sm:$0xff] }
 0x12f   : > { %v1594_v11 = vadd.f32 %v1593_v37, %v1481_v23  ;;  %v1706_v26 = vpop.f32.mrf.mxu3  ;;  %1916 = vmatpush.msra.mxu1 %v1276_v16 }
 0x131   : > { %v1707_v53 = vadd.f32 %v1706_v26, %v1594_v11  ;;  %v609_v11 = vld [vmem:[#allocation2 + $0x139] sm:$0xff] }
 0x132   : > { %v1486_v54 = vpop.f32.mrf.mxu1  ;;  %v1825_v52 = vpop.f32.mrf.mxu0 }
 0x133   : > { %v3459_v56 = vadd.f32 %v1819_v41, %v1707_v53  ;;  %1643 = vmatmul.f32.gmra.mxu2 %v478_v46  ;;  %v543_v41 = vld [vmem:[#allocation2 + $0x120] sm:$0xff]  ;;  %v1487_v18 = vadd.f32 %v1486_v54, %v3356_v44 }
 0x134   : > { %1756 = vmatmul.f32.gmra.mxu3 %v3184_v63  ;;  %v481_v54 = vld [vmem:[#allocation2 + $0x122] sm:$0xff] }
 0x135   : > { %1533 = vmatmul.f32.gmra.mxu1 %v3029_v28  ;;  %1872 = vmatmul.f32.gmra.mxu0 %v607_v60  ;;  %v1308_v28 = vld [vmem:[%s3672_s1 + $0x390] sm:$0xff] }
 0x136   : > { %v1596_v8 = vpop.f32.mrf.mxu2  ;;  %2142 = vmatpush.msra.mxu3 %v1308_v28 }
 0x137   : > { %v1597_v21 = vadd.f32 %v1596_v8, %v1484_v27  ;;  %v1709_v19 = vpop.f32.mrf.mxu3  ;;  %v545_v27 = vld [vmem:[#allocation2 + $0x138] sm:$0xff] }
 0x139   : > { %v1710_v31 = vadd.f32 %v1709_v19, %v1597_v21  ;;  %v610_v21 = vld [vmem:[#allocation2 + $0x141] sm:$0xff] }
 0x13a   : > { %v1489_v57 = vpop.f32.mrf.mxu1  ;;  %v1828_v7 = vpop.f32.mrf.mxu0 }
 0x13b   : > { %v3467_v63 = vadd.f32 %v1822_v42, %v1710_v31  ;;  %1646 = vmatmul.f32.gmra.mxu2 %v479_v61  ;;  %v480_v42 = vld [vmem:[#allocation2 + $0x112] sm:$0xff]  ;;  %v1490_v44 = vadd.f32 %v1489_v57, %v3370_v0  ;;  %v1291_v61 = vld [vmem:[%s3672_s1 + $0x308] sm:$0xff] }
 0x13c   : > { %1759 = vmatmul.f32.gmra.mxu3 %v543_v41  ;;  %2030 = vmatpush.msra.mxu2 %v1291_v61  ;;  %v1307_v0 = vld [vmem:[%s3672_s1 + $0x388] sm:$0xff] }
 0x13d   : > { %1536 = vmatmul.f32.gmra.mxu1 %v3054_v38  ;;  %1875 = vmatmul.f32.gmra.mxu0 %v608_v13  ;;  %v1324_v38 = vld [vmem:[%s3672_s1 + $0x410] sm:$0xff] }
 0x13e   : > { %v1599_v43 = vpop.f32.mrf.mxu2  ;;  %2255 = vmatpush.msra.mxu0 %v1324_v38  ;;  %2143 = vmatpush.msra.mxu3 %v1307_v0  ;;  %v1274_v0 = vld [vmem:[%s3672_s1 + $0x280] sm:$0xff] }
 0x13f   : > { %v1600_v51 = vadd.f32 %v1599_v43, %v1487_v18  ;;  %v1712_v48 = vpop.f32.mrf.mxu3  ;;  %v546_v18 = vld [vmem:[#allocation2 + $0x140] sm:$0xff] }
 0x141   : > { %v1713_v32 = vadd.f32 %v1712_v48, %v1600_v51  ;;  %v611_v48 = vld [vmem:[#allocation2 + $0x151] sm:$0xff] }
 0x142   : > { %v1492_v23 = vpop.f32.mrf.mxu1  ;;  %v1831_v37 = vpop.f32.mrf.mxu0 }
 0x143   : > { %v3480_v26 = vadd.f32 %v1825_v52, %v1713_v32  ;;  %1649 = vmatmul.f32.gmra.mxu2 %v480_v42 }
 0x144   : > { %1762 = vmatmul.f32.gmra.mxu3 %v544_v4 }
 0x145   : > { %1539 = vmatmul.f32.gmra.mxu1 %v607_v60  ;;  %1878 = vmatmul.f32.gmra.mxu0 %v609_v11  ;;  %v1493_v60 = vadd.f32 %v1492_v23, %v3258_v50  ;;  %v1323_v50 = vld [vmem:[%s3672_s1 + $0x408] sm:$0xff] }
 0x146   : > { %v1602_v12 = vpop.f32.mrf.mxu2  ;;  %2256 = vmatpush.msra.mxu0 %v1323_v50 }
 0x147   : > { %v1603_v46 = vadd.f32 %v1602_v12, %v1490_v44  ;;  %v1715_v53 = vpop.f32.mrf.mxu3  ;;  %v547_v44 = vld [vmem:[#allocation2 + $0x150] sm:$0xff] }
 0x149   : > { %v1716_v15 = vadd.f32 %v1715_v53, %v1603_v46  ;;  %v612_v53 = vld [vmem:[#allocation2 + $0x159] sm:$0xff] }
 0x14a   : > { %v1495_v8 = vpop.f32.mrf.mxu1  ;;  %v1834_v52 = vpop.f32.mrf.mxu0 }
 0x14b   : > { %v3486_v19 = vadd.f32 %v1828_v7, %v1716_v15  ;;  %1652 = vmatmul.f32.gmra.mxu2 %v481_v54  ;;  %v1275_v7 = vld [vmem:[%s3672_s1 + $0x288] sm:$0xff]  ;;  %v1496_v42 = vadd.f32 %v1495_v8, %v3268_v55  ;;  %v1290_v55 = vld [vmem:[%s3672_s1 + $0x300] sm:$0xff] }
 0x14c   : > { %1765 = vmatmul.f32.gmra.mxu3 %v545_v27  ;;  %1917 = vmatpush.msra.mxu1 %v1275_v7  ;;  %v3518_v27 = vld [vmem:[%s2722_s28 + $0xf8] sm:$0xff] }
 0x14d   : > { %1542 = vmatmul.f32.gmra.mxu1 %v608_v13  ;;  %1881 = vmatmul.f32.gmra.mxu0 %v610_v21  ;;  %v3504_v13 = vld [vmem:[%s2722_s28 + $0xf0] sm:$0xff]  ;;  %328 = vst [vmem:[#allocation2 + $0x189] sm:$0xff] %v3518_v27 }
 0x14e   : > { %v1605_v31 = vpop.f32.mrf.mxu2  ;;  %327 = vst [vmem:[#allocation2 + $0x181] sm:$0xff] %v3504_v13  ;;  %2031 = vmatpush.msra.mxu2 %v1290_v55  ;;  %1918 = vmatpush.msra.mxu1 %v1274_v0  ;;  %v486_v55 = vld [vmem:[#allocation2 + $0x15a] sm:$0xff] }
 0x14f   : > { %v1606_v41 = vadd.f32 %v1605_v31, %v1493_v60  ;;  %v1718_v57 = vpop.f32.mrf.mxu3  ;;  %v484_v60 = vld [vmem:[#allocation2 + $0x142] sm:$0xff] }
 0x151   : > { %v1719_v28 = vadd.f32 %v1718_v57, %v1606_v41  ;;  %v548_v41 = vld [vmem:[#allocation2 + $0x158] sm:$0xff] }
 0x152   : > { %v1498_v43 = vpop.f32.mrf.mxu1  ;;  %v1837_v51 = vpop.f32.mrf.mxu0 }
 0x153   : > { %v3498_v16 = vadd.f32 %v1831_v37, %v1719_v28  ;;  %1655 = vmatmul.f32.gmra.mxu2 %v482_v17  ;;  %v483_v37 = vld [vmem:[#allocation2 + $0x13a] sm:$0xff]  ;;  %v1499_v15 = vadd.f32 %v1498_v43, %v3286_v5 }
 0x154   : > { %1768 = vmatmul.f32.gmra.mxu3 %v546_v18  ;;  %v1322_v17 = vld [vmem:[%s3672_s1 + $0x400] sm:$0xff] }
 0x155   : > { %1545 = vmatmul.f32.gmra.mxu1 %v609_v11  ;;  %1884 = vmatmul.f32.gmra.mxu0 %v611_v48  ;;  %v1306_v11 = vld [vmem:[%s3672_s1 + $0x380] sm:$0xff] }
 0x156   : > { %v1608_v32 = vpop.f32.mrf.mxu2  ;;  %2144 = vmatpush.msra.mxu3 %v1306_v11  ;;  %2257 = vmatpush.msra.mxu0 %v1322_v17 }
 0x157   : > { %v1609_v4 = vadd.f32 %v1608_v32, %v1496_v42  ;;  %v1721_v23 = vpop.f32.mrf.mxu3  ;;  %v485_v42 = vld [vmem:[#allocation2 + $0x152] sm:$0xff] }
 0x159   : > { %v1722_v38 = vadd.f32 %v1721_v23, %v1609_v4  ;;  %v549_v4 = vld [vmem:[#allocation2 + $0x168] sm:$0xff] }
 0x15a   : > { %v1501_v12 = vpop.f32.mrf.mxu1  ;;  %v1840_v46 = vpop.f32.mrf.mxu0 }
 0x15b   : > { %v3508_v54 = vadd.f32 %v1834_v52, %v1722_v38  ;;  %1658 = vmatmul.f32.gmra.mxu2 %v483_v37  ;;  %v1502_v28 = vadd.f32 %v1501_v12, %v3300_v20  ;;  %v614_v37 = vld [vmem:[#allocation2 + $0x171] sm:$0xff] }
 0x15c   : > { %1771 = vmatmul.f32.gmra.mxu3 %v547_v44 }
 0x15d   : > { %1548 = vmatmul.f32.gmra.mxu1 %v610_v21  ;;  %1887 = vmatmul.f32.gmra.mxu0 %v612_v53  ;;  %v613_v21 = vld [vmem:[#allocation2 + $0x169] sm:$0xff] }
 0x15e   : > { %v1611_v8 = vpop.f32.mrf.mxu2 }
 0x15f   : > { %v1612_v52 = vadd.f32 %v1611_v8, %v1499_v15  ;;  %v1724_v61 = vpop.f32.mrf.mxu3  ;;  %v550_v15 = vld [vmem:[#allocation2 + $0x170] sm:$0xff] }
 0x161   : > { %v1725_v31 = vadd.f32 %v1724_v61, %v1612_v52 }
 0x162   : > { %v1504_v57 = vpop.f32.mrf.mxu1  ;;  %v1843_v5 = vpop.f32.mrf.mxu0 }
 0x163   : > { %v3524_v7 = vadd.f32 %v1837_v51, %v1725_v31  ;;  %1661 = vmatmul.f32.gmra.mxu2 %v484_v60  ;;  %v1505_v44 = vadd.f32 %v1504_v57, %v3320_v58  ;;  %v487_v60 = vld [vmem:[#allocation2 + $0x16a] sm:$0xff] }
 0x164   : > { %1774 = vmatmul.f32.gmra.mxu3 %v548_v41  ;;  %v551_v41 = vld [vmem:[#allocation2 + $0x180] sm:$0xff] }
 0x165   : > { %1551 = vmatmul.f32.gmra.mxu1 %v611_v48  ;;  %1890 = vmatmul.f32.gmra.mxu0 %v613_v21 }
 0x166   : > { %v1614_v18 = vpop.f32.mrf.mxu2 }
 0x167   : > { %v1615_v43 = vadd.f32 %v1614_v18, %v1502_v28  ;;  %v1727_v50 = vpop.f32.mrf.mxu3  ;;  %v488_v18 = vld [vmem:[#allocation2 + $0x172] sm:$0xff] }
 0x169   : > { %v1728_v32 = vadd.f32 %v1727_v50, %v1615_v43  ;;  %v552_v50 = vld [vmem:[#allocation2 + $0x188] sm:$0xff] }
 0x16a   : > { %v1507_v23 = vpop.f32.mrf.mxu1  ;;  %v1846_v51 = vpop.f32.mrf.mxu0 }
 0x16b   : > { %v3530_v38 = vadd.f32 %v1840_v46, %v1728_v32  ;;  %1664 = vmatmul.f32.gmra.mxu2 %v485_v42  ;;  %v1508_v46 = vadd.f32 %v1507_v23, %v3334_v24  ;;  %v649_v32 = vld [vmem:[#allocation2 + $0x1a] sm:$0xff]  ;;  %v842_v23 = vld [vmem:[#allocation2 + $0x32] sm:$0xff] }
 0x16c   : > { %1777 = vmatmul.f32.gmra.mxu3 %v549_v4 }
 0x16d   : > { %1554 = vmatmul.f32.gmra.mxu1 %v612_v53  ;;  %1893 = vmatmul.f32.gmra.mxu0 %v614_v37 }
 0x16e   : > { %v1617_v20 = vpop.f32.mrf.mxu2 }
 0x16f   : > { %v1618_v48 = vadd.f32 %v1617_v20, %v1505_v44  ;;  %v1730_v12 = vpop.f32.mrf.mxu3  ;;  %v714_v20 = vld [vmem:[#allocation2 + $0x30] sm:$0xff] }
 0x171   : > { %v1731_v11 = vadd.f32 %v1730_v12, %v1618_v48  ;;  %v778_v12 = vld [vmem:[#allocation2 + $0x31] sm:$0xff] }
 0x172   : > { %v1510_v8 = vpop.f32.mrf.mxu1  ;;  %v1849_v52 = vpop.f32.mrf.mxu0 }
 0x173   : > { %v3533_v61 = vadd.f32 %v1843_v5, %v1731_v11  ;;  %1667 = vmatmul.f32.gmra.mxu2 %v486_v55  ;;  %v1511_v5 = vadd.f32 %v1510_v8, %v3354_v39  ;;  %v650_v11 = vld [vmem:[#allocation2 + $0x22] sm:$0xff]  ;;  %v843_v8 = vld [vmem:[#allocation2 + $0x3a] sm:$0xff] }
 0x174   : > { %1780 = vmatmul.f32.gmra.mxu3 %v550_v15 }
 0x175   : > { %1557 = vmatmul.f32.gmra.mxu1 %v613_v21  ;;  %1896 = vmatmul.f32.gmra.mxu0 %v3504_v13 }
 0x176   : > { %v1620_v58 = vpop.f32.mrf.mxu2 }
 0x177   : > { %v1621_v53 = vadd.f32 %v1620_v58, %v1508_v46  ;;  %v1733_v0 = vpop.f32.mrf.mxu3 }
 0x179   : > { %v1734_v31 = vadd.f32 %v1733_v0, %v1621_v53  ;;  %v715_v0 = vld [vmem:[#allocation2 + $0x38] sm:$0xff] }
 0x17a   : > { %v1513_v57 = vpop.f32.mrf.mxu1  ;;  %v1852_v17 = vpop.f32.mrf.mxu0 }
 0x17b   : > { %v3537_v28 = vadd.f32 %v1846_v51, %v1734_v31  ;;  %1670 = vmatmul.f32.gmra.mxu2 %v487_v60  ;;  %v1514_v51 = vadd.f32 %v1513_v57, %v3368_v14  ;;  %v779_v31 = vld [vmem:[#allocation2 + $0x39] sm:$0xff] }
 0x17c   : > { %1783 = vmatmul.f32.gmra.mxu3 %v551_v41 }
 0x17d   : > { %1560 = vmatmul.f32.gmra.mxu1 %v614_v37  ;;  %1899 = vmatmul.f32.gmra.mxu0 %v3518_v27 }
 0x17e   : > { %v1623_v24 = vpop.f32.mrf.mxu2 }
 0x17f   : > { %v1624_v21 = vadd.f32 %v1623_v24, %v1511_v5  ;;  %v1736_v13 = vpop.f32.mrf.mxu3  ;;  %v844_v5 = vld [vmem:[#allocation2 + $0x4a] sm:$0xff] }
 0x181   : > { %v1737_v43 = vadd.f32 %v1736_v13, %v1624_v21 }
 0x182   : > { %v1516_v42 = vpop.f32.mrf.mxu1  ;;  %v1855_v4 = vpop.f32.mrf.mxu0 }
 0x183   : > { %v3541_v44 = vadd.f32 %v1849_v52, %v1737_v43  ;;  %1673 = vmatmul.f32.gmra.mxu2 %v488_v18  ;;  %v1517_v52 = vadd.f32 %v1516_v42, %v3279_v1  ;;  %v716_v18 = vld [vmem:[#allocation2 + $0x48] sm:$0xff] }
 0x184   : > { %1786 = vmatmul.f32.gmra.mxu3 %v552_v50  ;;  %v780_v50 = vld [vmem:[#allocation2 + $0x49] sm:$0xff] }
 0x185   : > { %1919 = vmatmul.f32.vlgmr.msra.gmra.mxu1 %v649_v32  ;;  %2258 = vmatmul.f32.vlgmr.msra.gmra.mxu0 %v842_v23 }
 0x186   : > { %v1626_v39 = vpop.f32.mrf.mxu2 }
 0x187   : > { %v1627_v27 = vadd.f32 %v1626_v39, %v1514_v51  ;;  %v1739_v37 = vpop.f32.mrf.mxu3  ;;  %v845_v51 = vld [vmem:[#allocation2 + $0x52] sm:$0xff] }
 0x189   : > { %v1740_v48 = vadd.f32 %v1739_v37, %v1627_v27  ;;  %v717_v37 = vld [vmem:[#allocation2 + $0x50] sm:$0xff] }
 0x18a   : > { %v1519_v55 = vpop.f32.mrf.mxu1  ;;  %v1858_v15 = vpop.f32.mrf.mxu0 }
 0x18b   : > { %v3544_v46 = vadd.f32 %v1852_v17, %v1740_v48  ;;  %2032 = vmatmul.f32.vlgmr.msra.gmra.mxu2 %v714_v20  ;;  %v1520_v17 = vadd.f32 %v1519_v55, %v3296_v9  ;;  %v781_v48 = vld [vmem:[#allocation2 + $0x51] sm:$0xff] }
 0x18c   : > { %2145 = vmatmul.f32.vlgmr.msra.gmra.mxu3 %v778_v12 }
 0x18d   : > { %1922 = vmatmul.f32.gmra.mxu1 %v650_v11  ;;  %2261 = vmatmul.f32.gmra.mxu0 %v843_v8  ;;  %v846_v11 = vld [vmem:[#allocation2 + $0x62] sm:$0xff] }
 0x18e   : > { %v1629_v14 = vpop.f32.mrf.mxu2 }
 0x18f   : > { %v1630_v58 = vadd.f32 %v1629_v14, %v1517_v52  ;;  %v1742_v53 = vpop.f32.mrf.mxu3 }
 0x191   : > { %v1743_v60 = vadd.f32 %v1742_v53, %v1630_v58  ;;  %v718_v58 = vld [vmem:[#allocation2 + $0x60] sm:$0xff] }
 0x192   : > { %v1522_v41 = vpop.f32.mrf.mxu1  ;;  %v1861_v57 = vpop.f32.mrf.mxu0 }
 0x193   : > { %v3547_v24 = vadd.f32 %v1855_v4, %v1743_v60  ;;  %2035 = vmatmul.f32.gmra.mxu2 %v715_v0  ;;  %v1523_v4 = vadd.f32 %v1522_v41, %v3313_v25  ;;  %v782_v0 = vld [vmem:[#allocation2 + $0x61] sm:$0xff]  ;;  %v847_v41 = vld [vmem:[#allocation2 + $0x6a] sm:$0xff] }
 0x194   : > { %2148 = vmatmul.f32.gmra.mxu3 %v779_v31 }
 0x195   : > { %1925 = vmatmul.f32.gmra.mxu1 %v842_v23  ;;  %2264 = vmatmul.f32.gmra.mxu0 %v844_v5 }
 0x196   : > { %v1632_v1 = vpop.f32.mrf.mxu2 }
 0x197   : > { %v1633_v21 = vadd.f32 %v1632_v1, %v1520_v17  ;;  %v1745_v13 = vpop.f32.mrf.mxu3 }
 0x199   : > { %v1746_v43 = vadd.f32 %v1745_v13, %v1633_v21  ;;  %v719_v21 = vld [vmem:[#allocation2 + $0x68] sm:$0xff] }
 0x19a   : > { %v1525_v42 = vpop.f32.mrf.mxu1  ;;  %v1864_v32 = vpop.f32.mrf.mxu0 }
 0x19b   : > { %v3550_v39 = vadd.f32 %v1858_v15, %v1746_v43  ;;  %2038 = vmatmul.f32.gmra.mxu2 %v716_v18  ;;  %v1526_v15 = vadd.f32 %v1525_v42, %v3330_v62  ;;  %v783_v18 = vld [vmem:[#allocation2 + $0x69] sm:$0xff]  ;;  %v848_v42 = vld [vmem:[#allocation2 + $0x7a] sm:$0xff] }
 0x19c   : > { %2151 = vmatmul.f32.gmra.mxu3 %v780_v50 }
 0x19d   : > { %1928 = vmatmul.f32.gmra.mxu1 %v843_v8  ;;  %2267 = vmatmul.f32.gmra.mxu0 %v845_v51 }
 0x19e   : > { %v1635_v9 = vpop.f32.mrf.mxu2 }
 0x19f   : > { %v1636_v23 = vadd.f32 %v1635_v9, %v1523_v4  ;;  %v1748_v27 = vpop.f32.mrf.mxu3 }
 0x1a1   : > { %v1749_v20 = vadd.f32 %v1748_v27, %v1636_v23  ;;  %v720_v23 = vld [vmem:[#allocation2 + $0x78] sm:$0xff] }
 0x1a2   : > { %v1528_v12 = vpop.f32.mrf.mxu1  ;;  %v1867_v55 = vpop.f32.mrf.mxu0 }
 0x1a3   : > { %v3553_v52 = vadd.f32 %v1861_v57, %v1749_v20  ;;  %2041 = vmatmul.f32.gmra.mxu2 %v717_v37  ;;  %v1529_v57 = vadd.f32 %v1528_v12, %v3347_v30  ;;  %v784_v37 = vld [vmem:[#allocation2 + $0x79] sm:$0xff]  ;;  %v849_v12 = vld [vmem:[#allocation2 + $0x82] sm:$0xff] }
 0x1a4   : > { %2154 = vmatmul.f32.gmra.mxu3 %v781_v48 }
 0x1a5   : > { %1931 = vmatmul.f32.gmra.mxu1 %v844_v5  ;;  %2270 = vmatmul.f32.gmra.mxu0 %v846_v11 }
 0x1a6   : > { %v1638_v25 = vpop.f32.mrf.mxu2 }
 0x1a7   : > { %v1639_v8 = vadd.f32 %v1638_v25, %v1526_v15  ;;  %v1751_v14 = vpop.f32.mrf.mxu3 }
 0x1a9   : > { %v1752_v53 = vadd.f32 %v1751_v14, %v1639_v8  ;;  %v721_v8 = vld [vmem:[#allocation2 + $0x80] sm:$0xff] }
 0x1aa   : > { %v1531_v60 = vpop.f32.mrf.mxu1  ;;  %v1870_v31 = vpop.f32.mrf.mxu0 }
 0x1ab   : > { %v3556_v17 = vadd.f32 %v1864_v32, %v1752_v53  ;;  %2044 = vmatmul.f32.gmra.mxu2 %v718_v58  ;;  %v1532_v32 = vadd.f32 %v1531_v60, %v3364_v47  ;;  %v785_v58 = vld [vmem:[#allocation2 + $0x81] sm:$0xff]  ;;  %v850_v60 = vld [vmem:[#allocation2 + $0x92] sm:$0xff] }
 0x1ac   : > { %2157 = vmatmul.f32.gmra.mxu3 %v782_v0 }
 0x1ad   : > { %1934 = vmatmul.f32.gmra.mxu1 %v845_v51  ;;  %2273 = vmatmul.f32.gmra.mxu0 %v847_v41 }
 0x1ae   : > { %v1641_v62 = vpop.f32.mrf.mxu2 }
 0x1af   : > { %v1642_v5 = vadd.f32 %v1641_v62, %v1529_v57  ;;  %v1754_v1 = vpop.f32.mrf.mxu3 }
 0x1b1   : > { %v1755_v13 = vadd.f32 %v1754_v1, %v1642_v5  ;;  %v722_v5 = vld [vmem:[#allocation2 + $0x90] sm:$0xff] }
 0x1b2   : > { %v1534_v43 = vpop.f32.mrf.mxu1  ;;  %v1873_v50 = vpop.f32.mrf.mxu0 }
 0x1b3   : > { %v3559_v4 = vadd.f32 %v1867_v55, %v1755_v13  ;;  %2047 = vmatmul.f32.gmra.mxu2 %v719_v21  ;;  %v1535_v55 = vadd.f32 %v1534_v43, %v3381_v6  ;;  %v786_v21 = vld [vmem:[#allocation2 + $0x91] sm:$0xff]  ;;  %v851_v43 = vld [vmem:[#allocation2 + $0x9a] sm:$0xff] }
 0x1b4   : > { %2160 = vmatmul.f32.gmra.mxu3 %v783_v18 }
 0x1b5   : > { %1937 = vmatmul.f32.gmra.mxu1 %v846_v11  ;;  %2276 = vmatmul.f32.gmra.mxu0 %v848_v42 }
 0x1b6   : > { %v1644_v30 = vpop.f32.mrf.mxu2 }
 0x1b7   : > { %v1645_v51 = vadd.f32 %v1644_v30, %v1532_v32  ;;  %v1757_v9 = vpop.f32.mrf.mxu3 }
 0x1b9   : > { %v1758_v27 = vadd.f32 %v1757_v9, %v1645_v51  ;;  %v723_v51 = vld [vmem:[#allocation2 + $0x98] sm:$0xff] }
 0x1ba   : > { %v1537_v20 = vpop.f32.mrf.mxu1  ;;  %v1876_v48 = vpop.f32.mrf.mxu0 }
 0x1bb   : > { %v3562_v15 = vadd.f32 %v1870_v31, %v1758_v27  ;;  %2050 = vmatmul.f32.gmra.mxu2 %v720_v23  ;;  %v1538_v31 = vadd.f32 %v1537_v20, %v3394_v35  ;;  %v787_v23 = vld [vmem:[#allocation2 + $0x99] sm:$0xff]  ;;  %v852_v20 = vld [vmem:[#allocation2 + $0xaa] sm:$0xff] }
 0x1bc   : > { %2163 = vmatmul.f32.gmra.mxu3 %v784_v37 }
 0x1bd   : > { %1940 = vmatmul.f32.gmra.mxu1 %v847_v41  ;;  %2279 = vmatmul.f32.gmra.mxu0 %v849_v12 }
 0x1be   : > { %v1647_v47 = vpop.f32.mrf.mxu2 }
 0x1bf   : > { %v1648_v11 = vadd.f32 %v1647_v47, %v1535_v55  ;;  %v1760_v25 = vpop.f32.mrf.mxu3 }
 0x1c1   : > { %v1761_v14 = vadd.f32 %v1760_v25, %v1648_v11  ;;  %v724_v11 = vld [vmem:[#allocation2 + $0xa8] sm:$0xff] }
 0x1c2   : > { %v1540_v53 = vpop.f32.mrf.mxu1  ;;  %v1879_v0 = vpop.f32.mrf.mxu0 }
 0x1c3   : > { %v3565_v57 = vadd.f32 %v1873_v50, %v1761_v14  ;;  %2053 = vmatmul.f32.gmra.mxu2 %v721_v8  ;;  %v1541_v50 = vadd.f32 %v1540_v53, %v3284_v3  ;;  %v788_v8 = vld [vmem:[#allocation2 + $0xa9] sm:$0xff]  ;;  %v853_v53 = vld [vmem:[#allocation2 + $0xb2] sm:$0xff] }
 0x1c4   : > { %2166 = vmatmul.f32.gmra.mxu3 %v785_v58 }
 0x1c5   : > { %1943 = vmatmul.f32.gmra.mxu1 %v848_v42  ;;  %2282 = vmatmul.f32.gmra.mxu0 %v850_v60 }
 0x1c6   : > { %v1650_v6 = vpop.f32.mrf.mxu2 }
 0x1c7   : > { %v1651_v41 = vadd.f32 %v1650_v6, %v1538_v31  ;;  %v1763_v62 = vpop.f32.mrf.mxu3 }
 0x1c9   : > { %v1764_v1 = vadd.f32 %v1763_v62, %v1651_v41  ;;  %v725_v41 = vld [vmem:[#allocation2 + $0xb0] sm:$0xff] }
 0x1ca   : > { %v1543_v13 = vpop.f32.mrf.mxu1  ;;  %v1882_v18 = vpop.f32.mrf.mxu0 }
 0x1cb   : > { %v3568_v32 = vadd.f32 %v1876_v48, %v1764_v1  ;;  %2056 = vmatmul.f32.gmra.mxu2 %v722_v5  ;;  %v1544_v48 = vadd.f32 %v1543_v13, %v3298_v10  ;;  %v789_v5 = vld [vmem:[#allocation2 + $0xb1] sm:$0xff]  ;;  %v854_v13 = vld [vmem:[#allocation2 + $0xc2] sm:$0xff] }
 0x1cc   : > { %2169 = vmatmul.f32.gmra.mxu3 %v786_v21 }
 0x1cd   : > { %1946 = vmatmul.f32.gmra.mxu1 %v849_v12  ;;  %2285 = vmatmul.f32.gmra.mxu0 %v851_v43 }
 0x1ce   : > { %v1653_v35 = vpop.f32.mrf.mxu2 }
 0x1cf   : > { %v1654_v42 = vadd.f32 %v1653_v35, %v1541_v50  ;;  %v1766_v30 = vpop.f32.mrf.mxu3 }
 0x1d1   : > { %v1767_v9 = vadd.f32 %v1766_v30, %v1654_v42  ;;  %v726_v42 = vld [vmem:[#allocation2 + $0xc0] sm:$0xff] }
 0x1d2   : > { %v1546_v27 = vpop.f32.mrf.mxu1  ;;  %v1885_v37 = vpop.f32.mrf.mxu0 }
 0x1d3   : > { %v3571_v55 = vadd.f32 %v1879_v0, %v1767_v9  ;;  %2059 = vmatmul.f32.gmra.mxu2 %v723_v51  ;;  %v1547_v0 = vadd.f32 %v1546_v27, %v3318_v36  ;;  %v790_v51 = vld [vmem:[#allocation2 + $0xc1] sm:$0xff]  ;;  %v855_v27 = vld [vmem:[#allocation2 + $0xca] sm:$0xff] }
 0x1d4   : > { %2172 = vmatmul.f32.gmra.mxu3 %v787_v23 }
 0x1d5   : > { %1949 = vmatmul.f32.gmra.mxu1 %v850_v60  ;;  %2288 = vmatmul.f32.gmra.mxu0 %v852_v20 }
 0x1d6   : > { %v1656_v3 = vpop.f32.mrf.mxu2 }
 0x1d7   : > { %v1657_v12 = vadd.f32 %v1656_v3, %v1544_v48  ;;  %v1769_v47 = vpop.f32.mrf.mxu3 }
 0x1d9   : > { %v1770_v25 = vadd.f32 %v1769_v47, %v1657_v12  ;;  %v727_v12 = vld [vmem:[#allocation2 + $0xc8] sm:$0xff] }
 0x1da   : > { %v1549_v14 = vpop.f32.mrf.mxu1  ;;  %v1888_v58 = vpop.f32.mrf.mxu0 }
 0x1db   : > { %v3574_v31 = vadd.f32 %v1882_v18, %v1770_v25  ;;  %2062 = vmatmul.f32.gmra.mxu2 %v724_v11  ;;  %v1550_v18 = vadd.f32 %v1549_v14, %v3332_v29  ;;  %v791_v11 = vld [vmem:[#allocation2 + $0xc9] sm:$0xff]  ;;  %v856_v14 = vld [vmem:[#allocation2 + $0xda] sm:$0xff] }
 0x1dc   : > { %2175 = vmatmul.f32.gmra.mxu3 %v788_v8 }
 0x1dd   : > { %1952 = vmatmul.f32.gmra.mxu1 %v851_v43  ;;  %2291 = vmatmul.f32.gmra.mxu0 %v853_v53 }
 0x1de   : > { %v1659_v10 = vpop.f32.mrf.mxu2 }
 0x1df   : > { %v1660_v60 = vadd.f32 %v1659_v10, %v1547_v0  ;;  %v1772_v6 = vpop.f32.mrf.mxu3 }
 0x1e1   : > { %v1773_v62 = vadd.f32 %v1772_v6, %v1660_v60  ;;  %v728_v60 = vld [vmem:[#allocation2 + $0xd8] sm:$0xff] }
 0x1e2   : > { %v1552_v1 = vpop.f32.mrf.mxu1  ;;  %v1891_v21 = vpop.f32.mrf.mxu0 }
 0x1e3   : > { %v3577_v50 = vadd.f32 %v1885_v37, %v1773_v62  ;;  %2065 = vmatmul.f32.gmra.mxu2 %v725_v41  ;;  %v1553_v37 = vadd.f32 %v1552_v1, %v3349_v34  ;;  %v792_v41 = vld [vmem:[#allocation2 + $0xd9] sm:$0xff]  ;;  %v857_v1 = vld [vmem:[#allocation2 + $0xe2] sm:$0xff] }
 0x1e4   : > { %2178 = vmatmul.f32.gmra.mxu3 %v789_v5 }
 0x1e5   : > { %1955 = vmatmul.f32.gmra.mxu1 %v852_v20  ;;  %2294 = vmatmul.f32.gmra.mxu0 %v854_v13 }
 0x1e6   : > { %v1662_v36 = vpop.f32.mrf.mxu2 }
 0x1e7   : > { %v1663_v43 = vadd.f32 %v1662_v36, %v1550_v18  ;;  %v1775_v35 = vpop.f32.mrf.mxu3 }
 0x1e9   : > { %v1776_v30 = vadd.f32 %v1775_v35, %v1663_v43  ;;  %v729_v43 = vld [vmem:[#allocation2 + $0xe0] sm:$0xff] }
 0x1ea   : > { %v1555_v9 = vpop.f32.mrf.mxu1  ;;  %v1894_v23 = vpop.f32.mrf.mxu0 }
 0x1eb   : > { %v3580_v48 = vadd.f32 %v1888_v58, %v1776_v30  ;;  %2068 = vmatmul.f32.gmra.mxu2 %v726_v42  ;;  %v1556_v58 = vadd.f32 %v1555_v9, %v3366_v49  ;;  %v793_v42 = vld [vmem:[#allocation2 + $0xe1] sm:$0xff]  ;;  %v858_v9 = vld [vmem:[#allocation2 + $0xf2] sm:$0xff] }
 0x1ec   : > { %2181 = vmatmul.f32.gmra.mxu3 %v790_v51 }
 0x1ed   : > { %1958 = vmatmul.f32.gmra.mxu1 %v853_v53  ;;  %2297 = vmatmul.f32.gmra.mxu0 %v855_v27 }
 0x1ee   : > { %v1665_v29 = vpop.f32.mrf.mxu2 }
 0x1ef   : > { %v1666_v20 = vadd.f32 %v1665_v29, %v1553_v37  ;;  %v1778_v3 = vpop.f32.mrf.mxu3 }
 0x1f1   : > { %v1779_v47 = vadd.f32 %v1778_v3, %v1666_v20  ;;  %v730_v20 = vld [vmem:[#allocation2 + $0xf0] sm:$0xff] }
 0x1f2   : > { %v1558_v25 = vpop.f32.mrf.mxu1  ;;  %v1897_v8 = vpop.f32.mrf.mxu0 }
 0x1f3   : > { %v3583_v0 = vadd.f32 %v1891_v21, %v1779_v47  ;;  %2071 = vmatmul.f32.gmra.mxu2 %v727_v12  ;;  %v1559_v21 = vadd.f32 %v1558_v25, %v3383_v2  ;;  %v794_v12 = vld [vmem:[#allocation2 + $0xf1] sm:$0xff]  ;;  %v859_v25 = vld [vmem:[#allocation2 + $0xfa] sm:$0xff] }
 0x1f4   : > { %2184 = vmatmul.f32.gmra.mxu3 %v791_v11 }
 0x1f5   : > { %1961 = vmatmul.f32.gmra.mxu1 %v854_v13  ;;  %2300 = vmatmul.f32.gmra.mxu0 %v856_v14 }
 0x1f6   : > { %v1668_v34 = vpop.f32.mrf.mxu2 }
 0x1f7   : > { %v1669_v53 = vadd.f32 %v1668_v34, %v1556_v58  ;;  %v1781_v10 = vpop.f32.mrf.mxu3 }
 0x1f9   : > { %v1782_v6 = vadd.f32 %v1781_v10, %v1669_v53  ;;  %v731_v53 = vld [vmem:[#allocation2 + $0xf8] sm:$0xff] }
 0x1fa   : > { %v1561_v62 = vpop.f32.mrf.mxu1  ;;  %v1900_v5 = vpop.f32.mrf.mxu0 }
 0x1fb   : > { %v3586_v18 = vadd.f32 %v1894_v23, %v1782_v6  ;;  %2074 = vmatmul.f32.gmra.mxu2 %v728_v60  ;;  %v1562_v23 = vadd.f32 %v1561_v62, %v3396_v45  ;;  %v795_v60 = vld [vmem:[#allocation2 + $0xf9] sm:$0xff]  ;;  %v860_v62 = vld [vmem:[#allocation2 + $0x10a] sm:$0xff] }
 0x1fc   : > { %2187 = vmatmul.f32.gmra.mxu3 %v792_v41 }
 0x1fd   : > { %1964 = vmatmul.f32.gmra.mxu1 %v855_v27  ;;  %2303 = vmatmul.f32.gmra.mxu0 %v857_v1 }
 0x1fe   : > { %v1671_v49 = vpop.f32.mrf.mxu2 }
 0x1ff   : > { %v1672_v13 = vadd.f32 %v1671_v49, %v1559_v21  ;;  %v1784_v36 = vpop.f32.mrf.mxu3 }
 0x201   : > { %v1785_v35 = vadd.f32 %v1784_v36, %v1672_v13  ;;  %v732_v13 = vld [vmem:[#allocation2 + $0x108] sm:$0xff] }
 0x202   : > { %v1920_v30 = vpop.f32.mrf.mxu1  ;;  %v2259_v51 = vpop.f32.mrf.mxu0 }
 0x203   : > { %v3589_v37 = vadd.f32 %v1897_v8, %v1785_v35  ;;  %2077 = vmatmul.f32.gmra.mxu2 %v729_v43  ;;  %v1921_v8 = vadd.f32 %v1920_v30, %v3411_v22  ;;  %v796_v43 = vld [vmem:[#allocation2 + $0x109] sm:$0xff]  ;;  %v861_v30 = vld [vmem:[#allocation2 + $0x112] sm:$0xff] }
 0x204   : > { %2190 = vmatmul.f32.gmra.mxu3 %v793_v42 }
 0x205   : > { %1967 = vmatmul.f32.gmra.mxu1 %v856_v14  ;;  %2306 = vmatmul.f32.gmra.mxu0 %v858_v9 }
 0x206   : > { %v1674_v2 = vpop.f32.mrf.mxu2 }
 0x207   : > { %v1675_v27 = vadd.f32 %v1674_v2, %v1562_v23  ;;  %v1787_v29 = vpop.f32.mrf.mxu3 }
 0x209   : > { %v1788_v3 = vadd.f32 %v1787_v29, %v1675_v27 }
 0x20a   : > { %v1923_v47 = vpop.f32.mrf.mxu1  ;;  %v2262_v11 = vpop.f32.mrf.mxu0 }
 0x20b   : > { %v3593_v58 = vadd.f32 %v1900_v5, %v1788_v3  ;;  %2080 = vmatmul.f32.gmra.mxu2 %v730_v20  ;;  %v1924_v22 = vadd.f32 %v1923_v47, %v3420_v40 }
 0x20c   : > { %2193 = vmatmul.f32.gmra.mxu3 %v794_v12  ;;  %v733_v12 = vld [vmem:[#allocation2 + $0x110] sm:$0xff] }
 0x20d   : > { %1970 = vmatmul.f32.gmra.mxu1 %v857_v1  ;;  %2309 = vmatmul.f32.gmra.mxu0 %v859_v25 }
 0x20e   : > { %v2033_v45 = vpop.f32.mrf.mxu2 }
 0x20f   : > { %v2034_v14 = vadd.f32 %v2033_v45, %v1921_v8  ;;  %v2146_v34 = vpop.f32.mrf.mxu3  ;;  %v797_v8 = vld [vmem:[#allocation2 + $0x111] sm:$0xff] }
 0x211   : > { %v2147_v10 = vadd.f32 %v2146_v34, %v2034_v14  ;;  %v862_v14 = vld [vmem:[#allocation2 + $0x122] sm:$0xff] }
 0x212   : > { %v1926_v6 = vpop.f32.mrf.mxu1  ;;  %v2265_v41 = vpop.f32.mrf.mxu0 }
 0x213   : > { %v2260_v5 = vadd.f32 %v2259_v51, %v2147_v10  ;;  %2083 = vmatmul.f32.gmra.mxu2 %v731_v53  ;;  %v1927_v51 = vadd.f32 %v1926_v6, %v3435_v33 }
 0x214   : > { %2196 = vmatmul.f32.gmra.mxu3 %v795_v60 }
 0x215   : > { %2355 = vst [vmem:[%s3599_s9] sm:$0xff] %v2260_v5  ;;  %1973 = vmatmul.f32.gmra.mxu1 %v858_v9  ;;  %2312 = vmatmul.f32.gmra.mxu0 %v860_v62  ;;  %v2424_v2 = vmul.f32 %v2260_v5, %v2260_v5 }
 0x216   : > { %v2036_v1 = vpop.f32.mrf.mxu2 }
 0x217   : > { %v2037_v21 = vadd.f32 %v2036_v1, %v1924_v22  ;;  %v2149_v49 = vpop.f32.mrf.mxu3  ;;  %v734_v22 = vld [vmem:[#allocation2 + $0x120] sm:$0xff] }
 0x219   : > { %v2150_v36 = vadd.f32 %v2149_v49, %v2037_v21  ;;  %v798_v21 = vld [vmem:[#allocation2 + $0x121] sm:$0xff] }
 0x21a   : > { %v1929_v35 = vpop.f32.mrf.mxu1  ;;  %v2268_v42 = vpop.f32.mrf.mxu0 }
 0x21b   : > { %v2263_v23 = vadd.f32 %v2262_v11, %v2150_v36  ;;  %2086 = vmatmul.f32.gmra.mxu2 %v732_v13  ;;  %v1930_v33 = vadd.f32 %v1929_v35, %v3444_v59 }
 0x21c   : > { %2199 = vmatmul.f32.gmra.mxu3 %v796_v43 }
 0x21d   : > { %2356 = vst [vmem:[%s3599_s9 + $0x8] sm:$0xff] %v2263_v23  ;;  %v2387_v40 = vadd.f32 %v2263_v23, %v2260_v5  ;;  %v2425_v9 = vmul.f32 %v2263_v23, %v2263_v23  ;;  %1976 = vmatmul.f32.gmra.mxu1 %v859_v25  ;;  %2315 = vmatmul.f32.gmra.mxu0 %v861_v30 }
 0x21e   : > { %v2039_v27 = vpop.f32.mrf.mxu2 }
 0x21f   : > { %v2456_v29 = vadd.f32 %v2425_v9, %v2424_v2  ;;  %v2040_v20 = vadd.f32 %v2039_v27, %v1927_v51  ;;  %v2152_v3 = vpop.f32.mrf.mxu3  ;;  %v799_v27 = vld [vmem:[#allocation2 + $0x129] sm:$0xff] }
 0x221   : > { %v2153_v47 = vadd.f32 %v2152_v3, %v2040_v20 }
 0x222   : > { %v1932_v45 = vpop.f32.mrf.mxu1  ;;  %v2271_v11 = vpop.f32.mrf.mxu0 }
 0x223   : > { %v2266_v34 = vadd.f32 %v2265_v41, %v2153_v47  ;;  %2089 = vmatmul.f32.gmra.mxu2 %v733_v12  ;;  %v863_v41 = vld [vmem:[#allocation2 + $0x12a] sm:$0xff]  ;;  %v1933_v59 = vadd.f32 %v1932_v45, %v3459_v56 }
 0x224   : > { %2202 = vmatmul.f32.gmra.mxu3 %v797_v8 }
 0x225   : > { %2357 = vst [vmem:[%s3599_s9 + $0x10] sm:$0xff] %v2266_v34  ;;  %v2388_v53 = vadd.f32 %v2387_v40, %v2266_v34  ;;  %v2426_v25 = vmul.f32 %v2266_v34, %v2266_v34  ;;  %1979 = vmatmul.f32.gmra.mxu1 %v860_v62  ;;  %2318 = vmatmul.f32.gmra.mxu0 %v862_v14  ;;  %v735_v40 = vld [vmem:[#allocation2 + $0x128] sm:$0xff] }
 0x226   : > { %v2042_v10 = vpop.f32.mrf.mxu2 }
 0x227   : > { %v2457_v60 = vadd.f32 %v2456_v29, %v2426_v25  ;;  %v2043_v6 = vadd.f32 %v2042_v10, %v1930_v33  ;;  %v2155_v5 = vpop.f32.mrf.mxu3  ;;  %v736_v33 = vld [vmem:[#allocation2 + $0x138] sm:$0xff] }
 0x228   : > { %v800_v25 = vld [vmem:[#allocation2 + $0x139] sm:$0xff] }
 0x229   : > { %v2156_v1 = vadd.f32 %v2155_v5, %v2043_v6 }
 0x22a   : > { %v1935_v49 = vpop.f32.mrf.mxu1  ;;  %v2274_v13 = vpop.f32.mrf.mxu0 }
 0x22b   : > { %v2269_v36 = vadd.f32 %v2268_v42, %v2156_v1  ;;  %2092 = vmatmul.f32.gmra.mxu2 %v734_v22  ;;  %v864_v42 = vld [vmem:[#allocation2 + $0x13a] sm:$0xff]  ;;  %v1936_v56 = vadd.f32 %v1935_v49, %v3467_v63 }
 0x22c   : > { %2205 = vmatmul.f32.gmra.mxu3 %v798_v21 }
 0x22d   : > { %2358 = vst [vmem:[%s3599_s9 + $0x18] sm:$0xff] %v2269_v36  ;;  %v2389_v43 = vadd.f32 %v2388_v53, %v2269_v36  ;;  %v2427_v62 = vmul.f32 %v2269_v36, %v2269_v36  ;;  %1982 = vmatmul.f32.gmra.mxu1 %v861_v30  ;;  %2321 = vmatmul.f32.gmra.mxu0 %v863_v41  ;;  %v737_v36 = vld [vmem:[#allocation2 + $0x140] sm:$0xff] }
 0x22e   : > { %v2045_v35 = vpop.f32.mrf.mxu2 }
 0x22f   : > { %v2458_v23 = vadd.f32 %v2457_v60, %v2427_v62  ;;  %v2046_v51 = vadd.f32 %v2045_v35, %v1933_v59  ;;  %v2158_v2 = vpop.f32.mrf.mxu3 }
 0x231   : > { %v2159_v9 = vadd.f32 %v2158_v2, %v2046_v51 }
 0x232   : > { %v1938_v29 = vpop.f32.mrf.mxu1  ;;  %v2277_v20 = vpop.f32.mrf.mxu0 }
 0x233   : > { %v2272_v3 = vadd.f32 %v2271_v11, %v2159_v9  ;;  %2095 = vmatmul.f32.gmra.mxu2 %v735_v40  ;;  %v865_v11 = vld [vmem:[#allocation2 + $0x142] sm:$0xff]  ;;  %v1939_v63 = vadd.f32 %v1938_v29, %v3480_v26  ;;  %v738_v29 = vld [vmem:[#allocation2 + $0x150] sm:$0xff] }
 0x234   : > { %2208 = vmatmul.f32.gmra.mxu3 %v799_v27 }
 0x235   : > { %2359 = vst [vmem:[%s3599_s9 + $0x20] sm:$0xff] %v2272_v3  ;;  %v2390_v12 = vadd.f32 %v2389_v43, %v2272_v3  ;;  %v2428_v30 = vmul.f32 %v2272_v3, %v2272_v3  ;;  %1985 = vmatmul.f32.gmra.mxu1 %v862_v14  ;;  %2324 = vmatmul.f32.gmra.mxu0 %v864_v42  ;;  %v801_v43 = vld [vmem:[#allocation2 + $0x141] sm:$0xff] }
 0x236   : > { %v2048_v47 = vpop.f32.mrf.mxu2 }
 0x237   : > { %v2459_v8 = vadd.f32 %v2458_v23, %v2428_v30  ;;  %v2049_v45 = vadd.f32 %v2048_v47, %v1936_v56  ;;  %v2161_v34 = vpop.f32.mrf.mxu3  ;;  %v802_v56 = vld [vmem:[#allocation2 + $0x151] sm:$0xff] }
 0x239   : > { %v2162_v53 = vadd.f32 %v2161_v34, %v2049_v45 }
 0x23a   : > { %v1941_v10 = vpop.f32.mrf.mxu1  ;;  %v2280_v60 = vpop.f32.mrf.mxu0 }
 0x23b   : > { %v2275_v6 = vadd.f32 %v2274_v13, %v2162_v53  ;;  %2098 = vmatmul.f32.gmra.mxu2 %v736_v33  ;;  %v866_v13 = vld [vmem:[#allocation2 + $0x152] sm:$0xff]  ;;  %v1942_v26 = vadd.f32 %v1941_v10, %v3486_v19 }
 0x23c   : > { %2211 = vmatmul.f32.gmra.mxu3 %v800_v25  ;;  %v739_v25 = vld [vmem:[#allocation2 + $0x158] sm:$0xff] }
 0x23d   : > { %2360 = vst [vmem:[%s3599_s9 + $0x28] sm:$0xff] %v2275_v6  ;;  %v2391_v5 = vadd.f32 %v2390_v12, %v2275_v6  ;;  %v2429_v14 = vmul.f32 %v2275_v6, %v2275_v6  ;;  %1988 = vmatmul.f32.gmra.mxu1 %v863_v41  ;;  %2327 = vmatmul.f32.gmra.mxu0 %v865_v11  ;;  %v803_v6 = vld [vmem:[#allocation2 + $0x159] sm:$0xff] }
 0x23e   : > { %v2051_v22 = vpop.f32.mrf.mxu2 }
 0x23f   : > { %v2460_v1 = vadd.f32 %v2459_v8, %v2429_v14  ;;  %v2052_v21 = vadd.f32 %v2051_v22, %v1939_v63  ;;  %v2164_v49 = vpop.f32.mrf.mxu3 }
 0x241   : > { %v2165_v59 = vadd.f32 %v2164_v49, %v2052_v21 }
 0x242   : > { %v1944_v62 = vpop.f32.mrf.mxu1  ;;  %v2283_v35 = vpop.f32.mrf.mxu0 }
 0x243   : > { %v2278_v23 = vadd.f32 %v2277_v20, %v2165_v59  ;;  %2101 = vmatmul.f32.gmra.mxu2 %v737_v36  ;;  %v867_v20 = vld [vmem:[#allocation2 + $0x15a] sm:$0xff]  ;;  %v1945_v19 = vadd.f32 %v1944_v62, %v3498_v16  ;;  %v740_v59 = vld [vmem:[#allocation2 + $0x168] sm:$0xff] }
 0x244   : > { %2214 = vmatmul.f32.gmra.mxu3 %v801_v43  ;;  %v804_v62 = vld [vmem:[#allocation2 + $0x169] sm:$0xff] }
 0x245   : > { %2361 = vst [vmem:[%s3599_s9 + $0x30] sm:$0xff] %v2278_v23  ;;  %v2392_v51 = vadd.f32 %v2391_v5, %v2278_v23  ;;  %v2430_v41 = vmul.f32 %v2278_v23, %v2278_v23  ;;  %1991 = vmatmul.f32.gmra.mxu1 %v864_v42  ;;  %2330 = vmatmul.f32.gmra.mxu0 %v866_v13 }
 0x246   : > { %v2054_v2 = vpop.f32.mrf.mxu2 }
 0x247   : > { %v2461_v40 = vadd.f32 %v2460_v1, %v2430_v41  ;;  %v2055_v9 = vadd.f32 %v2054_v2, %v1942_v26  ;;  %v2167_v27 = vpop.f32.mrf.mxu3 }
 0x249   : > { %v2168_v3 = vadd.f32 %v2167_v27, %v2055_v9 }
 0x24a   : > { %v1947_v12 = vpop.f32.mrf.mxu1  ;;  %v2286_v30 = vpop.f32.mrf.mxu0 }
 0x24b   : > { %v2281_v47 = vadd.f32 %v2280_v60, %v2168_v3  ;;  %2104 = vmatmul.f32.gmra.mxu2 %v738_v29  ;;  %v868_v60 = vld [vmem:[#allocation2 + $0x16a] sm:$0xff]  ;;  %v1948_v16 = vadd.f32 %v1947_v12, %v3508_v54 }
 0x24c   : > { %2217 = vmatmul.f32.gmra.mxu3 %v802_v56  ;;  %v741_v29 = vld [vmem:[#allocation2 + $0x170] sm:$0xff] }
 0x24d   : > { %2362 = vst [vmem:[%s3599_s9 + $0x38] sm:$0xff] %v2281_v47  ;;  %v2393_v8 = vadd.f32 %v2392_v51, %v2281_v47  ;;  %v2431_v42 = vmul.f32 %v2281_v47, %v2281_v47  ;;  %1994 = vmatmul.f32.gmra.mxu1 %v865_v11  ;;  %2333 = vmatmul.f32.gmra.mxu0 %v867_v20  ;;  %v805_v56 = vld [vmem:[#allocation2 + $0x171] sm:$0xff] }
 0x24e   : > { %v2057_v45 = vpop.f32.mrf.mxu2 }
 0x24f   : > { %v2462_v34 = vadd.f32 %v2461_v40, %v2431_v42  ;;  %v2058_v33 = vadd.f32 %v2057_v45, %v1945_v19  ;;  %v2170_v53 = vpop.f32.mrf.mxu3 }
 0x251   : > { %v2171_v10 = vadd.f32 %v2170_v53, %v2058_v33  ;;  %v742_v53 = vld [vmem:[#allocation2 + $0x180] sm:$0xff] }
 0x252   : > { %v1950_v63 = vpop.f32.mrf.mxu1  ;;  %v2289_v5 = vpop.f32.mrf.mxu0 }
 0x253   : > { %v2284_v14 = vadd.f32 %v2283_v35, %v2171_v10  ;;  %2107 = vmatmul.f32.gmra.mxu2 %v739_v25  ;;  %v869_v35 = vld [vmem:[#allocation2 + $0x172] sm:$0xff]  ;;  %v1951_v54 = vadd.f32 %v1950_v63, %v3524_v7  ;;  %v806_v10 = vld [vmem:[#allocation2 + $0x181] sm:$0xff] }
 0x254   : > { %2220 = vmatmul.f32.gmra.mxu3 %v803_v6 }
 0x255   : > { %2363 = vst [vmem:[%s3599_s9 + $0x40] sm:$0xff] %v2284_v14  ;;  %v2394_v22 = vadd.f32 %v2393_v8, %v2284_v14  ;;  %v2432_v11 = vmul.f32 %v2284_v14, %v2284_v14  ;;  %1997 = vmatmul.f32.gmra.mxu1 %v866_v13  ;;  %2336 = vmatmul.f32.gmra.mxu0 %v868_v60 }
 0x256   : > { %v2060_v1 = vpop.f32.mrf.mxu2 }
 0x257   : > { %v2463_v21 = vadd.f32 %v2462_v34, %v2432_v11  ;;  %v2061_v49 = vadd.f32 %v2060_v1, %v1948_v16  ;;  %v2173_v36 = vpop.f32.mrf.mxu3 }
 0x259   : > { %v2174_v43 = vadd.f32 %v2173_v36, %v2061_v49  ;;  %v743_v49 = vld [vmem:[#allocation2 + $0x188] sm:$0xff] }
 0x25a   : > { %v1953_v23 = vpop.f32.mrf.mxu1  ;;  %v2292_v26 = vpop.f32.mrf.mxu0 }
 0x25b   : > { %v2287_v51 = vadd.f32 %v2286_v30, %v2174_v43  ;;  %2110 = vmatmul.f32.gmra.mxu2 %v740_v59  ;;  %v870_v30 = vld [vmem:[#allocation2 + $0x182] sm:$0xff]  ;;  %v1954_v7 = vadd.f32 %v1953_v23, %v3530_v38  ;;  %v872_v23 = vld [vmem:[#allocation2 + $0x19a] sm:$0xff] }
 0x25c   : > { %2223 = vmatmul.f32.gmra.mxu3 %v804_v62  ;;  %v807_v59 = vld [vmem:[#allocation2 + $0x189] sm:$0xff] }
 0x25d   : > { %2364 = vst [vmem:[%s3599_s9 + $0x48] sm:$0xff] %v2287_v51  ;;  %v2395_v41 = vadd.f32 %v2394_v22, %v2287_v51  ;;  %v2433_v13 = vmul.f32 %v2287_v51, %v2287_v51  ;;  %2000 = vmatmul.f32.gmra.mxu1 %v867_v20  ;;  %2339 = vmatmul.f32.gmra.mxu0 %v869_v35 }
 0x25e   : > { %v2063_v2 = vpop.f32.mrf.mxu2 }
 0x25f   : > { %v2464_v40 = vadd.f32 %v2463_v21, %v2433_v13  ;;  %v2064_v9 = vadd.f32 %v2063_v2, %v1951_v54  ;;  %v2176_v27 = vpop.f32.mrf.mxu3 }
 0x261   : > { %v2177_v3 = vadd.f32 %v2176_v27, %v2064_v9  ;;  %v808_v9 = vld [vmem:[#allocation2 + $0x199] sm:$0xff] }
 0x262   : > { %v1956_v12 = vpop.f32.mrf.mxu1  ;;  %v2295_v47 = vpop.f32.mrf.mxu0 }
 0x263   : > { %v2290_v19 = vadd.f32 %v2289_v5, %v2177_v3  ;;  %2113 = vmatmul.f32.gmra.mxu2 %v741_v29  ;;  %v871_v5 = vld [vmem:[#allocation2 + $0x18a] sm:$0xff]  ;;  %v1957_v38 = vadd.f32 %v1956_v12, %v3533_v61  ;;  %v873_v3 = vld [vmem:[#allocation2 + $0x1a2] sm:$0xff] }
 0x264   : > { %2226 = vmatmul.f32.gmra.mxu3 %v805_v56  ;;  %v2653_v12 = vld [vmem:[#allocation2] sm:$0xff] }
 0x265   : > { %2365 = vst [vmem:[%s3599_s9 + $0x50] sm:$0xff] %v2290_v19  ;;  %v2396_v8 = vadd.f32 %v2395_v41, %v2290_v19  ;;  %v2434_v20 = vmul.f32 %v2290_v19, %v2290_v19  ;;  %2003 = vmatmul.f32.gmra.mxu1 %v868_v60  ;;  %2342 = vmatmul.f32.gmra.mxu0 %v870_v30 }
 0x266   : > { %v2066_v42 = vpop.f32.mrf.mxu2 }
 0x267   : > { %v2465_v45 = vadd.f32 %v2464_v40, %v2434_v20  ;;  %v2067_v34 = vadd.f32 %v2066_v42, %v1954_v7  ;;  %v2179_v33 = vpop.f32.mrf.mxu3 }
 0x269   : > { %v2180_v25 = vadd.f32 %v2179_v33, %v2067_v34 }
 0x26a   : > { %v1959_v6 = vpop.f32.mrf.mxu1  ;;  %v2298_v63 = vpop.f32.mrf.mxu0 }
 0x26b   : > { %v2293_v14 = vadd.f32 %v2292_v26, %v2180_v25  ;;  %2116 = vmatmul.f32.gmra.mxu2 %v742_v53  ;;  %v1960_v61 = vadd.f32 %v1959_v6, %v3537_v28 }
 0x26c   : > { %2229 = vmatmul.f32.gmra.mxu3 %v806_v10 }
 0x26d   : > { %2366 = vst [vmem:[%s3599_s9 + $0x58] sm:$0xff] %v2293_v14  ;;  %v2397_v16 = vadd.f32 %v2396_v8, %v2293_v14  ;;  %v2435_v60 = vmul.f32 %v2293_v14, %v2293_v14  ;;  %2006 = vmatmul.f32.gmra.mxu1 %v869_v35  ;;  %2345 = vmatmul.f32.gmra.mxu0 %v871_v5 }
 0x26e   : > { %v2069_v22 = vpop.f32.mrf.mxu2 }
 0x26f   : > { %v2466_v11 = vadd.f32 %v2465_v45, %v2435_v60  ;;  %v2070_v1 = vadd.f32 %v2069_v22, %v1957_v38  ;;  %v2182_v21 = vpop.f32.mrf.mxu3  ;;  %v809_v45 = vld [vmem:[#allocation2 + $0x1a1] sm:$0xff] }
 0x271   : > { %v2183_v36 = vadd.f32 %v2182_v21, %v2070_v1 }
 0x272   : > { %v1962_v43 = vpop.f32.mrf.mxu1  ;;  %v2301_v62 = vpop.f32.mrf.mxu0 }
 0x273   : > { %v2296_v26 = vadd.f32 %v2295_v47, %v2183_v36  ;;  %2119 = vmatmul.f32.gmra.mxu2 %v743_v49  ;;  %v1963_v28 = vadd.f32 %v1962_v43, %v3541_v44 }
 0x274   : > { %2232 = vmatmul.f32.gmra.mxu3 %v807_v59 }
 0x275   : > { %2367 = vst [vmem:[%s3599_s9 + $0x60] sm:$0xff] %v2296_v26  ;;  %v2398_v51 = vadd.f32 %v2397_v16, %v2296_v26  ;;  %v2436_v35 = vmul.f32 %v2296_v26, %v2296_v26  ;;  %2009 = vmatmul.f32.gmra.mxu1 %v870_v30  ;;  %2348 = vmatmul.f32.gmra.mxu0 %v872_v23 }
 0x276   : > { %v2072_v54 = vpop.f32.mrf.mxu2 }
 0x277   : > { %v2467_v41 = vadd.f32 %v2466_v11, %v2436_v35  ;;  %v2073_v13 = vadd.f32 %v2072_v54, %v1960_v61  ;;  %v2185_v2 = vpop.f32.mrf.mxu3 }
 0x279   : > { %v2186_v40 = vadd.f32 %v2185_v2, %v2073_v13 }
 0x27a   : > { %v1965_v27 = vpop.f32.mrf.mxu1  ;;  %v2304_v29 = vpop.f32.mrf.mxu0 }
 0x27b   : > { %v2299_v56 = vadd.f32 %v2298_v63, %v2186_v40  ;;  %2122 = vmatmul.f32.gmra.mxu2 %v2653_v12  ;;  %v1966_v44 = vadd.f32 %v1965_v27, %v3544_v46 }
 0x27c   : > { %2235 = vmatmul.f32.gmra.mxu3 %v808_v9 }
 0x27d   : > { %2368 = vst [vmem:[%s3599_s9 + $0x68] sm:$0xff] %v2299_v56  ;;  %v2399_v47 = vadd.f32 %v2398_v51, %v2299_v56  ;;  %v2437_v30 = vmul.f32 %v2299_v56, %v2299_v56  ;;  %2012 = vmatmul.f32.gmra.mxu1 %v871_v5  ;;  %2351 = vmatmul.f32.gmra.mxu0 %v873_v3 }
 0x27e   : > { %v2075_v19 = vpop.f32.mrf.mxu2 }
 0x27f   : > { %v2468_v7 = vadd.f32 %v2467_v41, %v2437_v30  ;;  %v2076_v8 = vadd.f32 %v2075_v19, %v1963_v28  ;;  %v2188_v20 = vpop.f32.mrf.mxu3 }
 0x281   : > { %v2189_v42 = vadd.f32 %v2188_v20, %v2076_v8 }
 0x282   : > { %v1968_v34 = vpop.f32.mrf.mxu1  ;;  %v2307_v33 = vpop.f32.mrf.mxu0 }
 0x283   : > { %v2302_v53 = vadd.f32 %v2301_v62, %v2189_v42  ;;  %2125 = vmatmul.f32.gmra.mxu2 %v2653_v12  ;;  %v1969_v11 = vadd.f32 %v1968_v34, %v3547_v24 }
 0x284   : > { %2238 = vmatmul.f32.gmra.mxu3 %v809_v45 }
 0x285   : > { %2369 = vst [vmem:[%s3599_s9 + $0x70] sm:$0xff] %v2302_v53  ;;  %v2400_v25 = vadd.f32 %v2399_v47, %v2302_v53  ;;  %v2438_v10 = vmul.f32 %v2302_v53, %v2302_v53 }
 0x286   : > { %v2078_v6 = vpop.f32.mrf.mxu2 }
 0x287   : > { %v2469_v63 = vadd.f32 %v2468_v7, %v2438_v10  ;;  %v2079_v5 = vadd.f32 %v2078_v6, %v1966_v44  ;;  %v2191_v14 = vpop.f32.mrf.mxu3 }
 0x289   : > { %v2192_v38 = vadd.f32 %v2191_v14, %v2079_v5 }
 0x28a   : > { %v1971_v16 = vpop.f32.mrf.mxu1  ;;  %v2310_v60 = vpop.f32.mrf.mxu0 }
 0x28b   : > { %v2305_v22 = vadd.f32 %v2304_v29, %v2192_v38  ;;  %v1972_v61 = vadd.f32 %v1971_v16, %v3550_v39 }
 0x28d   : > { %2370 = vst [vmem:[%s3599_s9 + $0x78] sm:$0xff] %v2305_v22  ;;  %v2401_v1 = vadd.f32 %v2400_v25, %v2305_v22  ;;  %v2439_v21 = vmul.f32 %v2305_v22, %v2305_v22 }
 0x28e   : > { %v2081_v49 = vpop.f32.mrf.mxu2 }
 0x28f   : > { %v2470_v36 = vadd.f32 %v2469_v63, %v2439_v21  ;;  %v2082_v46 = vadd.f32 %v2081_v49, %v1969_v11  ;;  %v2194_v59 = vpop.f32.mrf.mxu3 }
 0x291   : > { %v2195_v43 = vadd.f32 %v2194_v59, %v2082_v46 }
 0x292   : > { %v1974_v62 = vpop.f32.mrf.mxu1  ;;  %v2313_v23 = vpop.f32.mrf.mxu0 }
 0x293   : > { %v2308_v26 = vadd.f32 %v2307_v33, %v2195_v43  ;;  %v1975_v29 = vadd.f32 %v1974_v62, %v3553_v52 }
 0x295   : > { %2371 = vst [vmem:[%s3599_s9 + $0x80] sm:$0xff] %v2308_v26  ;;  %v2402_v51 = vadd.f32 %v2401_v1, %v2308_v26  ;;  %v2440_v35 = vmul.f32 %v2308_v26, %v2308_v26 }
 0x296   : > { %v2084_v54 = vpop.f32.mrf.mxu2 }
 0x297   : > { %v2471_v41 = vadd.f32 %v2470_v36, %v2440_v35  ;;  %v2085_v24 = vadd.f32 %v2084_v54, %v1972_v61  ;;  %v2197_v13 = vpop.f32.mrf.mxu3 }
 0x299   : > { %v2198_v2 = vadd.f32 %v2197_v13, %v2085_v24 }
 0x29a   : > { %v1977_v40 = vpop.f32.mrf.mxu1  ;;  %v2316_v9 = vpop.f32.mrf.mxu0 }
 0x29b   : > { %v2311_v27 = vadd.f32 %v2310_v60, %v2198_v2  ;;  %v1978_v20 = vadd.f32 %v1977_v40, %v3556_v17 }
 0x29d   : > { %2372 = vst [vmem:[%s3599_s9 + $0x88] sm:$0xff] %v2311_v27  ;;  %v2403_v3 = vadd.f32 %v2402_v51, %v2311_v27  ;;  %v2441_v56 = vmul.f32 %v2311_v27, %v2311_v27 }
 0x29e   : > { %v2087_v12 = vpop.f32.mrf.mxu2 }
 0x29f   : > { %v2472_v28 = vadd.f32 %v2471_v41, %v2441_v56  ;;  %v2088_v39 = vadd.f32 %v2087_v12, %v1975_v29  ;;  %v2200_v47 = vpop.f32.mrf.mxu3 }
 0x2a1   : > { %v2201_v30 = vadd.f32 %v2200_v47, %v2088_v39 }
 0x2a2   : > { %v1980_v19 = vpop.f32.mrf.mxu1  ;;  %v2319_v7 = vpop.f32.mrf.mxu0 }
 0x2a3   : > { %v2314_v8 = vadd.f32 %v2313_v23, %v2201_v30  ;;  %v1981_v63 = vadd.f32 %v1980_v19, %v3559_v4 }
 0x2a5   : > { %2373 = vst [vmem:[%s3599_s9 + $0x90] sm:$0xff] %v2314_v8  ;;  %v2404_v42 = vadd.f32 %v2403_v3, %v2314_v8  ;;  %v2442_v45 = vmul.f32 %v2314_v8, %v2314_v8 }
 0x2a6   : > { %v2090_v34 = vpop.f32.mrf.mxu2 }
 0x2a7   : > { %v2473_v33 = vadd.f32 %v2472_v28, %v2442_v45  ;;  %v2091_v52 = vadd.f32 %v2090_v34, %v1978_v20  ;;  %v2203_v53 = vpop.f32.mrf.mxu3 }
 0x2a9   : > { %v2204_v44 = vadd.f32 %v2203_v53, %v2091_v52 }
 0x2aa   : > { %v1983_v25 = vpop.f32.mrf.mxu1  ;;  %v2322_v10 = vpop.f32.mrf.mxu0 }
 0x2ab   : > { %v2317_v6 = vadd.f32 %v2316_v9, %v2204_v44  ;;  %v1984_v49 = vadd.f32 %v1983_v25, %v3562_v15 }
 0x2ad   : > { %2374 = vst [vmem:[%s3599_s9 + $0x98] sm:$0xff] %v2317_v6  ;;  %v2405_v5 = vadd.f32 %v2404_v42, %v2317_v6  ;;  %v2443_v14 = vmul.f32 %v2317_v6, %v2317_v6 }
 0x2ae   : > { %v2093_v38 = vpop.f32.mrf.mxu2 }
 0x2af   : > { %v2474_v16 = vadd.f32 %v2473_v33, %v2443_v14  ;;  %v2094_v17 = vadd.f32 %v2093_v38, %v1981_v63  ;;  %v2206_v60 = vpop.f32.mrf.mxu3 }
 0x2b1   : > { %v2207_v22 = vadd.f32 %v2206_v60, %v2094_v17 }
 0x2b2   : > { %v1986_v11 = vpop.f32.mrf.mxu1  ;;  %v2325_v1 = vpop.f32.mrf.mxu0 }
 0x2b3   : > { %v2320_v21 = vadd.f32 %v2319_v7, %v2207_v22  ;;  %v1987_v35 = vadd.f32 %v1986_v11, %v3565_v57 }
 0x2b5   : > { %2375 = vst [vmem:[%s3599_s9 + $0xa0] sm:$0xff] %v2320_v21  ;;  %v2406_v36 = vadd.f32 %v2405_v5, %v2320_v21  ;;  %v2444_v46 = vmul.f32 %v2320_v21, %v2320_v21 }
 0x2b6   : > { %v2096_v59 = vpop.f32.mrf.mxu2 }
 0x2b7   : > { %v2475_v43 = vadd.f32 %v2474_v16, %v2444_v46  ;;  %v2097_v4 = vadd.f32 %v2096_v59, %v1984_v49  ;;  %v2209_v62 = vpop.f32.mrf.mxu3 }
 0x2b9   : > { %v2210_v23 = vadd.f32 %v2209_v62, %v2097_v4 }
 0x2ba   : > { %v1989_v26 = vpop.f32.mrf.mxu1  ;;  %v2328_v61 = vpop.f32.mrf.mxu0 }
 0x2bb   : > { %v2323_v51 = vadd.f32 %v2322_v10, %v2210_v23  ;;  %v1990_v3 = vadd.f32 %v1989_v26, %v3568_v32 }
 0x2bd   : > { %2376 = vst [vmem:[%s3599_s9 + $0xa8] sm:$0xff] %v2323_v51  ;;  %v2407_v54 = vadd.f32 %v2406_v36, %v2323_v51  ;;  %v2445_v41 = vmul.f32 %v2323_v51, %v2323_v51 }
 0x2be   : > { %v2099_v24 = vpop.f32.mrf.mxu2 }
 0x2bf   : > { %v2476_v13 = vadd.f32 %v2475_v43, %v2445_v41  ;;  %v2100_v15 = vadd.f32 %v2099_v24, %v1987_v35  ;;  %v2212_v2 = vpop.f32.mrf.mxu3 }
 0x2c1   : > { %v2213_v40 = vadd.f32 %v2212_v2, %v2100_v15 }
 0x2c2   : > { %v1992_v9 = vpop.f32.mrf.mxu1  ;;  %v2331_v27 = vpop.f32.mrf.mxu0 }
 0x2c3   : > { %v2326_v29 = vadd.f32 %v2325_v1, %v2213_v40  ;;  %v1993_v20 = vadd.f32 %v1992_v9, %v3571_v55 }
 0x2c5   : > { %2377 = vst [vmem:[%s3599_s9 + $0xb0] sm:$0xff] %v2326_v29  ;;  %v2408_v56 = vadd.f32 %v2407_v54, %v2326_v29  ;;  %v2446_v12 = vmul.f32 %v2326_v29, %v2326_v29 }
 0x2c6   : > { %v2102_v28 = vpop.f32.mrf.mxu2 }
 0x2c7   : > { %v2477_v39 = vadd.f32 %v2476_v13, %v2446_v12  ;;  %v2103_v57 = vadd.f32 %v2102_v28, %v1990_v3  ;;  %v2215_v47 = vpop.f32.mrf.mxu3 }
 0x2c9   : > { %v2216_v30 = vadd.f32 %v2215_v47, %v2103_v57 }
 0x2ca   : > { %v1995_v19 = vpop.f32.mrf.mxu1  ;;  %v2334_v8 = vpop.f32.mrf.mxu0 }
 0x2cb   : > { %v2329_v7 = vadd.f32 %v2328_v61, %v2216_v30  ;;  %v1996_v10 = vadd.f32 %v1995_v19, %v3574_v31 }
 0x2cd   : > { %2378 = vst [vmem:[%s3599_s9 + $0xb8] sm:$0xff] %v2329_v7  ;;  %v2409_v42 = vadd.f32 %v2408_v56, %v2329_v7  ;;  %v2447_v45 = vmul.f32 %v2329_v7, %v2329_v7 }
 0x2ce   : > { %v2105_v34 = vpop.f32.mrf.mxu2 }
 0x2cf   : > { %v2478_v33 = vadd.f32 %v2477_v39, %v2447_v45  ;;  %v2106_v32 = vadd.f32 %v2105_v34, %v1993_v20  ;;  %v2218_v52 = vpop.f32.mrf.mxu3 }
 0x2d1   : > { %v2219_v53 = vadd.f32 %v2218_v52, %v2106_v32 }
 0x2d2   : > { %v1998_v44 = vpop.f32.mrf.mxu1  ;;  %v2337_v14 = vpop.f32.mrf.mxu0 }
 0x2d3   : > { %v2332_v25 = vadd.f32 %v2331_v27, %v2219_v53  ;;  %v1999_v11 = vadd.f32 %v1998_v44, %v3577_v50 }
 0x2d5   : > { %2379 = vst [vmem:[%s3599_s9 + $0xc0] sm:$0xff] %v2332_v25  ;;  %v2410_v6 = vadd.f32 %v2409_v42, %v2332_v25  ;;  %v2448_v63 = vmul.f32 %v2332_v25, %v2332_v25 }
 0x2d6   : > { %v2108_v5 = vpop.f32.mrf.mxu2 }
 0x2d7   : > { %v2479_v38 = vadd.f32 %v2478_v33, %v2448_v63  ;;  %v2109_v55 = vadd.f32 %v2108_v5, %v1996_v10  ;;  %v2221_v16 = vpop.f32.mrf.mxu3 }
 0x2d9   : > { %v2222_v17 = vadd.f32 %v2221_v16, %v2109_v55 }
 0x2da   : > { %v2001_v60 = vpop.f32.mrf.mxu1  ;;  %v2340_v59 = vpop.f32.mrf.mxu0 }
 0x2db   : > { %v2335_v22 = vadd.f32 %v2334_v8, %v2222_v17  ;;  %v2002_v23 = vadd.f32 %v2001_v60, %v3580_v48 }
 0x2dd   : > { %2380 = vst [vmem:[%s3599_s9 + $0xc8] sm:$0xff] %v2335_v22  ;;  %v2411_v1 = vadd.f32 %v2410_v6, %v2335_v22  ;;  %v2449_v21 = vmul.f32 %v2335_v22, %v2335_v22 }
 0x2de   : > { %v2111_v49 = vpop.f32.mrf.mxu2 }
 0x2df   : > { %v2480_v36 = vadd.f32 %v2479_v38, %v2449_v21  ;;  %v2112_v31 = vadd.f32 %v2111_v49, %v1999_v11  ;;  %v2224_v46 = vpop.f32.mrf.mxu3 }
 0x2e1   : > { %v2225_v43 = vadd.f32 %v2224_v46, %v2112_v31 }
 0x2e2   : > { %v2004_v62 = vpop.f32.mrf.mxu1  ;;  %v2343_v24 = vpop.f32.mrf.mxu0 }
 0x2e3   : > { %v2338_v4 = vadd.f32 %v2337_v14, %v2225_v43  ;;  %v2005_v15 = vadd.f32 %v2004_v62, %v3583_v0 }
 0x2e5   : > { %2381 = vst [vmem:[%s3599_s9 + $0xd0] sm:$0xff] %v2338_v4  ;;  %v2412_v26 = vadd.f32 %v2411_v1, %v2338_v4  ;;  %v2450_v61 = vmul.f32 %v2338_v4, %v2338_v4 }
 0x2e6   : > { %v2114_v51 = vpop.f32.mrf.mxu2 }
 0x2e7   : > { %v2481_v35 = vadd.f32 %v2480_v36, %v2450_v61  ;;  %v2115_v50 = vadd.f32 %v2114_v51, %v2002_v23  ;;  %v2227_v54 = vpop.f32.mrf.mxu3 }
 0x2e9   : > { %v2228_v41 = vadd.f32 %v2227_v54, %v2115_v50 }
 0x2ea   : > { %v2007_v27 = vpop.f32.mrf.mxu1  ;;  %v2346_v28 = vpop.f32.mrf.mxu0 }
 0x2eb   : > { %v2341_v13 = vadd.f32 %v2340_v59, %v2228_v41  ;;  %v2008_v39 = vadd.f32 %v2007_v27, %v3586_v18 }
 0x2ed   : > { %2382 = vst [vmem:[%s3599_s9 + $0xd8] sm:$0xff] %v2341_v13  ;;  %v2413_v2 = vadd.f32 %v2412_v26, %v2341_v13  ;;  %v2451_v40 = vmul.f32 %v2341_v13, %v2341_v13 }
 0x2ee   : > { %v2117_v9 = vpop.f32.mrf.mxu2 }
 0x2ef   : > { %v2482_v29 = vadd.f32 %v2481_v35, %v2451_v40  ;;  %v2118_v48 = vadd.f32 %v2117_v9, %v2005_v15  ;;  %v2230_v3 = vpop.f32.mrf.mxu3 }
 0x2f1   : > { %v2231_v56 = vadd.f32 %v2230_v3, %v2118_v48 }
 0x2f2   : > { %v2010_v8 = vpop.f32.mrf.mxu1  ;;  %v2349_v52 = vpop.f32.mrf.mxu0 }
 0x2f3   : > { %v2344_v12 = vadd.f32 %v2343_v24, %v2231_v56  ;;  %v2011_v45 = vadd.f32 %v2010_v8, %v3589_v37 }
 0x2f5   : > { %2383 = vst [vmem:[%s3599_s9 + $0xe0] sm:$0xff] %v2344_v12  ;;  %v2414_v57 = vadd.f32 %v2413_v2, %v2344_v12  ;;  %v2452_v47 = vmul.f32 %v2344_v12, %v2344_v12 }
 0x2f6   : > { %v2120_v30 = vpop.f32.mrf.mxu2 }
 0x2f7   : > { %v2483_v19 = vadd.f32 %v2482_v29, %v2452_v47  ;;  %v2121_v0 = vadd.f32 %v2120_v30, %v2008_v39  ;;  %v2233_v7 = vpop.f32.mrf.mxu3 }
 0x2f9   : > { %v2234_v20 = vadd.f32 %v2233_v7, %v2121_v0 }
 0x2fa   : > { %v2013_v10 = vpop.f32.mrf.mxu1  ;;  %v2352_v17 = vpop.f32.mrf.mxu0 }
 0x2fb   : > { %v2347_v42 = vadd.f32 %v2346_v28, %v2234_v20  ;;  %v2014_v63 = vadd.f32 %v2013_v10, %v3593_v58 }
 0x2fd   : > { %2384 = vst [vmem:[%s3599_s9 + $0xe8] sm:$0xff] %v2347_v42  ;;  %v2415_v34 = vadd.f32 %v2414_v57, %v2347_v42  ;;  %v2453_v33 = vmul.f32 %v2347_v42, %v2347_v42 }
 0x2fe   : > { %v2123_v32 = vpop.f32.mrf.mxu2 }
 0x2ff   : > { %v2484_v53 = vadd.f32 %v2483_v19, %v2453_v33  ;;  %v2124_v18 = vadd.f32 %v2123_v32, %v2011_v45  ;;  %v2236_v44 = vpop.f32.mrf.mxu3 }
 0x301   : > { %v2237_v25 = vadd.f32 %v2236_v44, %v2124_v18 }
 0x303   : > { %v2350_v6 = vadd.f32 %v2349_v52, %v2237_v25 }
 0x305   : > { %2385 = vst [vmem:[%s3599_s9 + $0xf0] sm:$0xff] %v2350_v6  ;;  %v2416_v5 = vadd.f32 %v2415_v34, %v2350_v6  ;;  %v2454_v14 = vmul.f32 %v2350_v6, %v2350_v6 }
 0x306   : > { %v2126_v38 = vpop.f32.mrf.mxu2 }
 0x307   : > { %v2485_v55 = vadd.f32 %v2484_v53, %v2454_v14  ;;  %v2127_v37 = vadd.f32 %v2126_v38, %v2014_v63  ;;  %v2239_v16 = vpop.f32.mrf.mxu3 }
 0x309   : > { %v2240_v60 = vadd.f32 %v2239_v16, %v2127_v37 }
 0x30b   : > { %v2353_v22 = vadd.f32 %v2352_v17, %v2240_v60 }
 0x30d   : > { %2386 = vst [vmem:[%s3599_s9 + $0xf8] sm:$0xff] %v2353_v22  ;;  %v2417_v11 = vadd.f32 %v2416_v5, %v2353_v22  ;;  %v2455_v1 = vmul.f32 %v2353_v22, %v2353_v22 }
 0x30f   : > { %v2418_v21 = vrot.slane %v2417_v11, 4  ;;  %v2486_v49 = vadd.f32 %v2485_v55, %v2455_v1 }
 0x311   : > { %v2419_v36 = vadd.f32 %v2418_v21, %v2417_v11  ;;  %v2487_v31 = vrot.slane %v2486_v49, 4 }
 0x313   : > { %v2420_v46 = vrot.slane %v2419_v36, 2  ;;  %v2488_v58 = vadd.f32 %v2487_v31, %v2486_v49 }
 0x315   : > { %v2421_v59 = vadd.f32 %v2420_v46, %v2419_v36  ;;  %v2489_v43 = vrot.slane %v2488_v58, 2 }
 0x317   : > { %v2422_v4 = vrot.slane %v2421_v59, 1  ;;  %v2490_v62 = vadd.f32 %v2489_v43, %v2488_v58 }
 0x319   : > { %v2491_v23 = vrot.slane %v2490_v62, 1  ;;  %v2423_v26 = vadd.f32 %v2422_v4, %v2421_v59 }
 0x31b   : > { %v2492_v61 = vadd.f32 %v2491_v23, %v2490_v62 }
 0x31d   : > { %v2494_v51 = vsel %vm2493_vm0, %v2423_v26, %v2492_v61 }
 0x31e   : > { %2495 = vst [vmem:[%s209_s13] sm:$0x3] %v2494_v51 }
 0x31f PF: > { %s15_s15 = sadd.s32 1, %s2660_s15  }
 0x320   : > { %p12_p5 = scmp.ge.s32.totalorder %s15_s15, 4  }
 0x322   :  { %14 = sbr.rel (!%p12_p5) target bundleno = 1 (0x1), region = 76 }

</bundles_post_ra>
